<compile_context>
chip_gen: v6e
topology: v6e:2x2x1
jax: 0.10.0
libtpu: 0.0.40
codegen_flags: <defaults>
</compile_context>

<pallas_src>
import functools

import jax
import jax.numpy as jnp
from jax.experimental import pallas as pl
from jax.experimental.pallas import tpu as pltpu


LANES = 128
VMEM_LIMIT = 48 * 1024 * 1024   # below v7x's 64 MiB/TC; plenty for these tiles


def _round_up(x, m):
    return ((x + m - 1) // m) * m


# -------------- fused in-kernel conv (tap accumulation) + batch stats --------

def _conv_stats_kernel(x_ref, w_ref, y_ref, sum_ref, sq_ref, *,
                       ksize, stride, Hq, Ho, Wo):
    """One batch image per grid step.

    x_ref : (1, s*s*Hq, Wq, Cin) bf16  phase-decomposed, spatially padded input
    w_ref : (k, k, Cin, Cp)      bf16  per-tap weight matrices (lane-padded)
    y_ref : (1, Ho*Wo, Cp)       bf16  conv output rows for this image
    sum_ref / sq_ref : (1, 1, Cp) f32  per-image partial batch statistics
    """
    cin = x_ref.shape[-1]
    acc = None
    for dh in range(ksize):
        for dw in range(ksize):
            phase = (dh % stride) * stride + (dw % stride)
            row0 = phase * Hq + dh // stride          # static ints
            col0 = dw // stride
            tap = x_ref[0, row0:row0 + Ho, col0:col0 + Wo, :]   # (Ho, Wo, Cin)
            lhs = tap.reshape(Ho * Wo, cin)
            part = jnp.dot(lhs, w_ref[dh, dw],
                           preferred_element_type=jnp.float32)
            acc = part if acc is None else acc + part
    # bf16 writeback; stats from the f32 accumulator (before the cast).
    y_ref[0] = acc.astype(y_ref.dtype)
    sum_ref[0] = jnp.sum(acc, axis=0, keepdims=True)
    sq_ref[0] = jnp.sum(acc * acc, axis=0, keepdims=True)


def conv2d_stats(x_nhwc, w_oihw, cp, *, stride, pad):
    """k x k conv (stride 1/2, zero pad) with fused per-channel batch stats.

    Returns y [N, Ho*Wo, cp] bf16, mean/var f32 [1, cp], and (N, Ho, Wo).
    """
    N, H, W, Cin = x_nhwc.shape
    O, I, kh, kw = w_oihw.shape
    assert kh == kw
    k = kh
    Ho = (H + 2 * pad - k) // stride + 1
    Wo = (W + 2 * pad - k) // stride + 1
    Hp, Wp = H + 2 * pad, W + 2 * pad
    Hq = (Hp + stride - 1) // stride
    Wq = (Wp + stride - 1) // stride
    ss = stride * stride

    # Single XLA prep pass: cast to bf16 + spatial zero pad (+ tail so the
    # phase split is exact).  ~1x the activation -- the 9x im2col blow-up is gone.
    xp = jnp.pad(x_nhwc.astype(jnp.bfloat16),
                 ((0, 0),
                  (pad, pad + Hq * stride - Hp),
                  (pad, pad + Wq * stride - Wp),
                  (0, 0)))
    if stride == 1:
        phases = xp                                        # (N, Hq, Wq, Cin)
    else:
        # phase (p,q) sub-image holds xp[i*s+p, j*s+q]; flatten (p,q,i) so the
        # kernel's per-tap window is a contiguous static slice.
        phases = xp.reshape(N, Hq, stride, Wq, stride, Cin)
        phases = phases.transpose(0, 2, 4, 1, 3, 5)
        phases = phases.reshape(N, ss * Hq, Wq, Cin)

    # Weights: [O, I, kh, kw] -> [k, k, Cin, cp].  Input channels are zero-padded
    # up to the activation's (possibly lane-padded) channel count, output
    # channels zero-padded to a lane multiple.
    wmat = jnp.transpose(w_oihw, (2, 3, 1, 0))             # (k, k, I, O)
    wmat = jnp.pad(wmat, ((0, 0), (0, 0), (0, Cin - I), (0, cp - O)))
    wmat = wmat.astype(jnp.bfloat16)

    R = Ho * Wo
    kernel = functools.partial(_conv_stats_kernel, ksize=k, stride=stride,
                               Hq=Hq, Ho=Ho, Wo=Wo)
    y, psum, psq = pl.pallas_call(
        kernel,
        out_shape=(jax.ShapeDtypeStruct((N, R, cp), jnp.bfloat16),
                   jax.ShapeDtypeStruct((N, 1, cp), jnp.float32),
                   jax.ShapeDtypeStruct((N, 1, cp), jnp.float32)),
        grid_spec=pltpu.PrefetchScalarGridSpec(
            num_scalar_prefetch=0,
            grid=(N,),
            in_specs=[
                pl.BlockSpec((1, ss * Hq, Wq, Cin), lambda n: (n, 0, 0, 0)),
                pl.BlockSpec((k, k, Cin, cp), lambda n: (0, 0, 0, 0)),
            ],
            out_specs=[
                pl.BlockSpec((1, R, cp), lambda n: (n, 0, 0)),
                pl.BlockSpec((1, 1, cp), lambda n: (n, 0, 0)),
                pl.BlockSpec((1, 1, cp), lambda n: (n, 0, 0)),
            ]),
        compiler_params=pltpu.CompilerParams(
            dimension_semantics=("parallel",),
            vmem_limit_bytes=VMEM_LIMIT),
    )(phases, wmat)

    m_total = float(N * R)                                 # exact (no pad rows)
    total = jnp.sum(psum[:, 0, :], axis=0)
    total_sq = jnp.sum(psq[:, 0, :], axis=0)
    mean = total / m_total
    # NOTE: E[y^2]-E[y]^2 in f32; clamp guards tiny negative round-off.
    var = jnp.maximum(total_sq / m_total - mean * mean, 0.0)
    return y, mean.reshape(1, cp), var.reshape(1, cp), (N, Ho, Wo)


# ----------------- fused BN normalize (+ residual) (+ ReLU) ------------------

def _bn_act_kernel(y_ref, scale_ref, shift_ref, o_ref, *, do_relu):
    out = y_ref[0].astype(jnp.float32) * scale_ref[...] + shift_ref[...]
    if do_relu:
        out = jnp.maximum(out, 0.0)
    o_ref[0] = out.astype(o_ref.dtype)


def _bn_add_act_kernel(y_ref, scale_ref, shift_ref, res_ref, o_ref, *, do_relu):
    out = (y_ref[0].astype(jnp.float32) * scale_ref[...] + shift_ref[...]
           + res_ref[0].astype(jnp.float32))
    if do_relu:
        out = jnp.maximum(out, 0.0)
    o_ref[0] = out.astype(o_ref.dtype)


def bn_act(y, mean, var, gamma, beta, *, eps=1e-5, residual=None, do_relu=True,
           out_dtype=jnp.bfloat16):
    """y, residual, out are bf16 [N, R, cp]; BN math in f32 (v5e-safe)."""
    N, R, cp = y.shape
    scale = (gamma.reshape(1, cp) / jnp.sqrt(var + eps)).astype(jnp.float32)
    shift = (beta.reshape(1, cp) - mean * scale).astype(jnp.float32)
    row_spec = pl.BlockSpec((1, R, cp), lambda n: (n, 0, 0))
    vec_spec = pl.BlockSpec((1, cp), lambda n: (0, 0))
    if residual is None:
        kernel = functools.partial(_bn_act_kernel, do_relu=do_relu)
        in_specs = [row_spec, vec_spec, vec_spec]
        args = (y, scale, shift)
    else:
        kernel = functools.partial(_bn_add_act_kernel, do_relu=do_relu)
        in_specs = [row_spec, vec_spec, vec_spec, row_spec]
        args = (y, scale, shift, residual)
    return pl.pallas_call(
        kernel,
        out_shape=jax.ShapeDtypeStruct((N, R, cp), out_dtype),
        grid_spec=pltpu.PrefetchScalarGridSpec(
            num_scalar_prefetch=0,
            grid=(N,),
            in_specs=in_specs,
            out_specs=row_spec),
        compiler_params=pltpu.CompilerParams(
            dimension_semantics=("parallel",),
            vmem_limit_bytes=VMEM_LIMIT),
    )(*args)


# ------------------------------ block assembly -------------------------------

def conv_bn(x_nhwc, w, gamma, beta, cp, *, stride, pad, relu, residual=None,
            eps=1e-5):
    planes = w.shape[0]
    y, mean, var, (N, Ho, Wo) = conv2d_stats(x_nhwc, w, cp, stride=stride,
                                             pad=pad)
    gamma_p = jnp.pad(gamma, (0, cp - planes))   # padded channels -> scale 0
    beta_p = jnp.pad(beta, (0, cp - planes))
    out = bn_act(y, mean, var, gamma_p, beta_p, eps=eps,
                 residual=residual, do_relu=relu)
    return out, (N, Ho, Wo)


def basic_block_forward(x_nchw, params, stride, eps=1e-5):
    # NCHW <-> NHWC transposes only at the module boundary; when chaining
    # blocks, feed the [N, Ho, Wo, Cp] lane-padded layout straight through.
    x = jnp.transpose(x_nchw, (0, 2, 3, 1))                 # NHWC
    N, H, W, Cin = x.shape
    planes = params["w1"].shape[0]
    cp = _round_up(planes, LANES)

    # conv1 -> bn1 -> relu  (batch stats fused into the conv kernel)
    out1, (_, Ho, Wo) = conv_bn(x, params["w1"], params["g1"], params["b1"],
                                cp, stride=stride, pad=1, relu=True, eps=eps)

    # shortcut: 1x1 projection conv + BN, or identity
    if stride != 1 or Cin != planes:
        sc, _ = conv_bn(x, params["ws"], params["gs"], params["bs"], cp,
                        stride=stride, pad=0, relu=False, eps=eps)
    else:
        sc = jnp.pad(x.astype(jnp.bfloat16).reshape(N, H * W, Cin),
                     ((0, 0), (0, 0), (0, cp - Cin)))

    # conv2 -> bn2 -> (+ shortcut) -> relu.  conv2 takes out1 in its
    # lane-padded channel layout (its weight is zero-padded over the extra
    # input channels), so no channel slice / relayout pass in between.
    h1 = out1.reshape(N, Ho, Wo, cp)
    out2, _ = conv_bn(h1, params["w2"], params["g2"], params["b2"], cp,
                      stride=1, pad=1, relu=True, residual=sc, eps=eps)

    out = out2[:, :, :planes].astype(jnp.float32).reshape(N, Ho, Wo, planes)
    return jnp.transpose(out, (0, 3, 1, 2))                 # NCHW


# --------------------------- pure-JAX reference ------------------------------

def reference_forward(x, params, stride, eps=1e-5):
    def conv(x, w, s, pad):
        return jax.lax.conv_general_dilated(
            x, w, (s, s), [(pad, pad), (pad, pad)],
            dimension_numbers=("NCHW", "OIHW", "NCHW"),
            precision=jax.lax.Precision.HIGHEST)

    def bn(x, g, b):
        mean = jnp.mean(x, axis=(0, 2, 3), keepdims=True)
        var = jnp.mean((x - mean) ** 2, axis=(0, 2, 3), keepdims=True)
        return ((x - mean) / jnp.sqrt(var + eps) * g.reshape(1, -1, 1, 1)
                + b.reshape(1, -1, 1, 1))

    out = jax.nn.relu(bn(conv(x, params["w1"], stride, 1),
                         params["g1"], params["b1"]))
    out = bn(conv(out, params["w2"], 1, 1), params["g2"], params["b2"])
    if stride != 1 or x.shape[1] != params["w1"].shape[0]:
        sc = bn(conv(x, params["ws"], stride, 0), params["gs"], params["bs"])
    else:
        sc = x
    return jax.nn.relu(out + sc)


# --------------------------------- main --------------------------------------

if __name__ == "__main__":
    in_planes, planes, stride = 4, 8, 2
    N, H, W = 2, 32, 32

    key = jax.random.PRNGKey(0)
    ks = jax.random.split(key, 8)
    params = {
        "w1": jax.random.normal(ks[0], (planes, in_planes, 3, 3),
                                jnp.float32) / jnp.sqrt(9.0 * in_planes),
        "g1": 1.0 + 0.1 * jax.random.normal(ks[1], (planes,), jnp.float32),
        "b1": 0.1 * jax.random.normal(ks[2], (planes,), jnp.float32),
        "w2": jax.random.normal(ks[3], (planes, planes, 3, 3),
                                jnp.float32) / jnp.sqrt(9.0 * planes),
        "g2": 1.0 + 0.1 * jax.random.normal(ks[4], (planes,), jnp.float32),
        "b2": 0.1 * jax.random.normal(ks[5], (planes,), jnp.float32),
        "ws": jax.random.normal(ks[6], (planes, in_planes, 1, 1),
                                jnp.float32) / jnp.sqrt(1.0 * in_planes),
        "gs": jnp.ones((planes,), jnp.float32),
        "bs": jnp.zeros((planes,), jnp.float32),
    }

    x = jax.random.normal(jax.random.PRNGKey(1), (N, in_planes, H, W),
                          jnp.float32)

    fwd = jax.jit(lambda xx, pp: basic_block_forward(xx, pp, stride))
    out = jax.block_until_ready(fwd(x, params))

    ref = jax.block_until_ready(reference_forward(x, params, stride))
    assert out.shape == ref.shape == (N, planes, H // stride, W // stride)
    # Tolerance covers bf16 MXU operands + bf16 intermediate storage vs the
    # HIGHEST-precision f32 reference.
    assert jnp.allclose(out, ref, atol=5e-2, rtol=5e-2), (
        float(jnp.max(jnp.abs(out - ref))))

    print("KERNEL_OK")
</pallas_src>

<mosaic_0001>
module attributes {stable_mosaic.version = 11 : i64} {
  func.func @_bn_act_kernel(%arg0: i32, %arg1: memref<1x256x128xbf16, #tpu.memory_space<vmem>>, %arg2: memref<1x128xf32, #tpu.memory_space<vmem>>, %arg3: memref<1x128xf32, #tpu.memory_space<vmem>>, %arg4: memref<1x256x128xbf16, #tpu.memory_space<vmem>>) attributes {dimension_semantics = [#tpu.dimension_semantics<parallel>], iteration_bounds = array<i64: 2>, scalar_prefetch = 0 : i64, scratch_operands = 0 : i64, tpu.core_type = #tpu.core_type<tc>, window_params = [{transform_indices = @transform_0, window_bounds = array<i64: 1, 256, 128>}, {pipeline_mode = #tpu.pipeline_mode<synchronous>, transform_indices = @transform_1, window_bounds = array<i64: 1, 128>}, {pipeline_mode = #tpu.pipeline_mode<synchronous>, transform_indices = @transform_2, window_bounds = array<i64: 1, 128>}, {transform_indices = @transform_3, window_bounds = array<i64: 1, 256, 128>}]} {
    %c0 = arith.constant 0 : index
    %c0_0 = arith.constant 0 : index
    %c0_1 = arith.constant 0 : index
    %0 = vector.load %arg1[%c0, %c0_0, %c0_1] : memref<1x256x128xbf16, #tpu.memory_space<vmem>>, vector<1x256x128xbf16>
    %1 = vector.shape_cast %0 : vector<1x256x128xbf16> to vector<256x128xbf16>
    %2 = arith.extf %1 : vector<256x128xbf16> to vector<256x128xf32>
    %c0_2 = arith.constant 0 : index
    %c0_3 = arith.constant 0 : index
    %3 = vector.load %arg2[%c0_2, %c0_3] : memref<1x128xf32, #tpu.memory_space<vmem>>, vector<1x128xf32>
    %4 = vector.broadcast %3 : vector<1x128xf32> to vector<256x128xf32>
    %5 = arith.mulf %2, %4 : vector<256x128xf32>
    %c0_4 = arith.constant 0 : index
    %c0_5 = arith.constant 0 : index
    %6 = vector.load %arg3[%c0_4, %c0_5] : memref<1x128xf32, #tpu.memory_space<vmem>>, vector<1x128xf32>
    %7 = vector.broadcast %6 : vector<1x128xf32> to vector<256x128xf32>
    %8 = arith.addf %5, %7 : vector<256x128xf32>
    %cst = arith.constant 0.000000e+00 : f32
    %9 = vector.broadcast %cst : f32 to vector<256x128xf32>
    %10 = arith.maximumf %8, %9 : vector<256x128xf32>
    %11 = arith.truncf %10 : vector<256x128xf32> to vector<256x128xbf16>
    %c0_6 = arith.constant 0 : index
    %c0_7 = arith.constant 0 : index
    %c0_8 = arith.constant 0 : index
    %12 = vector.load %arg4[%c0_6, %c0_7, %c0_8] : memref<1x256x128xbf16, #tpu.memory_space<vmem>>, vector<1x256x128xbf16>
    %13 = vector.shape_cast %12 : vector<1x256x128xbf16> to vector<256x128xbf16>
    %14 = vector.shape_cast %11 : vector<256x128xbf16> to vector<1x256x128xbf16>
    tpu.vector_store %arg4[%c0_6, %c0_7, %c0_8], %14 {strides = array<i32>} : memref<1x256x128xbf16, #tpu.memory_space<vmem>>, vector<1x256x128xbf16>,
    return
  }
  func.func @transform_0(%arg0: i32) -> (i32, i32, i32) {
    %c0_i32 = arith.constant 0 : i32
    %c0_i32_0 = arith.constant 0 : i32
    %c0_i32_1 = arith.constant 0 : i32
    return %arg0, %c0_i32, %c0_i32_0 : i32, i32, i32
  }
  func.func @transform_1(%arg0: i32) -> (i32, i32) {
    %c0_i32 = arith.constant 0 : i32
    %c0_i32_0 = arith.constant 0 : i32
    %c0_i32_1 = arith.constant 0 : i32
    return %c0_i32, %c0_i32_0 : i32, i32
  }
  func.func @transform_2(%arg0: i32) -> (i32, i32) {
    %c0_i32 = arith.constant 0 : i32
    %c0_i32_0 = arith.constant 0 : i32
    %c0_i32_1 = arith.constant 0 : i32
    return %c0_i32, %c0_i32_0 : i32, i32
  }
  func.func @transform_3(%arg0: i32) -> (i32, i32, i32) {
    %c0_i32 = arith.constant 0 : i32
    %c0_i32_0 = arith.constant 0 : i32
    %c0_i32_1 = arith.constant 0 : i32
    return %arg0, %c0_i32, %c0_i32_0 : i32, i32, i32
  }
}

module attributes {stable_mosaic.version = 11 : i64} {
  func.func @_conv_stats_kernel(%arg0: i32, %arg1: memref<1x68x17x4xbf16, #tpu.memory_space<vmem>>, %arg2: memref<3x3x4x128xbf16, #tpu.memory_space<vmem>>, %arg3: memref<1x256x128xbf16, #tpu.memory_space<vmem>>, %arg4: memref<1x1x128xf32, #tpu.memory_space<vmem>>, %arg5: memref<1x1x128xf32, #tpu.memory_space<vmem>>) attributes {dimension_semantics = [#tpu.dimension_semantics<parallel>], iteration_bounds = array<i64: 2>, scalar_prefetch = 0 : i64, scratch_operands = 0 : i64, tpu.core_type = #tpu.core_type<tc>, window_params = [{transform_indices = @transform_0, window_bounds = array<i64: 1, 68, 17, 4>}, {pipeline_mode = #tpu.pipeline_mode<synchronous>, transform_indices = @transform_1, window_bounds = array<i64: 3, 3, 4, 128>}, {transform_indices = @transform_2, window_bounds = array<i64: 1, 256, 128>}, {transform_indices = @transform_3, window_bounds = array<i64: 1, 1, 128>}, {transform_indices = @transform_4, window_bounds = array<i64: 1, 1, 128>}]} {
    %c0 = arith.constant 0 : index
    %c0_0 = arith.constant 0 : index
    %c0_1 = arith.constant 0 : index
    %c0_2 = arith.constant 0 : index
    %0 = vector.load %arg1[%c0, %c0_0, %c0_1, %c0_2] : memref<1x68x17x4xbf16, #tpu.memory_space<vmem>>, vector<1x16x16x4xbf16>
    %1 = vector.shape_cast %0 : vector<1x16x16x4xbf16> to vector<16x16x4xbf16>
    %2 = vector.shape_cast %1 : vector<16x16x4xbf16> to vector<256x4xbf16>
    %c0_3 = arith.constant 0 : index
    %c0_4 = arith.constant 0 : index
    %c0_5 = arith.constant 0 : index
    %c0_6 = arith.constant 0 : index
    %3 = vector.load %arg2[%c0_3, %c0_4, %c0_5, %c0_6] : memref<3x3x4x128xbf16, #tpu.memory_space<vmem>>, vector<1x1x4x128xbf16>
    %4 = vector.shape_cast %3 : vector<1x1x4x128xbf16> to vector<4x128xbf16>
    %cst = arith.constant dense<0.000000e+00> : vector<256x128xf32>
    %5 = tpu.matmul %2, %4, %cst {dimension_numbers = #tpu.dot_dimension_numbers<[1], [0], [0], [1], [0, 0, 1, 1], [], []>} : vector<256x4xbf16>, vector<4x128xbf16>, vector<256x128xf32> -> vector<256x128xf32>
    %c0_7 = arith.constant 0 : index
    %c17 = arith.constant 17 : index
    %c0_8 = arith.constant 0 : index
    %c0_9 = arith.constant 0 : index
    %6 = vector.load %arg1[%c0_7, %c17, %c0_8, %c0_9] : memref<1x68x17x4xbf16, #tpu.memory_space<vmem>>, vector<1x16x16x4xbf16>
    %7 = vector.shape_cast %6 : vector<1x16x16x4xbf16> to vector<16x16x4xbf16>
    %8 = vector.shape_cast %7 : vector<16x16x4xbf16> to vector<256x4xbf16>
    %c0_10 = arith.constant 0 : index
    %c1 = arith.constant 1 : index
    %c0_11 = arith.constant 0 : index
    %c0_12 = arith.constant 0 : index
    %9 = vector.load %arg2[%c0_10, %c1, %c0_11, %c0_12] : memref<3x3x4x128xbf16, #tpu.memory_space<vmem>>, vector<1x1x4x128xbf16>
    %10 = vector.shape_cast %9 : vector<1x1x4x128xbf16> to vector<4x128xbf16>
    %cst_13 = arith.constant dense<0.000000e+00> : vector<256x128xf32>
    %11 = tpu.matmul %8, %10, %cst_13 {dimension_numbers = #tpu.dot_dimension_numbers<[1], [0], [0], [1], [0, 0, 1, 1], [], []>} : vector<256x4xbf16>, vector<4x128xbf16>, vector<256x128xf32> -> vector<256x128xf32>
    %12 = arith.addf %5, %11 : vector<256x128xf32>
    %c0_14 = arith.constant 0 : index
    %c0_15 = arith.constant 0 : index
    %c1_16 = arith.constant 1 : index
    %c0_17 = arith.constant 0 : index
    %13 = vector.load %arg1[%c0_14, %c0_15, %c1_16, %c0_17] : memref<1x68x17x4xbf16, #tpu.memory_space<vmem>>, vector<1x16x16x4xbf16>
    %14 = vector.shape_cast %13 : vector<1x16x16x4xbf16> to vector<16x16x4xbf16>
    %15 = vector.shape_cast %14 : vector<16x16x4xbf16> to vector<256x4xbf16>
    %c0_18 = arith.constant 0 : index
    %c2 = arith.constant 2 : index
    %c0_19 = arith.constant 0 : index
    %c0_20 = arith.constant 0 : index
    %16 = vector.load %arg2[%c0_18, %c2, %c0_19, %c0_20] : memref<3x3x4x128xbf16, #tpu.memory_space<vmem>>, vector<1x1x4x128xbf16>
    %17 = vector.shape_cast %16 : vector<1x1x4x128xbf16> to vector<4x128xbf16>
    %cst_21 = arith.constant dense<0.000000e+00> : vector<256x128xf32>
    %18 = tpu.matmul %15, %17, %cst_21 {dimension_numbers = #tpu.dot_dimension_numbers<[1], [0], [0], [1], [0, 0, 1, 1], [], []>} : vector<256x4xbf16>, vector<4x128xbf16>, vector<256x128xf32> -> vector<256x128xf32>
    %19 = arith.addf %12, %18 : vector<256x128xf32>
    %c0_22 = arith.constant 0 : index
    %c34 = arith.constant 34 : index
    %c0_23 = arith.constant 0 : index
    %c0_24 = arith.constant 0 : index
    %20 = vector.load %arg1[%c0_22, %c34, %c0_23, %c0_24] : memref<1x68x17x4xbf16, #tpu.memory_space<vmem>>, vector<1x16x16x4xbf16>
    %21 = vector.shape_cast %20 : vector<1x16x16x4xbf16> to vector<16x16x4xbf16>
    %22 = vector.shape_cast %21 : vector<16x16x4xbf16> to vector<256x4xbf16>
    %c1_25 = arith.constant 1 : index
    %c0_26 = arith.constant 0 : index
    %c0_27 = arith.constant 0 : index
    %c0_28 = arith.constant 0 : index
    %23 = vector.load %arg2[%c1_25, %c0_26, %c0_27, %c0_28] : memref<3x3x4x128xbf16, #tpu.memory_space<vmem>>, vector<1x1x4x128xbf16>
    %24 = vector.shape_cast %23 : vector<1x1x4x128xbf16> to vector<4x128xbf16>
    %cst_29 = arith.constant dense<0.000000e+00> : vector<256x128xf32>
    %25 = tpu.matmul %22, %24, %cst_29 {dimension_numbers = #tpu.dot_dimension_numbers<[1], [0], [0], [1], [0, 0, 1, 1], [], []>} : vector<256x4xbf16>, vector<4x128xbf16>, vector<256x128xf32> -> vector<256x128xf32>
    %26 = arith.addf %19, %25 : vector<256x128xf32>
    %c0_30 = arith.constant 0 : index
    %c51 = arith.constant 51 : index
    %c0_31 = arith.constant 0 : index
    %c0_32 = arith.constant 0 : index
    %27 = vector.load %arg1[%c0_30, %c51, %c0_31, %c0_32] : memref<1x68x17x4xbf16, #tpu.memory_space<vmem>>, vector<1x16x16x4xbf16>
    %28 = vector.shape_cast %27 : vector<1x16x16x4xbf16> to vector<16x16x4xbf16>
    %29 = vector.shape_cast %28 : vector<16x16x4xbf16> to vector<256x4xbf16>
    %c1_33 = arith.constant 1 : index
    %c1_34 = arith.constant 1 : index
    %c0_35 = arith.constant 0 : index
    %c0_36 = arith.constant 0 : index
    %30 = vector.load %arg2[%c1_33, %c1_34, %c0_35, %c0_36] : memref<3x3x4x128xbf16, #tpu.memory_space<vmem>>, vector<1x1x4x128xbf16>
    %31 = vector.shape_cast %30 : vector<1x1x4x128xbf16> to vector<4x128xbf16>
    %cst_37 = arith.constant dense<0.000000e+00> : vector<256x128xf32>
    %32 = tpu.matmul %29, %31, %cst_37 {dimension_numbers = #tpu.dot_dimension_numbers<[1], [0], [0], [1], [0, 0, 1, 1], [], []>} : vector<256x4xbf16>, vector<4x128xbf16>, vector<256x128xf32> -> vector<256x128xf32>
    %33 = arith.addf %26, %32 : vector<256x128xf32>
    %c0_38 = arith.constant 0 : index
    %c34_39 = arith.constant 34 : index
    %c1_40 = arith.constant 1 : index
    %c0_41 = arith.constant 0 : index
    %34 = vector.load %arg1[%c0_38, %c34_39, %c1_40, %c0_41] : memref<1x68x17x4xbf16, #tpu.memory_space<vmem>>, vector<1x16x16x4xbf16>
    %35 = vector.shape_cast %34 : vector<1x16x16x4xbf16> to vector<16x16x4xbf16>
    %36 = vector.shape_cast %35 : vector<16x16x4xbf16> to vector<256x4xbf16>
    %c1_42 = arith.constant 1 : index
    %c2_43 = arith.constant 2 : index
    %c0_44 = arith.constant 0 : index
    %c0_45 = arith.constant 0 : index
    %37 = vector.load %arg2[%c1_42, %c2_43, %c0_44, %c0_45] : memref<3x3x4x128xbf16, #tpu.memory_space<vmem>>, vector<1x1x4x128xbf16>
    %38 = vector.shape_cast %37 : vector<1x1x4x128xbf16> to vector<4x128xbf16>
    %cst_46 = arith.constant dense<0.000000e+00> : vector<256x128xf32>
    %39 = tpu.matmul %36, %38, %cst_46 {dimension_numbers = #tpu.dot_dimension_numbers<[1], [0], [0], [1], [0, 0, 1, 1], [], []>} : vector<256x4xbf16>, vector<4x128xbf16>, vector<256x128xf32> -> vector<256x128xf32>
    %40 = arith.addf %33, %39 : vector<256x128xf32>
    %c0_47 = arith.constant 0 : index
    %c1_48 = arith.constant 1 : index
    %c0_49 = arith.constant 0 : index
    %c0_50 = arith.constant 0 : index
    %41 = vector.load %arg1[%c0_47, %c1_48, %c0_49, %c0_50] : memref<1x68x17x4xbf16, #tpu.memory_space<vmem>>, vector<1x16x16x4xbf16>
    %42 = vector.shape_cast %41 : vector<1x16x16x4xbf16> to vector<16x16x4xbf16>
    %43 = vector.shape_cast %42 : vector<16x16x4xbf16> to vector<256x4xbf16>
    %c2_51 = arith.constant 2 : index
    %c0_52 = arith.constant 0 : index
    %c0_53 = arith.constant 0 : index
    %c0_54 = arith.constant 0 : index
    %44 = vector.load %arg2[%c2_51, %c0_52, %c0_53, %c0_54] : memref<3x3x4x128xbf16, #tpu.memory_space<vmem>>, vector<1x1x4x128xbf16>
    %45 = vector.shape_cast %44 : vector<1x1x4x128xbf16> to vector<4x128xbf16>
    %cst_55 = arith.constant dense<0.000000e+00> : vector<256x128xf32>
    %46 = tpu.matmul %43, %45, %cst_55 {dimension_numbers = #tpu.dot_dimension_numbers<[1], [0], [0], [1], [0, 0, 1, 1], [], []>} : vector<256x4xbf16>, vector<4x128xbf16>, vector<256x128xf32> -> vector<256x128xf32>
    %47 = arith.addf %40, %46 : vector<256x128xf32>
    %c0_56 = arith.constant 0 : index
    %c18 = arith.constant 18 : index
    %c0_57 = arith.constant 0 : index
    %c0_58 = arith.constant 0 : index
    %48 = vector.load %arg1[%c0_56, %c18, %c0_57, %c0_58] : memref<1x68x17x4xbf16, #tpu.memory_space<vmem>>, vector<1x16x16x4xbf16>
    %49 = vector.shape_cast %48 : vector<1x16x16x4xbf16> to vector<16x16x4xbf16>
    %50 = vector.shape_cast %49 : vector<16x16x4xbf16> to vector<256x4xbf16>
    %c2_59 = arith.constant 2 : index
    %c1_60 = arith.constant 1 : index
    %c0_61 = arith.constant 0 : index
    %c0_62 = arith.constant 0 : index
    %51 = vector.load %arg2[%c2_59, %c1_60, %c0_61, %c0_62] : memref<3x3x4x128xbf16, #tpu.memory_space<vmem>>, vector<1x1x4x128xbf16>
    %52 = vector.shape_cast %51 : vector<1x1x4x128xbf16> to vector<4x128xbf16>
    %cst_63 = arith.constant dense<0.000000e+00> : vector<256x128xf32>
    %53 = tpu.matmul %50, %52, %cst_63 {dimension_numbers = #tpu.dot_dimension_numbers<[1], [0], [0], [1], [0, 0, 1, 1], [], []>} : vector<256x4xbf16>, vector<4x128xbf16>, vector<256x128xf32> -> vector<256x128xf32>
    %54 = arith.addf %47, %53 : vector<256x128xf32>
    %c0_64 = arith.constant 0 : index
    %c1_65 = arith.constant 1 : index
    %c1_66 = arith.constant 1 : index
    %c0_67 = arith.constant 0 : index
    %55 = vector.load %arg1[%c0_64, %c1_65, %c1_66, %c0_67] : memref<1x68x17x4xbf16, #tpu.memory_space<vmem>>, vector<1x16x16x4xbf16>
    %56 = vector.shape_cast %55 : vector<1x16x16x4xbf16> to vector<16x16x4xbf16>
    %57 = vector.shape_cast %56 : vector<16x16x4xbf16> to vector<256x4xbf16>
    %c2_68 = arith.constant 2 : index
    %c2_69 = arith.constant 2 : index
    %c0_70 = arith.constant 0 : index
    %c0_71 = arith.constant 0 : index
    %58 = vector.load %arg2[%c2_68, %c2_69, %c0_70, %c0_71] : memref<3x3x4x128xbf16, #tpu.memory_space<vmem>>, vector<1x1x4x128xbf16>
    %59 = vector.shape_cast %58 : vector<1x1x4x128xbf16> to vector<4x128xbf16>
    %cst_72 = arith.constant dense<0.000000e+00> : vector<256x128xf32>
    %60 = tpu.matmul %57, %59, %cst_72 {dimension_numbers = #tpu.dot_dimension_numbers<[1], [0], [0], [1], [0, 0, 1, 1], [], []>} : vector<256x4xbf16>, vector<4x128xbf16>, vector<256x128xf32> -> vector<256x128xf32>
    %61 = arith.addf %54, %60 : vector<256x128xf32>
    %62 = arith.truncf %61 : vector<256x128xf32> to vector<256x128xbf16>
    %c0_73 = arith.constant 0 : index
    %c0_74 = arith.constant 0 : index
    %c0_75 = arith.constant 0 : index
    %63 = vector.load %arg3[%c0_73, %c0_74, %c0_75] : memref<1x256x128xbf16, #tpu.memory_space<vmem>>, vector<1x256x128xbf16>
    %64 = vector.shape_cast %63 : vector<1x256x128xbf16> to vector<256x128xbf16>
    %65 = vector.shape_cast %62 : vector<256x128xbf16> to vector<1x256x128xbf16>
    tpu.vector_store %arg3[%c0_73, %c0_74, %c0_75], %65 {strides = array<i32>} : memref<1x256x128xbf16, #tpu.memory_space<vmem>>, vector<1x256x128xbf16>,
    %cst_76 = arith.constant dense<0.000000e+00> : vector<128xf32>
    %66 = vector.multi_reduction <add>, %61, %cst_76 [0] : vector<256x128xf32> to vector<128xf32>
    %67 = vector.shape_cast %66 : vector<128xf32> to vector<1x128xf32>
    %c0_77 = arith.constant 0 : index
    %c0_78 = arith.constant 0 : index
    %c0_79 = arith.constant 0 : index
    %68 = vector.load %arg4[%c0_77, %c0_78, %c0_79] : memref<1x1x128xf32, #tpu.memory_space<vmem>>, vector<1x1x128xf32>
    %69 = vector.shape_cast %68 : vector<1x1x128xf32> to vector<1x128xf32>
    %70 = vector.shape_cast %67 : vector<1x128xf32> to vector<1x1x128xf32>
    tpu.vector_store %arg4[%c0_77, %c0_78, %c0_79], %70 {strides = array<i32>} : memref<1x1x128xf32, #tpu.memory_space<vmem>>, vector<1x1x128xf32>,
    %71 = arith.mulf %61, %61 : vector<256x128xf32>
    %cst_80 = arith.constant dense<0.000000e+00> : vector<128xf32>
    %72 = vector.multi_reduction <add>, %71, %cst_80 [0] : vector<256x128xf32> to vector<128xf32>
    %73 = vector.shape_cast %72 : vector<128xf32> to vector<1x128xf32>
    %c0_81 = arith.constant 0 : index
    %c0_82 = arith.constant 0 : index
    %c0_83 = arith.constant 0 : index
    %74 = vector.load %arg5[%c0_81, %c0_82, %c0_83] : memref<1x1x128xf32, #tpu.memory_space<vmem>>, vector<1x1x128xf32>
    %75 = vector.shape_cast %74 : vector<1x1x128xf32> to vector<1x128xf32>
    %76 = vector.shape_cast %73 : vector<1x128xf32> to vector<1x1x128xf32>
    tpu.vector_store %arg5[%c0_81, %c0_82, %c0_83], %76 {strides = array<i32>} : memref<1x1x128xf32, #tpu.memory_space<vmem>>, vector<1x1x128xf32>,
    return
  }
  func.func @transform_0(%arg0: i32) -> (i32, i32, i32, i32) {
    %c0_i32 = arith.constant 0 : i32
    %c0_i32_0 = arith.constant 0 : i32
    %c0_i32_1 = arith.constant 0 : i32
    %c0_i32_2 = arith.constant 0 : i32
    return %arg0, %c0_i32, %c0_i32_0, %c0_i32_1 : i32, i32, i32, i32
  }
  func.func @transform_1(%arg0: i32) -> (i32, i32, i32, i32) {
    %c0_i32 = arith.constant 0 : i32
    %c0_i32_0 = arith.constant 0 : i32
    %c0_i32_1 = arith.constant 0 : i32
    %c0_i32_2 = arith.constant 0 : i32
    %c0_i32_3 = arith.constant 0 : i32
    return %c0_i32, %c0_i32_0, %c0_i32_1, %c0_i32_2 : i32, i32, i32, i32
  }
  func.func @transform_2(%arg0: i32) -> (i32, i32, i32) {
    %c0_i32 = arith.constant 0 : i32
    %c0_i32_0 = arith.constant 0 : i32
    %c0_i32_1 = arith.constant 0 : i32
    return %arg0, %c0_i32, %c0_i32_0 : i32, i32, i32
  }
  func.func @transform_3(%arg0: i32) -> (i32, i32, i32) {
    %c0_i32 = arith.constant 0 : i32
    %c0_i32_0 = arith.constant 0 : i32
    %c0_i32_1 = arith.constant 0 : i32
    return %arg0, %c0_i32, %c0_i32_0 : i32, i32, i32
  }
  func.func @transform_4(%arg0: i32) -> (i32, i32, i32) {
    %c0_i32 = arith.constant 0 : i32
    %c0_i32_0 = arith.constant 0 : i32
    %c0_i32_1 = arith.constant 0 : i32
    return %arg0, %c0_i32, %c0_i32_0 : i32, i32, i32
  }
}

module attributes {stable_mosaic.version = 11 : i64} {
  func.func @_conv_stats_kernel(%arg0: i32, %arg1: memref<1x18x18x128xbf16, #tpu.memory_space<vmem>>, %arg2: memref<3x3x128x128xbf16, #tpu.memory_space<vmem>>, %arg3: memref<1x256x128xbf16, #tpu.memory_space<vmem>>, %arg4: memref<1x1x128xf32, #tpu.memory_space<vmem>>, %arg5: memref<1x1x128xf32, #tpu.memory_space<vmem>>) attributes {dimension_semantics = [#tpu.dimension_semantics<parallel>], iteration_bounds = array<i64: 2>, scalar_prefetch = 0 : i64, scratch_operands = 0 : i64, tpu.core_type = #tpu.core_type<tc>, window_params = [{transform_indices = @transform_0, window_bounds = array<i64: 1, 18, 18, 128>}, {pipeline_mode = #tpu.pipeline_mode<synchronous>, transform_indices = @transform_1, window_bounds = array<i64: 3, 3, 128, 128>}, {transform_indices = @transform_2, window_bounds = array<i64: 1, 256, 128>}, {transform_indices = @transform_3, window_bounds = array<i64: 1, 1, 128>}, {transform_indices = @transform_4, window_bounds = array<i64: 1, 1, 128>}]} {
    %c0 = arith.constant 0 : index
    %c0_0 = arith.constant 0 : index
    %c0_1 = arith.constant 0 : index
    %c0_2 = arith.constant 0 : index
    %0 = vector.load %arg1[%c0, %c0_0, %c0_1, %c0_2] : memref<1x18x18x128xbf16, #tpu.memory_space<vmem>>, vector<1x16x16x128xbf16>
    %1 = vector.shape_cast %0 : vector<1x16x16x128xbf16> to vector<16x16x128xbf16>
    %2 = vector.shape_cast %1 : vector<16x16x128xbf16> to vector<256x128xbf16>
    %c0_3 = arith.constant 0 : index
    %c0_4 = arith.constant 0 : index
    %c0_5 = arith.constant 0 : index
    %c0_6 = arith.constant 0 : index
    %3 = vector.load %arg2[%c0_3, %c0_4, %c0_5, %c0_6] : memref<3x3x128x128xbf16, #tpu.memory_space<vmem>>, vector<1x1x128x128xbf16>
    %4 = vector.shape_cast %3 : vector<1x1x128x128xbf16> to vector<128x128xbf16>
    %cst = arith.constant dense<0.000000e+00> : vector<256x128xf32>
    %5 = tpu.matmul %2, %4, %cst {dimension_numbers = #tpu.dot_dimension_numbers<[1], [0], [0], [1], [0, 0, 1, 1], [], []>} : vector<256x128xbf16>, vector<128x128xbf16>, vector<256x128xf32> -> vector<256x128xf32>
    %c0_7 = arith.constant 0 : index
    %c0_8 = arith.constant 0 : index
    %c1 = arith.constant 1 : index
    %c0_9 = arith.constant 0 : index
    %6 = vector.load %arg1[%c0_7, %c0_8, %c1, %c0_9] : memref<1x18x18x128xbf16, #tpu.memory_space<vmem>>, vector<1x16x16x128xbf16>
    %7 = vector.shape_cast %6 : vector<1x16x16x128xbf16> to vector<16x16x128xbf16>
    %8 = vector.shape_cast %7 : vector<16x16x128xbf16> to vector<256x128xbf16>
    %c0_10 = arith.constant 0 : index
    %c1_11 = arith.constant 1 : index
    %c0_12 = arith.constant 0 : index
    %c0_13 = arith.constant 0 : index
    %9 = vector.load %arg2[%c0_10, %c1_11, %c0_12, %c0_13] : memref<3x3x128x128xbf16, #tpu.memory_space<vmem>>, vector<1x1x128x128xbf16>
    %10 = vector.shape_cast %9 : vector<1x1x128x128xbf16> to vector<128x128xbf16>
    %cst_14 = arith.constant dense<0.000000e+00> : vector<256x128xf32>
    %11 = tpu.matmul %8, %10, %cst_14 {dimension_numbers = #tpu.dot_dimension_numbers<[1], [0], [0], [1], [0, 0, 1, 1], [], []>} : vector<256x128xbf16>, vector<128x128xbf16>, vector<256x128xf32> -> vector<256x128xf32>
    %12 = arith.addf %5, %11 : vector<256x128xf32>
    %c0_15 = arith.constant 0 : index
    %c0_16 = arith.constant 0 : index
    %c2 = arith.constant 2 : index
    %c0_17 = arith.constant 0 : index
    %13 = vector.load %arg1[%c0_15, %c0_16, %c2, %c0_17] : memref<1x18x18x128xbf16, #tpu.memory_space<vmem>>, vector<1x16x16x128xbf16>
    %14 = vector.shape_cast %13 : vector<1x16x16x128xbf16> to vector<16x16x128xbf16>
    %15 = vector.shape_cast %14 : vector<16x16x128xbf16> to vector<256x128xbf16>
    %c0_18 = arith.constant 0 : index
    %c2_19 = arith.constant 2 : index
    %c0_20 = arith.constant 0 : index
    %c0_21 = arith.constant 0 : index
    %16 = vector.load %arg2[%c0_18, %c2_19, %c0_20, %c0_21] : memref<3x3x128x128xbf16, #tpu.memory_space<vmem>>, vector<1x1x128x128xbf16>
    %17 = vector.shape_cast %16 : vector<1x1x128x128xbf16> to vector<128x128xbf16>
    %cst_22 = arith.constant dense<0.000000e+00> : vector<256x128xf32>
    %18 = tpu.matmul %15, %17, %cst_22 {dimension_numbers = #tpu.dot_dimension_numbers<[1], [0], [0], [1], [0, 0, 1, 1], [], []>} : vector<256x128xbf16>, vector<128x128xbf16>, vector<256x128xf32> -> vector<256x128xf32>
    %19 = arith.addf %12, %18 : vector<256x128xf32>
    %c0_23 = arith.constant 0 : index
    %c1_24 = arith.constant 1 : index
    %c0_25 = arith.constant 0 : index
    %c0_26 = arith.constant 0 : index
    %20 = vector.load %arg1[%c0_23, %c1_24, %c0_25, %c0_26] : memref<1x18x18x128xbf16, #tpu.memory_space<vmem>>, vector<1x16x16x128xbf16>
    %21 = vector.shape_cast %20 : vector<1x16x16x128xbf16> to vector<16x16x128xbf16>
    %22 = vector.shape_cast %21 : vector<16x16x128xbf16> to vector<256x128xbf16>
    %c1_27 = arith.constant 1 : index
    %c0_28 = arith.constant 0 : index
    %c0_29 = arith.constant 0 : index
    %c0_30 = arith.constant 0 : index
    %23 = vector.load %arg2[%c1_27, %c0_28, %c0_29, %c0_30] : memref<3x3x128x128xbf16, #tpu.memory_space<vmem>>, vector<1x1x128x128xbf16>
    %24 = vector.shape_cast %23 : vector<1x1x128x128xbf16> to vector<128x128xbf16>
    %cst_31 = arith.constant dense<0.000000e+00> : vector<256x128xf32>
    %25 = tpu.matmul %22, %24, %cst_31 {dimension_numbers = #tpu.dot_dimension_numbers<[1], [0], [0], [1], [0, 0, 1, 1], [], []>} : vector<256x128xbf16>, vector<128x128xbf16>, vector<256x128xf32> -> vector<256x128xf32>
    %26 = arith.addf %19, %25 : vector<256x128xf32>
    %c0_32 = arith.constant 0 : index
    %c1_33 = arith.constant 1 : index
    %c1_34 = arith.constant 1 : index
    %c0_35 = arith.constant 0 : index
    %27 = vector.load %arg1[%c0_32, %c1_33, %c1_34, %c0_35] : memref<1x18x18x128xbf16, #tpu.memory_space<vmem>>, vector<1x16x16x128xbf16>
    %28 = vector.shape_cast %27 : vector<1x16x16x128xbf16> to vector<16x16x128xbf16>
    %29 = vector.shape_cast %28 : vector<16x16x128xbf16> to vector<256x128xbf16>
    %c1_36 = arith.constant 1 : index
    %c1_37 = arith.constant 1 : index
    %c0_38 = arith.constant 0 : index
    %c0_39 = arith.constant 0 : index
    %30 = vector.load %arg2[%c1_36, %c1_37, %c0_38, %c0_39] : memref<3x3x128x128xbf16, #tpu.memory_space<vmem>>, vector<1x1x128x128xbf16>
    %31 = vector.shape_cast %30 : vector<1x1x128x128xbf16> to vector<128x128xbf16>
    %cst_40 = arith.constant dense<0.000000e+00> : vector<256x128xf32>
    %32 = tpu.matmul %29, %31, %cst_40 {dimension_numbers = #tpu.dot_dimension_numbers<[1], [0], [0], [1], [0, 0, 1, 1], [], []>} : vector<256x128xbf16>, vector<128x128xbf16>, vector<256x128xf32> -> vector<256x128xf32>
    %33 = arith.addf %26, %32 : vector<256x128xf32>
    %c0_41 = arith.constant 0 : index
    %c1_42 = arith.constant 1 : index
    %c2_43 = arith.constant 2 : index
    %c0_44 = arith.constant 0 : index
    %34 = vector.load %arg1[%c0_41, %c1_42, %c2_43, %c0_44] : memref<1x18x18x128xbf16, #tpu.memory_space<vmem>>, vector<1x16x16x128xbf16>
    %35 = vector.shape_cast %34 : vector<1x16x16x128xbf16> to vector<16x16x128xbf16>
    %36 = vector.shape_cast %35 : vector<16x16x128xbf16> to vector<256x128xbf16>
    %c1_45 = arith.constant 1 : index
    %c2_46 = arith.constant 2 : index
    %c0_47 = arith.constant 0 : index
    %c0_48 = arith.constant 0 : index
    %37 = vector.load %arg2[%c1_45, %c2_46, %c0_47, %c0_48] : memref<3x3x128x128xbf16, #tpu.memory_space<vmem>>, vector<1x1x128x128xbf16>
    %38 = vector.shape_cast %37 : vector<1x1x128x128xbf16> to vector<128x128xbf16>
    %cst_49 = arith.constant dense<0.000000e+00> : vector<256x128xf32>
    %39 = tpu.matmul %36, %38, %cst_49 {dimension_numbers = #tpu.dot_dimension_numbers<[1], [0], [0], [1], [0, 0, 1, 1], [], []>} : vector<256x128xbf16>, vector<128x128xbf16>, vector<256x128xf32> -> vector<256x128xf32>
    %40 = arith.addf %33, %39 : vector<256x128xf32>
    %c0_50 = arith.constant 0 : index
    %c2_51 = arith.constant 2 : index
    %c0_52 = arith.constant 0 : index
    %c0_53 = arith.constant 0 : index
    %41 = vector.load %arg1[%c0_50, %c2_51, %c0_52, %c0_53] : memref<1x18x18x128xbf16, #tpu.memory_space<vmem>>, vector<1x16x16x128xbf16>
    %42 = vector.shape_cast %41 : vector<1x16x16x128xbf16> to vector<16x16x128xbf16>
    %43 = vector.shape_cast %42 : vector<16x16x128xbf16> to vector<256x128xbf16>
    %c2_54 = arith.constant 2 : index
    %c0_55 = arith.constant 0 : index
    %c0_56 = arith.constant 0 : index
    %c0_57 = arith.constant 0 : index
    %44 = vector.load %arg2[%c2_54, %c0_55, %c0_56, %c0_57] : memref<3x3x128x128xbf16, #tpu.memory_space<vmem>>, vector<1x1x128x128xbf16>
    %45 = vector.shape_cast %44 : vector<1x1x128x128xbf16> to vector<128x128xbf16>
    %cst_58 = arith.constant dense<0.000000e+00> : vector<256x128xf32>
    %46 = tpu.matmul %43, %45, %cst_58 {dimension_numbers = #tpu.dot_dimension_numbers<[1], [0], [0], [1], [0, 0, 1, 1], [], []>} : vector<256x128xbf16>, vector<128x128xbf16>, vector<256x128xf32> -> vector<256x128xf32>
    %47 = arith.addf %40, %46 : vector<256x128xf32>
    %c0_59 = arith.constant 0 : index
    %c2_60 = arith.constant 2 : index
    %c1_61 = arith.constant 1 : index
    %c0_62 = arith.constant 0 : index
    %48 = vector.load %arg1[%c0_59, %c2_60, %c1_61, %c0_62] : memref<1x18x18x128xbf16, #tpu.memory_space<vmem>>, vector<1x16x16x128xbf16>
    %49 = vector.shape_cast %48 : vector<1x16x16x128xbf16> to vector<16x16x128xbf16>
    %50 = vector.shape_cast %49 : vector<16x16x128xbf16> to vector<256x128xbf16>
    %c2_63 = arith.constant 2 : index
    %c1_64 = arith.constant 1 : index
    %c0_65 = arith.constant 0 : index
    %c0_66 = arith.constant 0 : index
    %51 = vector.load %arg2[%c2_63, %c1_64, %c0_65, %c0_66] : memref<3x3x128x128xbf16, #tpu.memory_space<vmem>>, vector<1x1x128x128xbf16>
    %52 = vector.shape_cast %51 : vector<1x1x128x128xbf16> to vector<128x128xbf16>
    %cst_67 = arith.constant dense<0.000000e+00> : vector<256x128xf32>
    %53 = tpu.matmul %50, %52, %cst_67 {dimension_numbers = #tpu.dot_dimension_numbers<[1], [0], [0], [1], [0, 0, 1, 1], [], []>} : vector<256x128xbf16>, vector<128x128xbf16>, vector<256x128xf32> -> vector<256x128xf32>
    %54 = arith.addf %47, %53 : vector<256x128xf32>
    %c0_68 = arith.constant 0 : index
    %c2_69 = arith.constant 2 : index
    %c2_70 = arith.constant 2 : index
    %c0_71 = arith.constant 0 : index
    %55 = vector.load %arg1[%c0_68, %c2_69, %c2_70, %c0_71] : memref<1x18x18x128xbf16, #tpu.memory_space<vmem>>, vector<1x16x16x128xbf16>
    %56 = vector.shape_cast %55 : vector<1x16x16x128xbf16> to vector<16x16x128xbf16>
    %57 = vector.shape_cast %56 : vector<16x16x128xbf16> to vector<256x128xbf16>
    %c2_72 = arith.constant 2 : index
    %c2_73 = arith.constant 2 : index
    %c0_74 = arith.constant 0 : index
    %c0_75 = arith.constant 0 : index
    %58 = vector.load %arg2[%c2_72, %c2_73, %c0_74, %c0_75] : memref<3x3x128x128xbf16, #tpu.memory_space<vmem>>, vector<1x1x128x128xbf16>
    %59 = vector.shape_cast %58 : vector<1x1x128x128xbf16> to vector<128x128xbf16>
    %cst_76 = arith.constant dense<0.000000e+00> : vector<256x128xf32>
    %60 = tpu.matmul %57, %59, %cst_76 {dimension_numbers = #tpu.dot_dimension_numbers<[1], [0], [0], [1], [0, 0, 1, 1], [], []>} : vector<256x128xbf16>, vector<128x128xbf16>, vector<256x128xf32> -> vector<256x128xf32>
    %61 = arith.addf %54, %60 : vector<256x128xf32>
    %62 = arith.truncf %61 : vector<256x128xf32> to vector<256x128xbf16>
    %c0_77 = arith.constant 0 : index
    %c0_78 = arith.constant 0 : index
    %c0_79 = arith.constant 0 : index
    %63 = vector.load %arg3[%c0_77, %c0_78, %c0_79] : memref<1x256x128xbf16, #tpu.memory_space<vmem>>, vector<1x256x128xbf16>
    %64 = vector.shape_cast %63 : vector<1x256x128xbf16> to vector<256x128xbf16>
    %65 = vector.shape_cast %62 : vector<256x128xbf16> to vector<1x256x128xbf16>
    tpu.vector_store %arg3[%c0_77, %c0_78, %c0_79], %65 {strides = array<i32>} : memref<1x256x128xbf16, #tpu.memory_space<vmem>>, vector<1x256x128xbf16>,
    %cst_80 = arith.constant dense<0.000000e+00> : vector<128xf32>
    %66 = vector.multi_reduction <add>, %61, %cst_80 [0] : vector<256x128xf32> to vector<128xf32>
    %67 = vector.shape_cast %66 : vector<128xf32> to vector<1x128xf32>
    %c0_81 = arith.constant 0 : index
    %c0_82 = arith.constant 0 : index
    %c0_83 = arith.constant 0 : index
    %68 = vector.load %arg4[%c0_81, %c0_82, %c0_83] : memref<1x1x128xf32, #tpu.memory_space<vmem>>, vector<1x1x128xf32>
    %69 = vector.shape_cast %68 : vector<1x1x128xf32> to vector<1x128xf32>
    %70 = vector.shape_cast %67 : vector<1x128xf32> to vector<1x1x128xf32>
    tpu.vector_store %arg4[%c0_81, %c0_82, %c0_83], %70 {strides = array<i32>} : memref<1x1x128xf32, #tpu.memory_space<vmem>>, vector<1x1x128xf32>,
    %71 = arith.mulf %61, %61 : vector<256x128xf32>
    %cst_84 = arith.constant dense<0.000000e+00> : vector<128xf32>
    %72 = vector.multi_reduction <add>, %71, %cst_84 [0] : vector<256x128xf32> to vector<128xf32>
    %73 = vector.shape_cast %72 : vector<128xf32> to vector<1x128xf32>
    %c0_85 = arith.constant 0 : index
    %c0_86 = arith.constant 0 : index
    %c0_87 = arith.constant 0 : index
    %74 = vector.load %arg5[%c0_85, %c0_86, %c0_87] : memref<1x1x128xf32, #tpu.memory_space<vmem>>, vector<1x1x128xf32>
    %75 = vector.shape_cast %74 : vector<1x1x128xf32> to vector<1x128xf32>
    %76 = vector.shape_cast %73 : vector<1x128xf32> to vector<1x1x128xf32>
    tpu.vector_store %arg5[%c0_85, %c0_86, %c0_87], %76 {strides = array<i32>} : memref<1x1x128xf32, #tpu.memory_space<vmem>>, vector<1x1x128xf32>,
    return
  }
  func.func @transform_0(%arg0: i32) -> (i32, i32, i32, i32) {
    %c0_i32 = arith.constant 0 : i32
    %c0_i32_0 = arith.constant 0 : i32
    %c0_i32_1 = arith.constant 0 : i32
    %c0_i32_2 = arith.constant 0 : i32
    return %arg0, %c0_i32, %c0_i32_0, %c0_i32_1 : i32, i32, i32, i32
  }
  func.func @transform_1(%arg0: i32) -> (i32, i32, i32, i32) {
    %c0_i32 = arith.constant 0 : i32
    %c0_i32_0 = arith.constant 0 : i32
    %c0_i32_1 = arith.constant 0 : i32
    %c0_i32_2 = arith.constant 0 : i32
    %c0_i32_3 = arith.constant 0 : i32
    return %c0_i32, %c0_i32_0, %c0_i32_1, %c0_i32_2 : i32, i32, i32, i32
  }
  func.func @transform_2(%arg0: i32) -> (i32, i32, i32) {
    %c0_i32 = arith.constant 0 : i32
    %c0_i32_0 = arith.constant 0 : i32
    %c0_i32_1 = arith.constant 0 : i32
    return %arg0, %c0_i32, %c0_i32_0 : i32, i32, i32
  }
  func.func @transform_3(%arg0: i32) -> (i32, i32, i32) {
    %c0_i32 = arith.constant 0 : i32
    %c0_i32_0 = arith.constant 0 : i32
    %c0_i32_1 = arith.constant 0 : i32
    return %arg0, %c0_i32, %c0_i32_0 : i32, i32, i32
  }
  func.func @transform_4(%arg0: i32) -> (i32, i32, i32) {
    %c0_i32 = arith.constant 0 : i32
    %c0_i32_0 = arith.constant 0 : i32
    %c0_i32_1 = arith.constant 0 : i32
    return %arg0, %c0_i32, %c0_i32_0 : i32, i32, i32
  }
}

module attributes {stable_mosaic.version = 11 : i64} {
  func.func @_conv_stats_kernel(%arg0: i32, %arg1: memref<1x64x16x4xbf16, #tpu.memory_space<vmem>>, %arg2: memref<1x1x4x128xbf16, #tpu.memory_space<vmem>>, %arg3: memref<1x256x128xbf16, #tpu.memory_space<vmem>>, %arg4: memref<1x1x128xf32, #tpu.memory_space<vmem>>, %arg5: memref<1x1x128xf32, #tpu.memory_space<vmem>>) attributes {dimension_semantics = [#tpu.dimension_semantics<parallel>], iteration_bounds = array<i64: 2>, scalar_prefetch = 0 : i64, scratch_operands = 0 : i64, tpu.core_type = #tpu.core_type<tc>, window_params = [{transform_indices = @transform_0, window_bounds = array<i64: 1, 64, 16, 4>}, {pipeline_mode = #tpu.pipeline_mode<synchronous>, transform_indices = @transform_1, window_bounds = array<i64: 1, 1, 4, 128>}, {transform_indices = @transform_2, window_bounds = array<i64: 1, 256, 128>}, {transform_indices = @transform_3, window_bounds = array<i64: 1, 1, 128>}, {transform_indices = @transform_4, window_bounds = array<i64: 1, 1, 128>}]} {
    %c0 = arith.constant 0 : index
    %c0_0 = arith.constant 0 : index
    %c0_1 = arith.constant 0 : index
    %c0_2 = arith.constant 0 : index
    %0 = vector.load %arg1[%c0, %c0_0, %c0_1, %c0_2] : memref<1x64x16x4xbf16, #tpu.memory_space<vmem>>, vector<1x16x16x4xbf16>
    %1 = vector.shape_cast %0 : vector<1x16x16x4xbf16> to vector<16x16x4xbf16>
    %2 = vector.shape_cast %1 : vector<16x16x4xbf16> to vector<256x4xbf16>
    %c0_3 = arith.constant 0 : index
    %c0_4 = arith.constant 0 : index
    %c0_5 = arith.constant 0 : index
    %c0_6 = arith.constant 0 : index
    %3 = vector.load %arg2[%c0_3, %c0_4, %c0_5, %c0_6] : memref<1x1x4x128xbf16, #tpu.memory_space<vmem>>, vector<1x1x4x128xbf16>
    %4 = vector.shape_cast %3 : vector<1x1x4x128xbf16> to vector<4x128xbf16>
    %cst = arith.constant dense<0.000000e+00> : vector<256x128xf32>
    %5 = tpu.matmul %2, %4, %cst {dimension_numbers = #tpu.dot_dimension_numbers<[1], [0], [0], [1], [0, 0, 1, 1], [], []>} : vector<256x4xbf16>, vector<4x128xbf16>, vector<256x128xf32> -> vector<256x128xf32>
    %6 = arith.truncf %5 : vector<256x128xf32> to vector<256x128xbf16>
    %c0_7 = arith.constant 0 : index
    %c0_8 = arith.constant 0 : index
    %c0_9 = arith.constant 0 : index
    %7 = vector.load %arg3[%c0_7, %c0_8, %c0_9] : memref<1x256x128xbf16, #tpu.memory_space<vmem>>, vector<1x256x128xbf16>
    %8 = vector.shape_cast %7 : vector<1x256x128xbf16> to vector<256x128xbf16>
    %9 = vector.shape_cast %6 : vector<256x128xbf16> to vector<1x256x128xbf16>
    tpu.vector_store %arg3[%c0_7, %c0_8, %c0_9], %9 {strides = array<i32>} : memref<1x256x128xbf16, #tpu.memory_space<vmem>>, vector<1x256x128xbf16>,
    %cst_10 = arith.constant dense<0.000000e+00> : vector<128xf32>
    %10 = vector.multi_reduction <add>, %5, %cst_10 [0] : vector<256x128xf32> to vector<128xf32>
    %11 = vector.shape_cast %10 : vector<128xf32> to vector<1x128xf32>
    %c0_11 = arith.constant 0 : index
    %c0_12 = arith.constant 0 : index
    %c0_13 = arith.constant 0 : index
    %12 = vector.load %arg4[%c0_11, %c0_12, %c0_13] : memref<1x1x128xf32, #tpu.memory_space<vmem>>, vector<1x1x128xf32>
    %13 = vector.shape_cast %12 : vector<1x1x128xf32> to vector<1x128xf32>
    %14 = vector.shape_cast %11 : vector<1x128xf32> to vector<1x1x128xf32>
    tpu.vector_store %arg4[%c0_11, %c0_12, %c0_13], %14 {strides = array<i32>} : memref<1x1x128xf32, #tpu.memory_space<vmem>>, vector<1x1x128xf32>,
    %15 = arith.mulf %5, %5 : vector<256x128xf32>
    %cst_14 = arith.constant dense<0.000000e+00> : vector<128xf32>
    %16 = vector.multi_reduction <add>, %15, %cst_14 [0] : vector<256x128xf32> to vector<128xf32>
    %17 = vector.shape_cast %16 : vector<128xf32> to vector<1x128xf32>
    %c0_15 = arith.constant 0 : index
    %c0_16 = arith.constant 0 : index
    %c0_17 = arith.constant 0 : index
    %18 = vector.load %arg5[%c0_15, %c0_16, %c0_17] : memref<1x1x128xf32, #tpu.memory_space<vmem>>, vector<1x1x128xf32>
    %19 = vector.shape_cast %18 : vector<1x1x128xf32> to vector<1x128xf32>
    %20 = vector.shape_cast %17 : vector<1x128xf32> to vector<1x1x128xf32>
    tpu.vector_store %arg5[%c0_15, %c0_16, %c0_17], %20 {strides = array<i32>} : memref<1x1x128xf32, #tpu.memory_space<vmem>>, vector<1x1x128xf32>,
    return
  }
  func.func @transform_0(%arg0: i32) -> (i32, i32, i32, i32) {
    %c0_i32 = arith.constant 0 : i32
    %c0_i32_0 = arith.constant 0 : i32
    %c0_i32_1 = arith.constant 0 : i32
    %c0_i32_2 = arith.constant 0 : i32
    return %arg0, %c0_i32, %c0_i32_0, %c0_i32_1 : i32, i32, i32, i32
  }
  func.func @transform_1(%arg0: i32) -> (i32, i32, i32, i32) {
    %c0_i32 = arith.constant 0 : i32
    %c0_i32_0 = arith.constant 0 : i32
    %c0_i32_1 = arith.constant 0 : i32
    %c0_i32_2 = arith.constant 0 : i32
    %c0_i32_3 = arith.constant 0 : i32
    return %c0_i32, %c0_i32_0, %c0_i32_1, %c0_i32_2 : i32, i32, i32, i32
  }
  func.func @transform_2(%arg0: i32) -> (i32, i32, i32) {
    %c0_i32 = arith.constant 0 : i32
    %c0_i32_0 = arith.constant 0 : i32
    %c0_i32_1 = arith.constant 0 : i32
    return %arg0, %c0_i32, %c0_i32_0 : i32, i32, i32
  }
  func.func @transform_3(%arg0: i32) -> (i32, i32, i32) {
    %c0_i32 = arith.constant 0 : i32
    %c0_i32_0 = arith.constant 0 : i32
    %c0_i32_1 = arith.constant 0 : i32
    return %arg0, %c0_i32, %c0_i32_0 : i32, i32, i32
  }
  func.func @transform_4(%arg0: i32) -> (i32, i32, i32) {
    %c0_i32 = arith.constant 0 : i32
    %c0_i32_0 = arith.constant 0 : i32
    %c0_i32_1 = arith.constant 0 : i32
    return %arg0, %c0_i32, %c0_i32_0 : i32, i32, i32
  }
}

module attributes {stable_mosaic.version = 11 : i64} {
  func.func @_bn_act_kernel(%arg0: i32, %arg1: memref<1x256x128xbf16, #tpu.memory_space<vmem>>, %arg2: memref<1x128xf32, #tpu.memory_space<vmem>>, %arg3: memref<1x128xf32, #tpu.memory_space<vmem>>, %arg4: memref<1x256x128xbf16, #tpu.memory_space<vmem>>) attributes {dimension_semantics = [#tpu.dimension_semantics<parallel>], iteration_bounds = array<i64: 2>, scalar_prefetch = 0 : i64, scratch_operands = 0 : i64, tpu.core_type = #tpu.core_type<tc>, window_params = [{transform_indices = @transform_0, window_bounds = array<i64: 1, 256, 128>}, {pipeline_mode = #tpu.pipeline_mode<synchronous>, transform_indices = @transform_1, window_bounds = array<i64: 1, 128>}, {pipeline_mode = #tpu.pipeline_mode<synchronous>, transform_indices = @transform_2, window_bounds = array<i64: 1, 128>}, {transform_indices = @transform_3, window_bounds = array<i64: 1, 256, 128>}]} {
    %c0 = arith.constant 0 : index
    %c0_0 = arith.constant 0 : index
    %c0_1 = arith.constant 0 : index
    %0 = vector.load %arg1[%c0, %c0_0, %c0_1] : memref<1x256x128xbf16, #tpu.memory_space<vmem>>, vector<1x256x128xbf16>
    %1 = vector.shape_cast %0 : vector<1x256x128xbf16> to vector<256x128xbf16>
    %2 = arith.extf %1 : vector<256x128xbf16> to vector<256x128xf32>
    %c0_2 = arith.constant 0 : index
    %c0_3 = arith.constant 0 : index
    %3 = vector.load %arg2[%c0_2, %c0_3] : memref<1x128xf32, #tpu.memory_space<vmem>>, vector<1x128xf32>
    %4 = vector.broadcast %3 : vector<1x128xf32> to vector<256x128xf32>
    %5 = arith.mulf %2, %4 : vector<256x128xf32>
    %c0_4 = arith.constant 0 : index
    %c0_5 = arith.constant 0 : index
    %6 = vector.load %arg3[%c0_4, %c0_5] : memref<1x128xf32, #tpu.memory_space<vmem>>, vector<1x128xf32>
    %7 = vector.broadcast %6 : vector<1x128xf32> to vector<256x128xf32>
    %8 = arith.addf %5, %7 : vector<256x128xf32>
    %9 = arith.truncf %8 : vector<256x128xf32> to vector<256x128xbf16>
    %c0_6 = arith.constant 0 : index
    %c0_7 = arith.constant 0 : index
    %c0_8 = arith.constant 0 : index
    %10 = vector.load %arg4[%c0_6, %c0_7, %c0_8] : memref<1x256x128xbf16, #tpu.memory_space<vmem>>, vector<1x256x128xbf16>
    %11 = vector.shape_cast %10 : vector<1x256x128xbf16> to vector<256x128xbf16>
    %12 = vector.shape_cast %9 : vector<256x128xbf16> to vector<1x256x128xbf16>
    tpu.vector_store %arg4[%c0_6, %c0_7, %c0_8], %12 {strides = array<i32>} : memref<1x256x128xbf16, #tpu.memory_space<vmem>>, vector<1x256x128xbf16>,
    return
  }
  func.func @transform_0(%arg0: i32) -> (i32, i32, i32) {
    %c0_i32 = arith.constant 0 : i32
    %c0_i32_0 = arith.constant 0 : i32
    %c0_i32_1 = arith.constant 0 : i32
    return %arg0, %c0_i32, %c0_i32_0 : i32, i32, i32
  }
  func.func @transform_1(%arg0: i32) -> (i32, i32) {
    %c0_i32 = arith.constant 0 : i32
    %c0_i32_0 = arith.constant 0 : i32
    %c0_i32_1 = arith.constant 0 : i32
    return %c0_i32, %c0_i32_0 : i32, i32
  }
  func.func @transform_2(%arg0: i32) -> (i32, i32) {
    %c0_i32 = arith.constant 0 : i32
    %c0_i32_0 = arith.constant 0 : i32
    %c0_i32_1 = arith.constant 0 : i32
    return %c0_i32, %c0_i32_0 : i32, i32
  }
  func.func @transform_3(%arg0: i32) -> (i32, i32, i32) {
    %c0_i32 = arith.constant 0 : i32
    %c0_i32_0 = arith.constant 0 : i32
    %c0_i32_1 = arith.constant 0 : i32
    return %arg0, %c0_i32, %c0_i32_0 : i32, i32, i32
  }
}

module attributes {stable_mosaic.version = 11 : i64} {
  func.func @_bn_add_act_kernel(%arg0: i32, %arg1: memref<1x256x128xbf16, #tpu.memory_space<vmem>>, %arg2: memref<1x128xf32, #tpu.memory_space<vmem>>, %arg3: memref<1x128xf32, #tpu.memory_space<vmem>>, %arg4: memref<1x256x128xbf16, #tpu.memory_space<vmem>>, %arg5: memref<1x256x128xbf16, #tpu.memory_space<vmem>>) attributes {dimension_semantics = [#tpu.dimension_semantics<parallel>], iteration_bounds = array<i64: 2>, scalar_prefetch = 0 : i64, scratch_operands = 0 : i64, tpu.core_type = #tpu.core_type<tc>, window_params = [{transform_indices = @transform_0, window_bounds = array<i64: 1, 256, 128>}, {pipeline_mode = #tpu.pipeline_mode<synchronous>, transform_indices = @transform_1, window_bounds = array<i64: 1, 128>}, {pipeline_mode = #tpu.pipeline_mode<synchronous>, transform_indices = @transform_2, window_bounds = array<i64: 1, 128>}, {transform_indices = @transform_3, window_bounds = array<i64: 1, 256, 128>}, {transform_indices = @transform_4, window_bounds = array<i64: 1, 256, 128>}]} {
    %c0 = arith.constant 0 : index
    %c0_0 = arith.constant 0 : index
    %c0_1 = arith.constant 0 : index
    %0 = vector.load %arg1[%c0, %c0_0, %c0_1] : memref<1x256x128xbf16, #tpu.memory_space<vmem>>, vector<1x256x128xbf16>
    %1 = vector.shape_cast %0 : vector<1x256x128xbf16> to vector<256x128xbf16>
    %2 = arith.extf %1 : vector<256x128xbf16> to vector<256x128xf32>
    %c0_2 = arith.constant 0 : index
    %c0_3 = arith.constant 0 : index
    %3 = vector.load %arg2[%c0_2, %c0_3] : memref<1x128xf32, #tpu.memory_space<vmem>>, vector<1x128xf32>
    %4 = vector.broadcast %3 : vector<1x128xf32> to vector<256x128xf32>
    %5 = arith.mulf %2, %4 : vector<256x128xf32>
    %c0_4 = arith.constant 0 : index
    %c0_5 = arith.constant 0 : index
    %6 = vector.load %arg3[%c0_4, %c0_5] : memref<1x128xf32, #tpu.memory_space<vmem>>, vector<1x128xf32>
    %7 = vector.broadcast %6 : vector<1x128xf32> to vector<256x128xf32>
    %8 = arith.addf %5, %7 : vector<256x128xf32>
    %c0_6 = arith.constant 0 : index
    %c0_7 = arith.constant 0 : index
    %c0_8 = arith.constant 0 : index
    %9 = vector.load %arg4[%c0_6, %c0_7, %c0_8] : memref<1x256x128xbf16, #tpu.memory_space<vmem>>, vector<1x256x128xbf16>
    %10 = vector.shape_cast %9 : vector<1x256x128xbf16> to vector<256x128xbf16>
    %11 = arith.extf %10 : vector<256x128xbf16> to vector<256x128xf32>
    %12 = arith.addf %8, %11 : vector<256x128xf32>
    %cst = arith.constant 0.000000e+00 : f32
    %13 = vector.broadcast %cst : f32 to vector<256x128xf32>
    %14 = arith.maximumf %12, %13 : vector<256x128xf32>
    %15 = arith.truncf %14 : vector<256x128xf32> to vector<256x128xbf16>
    %c0_9 = arith.constant 0 : index
    %c0_10 = arith.constant 0 : index
    %c0_11 = arith.constant 0 : index
    %16 = vector.load %arg5[%c0_9, %c0_10, %c0_11] : memref<1x256x128xbf16, #tpu.memory_space<vmem>>, vector<1x256x128xbf16>
    %17 = vector.shape_cast %16 : vector<1x256x128xbf16> to vector<256x128xbf16>
    %18 = vector.shape_cast %15 : vector<256x128xbf16> to vector<1x256x128xbf16>
    tpu.vector_store %arg5[%c0_9, %c0_10, %c0_11], %18 {strides = array<i32>} : memref<1x256x128xbf16, #tpu.memory_space<vmem>>, vector<1x256x128xbf16>,
    return
  }
  func.func @transform_0(%arg0: i32) -> (i32, i32, i32) {
    %c0_i32 = arith.constant 0 : i32
    %c0_i32_0 = arith.constant 0 : i32
    %c0_i32_1 = arith.constant 0 : i32
    return %arg0, %c0_i32, %c0_i32_0 : i32, i32, i32
  }
  func.func @transform_1(%arg0: i32) -> (i32, i32) {
    %c0_i32 = arith.constant 0 : i32
    %c0_i32_0 = arith.constant 0 : i32
    %c0_i32_1 = arith.constant 0 : i32
    return %c0_i32, %c0_i32_0 : i32, i32
  }
  func.func @transform_2(%arg0: i32) -> (i32, i32) {
    %c0_i32 = arith.constant 0 : i32
    %c0_i32_0 = arith.constant 0 : i32
    %c0_i32_1 = arith.constant 0 : i32
    return %c0_i32, %c0_i32_0 : i32, i32
  }
  func.func @transform_3(%arg0: i32) -> (i32, i32, i32) {
    %c0_i32 = arith.constant 0 : i32
    %c0_i32_0 = arith.constant 0 : i32
    %c0_i32_1 = arith.constant 0 : i32
    return %arg0, %c0_i32, %c0_i32_0 : i32, i32, i32
  }
  func.func @transform_4(%arg0: i32) -> (i32, i32, i32) {
    %c0_i32 = arith.constant 0 : i32
    %c0_i32_0 = arith.constant 0 : i32
    %c0_i32_1 = arith.constant 0 : i32
    return %arg0, %c0_i32, %c0_i32_0 : i32, i32, i32
  }
}

</mosaic_0001>

<bundles_post_ra>
// kernel: _lambda_.7
= control target key start
LH: loop header
LB: loop body
LE: loop exit
PB: predicated region body
PF: predicated region fallthrough
CT: control target
= control target key end

     0   :  { %s849_s12 = smov 0   ;;  %s983_s0 = inlined_call_operand.vmem [shape: bf16[2,256,128], index: 0, kind: input, shape index: {}]   ;;  %s984_s1 = inlined_call_operand.vmem [shape: f32[1,128], index: 1, kind: input, shape index: {}]   ;;  %s985_s2 = inlined_call_operand.vmem [shape: f32[1,128], index: 2, kind: input, shape index: {}]   ;;  %s986_s3 = inlined_call_operand.vmem [shape: bf16[2,256,128], index: 3, kind: output, shape index: {}]  }
   0x1 LB: > { %s560_s13 = sadd.s32 4294967295, %s827_s12   ;;  %p564_p0 = scmp.ge.s32.totalorder %s827_s12, 1  ;;  %s827_s12 = sphi %s849_s12, %s13_s12  }
   0x2   : > { %p137_p1 = scmp.lt.s32.totalorder %s827_s12, 3 }
   0x4   : > { %p138_p2 = pnand %p564_p0, %p137_p1 }
   0x5   : > { %p161_p3 = scmp.lt.s32.totalorder (!%p138_p2), %s560_s13, 1 }
   0x6   : > { %141 = sbr.rel (%p138_p2) target bundleno = 57 (0x39), region = 32 }
   0xb   : > { %s988_s13 = smov (!%p161_p3, %s560_s13), 1  ;;  %v870_v0 = vld [vmem:[%s984_s1] ss:$0 sm:$0xff] }
   0xc   : > { %s605_s14 = sshll.u32 %s988_s13, 7  ;;  %v879_v9 = vld [vmem:[%s985_s2] ss:$0 sm:$0xff] }
   0xd   : > { %s865_s17 = scalar_lea.vmem %s983_s0, %s605_s14  ;;  %s904_s24 = scalar_lea.vmem %s986_s3, %s605_s14 }
   0xe   : > { %v640_v1 = vld [vmem:[%s865_s17] sm:$0xff]   ;;  %v783_v2 = vld [vmem:[%s865_s17 + $0x8] sm:$0xff]   ;;  %v784_v3 = vld [vmem:[%s865_s17 + $0x10] sm:$0xff]  }
   0xf   : > { %v641_v4 = vunpack.c.l.bf16 %v640_v1  ;;  %v642_v5 = vunpack.c.h.bf16 %v640_v1  ;;  %v645_v6 = vunpack.c.l.bf16 %v783_v2  ;;  %v646_v7 = vunpack.c.h.bf16 %v783_v2  ;;  %v785_v8 = vld [vmem:[%s865_s17 + $0x18] sm:$0xff]   ;;  %v786_v30 = vld [vmem:[%s865_s17 + $0x20] sm:$0xff]   ;;  %v787_v35 = vld [vmem:[%s865_s17 + $0x28] sm:$0xff]  }
  0x10   : > { %v649_v10 = vunpack.c.l.bf16 %v784_v3  ;;  %v650_v11 = vunpack.c.h.bf16 %v784_v3  ;;  %v653_v12 = vunpack.c.l.bf16 %v785_v8  ;;  %v654_v13 = vunpack.c.h.bf16 %v785_v8  ;;  %v788_v40 = vld [vmem:[%s865_s17 + $0x30] sm:$0xff]   ;;  %v789_v45 = vld [vmem:[%s865_s17 + $0x38] sm:$0xff]   ;;  %v790_v3 = vld [vmem:[%s865_s17 + $0x40] sm:$0xff]  }
  0x11   : > { %v242_v14 = vmul.f32 %v641_v4, %v870_v0  ;;  %v243_v15 = vmul.f32 %v642_v5, %v870_v0  ;;  %v244_v16 = vmul.f32 %v645_v6, %v870_v0  ;;  %v245_v17 = vmul.f32 %v646_v7, %v870_v0 }
  0x12   : > { %v246_v18 = vmul.f32 %v649_v10, %v870_v0  ;;  %v247_v19 = vmul.f32 %v650_v11, %v870_v0  ;;  %v248_v20 = vmul.f32 %v653_v12, %v870_v0  ;;  %v249_v21 = vmul.f32 %v654_v13, %v870_v0  ;;  %v791_v13 = vld [vmem:[%s865_s17 + $0x48] sm:$0xff]  }
  0x13   : > { %v281_v22 = vadd.f32 %v879_v9, %v242_v14  ;;  %v282_v23 = vadd.f32 %v879_v9, %v243_v15  ;;  %v283_v24 = vadd.f32 %v879_v9, %v244_v16  ;;  %v284_v25 = vadd.f32 %v879_v9, %v245_v17 }
  0x14   : > { %v285_v26 = vadd.f32 %v879_v9, %v246_v18  ;;  %v286_v27 = vadd.f32 %v879_v9, %v247_v19  ;;  %v287_v28 = vadd.f32 %v879_v9, %v248_v20  ;;  %v288_v29 = vadd.f32 %v879_v9, %v249_v21  ;;  %v792_v18 = vld [vmem:[%s865_s17 + $0x50] sm:$0xff]  }
  0x15   : > { %v313_v31 = vmax.f32 %v281_v22, 0.0  ;;  %v314_v32 = vmax.f32 %v282_v23, 0.0  ;;  %v315_v33 = vmax.f32 %v283_v24, 0.0  ;;  %v316_v34 = vmax.f32 %v284_v25, 0.0  ;;  %v793_v23 = vld [vmem:[%s865_s17 + $0x58] sm:$0xff]  }
  0x16   : > { %v317_v36 = vmax.f32 %v285_v26, 0.0  ;;  %v318_v37 = vmax.f32 %v286_v27, 0.0  ;;  %v319_v38 = vmax.f32 %v287_v28, 0.0  ;;  %v320_v39 = vmax.f32 %v288_v29, 0.0 }
  0x17   : > { %v706_v41 = vpack.c.bf16 %v314_v32, %v313_v31  ;;  %v711_v42 = vpack.c.bf16 %v316_v34, %v315_v33  ;;  %v657_v43 = vunpack.c.l.bf16 %v786_v30  ;;  %v658_v44 = vunpack.c.h.bf16 %v786_v30 }
  0x18   : > { %v716_v46 = vpack.c.bf16 %v318_v37, %v317_v36  ;;  %v721_v47 = vpack.c.bf16 %v320_v39, %v319_v38  ;;  %v661_v48 = vunpack.c.l.bf16 %v787_v35  ;;  %v662_v49 = vunpack.c.h.bf16 %v787_v35 }
  0x19   : > { %707 = vst [vmem:[%s904_s24] sm:$0xff] %v706_v41   ;;  %798 = vst [vmem:[%s904_s24 + $0x8] sm:$0xff] %v711_v42   ;;  %v250_v50 = vmul.f32 %v657_v43, %v870_v0  ;;  %v251_v51 = vmul.f32 %v658_v44, %v870_v0  ;;  %v665_v52 = vunpack.c.l.bf16 %v788_v40  ;;  %v666_v53 = vunpack.c.h.bf16 %v788_v40  ;;  %v794_v40 = vld [vmem:[%s865_s17 + $0x60] sm:$0xff]  }
  0x1a   : > { %799 = vst [vmem:[%s904_s24 + $0x10] sm:$0xff] %v716_v46   ;;  %800 = vst [vmem:[%s904_s24 + $0x18] sm:$0xff] %v721_v47   ;;  %v252_v54 = vmul.f32 %v661_v48, %v870_v0  ;;  %v253_v55 = vmul.f32 %v662_v49, %v870_v0  ;;  %v669_v56 = vunpack.c.l.bf16 %v789_v45  ;;  %v670_v57 = vunpack.c.h.bf16 %v789_v45 }
  0x1b   : > { %v289_v58 = vadd.f32 %v879_v9, %v250_v50  ;;  %v290_v59 = vadd.f32 %v879_v9, %v251_v51  ;;  %v254_v60 = vmul.f32 %v665_v52, %v870_v0  ;;  %v255_v61 = vmul.f32 %v666_v53, %v870_v0  ;;  %v795_v53 = vld [vmem:[%s865_s17 + $0x68] sm:$0xff]  }
  0x1c   : > { %v291_v62 = vadd.f32 %v879_v9, %v252_v54  ;;  %v292_v63 = vadd.f32 %v879_v9, %v253_v55  ;;  %v256_v1 = vmul.f32 %v669_v56, %v870_v0  ;;  %v257_v2 = vmul.f32 %v670_v57, %v870_v0 }
  0x1d   : > { %v321_v4 = vmax.f32 %v289_v58, 0.0  ;;  %v322_v5 = vmax.f32 %v290_v59, 0.0  ;;  %v293_v6 = vadd.f32 %v879_v9, %v254_v60  ;;  %v294_v7 = vadd.f32 %v879_v9, %v255_v61  ;;  %v796_v58 = vld [vmem:[%s865_s17 + $0x70] sm:$0xff]  }
  0x1e   : > { %v323_v8 = vmax.f32 %v291_v62, 0.0  ;;  %v324_v10 = vmax.f32 %v292_v63, 0.0  ;;  %v295_v11 = vadd.f32 %v879_v9, %v256_v1  ;;  %v296_v12 = vadd.f32 %v879_v9, %v257_v2  ;;  %v797_v63 = vld [vmem:[%s865_s17 + $0x78] sm:$0xff]  }
  0x1f   : > { %v726_v14 = vpack.c.bf16 %v322_v5, %v321_v4  ;;  %v325_v15 = vmax.f32 %v293_v6, 0.0  ;;  %v326_v16 = vmax.f32 %v294_v7, 0.0  ;;  %v673_v17 = vunpack.c.l.bf16 %v790_v3 }
  0x20   : > { %v731_v19 = vpack.c.bf16 %v324_v10, %v323_v8  ;;  %v327_v20 = vmax.f32 %v295_v11, 0.0  ;;  %v328_v21 = vmax.f32 %v296_v12, 0.0  ;;  %v674_v22 = vunpack.c.h.bf16 %v790_v3 }
  0x21   : > { %801 = vst [vmem:[%s904_s24 + $0x20] sm:$0xff] %v726_v14   ;;  %v736_v24 = vpack.c.bf16 %v326_v16, %v325_v15  ;;  %v258_v25 = vmul.f32 %v673_v17, %v870_v0  ;;  %v677_v26 = vunpack.c.l.bf16 %v791_v13  ;;  %v678_v27 = vunpack.c.h.bf16 %v791_v13 }
  0x22   : > { %802 = vst [vmem:[%s904_s24 + $0x28] sm:$0xff] %v731_v19   ;;  %v741_v28 = vpack.c.bf16 %v328_v21, %v327_v20  ;;  %v259_v29 = vmul.f32 %v674_v22, %v870_v0  ;;  %v681_v30 = vunpack.c.l.bf16 %v792_v18  ;;  %v682_v31 = vunpack.c.h.bf16 %v792_v18 }
  0x23   : > { %803 = vst [vmem:[%s904_s24 + $0x30] sm:$0xff] %v736_v24   ;;  %v297_v32 = vadd.f32 %v879_v9, %v258_v25  ;;  %v260_v33 = vmul.f32 %v677_v26, %v870_v0  ;;  %v261_v34 = vmul.f32 %v678_v27, %v870_v0  ;;  %v685_v35 = vunpack.c.l.bf16 %v793_v23 }
  0x24   : > { %804 = vst [vmem:[%s904_s24 + $0x38] sm:$0xff] %v741_v28   ;;  %v298_v36 = vadd.f32 %v879_v9, %v259_v29  ;;  %v262_v37 = vmul.f32 %v681_v30, %v870_v0  ;;  %v263_v38 = vmul.f32 %v682_v31, %v870_v0  ;;  %v686_v39 = vunpack.c.h.bf16 %v793_v23 }
  0x25   : > { %v329_v41 = vmax.f32 %v297_v32, 0.0  ;;  %v299_v42 = vadd.f32 %v879_v9, %v260_v33  ;;  %v300_v43 = vadd.f32 %v879_v9, %v261_v34  ;;  %v264_v44 = vmul.f32 %v685_v35, %v870_v0 }
  0x26   : > { %v330_v45 = vmax.f32 %v298_v36, 0.0  ;;  %v301_v46 = vadd.f32 %v879_v9, %v262_v37  ;;  %v302_v47 = vadd.f32 %v879_v9, %v263_v38  ;;  %v265_v48 = vmul.f32 %v686_v39, %v870_v0 }
  0x27   : > { %v331_v49 = vmax.f32 %v299_v42, 0.0  ;;  %v332_v50 = vmax.f32 %v300_v43, 0.0  ;;  %v303_v51 = vadd.f32 %v879_v9, %v264_v44  ;;  %v689_v52 = vunpack.c.l.bf16 %v794_v40 }
  0x28   : > { %v746_v54 = vpack.c.bf16 %v330_v45, %v329_v41  ;;  %v333_v55 = vmax.f32 %v301_v46, 0.0  ;;  %v334_v56 = vmax.f32 %v302_v47, 0.0  ;;  %v304_v57 = vadd.f32 %v879_v9, %v265_v48 }
  0x29   : > { %v751_v59 = vpack.c.bf16 %v332_v50, %v331_v49  ;;  %v335_v60 = vmax.f32 %v303_v51, 0.0  ;;  %v690_v61 = vunpack.c.h.bf16 %v794_v40  ;;  %v266_v62 = vmul.f32 %v689_v52, %v870_v0 }
  0x2a   : > { %805 = vst [vmem:[%s904_s24 + $0x40] sm:$0xff] %v746_v54   ;;  %v756_v1 = vpack.c.bf16 %v334_v56, %v333_v55  ;;  %v336_v2 = vmax.f32 %v304_v57, 0.0  ;;  %v693_v3 = vunpack.c.l.bf16 %v795_v53  ;;  %v694_v4 = vunpack.c.h.bf16 %v795_v53 }
  0x2b   : > { %806 = vst [vmem:[%s904_s24 + $0x48] sm:$0xff] %v751_v59   ;;  %v267_v5 = vmul.f32 %v690_v61, %v870_v0  ;;  %v305_v6 = vadd.f32 %v879_v9, %v266_v62  ;;  %v697_v7 = vunpack.c.l.bf16 %v796_v58  ;;  %v698_v8 = vunpack.c.h.bf16 %v796_v58 }
  0x2c   : > { %807 = vst [vmem:[%s904_s24 + $0x50] sm:$0xff] %v756_v1   ;;  %v761_v10 = vpack.c.bf16 %v336_v2, %v335_v60  ;;  %v268_v11 = vmul.f32 %v693_v3, %v870_v0  ;;  %v269_v12 = vmul.f32 %v694_v4, %v870_v0  ;;  %v701_v13 = vunpack.c.l.bf16 %v797_v63 }
  0x2d   : > { %v306_v14 = vadd.f32 %v879_v9, %v267_v5  ;;  %v337_v15 = vmax.f32 %v305_v6, 0.0  ;;  %v270_v16 = vmul.f32 %v697_v7, %v870_v0  ;;  %v271_v17 = vmul.f32 %v698_v8, %v870_v0 }
  0x2e   : > { %808 = vst [vmem:[%s904_s24 + $0x58] sm:$0xff] %v761_v10   ;;  %v307_v18 = vadd.f32 %v879_v9, %v268_v11  ;;  %v308_v19 = vadd.f32 %v879_v9, %v269_v12  ;;  %v702_v20 = vunpack.c.h.bf16 %v797_v63  ;;  %v272_v21 = vmul.f32 %v701_v13, %v870_v0 }
  0x2f   : > { %v338_v22 = vmax.f32 %v306_v14, 0.0  ;;  %v309_v23 = vadd.f32 %v879_v9, %v270_v16  ;;  %v310_v24 = vadd.f32 %v879_v9, %v271_v17 }
  0x30   : > { %v339_v25 = vmax.f32 %v307_v18, 0.0  ;;  %v340_v26 = vmax.f32 %v308_v19, 0.0  ;;  %v273_v27 = vmul.f32 %v702_v20, %v870_v0  ;;  %v311_v28 = vadd.f32 %v879_v9, %v272_v21 }
  0x31   : > { %v766_v29 = vpack.c.bf16 %v338_v22, %v337_v15  ;;  %v341_v30 = vmax.f32 %v309_v23, 0.0  ;;  %v342_v31 = vmax.f32 %v310_v24, 0.0 }
  0x32   : > { %v771_v32 = vpack.c.bf16 %v340_v26, %v339_v25  ;;  %v312_v33 = vadd.f32 %v879_v9, %v273_v27  ;;  %v343_v34 = vmax.f32 %v311_v28, 0.0 }
  0x33   : > { %809 = vst [vmem:[%s904_s24 + $0x60] sm:$0xff] %v766_v29   ;;  %v776_v35 = vpack.c.bf16 %v342_v31, %v341_v30 }
  0x34   : > { %810 = vst [vmem:[%s904_s24 + $0x68] sm:$0xff] %v771_v32   ;;  %v344_v36 = vmax.f32 %v312_v33, 0.0 }
  0x35   : > { %811 = vst [vmem:[%s904_s24 + $0x70] sm:$0xff] %v776_v35  }
  0x36   : > { %v781_v37 = vpack.c.bf16 %v344_v36, %v343_v34 }
  0x38   : > { %812 = vst [vmem:[%s904_s24 + $0x78] sm:$0xff] %v781_v37  }
  0x39 PF: > { %s13_s12 = sadd.s32 1, %s827_s12  }
  0x3a   : > { %p10_p4 = scmp.ge.s32.totalorder %s13_s12, 4  }
  0x3c   :  { %12 = sbr.rel (!%p10_p4) target bundleno = 1 (0x1), region = 62 }

// kernel: _lambda_.6
= control target key start
LH: loop header
LB: loop body
LE: loop exit
PB: predicated region body
PF: predicated region fallthrough
CT: control target
= control target key end

     0   :  { %s6191_s15 = smov 0   ;;  %s7715_s0 = inlined_call_operand.vmem [shape: bf16[2,68,17,4], index: 0, kind: input, shape index: {}]   ;;  %s7716_s1 = inlined_call_operand.vmem [shape: bf16[3,3,4,128], index: 1, kind: input, shape index: {}]   ;;  %s7717_s2 = inlined_call_operand.vmem [shape: bf16[2,256,128], index: 2, kind: output, shape index: {0}]   ;;  %s7718_s3 = inlined_call_operand.vmem [shape: f32[2,1,128], index: 3, kind: output, shape index: {1}]   ;;  %s7719_s4 = inlined_call_operand.vmem [shape: f32[2,1,128], index: 4, kind: output, shape index: {2}]  }
   0x1 LB: > { %s4860_s16 = sadd.s32 4294967295, %s6164_s15   ;;  %p4864_p0 = scmp.ge.s32.totalorder %s6164_s15, 1  ;;  %s6164_s15 = sphi %s6191_s15, %s15_s15  }
   0x2   : > { %p167_p1 = scmp.lt.s32.totalorder %s6164_s15, 3 }
   0x4   : > { %p168_p2 = pnand %p4864_p0, %p167_p1 }
   0x6   : > { %171 = sbr.rel (%p168_p2) target bundleno = 525 (0x20d), region = 28 }
   0xb   : > { %v4900_v0 = vld [vmem:[%s7716_s1 + $0x2] sm:$0x3]  ;;  %vm413_vm0 = vcmask 1041408   ;;  %p199_p3 = scmp.lt.s32.totalorder %s4860_s16, 1  ;;  %v248_v2 = vld [vmem:[%s7716_s1] sm:$0x3] }
   0xc   : > { %6044 = vmatprep.subr.msk.bf16.mxu1 %vm413_vm0, %v4900_v0  ;;  %6043 = vmatprep.subr.msk.bf16.mxu0 %vm413_vm0, %v4900_v0  ;;  %v415_v1 = vsel %vm413_vm0, %v4900_v0, 0  ;;  %v4965_v3 = vld [vmem:[%s7716_s1 + $0x4] sm:$0x3]  ;;  %vm364_vm1 = vcmask 31744   ;;  %v5030_v8 = vld [vmem:[%s7716_s1 + $0x6] sm:$0x3] }
   0xd   : > { %6042 = vmatpush3.bf16.msra.mxu1 %v415_v1  ;;  %5736 = vmatpush3.bf16.msra.mxu0 %v415_v1  ;;  %s7808_s16 = smov (!%p199_p3, %s4860_s16), 1  ;;  %v1404_v7 = vsel %vm413_vm0, %v4965_v3, 0  ;;  %v707_v10 = vsel %vm413_vm0, %v248_v2, 0  ;;  %v5095_v11 = vld [vmem:[%s7716_s1 + $0x8] sm:$0x3]  ;;  %v6256_v22 = vsel %vm413_vm0, %v5030_v8, 0 }
   0xe   : > { %6045 = vmatprep.subr.msk.bf16.mxu1 %vm413_vm0, %v248_v2  ;;  %6046 = vmatprep.subr.msk.bf16.mxu0 %vm413_vm0, %v4965_v3  ;;  %s6053_s23 = smul.u32 816, %s7808_s16  ;;  %vm918_vm2 = vsmask.f32 3328  ;;  %vm919_vm3 = vsmask.f32 7440  ;;  %v6263_v32 = vsel %vm413_vm0, %v5095_v11, 0  ;;  %s211_s21 = scalar_lea.vmem %s7718_s3, %s7808_s16 }
   0xf   : > { %vm6274_vm4 = vmor %vm918_vm2, %vm919_vm3  ;;  %s5454_s13 = sshll.u32 %s7808_s16, 7  ;;  %s214_s24 = scalar_lea.vmem %s7719_s4, %s7808_s16 }
  0x10   : > { %s6219_s26 = scalar_lea.vmem %s7715_s0, %s6053_s23  ;;  %s7622_s18 = scalar_lea.vmem %s7717_s2, %s5454_s13 }
  0x11   : > { %v6062_v4 = vld [vmem:[%s6219_s26 + $0xcc] sm:$0xff]   ;;  %v6064_v6 = vld [vmem:[%s6219_s26 + $0xd8] sm:$0xff]   ;;  %v6066_v12 = vld [vmem:[%s6219_s26 + $0xe4] sm:$0xff]  }
  0x12   : > { %v6063_v5 = vld [vmem:[%s6219_s26 + $0x12c] sm:$0xff]   ;;  %5737 = vmatprep.mubr.msk.bf16.mxu0 %vm364_vm1, %v6062_v4  ;;  %v6065_v9 = vld [vmem:[%s6219_s26 + $0x138] sm:$0xff]   ;;  %v6067_v13 = vld [vmem:[%s6219_s26 + $0x144] sm:$0xff]  }
  0x13   : > { %5753 = vmatprep.mubr.msk.bf16.mxu1 %vm364_vm1, %v6063_v5  ;;  %5738 = vmatmul.mubr.msk.bf16.vlgmr.msra.gmra.mxu0 %vm364_vm1, %v6064_v6  ;;  %v6068_v14 = vld [vmem:[%s6219_s26 + $0xf0] sm:$0xff]   ;;  %v6070_v16 = vld [vmem:[%s6219_s26 + $0xfc] sm:$0xff]   ;;  %v6072_v18 = vld [vmem:[%s6219_s26 + $0x108] sm:$0xff]  }
  0x14   : > { %5754 = vmatmul.mubr.msk.bf16.vlgmr.msra.gmra.mxu1 %vm364_vm1, %v6065_v9  ;;  %5804 = vmatpush3.bf16.msra.mxu0 %v1404_v7  ;;  %v6069_v15 = vld [vmem:[%s6219_s26 + $0x150] sm:$0xff]   ;;  %v6071_v17 = vld [vmem:[%s6219_s26 + $0x15c] sm:$0xff]   ;;  %v6073_v19 = vld [vmem:[%s6219_s26 + $0x168] sm:$0xff]  }
  0x15   : > { %5770 = vmatpush3.bf16.msra.mxu1 %v707_v10  ;;  %5741 = vmatprep.mubr.msk.bf16.mxu0 %vm364_vm1, %v6066_v12  ;;  %v6074_v20 = vld [vmem:[%s6219_s26 + $0x114] sm:$0xff]   ;;  %v870_v23 = vld [vmem:[%s6219_s26] sm:$0xf]  ;;  %v871_v24 = vld [vmem:[%s6219_s26 + $0x4] sm:$0xf] }
  0x16   : > { %5757 = vmatprep.mubr.msk.bf16.mxu1 %vm364_vm1, %v6067_v13  ;;  %6047 = vmatprep.subr.msk.bf16.mxu1 %vm413_vm0, %v5030_v8  ;;  %v6075_v21 = vld [vmem:[%s6219_s26 + $0x174] sm:$0xff]   ;;  %v872_v25 = vld [vmem:[%s6219_s26 + $0x8] sm:$0x1]  ;;  %v922_v26 = vshrl.u32 %v870_v23, 16  ;;  %v925_v27 = vshll.u32 %v870_v23, 16  ;;  %v931_v28 = vshll.u32 %v871_v24, 16 }
  0x17   : > { %6048 = vmatprep.subr.msk.bf16.mxu0 %vm413_vm0, %v5095_v11  ;;  %v935_v29 = vshrl.u32 %v871_v24, 16  ;;  %v941_v30 = vshll.u32 %v872_v25, 16  ;;  %v873_v31 = vld [vmem:[%s6219_s26 + $0xc] sm:$0xf]  ;;  %v874_v37 = vld [vmem:[%s6219_s26 + $0x10] sm:$0xf] }
  0x18   : > { %v924_v33 = vrot.slane %v922_v26, 4  ;;  %v927_v34 = vrot.slane %v925_v27, 5  ;;  %v933_v35 = vrot.slane %v931_v28, 5  ;;  %v875_v39 = vld [vmem:[%s6219_s26 + $0x14] sm:$0x1]  ;;  %v946_v40 = vshrl.u32 %v873_v31, 16 }
  0x19   : > { %v937_v36 = vrot.slane %v935_v29, 4  ;;  %v943_v38 = vrot.slane %v941_v30, 5  ;;  %v949_v41 = vshll.u32 %v873_v31, 16  ;;  %v955_v42 = vshll.u32 %v874_v37, 16  ;;  %v6076_v47 = vld [vmem:[%s6219_s26 + $0x120] sm:$0xff]   ;;  %v6079_v26 = vld [vmem:[%s6219_s26 + $0xc] sm:$0xff]  }
  0x1a   : > { %v928_v43 = vor.u32 %v927_v34, %v924_v33  ;;  %v959_v45 = vshrl.u32 %v874_v37, 16  ;;  %v965_v46 = vshll.u32 %v875_v39, 16  ;;  %v948_v49 = vrot.slane %v946_v40, 4  ;;  %v876_v52 = vld [vmem:[%s6219_s26 + $0x18] sm:$0xf]  ;;  %v6077_v58 = vld [vmem:[%s6219_s26 + $0x180] sm:$0xff]  }
  0x1b   : > { %5742 = vmatmul.mubr.msk.bf16.gmra.mxu0 %vm364_vm1, %v6068_v14  ;;  %v938_v44 = vor.u32 %v937_v36, %v933_v35  ;;  %v951_v50 = vrot.slane %v949_v41, 5  ;;  %v957_v51 = vrot.slane %v955_v42, 5  ;;  %v877_v57 = vld [vmem:[%s6219_s26 + $0x1c] sm:$0xf]  ;;  %v878_v60 = vld [vmem:[%s6219_s26 + $0x20] sm:$0x1] }
  0x1c   : > { %5758 = vmatmul.mubr.msk.bf16.gmra.mxu1 %vm364_vm1, %v6069_v15  ;;  %5745 = vmatprep.mubr.msk.bf16.mxu0 %vm364_vm1, %v6070_v16  ;;  %v929_v53 = vrot.slane %v928_v43, 4  ;;  %v961_v55 = vrot.slane %v959_v45, 4  ;;  %v967_v56 = vrot.slane %v965_v46, 5  ;;  %v970_v61 = vshrl.u32 %v876_v52, 16  ;;  %v6078_v0 = vld [vmem:[%s6219_s26] sm:$0xff]   ;;  %v6080_v42 = vld [vmem:[%s6219_s26 + $0x18] sm:$0xff]  }
  0x1d   : > { %5761 = vmatprep.mubr.msk.bf16.mxu1 %vm364_vm1, %v6071_v17  ;;  %v939_v54 = vrot.slane %v938_v44, 4  ;;  %v952_v59 = vor.u32 %v951_v50, %v948_v49  ;;  %v973_v62 = vshll.u32 %v876_v52, 16  ;;  %v979_v63 = vshll.u32 %v877_v57, 16  ;;  %v879_v9 = vld [vmem:[%s6219_s26 + $0x24] sm:$0xf] }
  0x1e   : > { %v934_v1 = vsel %vm6274_vm4, %v929_v53, %v933_v35  ;;  %v962_v3 = vor.u32 %v961_v55, %v957_v51  ;;  %v983_v4 = vshrl.u32 %v877_v57, 16  ;;  %v972_v7 = vrot.slane %v970_v61, 4  ;;  %v880_v14 = vld [vmem:[%s6219_s26 + $0x28] sm:$0xf]  ;;  %v881_v17 = vld [vmem:[%s6219_s26 + $0x2c] sm:$0x1] }
  0x1f   : > { %v944_v2 = vsel %vm6274_vm4, %v939_v54, %v943_v38  ;;  %v953_v6 = vrot.slane %v952_v59, 4  ;;  %v975_v8 = vrot.slane %v973_v62, 5  ;;  %v981_v11 = vrot.slane %v979_v63, 5  ;;  %v882_v25 = vld [vmem:[%s6219_s26 + $0x30] sm:$0xf] }
  0x20   : > { %v4966_v5 = vcombine.low %v934_v1, %v944_v2  ;;  %v963_v10 = vrot.slane %v962_v3, 4  ;;  %v985_v12 = vrot.slane %v983_v4, 4  ;;  %v989_v13 = vshll.u32 %v878_v60, 16  ;;  %v883_v31 = vld [vmem:[%s6219_s26 + $0x34] sm:$0xf] }
  0x21   : > { %v958_v15 = vsel %vm6274_vm4, %v953_v6, %v957_v51  ;;  %v976_v16 = vor.u32 %v975_v8, %v972_v7  ;;  %v1003_v24 = vshll.u32 %v880_v14, 16  ;;  %v1007_v35 = vshrl.u32 %v880_v14, 16  ;;  %v884_v37 = vld [vmem:[%s6219_s26 + $0x38] sm:$0x1]  ;;  %v6311_v49 = vld [vmem:[%s7716_s1 + $0xa] sm:$0x3] }
  0x22   : > { %v991_v23 = vrot.slane %v989_v13, 5  ;;  %v1013_v36 = vshll.u32 %v881_v17, 16  ;;  %v1018_v40 = vshrl.u32 %v882_v25, 16  ;;  %v1021_v41 = vshll.u32 %v882_v25, 16  ;;  %v886_v54 = vld [vmem:[%s6219_s26 + $0x40] sm:$0xf] }
  0x23   : > { %5746 = vmatmul.mubr.msk.bf16.gmra.mxu0 %vm364_vm1, %v6072_v18  ;;  %v994_v18 = vshrl.u32 %v879_v9, 16  ;;  %v977_v28 = vrot.slane %v976_v16, 4  ;;  %v1005_v34 = vrot.slane %v1003_v24, 5  ;;  %v1009_v44 = vrot.slane %v1007_v35, 4  ;;  %v6317_v55 = vld [vmem:[%s7716_s1 + $0xc] sm:$0x3] }
  0x24   : > { %5762 = vmatmul.mubr.msk.bf16.gmra.mxu1 %vm364_vm1, %v6073_v19  ;;  %5749 = vmatprep.mubr.msk.bf16.mxu0 %vm364_vm1, %v6074_v20  ;;  %v997_v19 = vshll.u32 %v879_v9, 16  ;;  %v968_v20 = vsel %vm6274_vm4, %v963_v10, %v967_v56  ;;  %v1015_v45 = vrot.slane %v1013_v36, 5  ;;  %v1027_v46 = vshll.u32 %v883_v31, 16  ;;  %v887_v60 = vld [vmem:[%s6219_s26 + $0x44] sm:$0x1] }
  0x25   : > { %5765 = vmatprep.mubr.msk.bf16.mxu1 %vm364_vm1, %v6075_v21  ;;  %v986_v21 = vor.u32 %v985_v12, %v981_v11  ;;  %v4967_v27 = vcombine.low %v958_v15, %v968_v20  ;;  %v996_v29 = vrot.slane %v994_v18, 4  ;;  %v982_v38 = vsel %vm6274_vm4, %v977_v28, %v981_v11  ;;  %v888_v9 = vld [vmem:[%s6219_s26 + $0x48] sm:$0xf]  ;;  %v889_v13 = vld [vmem:[%s6219_s26 + $0x4c] sm:$0xf]  ;;  %v6082_v15 = vld [vmem:[%s6219_s26 + $0x30] sm:$0xff]  }
  0x26   : > { %v999_v30 = vrot.slane %v997_v19, 5  ;;  %v1020_v52 = vrot.slane %v1018_v40, 4  ;;  %v1023_v53 = vrot.slane %v1021_v41, 5  ;;  %v1010_v56 = vor.u32 %v1009_v44, %v1005_v34  ;;  %v890_v19 = vld [vmem:[%s6219_s26 + $0x50] sm:$0x1] }
  0x27   : > { %v987_v33 = vrot.slane %v986_v21, 4  ;;  %v1029_v57 = vrot.slane %v1027_v46, 5  ;;  %v1037_v59 = vshll.u32 %v884_v37, 16  ;;  %v1051_v4 = vshll.u32 %v886_v54, 16  ;;  %v891_v25 = vld [vmem:[%s6219_s26 + $0x54] sm:$0xf] }
  0x28   : > { %v1000_v39 = vor.u32 %v999_v30, %v996_v29  ;;  %v1024_v62 = vor.u32 %v1023_v53, %v1020_v52  ;;  %v1011_v1 = vrot.slane %v1010_v56, 4  ;;  %v1055_v8 = vshrl.u32 %v886_v54, 16  ;;  %v892_v30 = vld [vmem:[%s6219_s26 + $0x58] sm:$0xf]  ;;  %v893_v40 = vld [vmem:[%s6219_s26 + $0x5c] sm:$0x1] }
  0x29   : > { %v992_v43 = vsel %vm6274_vm4, %v987_v33, %v991_v23  ;;  %v1039_v3 = vrot.slane %v1037_v59, 5  ;;  %v1053_v11 = vrot.slane %v1051_v4, 5  ;;  %v1061_v12 = vshll.u32 %v887_v60, 16  ;;  %v6083_v46 = vld [vmem:[%s6219_s26 + $0x3c] sm:$0xff]   ;;  %v895_v53 = vld [vmem:[%s6219_s26 + $0x64] sm:$0xf] }
  0x2a   : > { %v4968_v50 = vcombine.low %v982_v38, %v992_v43  ;;  %v1001_v51 = vrot.slane %v1000_v39, 4  ;;  %v1057_v18 = vrot.slane %v1055_v8, 4  ;;  %v1066_v23 = vshrl.u32 %v888_v9, 16 }
  0x2b   : > { %5750 = vmatmul.mubr.msk.bf16.gmra.mxu0 %vm364_vm1, %v6076_v47  ;;  %v885_v47 = vld [vmem:[%s6219_s26 + $0x3c] sm:$0xf]  ;;  %v1063_v21 = vrot.slane %v1061_v12, 5  ;;  %v1069_v24 = vshll.u32 %v888_v9, 16  ;;  %v1075_v28 = vshll.u32 %v889_v13, 16  ;;  %v1079_v29 = vshrl.u32 %v889_v13, 16 }
  0x2c   : > { %5766 = vmatmul.mubr.msk.bf16.gmra.mxu1 %vm364_vm1, %v6077_v58  ;;  %5805 = vmatprep.mubr.msk.bf16.mxu0 %vm364_vm1, %v4966_v5  ;;  %v1031_v58 = vshrl.u32 %v883_v31, 16  ;;  %v1006_v61 = vsel %vm6274_vm4, %v1001_v51, %v1005_v34  ;;  %v1042_v63 = vshrl.u32 %v885_v47, 16  ;;  %v1025_v5 = vrot.slane %v1024_v62, 4  ;;  %v898_v9 = vld [vmem:[%s6219_s26 + $0x70] sm:$0xf] }
  0x2d   : > { %5771 = vmatprep.mubr.msk.bf16.mxu1 %vm364_vm1, %v6078_v0  ;;  %v1045_v0 = vshll.u32 %v885_v47, 16  ;;  %v1068_v33 = vrot.slane %v1066_v23, 4  ;;  %v1071_v34 = vrot.slane %v1069_v24, 5  ;;  %v1085_v35 = vshll.u32 %v890_v19, 16  ;;  %v6085_v23 = vld [vmem:[%s6219_s26 + $0x54] sm:$0xff]  }
  0x2e   : > { %v1033_v2 = vrot.slane %v1031_v58, 4  ;;  %v1044_v6 = vrot.slane %v1042_v63, 4  ;;  %v1030_v16 = vsel %vm6274_vm4, %v1025_v5, %v1029_v57  ;;  %v1077_v39 = vrot.slane %v1075_v28, 5  ;;  %v896_v63 = vld [vmem:[%s6219_s26 + $0x68] sm:$0x1] }
  0x2f   : > { %v1047_v7 = vrot.slane %v1045_v0, 5  ;;  %v1072_v41 = vor.u32 %v1071_v34, %v1068_v33  ;;  %v1087_v43 = vrot.slane %v1085_v35, 5  ;;  %v1090_v44 = vshrl.u32 %v891_v25, 16  ;;  %v6084_v0 = vld [vmem:[%s6219_s26 + $0x48] sm:$0xff]   ;;  %v900_v28 = vld [vmem:[%s6219_s26 + $0x78] sm:$0xf] }
  0x30   : > { %v1034_v10 = vor.u32 %v1033_v2, %v1029_v57  ;;  %v1099_v51 = vshll.u32 %v892_v30, 16  ;;  %v1103_v52 = vshrl.u32 %v892_v30, 16  ;;  %v1109_v62 = vshll.u32 %v893_v40, 16  ;;  %v901_v34 = vld [vmem:[%s6219_s26 + $0x7c] sm:$0xf]  ;;  %v6086_v40 = vld [vmem:[%s6219_s26 + $0x60] sm:$0xff]  }
  0x31   : > { %v1048_v17 = vor.u32 %v1047_v7, %v1044_v6  ;;  %v1073_v56 = vrot.slane %v1072_v41, 4  ;;  %v1092_v58 = vrot.slane %v1090_v44, 4  ;;  %v1123_v8 = vshll.u32 %v895_v53, 16 }
  0x32   : > { %v1035_v20 = vrot.slane %v1034_v10, 4  ;;  %v1101_v60 = vrot.slane %v1099_v51, 5  ;;  %v1111_v7 = vrot.slane %v1109_v62, 5  ;;  %v1127_v12 = vshrl.u32 %v895_v53, 16 }
  0x33   : > { %5806 = vmatmul.mubr.msk.bf16.vlgmr.msra.gmra.mxu0 %vm364_vm1, %v4967_v27  ;;  %v1058_v27 = vor.u32 %v1057_v18, %v1053_v11  ;;  %v1133_v19 = vshll.u32 %v896_v63, 16  ;;  %v1162_v44 = vshrl.u32 %v900_v28, 16  ;;  %v1171_v51 = vshll.u32 %v901_v34, 16 }
  0x34   : > { %5772 = vmatmul.mubr.msk.bf16.vlgmr.msra.gmra.mxu1 %vm364_vm1, %v6079_v26  ;;  %5872 = vmatpush3.bf16.msra.mxu0 %v6263_v32  ;;  %v6081_v32 = vld [vmem:[%s6219_s26 + $0x24] sm:$0xff]   ;;  %v1049_v26 = vrot.slane %v1048_v17, 4  ;;  %v1040_v31 = vsel %vm6274_vm4, %v1035_v20, %v1039_v3  ;;  %v1129_v18 = vrot.slane %v1127_v12, 4  ;;  %v899_v20 = vld [vmem:[%s6219_s26 + $0x74] sm:$0x1] }
  0x35   : > { %5838 = vmatpush3.bf16.msra.mxu1 %v6256_v22  ;;  %5775 = vmatprep.mubr.msk.bf16.mxu1 %vm364_vm1, %v6080_v42  ;;  %v1016_v22 = vsel %vm6274_vm4, %v1011_v1, %v1015_v45  ;;  %v4970_v36 = vcombine.low %v1030_v16, %v1040_v31  ;;  %v1059_v38 = vrot.slane %v1058_v27, 4  ;;  %v1081_v42 = vrot.slane %v1079_v29, 4  ;;  %v894_v45 = vld [vmem:[%s6219_s26 + $0x60] sm:$0xf] }
  0x36   : > { %5809 = vmatprep.mubr.msk.bf16.mxu0 %vm364_vm1, %v4968_v50  ;;  %6049 = vmatprep.subr.msk.bf16.mxu1 %vm413_vm0, %v6311_v49  ;;  %v4969_v14 = vcombine.low %v1006_v61, %v1016_v22  ;;  %v1054_v37 = vsel %vm6274_vm4, %v1049_v26, %v1053_v11  ;;  %v1093_v50 = vshll.u32 %v891_v25, 16  ;;  %v1105_v61 = vrot.slane %v1103_v52, 4 }
  0x37   : > { %6050 = vmatprep.subr.msk.bf16.mxu0 %vm413_vm0, %v6317_v55  ;;  %v1064_v47 = vsel %vm6274_vm4, %v1059_v38, %v1063_v21  ;;  %v1082_v57 = vor.u32 %v1081_v42, %v1077_v39  ;;  %v1078_v1 = vsel %vm6274_vm4, %v1073_v56, %v1077_v39  ;;  %v1114_v3 = vshrl.u32 %v894_v45, 16  ;;  %v902_v39 = vld [vmem:[%s6219_s26 + $0x80] sm:$0x1] }
  0x38   : > { %v4971_v54 = vcombine.low %v1054_v37, %v1064_v47  ;;  %v1095_v59 = vrot.slane %v1093_v50, 5  ;;  %v1117_v4 = vshll.u32 %v894_v45, 16  ;;  %v1106_v6 = vor.u32 %v1105_v61, %v1101_v60  ;;  %v903_v45 = vld [vmem:[%s6219_s26 + $0x84] sm:$0xf]  ;;  %v904_v61 = vld [vmem:[%s6219_s26 + $0x88] sm:$0xf] }
  0x39   : > { %v1083_v2 = vrot.slane %v1082_v57, 4  ;;  %v1116_v10 = vrot.slane %v1114_v3, 4  ;;  %v1125_v16 = vrot.slane %v1123_v8, 5  ;;  %v1147_v27 = vshll.u32 %v898_v9, 16 }
  0x3a   : > { %v1096_v5 = vor.u32 %v1095_v59, %v1092_v58  ;;  %v1119_v11 = vrot.slane %v1117_v4, 5  ;;  %v1135_v33 = vrot.slane %v1133_v19, 5  ;;  %v1151_v38 = vshrl.u32 %v898_v9, 16 }
  0x3b   : > { %5810 = vmatmul.mubr.msk.bf16.gmra.mxu0 %vm364_vm1, %v4969_v14  ;;  %v1088_v22 = vsel %vm6274_vm4, %v1083_v2, %v1087_v43  ;;  %v1130_v31 = vor.u32 %v1129_v18, %v1125_v16  ;;  %v1149_v37 = vrot.slane %v1147_v27, 5  ;;  %v1157_v43 = vshll.u32 %v899_v20, 16 }
  0x3c   : > { %5776 = vmatmul.mubr.msk.bf16.gmra.mxu1 %vm364_vm1, %v6081_v32  ;;  %5813 = vmatprep.mubr.msk.bf16.mxu0 %vm364_vm1, %v4970_v36  ;;  %v897_v32 = vld [vmem:[%s6219_s26 + $0x6c] sm:$0xf]  ;;  %v4972_v13 = vcombine.low %v1078_v1, %v1088_v22  ;;  %v1097_v14 = vrot.slane %v1096_v5, 4  ;;  %v1120_v17 = vor.u32 %v1119_v11, %v1116_v10  ;;  %v1153_v47 = vrot.slane %v1151_v38, 4  ;;  %v906_v22 = vld [vmem:[%s6219_s26 + $0x90] sm:$0xf] }
  0x3d   : > { %5779 = vmatprep.mubr.msk.bf16.mxu1 %vm364_vm1, %v6082_v15  ;;  %v1107_v15 = vrot.slane %v1106_v6, 4  ;;  %v1138_v21 = vshrl.u32 %v897_v32, 16  ;;  %v1141_v26 = vshll.u32 %v897_v32, 16  ;;  %v1131_v42 = vrot.slane %v1130_v31, 4  ;;  %v905_v1 = vld [vmem:[%s6219_s26 + $0x8c] sm:$0x1] }
  0x3e   : > { %v1102_v24 = vsel %vm6274_vm4, %v1097_v14, %v1101_v60  ;;  %v1121_v30 = vrot.slane %v1120_v17, 4  ;;  %v1165_v50 = vshll.u32 %v900_v28, 16  ;;  %v1159_v53 = vrot.slane %v1157_v43, 5  ;;  %v6087_v10 = vld [vmem:[%s6219_s26 + $0x6c] sm:$0xff]   ;;  %v6088_v17 = vld [vmem:[%s6219_s26 + $0x78] sm:$0xff]  }
  0x3f   : > { %v1112_v25 = vsel %vm6274_vm4, %v1107_v15, %v1111_v7  ;;  %v1140_v35 = vrot.slane %v1138_v21, 4  ;;  %v1143_v36 = vrot.slane %v1141_v26, 5  ;;  %v1136_v52 = vsel %vm6274_vm4, %v1131_v42, %v1135_v33  ;;  %v907_v15 = vld [vmem:[%s6219_s26 + $0x94] sm:$0xf]  ;;  %v908_v21 = vld [vmem:[%s6219_s26 + $0x98] sm:$0x1] }
  0x40   : > { %v4973_v29 = vcombine.low %v1102_v24, %v1112_v25  ;;  %v1126_v41 = vsel %vm6274_vm4, %v1121_v30, %v1125_v16  ;;  %v1175_v56 = vshrl.u32 %v901_v34, 16  ;;  %v1154_v59 = vor.u32 %v1153_v47, %v1149_v37  ;;  %v909_v31 = vld [vmem:[%s6219_s26 + $0x9c] sm:$0xf]  ;;  %v911_v42 = vld [vmem:[%s6219_s26 + $0xa4] sm:$0x1] }
  0x41   : > { %v4974_v57 = vcombine.low %v1126_v41, %v1136_v52  ;;  %v1167_v60 = vrot.slane %v1165_v50, 5  ;;  %v1173_v62 = vrot.slane %v1171_v51, 5  ;;  %v1186_v2 = vshrl.u32 %v903_v45, 16  ;;  %v6089_v47 = vld [vmem:[%s6219_s26 + $0x84] sm:$0xff]  }
  0x42   : > { %v1177_v63 = vrot.slane %v1175_v56, 4  ;;  %v1155_v4 = vrot.slane %v1154_v59, 4  ;;  %v1189_v5 = vshll.u32 %v903_v45, 16  ;;  %v1195_v9 = vshll.u32 %v904_v61, 16 }
  0x43   : > { %5814 = vmatmul.mubr.msk.bf16.gmra.mxu0 %vm364_vm1, %v4971_v54  ;;  %v1164_v54 = vrot.slane %v1162_v44, 4  ;;  %v1188_v8 = vrot.slane %v1186_v2, 4  ;;  %v1199_v14 = vshrl.u32 %v904_v61, 16  ;;  %v1205_v20 = vshll.u32 %v905_v1, 16  ;;  %v913_v61 = vld [vmem:[%s6219_s26 + $0xac] sm:$0xf] }
  0x44   : > { %5780 = vmatmul.mubr.msk.bf16.gmra.mxu1 %vm364_vm1, %v6083_v46  ;;  %5817 = vmatprep.mubr.msk.bf16.mxu0 %vm364_vm1, %v4972_v13  ;;  %v1144_v46 = vor.u32 %v1143_v36, %v1140_v35  ;;  %v1178_v6 = vor.u32 %v1177_v63, %v1173_v62  ;;  %v1160_v11 = vsel %vm6274_vm4, %v1155_v4, %v1159_v53  ;;  %v1191_v13 = vrot.slane %v1189_v5, 5  ;;  %v914_v2 = vld [vmem:[%s6219_s26 + $0xb0] sm:$0x1] }
  0x45   : > { %5783 = vmatprep.mubr.msk.bf16.mxu1 %vm364_vm1, %v6084_v0  ;;  %v1181_v0 = vshll.u32 %v902_v39, 16  ;;  %v1168_v32 = vor.u32 %v1167_v60, %v1164_v54  ;;  %v1197_v19 = vrot.slane %v1195_v9, 5  ;;  %v1201_v25 = vrot.slane %v1199_v14, 4  ;;  %v912_v54 = vld [vmem:[%s6219_s26 + $0xa8] sm:$0xf] }
  0x46   : > { %v1145_v58 = vrot.slane %v1144_v46, 4  ;;  %v1179_v18 = vrot.slane %v1178_v6, 4  ;;  %v1192_v24 = vor.u32 %v1191_v13, %v1188_v8  ;;  %v1210_v26 = vshrl.u32 %v906_v22, 16  ;;  %v915_v6 = vld [vmem:[%s6219_s26 + $0xb4] sm:$0xf] }
  0x47   : > { %v1183_v7 = vrot.slane %v1181_v0, 5  ;;  %v1169_v12 = vrot.slane %v1168_v32, 4  ;;  %v1207_v28 = vrot.slane %v1205_v20, 5  ;;  %v1219_v30 = vshll.u32 %v907_v15, 16 }
  0x48   : > { %v1150_v3 = vsel %vm6274_vm4, %v1145_v58, %v1149_v37  ;;  %v1193_v34 = vrot.slane %v1192_v24, 4  ;;  %v1202_v35 = vor.u32 %v1201_v25, %v1197_v19  ;;  %v1212_v36 = vrot.slane %v1210_v26, 4  ;;  %v910_v37 = vld [vmem:[%s6219_s26 + $0xa0] sm:$0xf] }
  0x49   : > { %v4975_v16 = vcombine.low %v1150_v3, %v1160_v11  ;;  %v1184_v27 = vsel %vm6274_vm4, %v1179_v18, %v1183_v7  ;;  %v1221_v39 = vrot.slane %v1219_v30, 5  ;;  %v1229_v41 = vshll.u32 %v908_v21, 16  ;;  %v6091_v25 = vld [vmem:[%s6219_s26 + $0x9c] sm:$0xff]  }
  0x4a   : > { %v1198_v43 = vsel %vm6274_vm4, %v1193_v34, %v1197_v19  ;;  %v1203_v44 = vrot.slane %v1202_v35, 4  ;;  %v1234_v45 = vshrl.u32 %v909_v31, 16  ;;  %v1237_v46 = vshll.u32 %v909_v31, 16  ;;  %v917_v19 = vld [vmem:[%s6219_s26 + $0xbc] sm:$0x1]  ;;  %v6092_v31 = vld [vmem:[%s6219_s26 + $0xa8] sm:$0xff]  }
  0x4b   : > { %5818 = vmatmul.mubr.msk.bf16.gmra.mxu0 %vm364_vm1, %v4973_v29  ;;  %v1213_v29 = vshll.u32 %v906_v22, 16  ;;  %v1231_v52 = vrot.slane %v1229_v41, 5  ;;  %v1243_v53 = vshll.u32 %v910_v37, 16  ;;  %v1247_v60 = vshrl.u32 %v910_v37, 16 }
  0x4c   : > { %5784 = vmatmul.mubr.msk.bf16.gmra.mxu1 %vm364_vm1, %v6085_v23  ;;  %5821 = vmatprep.mubr.msk.bf16.mxu0 %vm364_vm1, %v4974_v57  ;;  %v1174_v23 = vsel %vm6274_vm4, %v1169_v12, %v1173_v62  ;;  %v1208_v56 = vsel %vm6274_vm4, %v1203_v44, %v1207_v28  ;;  %v6090_v57 = vld [vmem:[%s6219_s26 + $0x90] sm:$0xff]   ;;  %v1236_v58 = vrot.slane %v1234_v45, 4  ;;  %v1239_v59 = vrot.slane %v1237_v46, 5 }
  0x4d   : > { %5787 = vmatprep.mubr.msk.bf16.mxu1 %vm364_vm1, %v6086_v40  ;;  %v4976_v33 = vcombine.low %v1174_v23, %v1184_v27  ;;  %v1215_v38 = vrot.slane %v1213_v29, 5  ;;  %v1223_v40 = vshrl.u32 %v907_v15, 16  ;;  %v4977_v62 = vcombine.low %v1198_v43, %v1208_v56 }
  0x4e   : > { %v1245_v1 = vrot.slane %v1243_v53, 5  ;;  %v1240_v3 = vor.u32 %v1239_v59, %v1236_v58  ;;  %v1249_v4 = vrot.slane %v1247_v60, 4  ;;  %v1253_v32 = vshll.u32 %v911_v42, 16  ;;  %v6093_v53 = vld [vmem:[%s6219_s26 + $0xb4] sm:$0xff]  }
  0x4f   : > { %v1216_v50 = vor.u32 %v1215_v38, %v1212_v36  ;;  %v1225_v51 = vrot.slane %v1223_v40, 4  ;;  %v1258_v5 = vshrl.u32 %v912_v54, 16  ;;  %v1261_v9 = vshll.u32 %v912_v54, 16  ;;  %v6094_v58 = vld [vmem:[%s6219_s26 + $0x198] sm:$0xff]  }
  0x50   : > { %v1267_v22 = vshll.u32 %v913_v61, 16  ;;  %v1241_v11 = vrot.slane %v1240_v3, 4  ;;  %v1250_v12 = vor.u32 %v1249_v4, %v1245_v1  ;;  %v1255_v13 = vrot.slane %v1253_v32, 5  ;;  %v6099_v3 = vld [vmem:[%s6219_s26 + $0x27c] sm:$0xff]   ;;  %v6101_v4 = vld [vmem:[%s6219_s26 + $0x288] sm:$0xff]   ;;  %v6103_v32 = vld [vmem:[%s6219_s26 + $0x294] sm:$0xff]  }
  0x51   : > { %v1217_v63 = vrot.slane %v1216_v50, 4  ;;  %v1226_v0 = vor.u32 %v1225_v51, %v1221_v39  ;;  %v1260_v14 = vrot.slane %v1258_v5, 4  ;;  %v1271_v18 = vshrl.u32 %v913_v61, 16  ;;  %v6475_v5 = vld [vmem:[%s7716_s1 + $0xe] sm:$0x3] }
  0x52   : > { %v1246_v21 = vsel %vm6274_vm4, %v1241_v11, %v1245_v1  ;;  %v1251_v23 = vrot.slane %v1250_v12, 4  ;;  %v1277_v24 = vshll.u32 %v914_v2, 16  ;;  %v1282_v28 = vshrl.u32 %v915_v6, 16  ;;  %v6098_v1 = vld [vmem:[%s6219_s26 + $0x1b0] sm:$0xff]   ;;  %v5129_v11 = vld [vmem:[%s6219_s26 + $0x19c] sm:$0xf] }
  0x53   : > { %5822 = vmatmul.mubr.msk.bf16.gmra.mxu0 %vm364_vm1, %v4975_v16  ;;  %v1222_v7 = vsel %vm6274_vm4, %v1217_v63, %v1221_v39  ;;  %v1227_v8 = vrot.slane %v1226_v0, 4  ;;  %v1263_v16 = vrot.slane %v1261_v9, 5  ;;  %v1273_v27 = vrot.slane %v1271_v18, 4  ;;  %v6096_v63 = vld [vmem:[%s6219_s26 + $0x1a4] sm:$0xff]   ;;  %v6488_v9 = vld [vmem:[%s7716_s1 + $0x10] sm:$0x3] }
  0x54   : > { %5788 = vmatmul.mubr.msk.bf16.gmra.mxu1 %vm364_vm1, %v6087_v10  ;;  %5825 = vmatprep.mubr.msk.bf16.mxu0 %vm364_vm1, %v4976_v33  ;;  %v916_v10 = vld [vmem:[%s6219_s26 + $0xb8] sm:$0xf]  ;;  %v1285_v29 = vshll.u32 %v915_v6, 16  ;;  %v1256_v30 = vsel %vm6274_vm4, %v1251_v23, %v1255_v13  ;;  %v1279_v33 = vrot.slane %v1277_v24, 5  ;;  %v1284_v39 = vrot.slane %v1282_v28, 4  ;;  %v6105_v6 = vld [vmem:[%s6219_s26 + $0x2a0] sm:$0xff]  }
  0x55   : > { %5791 = vmatprep.mubr.msk.bf16.mxu1 %vm364_vm1, %v6088_v17  ;;  %v1232_v15 = vsel %vm6274_vm4, %v1227_v8, %v1231_v52  ;;  %v1269_v17 = vrot.slane %v1267_v22, 5  ;;  %v1264_v26 = vor.u32 %v1263_v16, %v1260_v14  ;;  %v1291_v34 = vshll.u32 %v916_v10, 16  ;;  %v6107_v8 = vld [vmem:[%s6219_s26 + $0x2ac] sm:$0xff]   ;;  %v6106_v22 = vld [vmem:[%s6219_s26 + $0x1e0] sm:$0xff]   ;;  %v5132_v24 = vld [vmem:[%s6219_s26 + $0x1a8] sm:$0xf] }
  0x56   : > { %v4978_v20 = vcombine.low %v1222_v7, %v1232_v15  ;;  %v1295_v35 = vshrl.u32 %v916_v10, 16  ;;  %v4979_v36 = vcombine.low %v1246_v21, %v1256_v30  ;;  %v1287_v40 = vrot.slane %v1285_v29, 5  ;;  %v6104_v7 = vld [vmem:[%s6219_s26 + $0x1d4] sm:$0xff]   ;;  %v5130_v12 = vld [vmem:[%s6219_s26 + $0x1a0] sm:$0x1]  ;;  %v6108_v16 = vld [vmem:[%s6219_s26 + $0x1ec] sm:$0xff]  }
  0x57   : > { %v1265_v37 = vrot.slane %v1264_v26, 4  ;;  %v1274_v38 = vor.u32 %v1273_v27, %v1269_v17  ;;  %v1293_v41 = vrot.slane %v1291_v34, 5  ;;  %v1301_v43 = vshll.u32 %v917_v19, 16  ;;  %v5128_v10 = vld [vmem:[%s6219_s26 + $0x198] sm:$0xf] }
  0x58   : > { %v1297_v42 = vrot.slane %v1295_v35, 4  ;;  %v1288_v46 = vor.u32 %v1287_v40, %v1284_v39  ;;  %v3207_v0 = vsel %vm413_vm0, %v6317_v55, 0  ;;  %v2848_v2 = vsel %vm413_vm0, %v6311_v49, 0  ;;  %v6100_v55 = vld [vmem:[%s6219_s26 + $0x1bc] sm:$0xff]   ;;  %v6102_v49 = vld [vmem:[%s6219_s26 + $0x1c8] sm:$0xff]  }
  0x59   : > { %v1270_v44 = vsel %vm6274_vm4, %v1265_v37, %v1269_v17  ;;  %v1275_v45 = vrot.slane %v1274_v38, 4  ;;  %v1303_v50 = vrot.slane %v1301_v43, 5  ;;  %v2366_v13 = vshrl.u32 %v5128_v10, 16  ;;  %v6109_v15 = vld [vmem:[%s6219_s26 + $0x2b8] sm:$0xff]   ;;  %v6111_v17 = vld [vmem:[%s6219_s26 + $0x2c4] sm:$0xff]   ;;  %v6113_v43 = vld [vmem:[%s6219_s26 + $0x2d0] sm:$0xff]  }
  0x5a   : > { %v1289_v54 = vrot.slane %v1288_v46, 4  ;;  %v2369_v14 = vshll.u32 %v5128_v10, 16  ;;  %v2375_v18 = vshll.u32 %v5129_v11, 16  ;;  %v2379_v19 = vshrl.u32 %v5129_v11, 16  ;;  %v6110_v21 = vld [vmem:[%s6219_s26 + $0x1f8] sm:$0xff]   ;;  %v6112_v40 = vld [vmem:[%s6219_s26 + $0x204] sm:$0xff]  }
  0x5b   : > { %5826 = vmatmul.mubr.msk.bf16.gmra.mxu0 %vm364_vm1, %v4977_v62  ;;  %v1280_v51 = vsel %vm6274_vm4, %v1275_v45, %v1279_v33  ;;  %v6097_v62 = vld [vmem:[%s6219_s26 + $0x270] sm:$0xff]   ;;  %v2385_v23 = vshll.u32 %v5130_v12, 16  ;;  %v2399_v34 = vshll.u32 %v5132_v24, 16  ;;  %v2403_v35 = vshrl.u32 %v5132_v24, 16  ;;  %v5137_v39 = vld [vmem:[%s6219_s26 + $0x1bc] sm:$0xf] }
  0x5c   : > { %5792 = vmatmul.mubr.msk.bf16.gmra.mxu1 %vm364_vm1, %v6089_v47  ;;  %5829 = vmatprep.mubr.msk.bf16.mxu0 %vm364_vm1, %v4978_v20  ;;  %v1298_v47 = vor.u32 %v1297_v42, %v1293_v41  ;;  %v4980_v52 = vcombine.low %v1270_v44, %v1280_v51  ;;  %v1294_v59 = vsel %vm6274_vm4, %v1289_v54, %v1293_v41  ;;  %v5131_v20 = vld [vmem:[%s6219_s26 + $0x1a4] sm:$0xf]  ;;  %v2371_v26 = vrot.slane %v2369_v14, 5  ;;  %v5134_v27 = vld [vmem:[%s6219_s26 + $0x1b0] sm:$0xf]  ;;  %v6115_v45 = vld [vmem:[%s6219_s26 + $0x2dc] sm:$0xff]  }
  0x5d   : > { %5795 = vmatprep.mubr.msk.bf16.mxu1 %vm364_vm1, %v6090_v57  ;;  %v6095_v57 = vld [vmem:[%s6219_s26 + $0x264] sm:$0xff]   ;;  %v2390_v28 = vshrl.u32 %v5131_v20, 16  ;;  %v2393_v29 = vshll.u32 %v5131_v20, 16  ;;  %v5135_v30 = vld [vmem:[%s6219_s26 + $0x1b4] sm:$0xf]  ;;  %v2381_v33 = vrot.slane %v2379_v19, 4 }
  0x5e   : > { %v1299_v56 = vrot.slane %v1298_v47, 4  ;;  %v2414_v37 = vshrl.u32 %v5134_v27, 16  ;;  %v2417_v38 = vshll.u32 %v5134_v27, 16  ;;  %v2423_v41 = vshll.u32 %v5135_v30, 16  ;;  %v6114_v44 = vld [vmem:[%s6219_s26 + $0x210] sm:$0xff]   ;;  %v6117_v14 = vld [vmem:[%s6219_s26 + $0x2e8] sm:$0xff]  }
  0x5f   : > { %v2427_v42 = vshrl.u32 %v5135_v30, 16  ;;  %v6520_v47 = vrot.slane %v2385_v23, 5  ;;  %v2395_v51 = vrot.slane %v2393_v29, 5  ;;  %v5138_v54 = vld [vmem:[%s6219_s26 + $0x1c0] sm:$0xf]  ;;  %v6548_v10 = vsel %vm413_vm0, %v6488_v9, 0 }
  0x60   : > { %v1304_v60 = vsel %vm6274_vm4, %v1299_v56, %v1303_v50  ;;  %v2392_v50 = vrot.slane %v2390_v28, 4  ;;  %v2438_v56 = vshrl.u32 %v5137_v39, 16  ;;  %v5141_v12 = vld [vmem:[%s6219_s26 + $0x1cc] sm:$0xf]  ;;  %v5142_v27 = vld [vmem:[%s6219_s26 + $0x1d0] sm:$0x1] }
  0x61   : > { %v4981_v61 = vcombine.low %v1294_v59, %v1304_v60  ;;  %v6528_v60 = vsel %vm413_vm0, %v6475_v5, 0  ;;  %v6118_v20 = vld [vmem:[%s6219_s26 + $0x228] sm:$0xff]   ;;  %v2471_v28 = vshll.u32 %v5141_v12, 16  ;;  %v5143_v29 = vld [vmem:[%s6219_s26 + $0x1d4] sm:$0xf] }
  0x63   : > { %5830 = vmatmul.mubr.msk.bf16.gmra.mxu0 %vm364_vm1, %v4979_v36  ;;  %v5133_v36 = vld [vmem:[%s6219_s26 + $0x1ac] sm:$0x1] }
  0x64   : > { %5796 = vmatmul.mubr.msk.bf16.gmra.mxu1 %vm364_vm1, %v6091_v25  ;;  %5833 = vmatprep.mubr.msk.bf16.mxu0 %vm364_vm1, %v4980_v52  ;;  %v2368_v25 = vrot.slane %v2366_v13, 4  ;;  %v6522_v52 = vrot.slane %v2399_v34, 5  ;;  %v2409_v59 = vshll.u32 %v5133_v36, 16  ;;  %v6116_v13 = vld [vmem:[%s6219_s26 + $0x21c] sm:$0xff]   ;;  %v5144_v34 = vld [vmem:[%s6219_s26 + $0x1d8] sm:$0xf] }
  0x65   : > { %5799 = vmatprep.mubr.msk.bf16.mxu1 %vm364_vm1, %v6092_v31  ;;  %v6511_v31 = vrot.slane %v2375_v18, 5 }
  0x66   : > { %v2372_v46 = vor.u32 %v2371_v26, %v2368_v25 }
  0x6b   : > { %5834 = vmatmul.mubr.msk.bf16.gmra.mxu0 %vm364_vm1, %v4981_v61  ;;  %v5136_v61 = vld [vmem:[%s6219_s26 + $0x1b8] sm:$0x1] }
  0x6c   : > { %5800 = vmatmul.mubr.msk.bf16.gmra.mxu1 %vm364_vm1, %v6093_v53  ;;  %5873 = vmatprep.mubr.msk.bf16.mxu0 %vm364_vm1, %v6095_v57  ;;  %v2405_v53 = vrot.slane %v2403_v35, 4  ;;  %v2441_v57 = vshll.u32 %v5137_v39, 16  ;;  %v2433_v11 = vshll.u32 %v5136_v61, 16 }
  0x6d   : > { %5839 = vmatprep.mubr.msk.bf16.mxu1 %vm364_vm1, %v6094_v58  ;;  %v2382_v58 = vor.u32 %v2381_v33, %v6511_v31  ;;  %v2475_v33 = vshrl.u32 %v5141_v12, 16 }
  0x6e   : > { %v6564_v30 = vrot.slane %v2433_v11, 5 }
  0x73   : > { %5874 = vmatmul.mubr.msk.bf16.vlgmr.msra.gmra.mxu0 %vm364_vm1, %v6097_v62  ;;  %v2416_v62 = vrot.slane %v2414_v37, 4 }
  0x74   : > { %5840 = vmatmul.mubr.msk.bf16.vlgmr.msra.gmra.mxu1 %vm364_vm1, %v6096_v63  ;;  %5940 = vmatpush3.bf16.msra.mxu0 %v3207_v0  ;;  %v2419_v63 = vrot.slane %v2417_v38, 5  ;;  %v6531_v0 = vrot.slane %v2423_v41, 5  ;;  %v2486_v41 = vshrl.u32 %v5143_v29, 16 }
  0x75   : > { %5906 = vmatpush3.bf16.msra.mxu1 %v2848_v2  ;;  %5843 = vmatprep.mubr.msk.bf16.mxu1 %vm364_vm1, %v6098_v1  ;;  %v2429_v1 = vrot.slane %v2427_v42, 4  ;;  %v2396_v2 = vor.u32 %v2395_v51, %v2392_v50  ;;  %v2489_v42 = vshll.u32 %v5143_v29, 16  ;;  %v6121_v50 = vld [vmem:[%s6219_s26 + $0x300] sm:$0xff]  }
  0x76   : > { %5877 = vmatprep.mubr.msk.bf16.mxu0 %vm364_vm1, %v6099_v3  ;;  %6051 = vmatprep.subr.msk.bf16.mxu1 %vm413_vm0, %v6475_v5  ;;  %v5139_v3 = vld [vmem:[%s6219_s26 + $0x1c4] sm:$0x1]  ;;  %v2406_v5 = vor.u32 %v2405_v53, %v6522_v52 }
  0x77   : > { %6052 = vmatprep.subr.msk.bf16.mxu0 %vm413_vm0, %v6488_v9  ;;  %v2457_v18 = vshll.u32 %v5139_v3, 16 }
  0x78   : > { %v6560_v25 = vrot.slane %v2406_v5, 4 }
  0x79   : > { %v6571_v37 = vrot.slane %v2457_v18, 5 }
  0x7b   : > { %5878 = vmatmul.mubr.msk.bf16.gmra.mxu0 %vm364_vm1, %v6101_v4  ;;  %v2451_v4 = vshrl.u32 %v5138_v54, 16 }
  0x7c   : > { %5844 = vmatmul.mubr.msk.bf16.gmra.mxu1 %vm364_vm1, %v6100_v55  ;;  %5881 = vmatprep.mubr.msk.bf16.mxu0 %vm364_vm1, %v6103_v32  ;;  %v2447_v55 = vshll.u32 %v5138_v54, 16  ;;  %v5140_v32 = vld [vmem:[%s6219_s26 + $0x1c8] sm:$0xf]  ;;  %v2477_v54 = vrot.slane %v2475_v33, 4 }
  0x7d   : > { %5847 = vmatprep.mubr.msk.bf16.mxu1 %vm364_vm1, %v6102_v49  ;;  %v6538_v49 = vrot.slane %v2372_v46, 4  ;;  %v2462_v19 = vshrl.u32 %v5140_v32, 16  ;;  %v2453_v9 = vrot.slane %v2451_v4, 4  ;;  %v2465_v24 = vshll.u32 %v5140_v32, 16 }
  0x7e   : > { %v6558_v23 = vrot.slane %v2447_v55, 5  ;;  %v2499_v46 = vshrl.u32 %v5144_v34, 16  ;;  %v2488_v4 = vrot.slane %v2486_v41, 4  ;;  %v2491_v32 = vrot.slane %v2489_v42, 5 }
  0x7f   : > { %v2464_v38 = vrot.slane %v2462_v19, 4  ;;  %v2378_v51 = vsel %vm6274_vm4, %v6538_v49, %v6511_v31  ;;  %v5150_v49 = vld [vmem:[%s6219_s26 + $0x1f0] sm:$0xf] }
  0x80   : > { %v2454_v39 = vor.u32 %v2453_v9, %v6558_v23  ;;  %v2492_v9 = vor.u32 %v2491_v32, %v2488_v4 }
  0x82   : > { %v6614_v3 = vrot.slane %v2454_v39, 4  ;;  %v5148_v39 = vld [vmem:[%s6219_s26 + $0x1e8] sm:$0x1] }
  0x83   : > { %5882 = vmatmul.mubr.msk.bf16.gmra.mxu0 %vm364_vm1, %v6105_v6  ;;  %v2440_v6 = vrot.slane %v2438_v56, 4  ;;  %v2481_v56 = vshll.u32 %v5142_v27, 16  ;;  %v6125_v27 = vld [vmem:[%s6219_s26 + $0x318] sm:$0xff]  }
  0x84   : > { %5848 = vmatmul.mubr.msk.bf16.gmra.mxu1 %vm364_vm1, %v6104_v7  ;;  %5885 = vmatprep.mubr.msk.bf16.mxu0 %vm364_vm1, %v6107_v8  ;;  %v2443_v7 = vrot.slane %v2441_v57, 5  ;;  %v6542_v8 = vrot.slane %v2382_v58, 4  ;;  %v5145_v57 = vld [vmem:[%s6219_s26 + $0x1dc] sm:$0x1]  ;;  %v5146_v58 = vld [vmem:[%s6219_s26 + $0x1e0] sm:$0xf] }
  0x85   : > { %5851 = vmatprep.mubr.msk.bf16.mxu1 %vm364_vm1, %v6106_v22  ;;  %v6544_v22 = vrot.slane %v2409_v59, 5  ;;  %v6120_v59 = vld [vmem:[%s6219_s26 + $0x234] sm:$0xff]   ;;  %v6624_v19 = vrot.slane %v2481_v56, 5 }
  0x86   : > { %v2444_v26 = vor.u32 %v2443_v7, %v2440_v6  ;;  %v2388_v53 = vsel %vm6274_vm4, %v6542_v8, %v6520_v47  ;;  %v2501_v6 = vrot.slane %v2499_v46, 4  ;;  %v2510_v7 = vshrl.u32 %v5146_v58, 16  ;;  %v5152_v8 = vld [vmem:[%s6219_s26 + $0x1f8] sm:$0xf]  ;;  %v5151_v46 = vld [vmem:[%s6219_s26 + $0x1f4] sm:$0x1] }
  0x87   : > { %v2412_v31 = vsel %vm6274_vm4, %v6560_v25, %v6544_v22  ;;  %v5177_v42 = vcombine.low %v2378_v51, %v2388_v53  ;;  %v2529_v51 = vshll.u32 %v5148_v39, 16 }
  0x88   : > { %v2512_v25 = vrot.slane %v2510_v7, 4  ;;  %v6127_v7 = vld [vmem:[%s6219_s26 + $0x18] sm:$0xff]  }
  0x8b   : > { %5886 = vmatmul.mubr.msk.bf16.gmra.mxu0 %vm364_vm1, %v6109_v15  ;;  %v6119_v15 = vld [vmem:[%s6219_s26 + $0x2f4] sm:$0xff]  }
  0x8c   : > { %5852 = vmatmul.mubr.msk.bf16.gmra.mxu1 %vm364_vm1, %v6108_v16  ;;  %5889 = vmatprep.mubr.msk.bf16.mxu0 %vm364_vm1, %v6111_v17  ;;  %v2420_v16 = vor.u32 %v2419_v63, %v2416_v62  ;;  %v2430_v17 = vor.u32 %v2429_v1, %v6531_v0  ;;  %v5147_v63 = vld [vmem:[%s6219_s26 + $0x1e4] sm:$0xf]  ;;  %v5149_v1 = vld [vmem:[%s6219_s26 + $0x1ec] sm:$0xf] }
  0x8d   : > { %5855 = vmatprep.mubr.msk.bf16.mxu1 %vm364_vm1, %v6110_v21  ;;  %v6556_v21 = vrot.slane %v2396_v2, 4  ;;  %v6122_v2 = vld [vmem:[%s6219_s26 + $0x240] sm:$0xff]   ;;  %v2519_v22 = vshll.u32 %v5147_v63, 16  ;;  %v2523_v11 = vshrl.u32 %v5147_v63, 16  ;;  %v2534_v12 = vshrl.u32 %v5149_v1, 16 }
  0x8e   : > { %v6567_v35 = vrot.slane %v2420_v16, 4  ;;  %v6569_v36 = vrot.slane %v2430_v17, 4  ;;  %v2543_v16 = vshll.u32 %v5150_v49, 16  ;;  %v2547_v17 = vshrl.u32 %v5150_v49, 16 }
  0x8f   : > { %v2402_v61 = vsel %vm6274_vm4, %v6556_v21, %v6522_v52  ;;  %v6123_v52 = vld [vmem:[%s6219_s26 + $0x30c] sm:$0xff]   ;;  %v2561_v21 = vshll.u32 %v5152_v8, 16  ;;  %v2525_v29 = vrot.slane %v2523_v11, 4 }
  0x90   : > { %v2426_v47 = vsel %vm6274_vm4, %v6567_v35, %v6531_v0  ;;  %v2436_v62 = vsel %vm6274_vm4, %v6569_v36, %v6564_v30  ;;  %v2513_v0 = vshll.u32 %v5146_v58, 16  ;;  %v2536_v30 = vrot.slane %v2534_v12, 4  ;;  %v6126_v35 = vld [vmem:[%s6219_s26 + $0xc] sm:$0xff]  }
  0x91   : > { %v2549_v41 = vrot.slane %v2547_v17, 4  ;;  %v2563_v56 = vrot.slane %v2561_v21, 5  ;;  %v6128_v21 = vld [vmem:[%s6219_s26 + $0x24] sm:$0xff]  }
  0x93   : > { %5890 = vmatmul.mubr.msk.bf16.gmra.mxu0 %vm364_vm1, %v6113_v43  ;;  %v6577_v43 = vrot.slane %v2444_v26, 4  ;;  %v2515_v26 = vrot.slane %v2513_v0, 5 }
  0x94   : > { %5856 = vmatmul.mubr.msk.bf16.gmra.mxu1 %vm364_vm1, %v6112_v40  ;;  %5893 = vmatprep.mubr.msk.bf16.mxu0 %vm364_vm1, %v6115_v45  ;;  %v2467_v40 = vrot.slane %v2465_v24, 5  ;;  %v2495_v45 = vshll.u32 %v5144_v34, 16  ;;  %v6124_v34 = vld [vmem:[%s6219_s26 + $0x24c] sm:$0xff]  }
  0x95   : > { %5859 = vmatprep.mubr.msk.bf16.mxu1 %vm364_vm1, %v6114_v44  ;;  %v6579_v44 = vrot.slane %v2471_v28, 5  ;;  %v6631_v28 = vrot.slane %v2519_v22, 5  ;;  %v2450_v58 = vsel %vm6274_vm4, %v6577_v43, %v6558_v23  ;;  %v6678_v22 = vrot.slane %v2529_v51, 5 }
  0x96   : > { %v2468_v55 = vor.u32 %v2467_v40, %v2464_v38  ;;  %v6617_v5 = vrot.slane %v2495_v45, 5  ;;  %v6636_v40 = vrot.slane %v2543_v16, 5  ;;  %v6638_v45 = vcombine.low %v2402_v61, %v2412_v31  ;;  %v5155_v61 = vld [vmem:[%s6219_s26 + $0x204] sm:$0xf] }
  0x97   : > { %v2460_v31 = vsel %vm6274_vm4, %v6614_v3, %v6571_v37 }
  0x98   : > { %v6622_v18 = vrot.slane %v2468_v55, 4  ;;  %v2502_v24 = vor.u32 %v2501_v6, %v6617_v5  ;;  %v2582_v6 = vshrl.u32 %v5155_v61, 16 }
  0x9a   : > { %v2503_v63 = vrot.slane %v2502_v24, 4  ;;  %v2474_v43 = vsel %vm6274_vm4, %v6622_v18, %v6579_v44 }
  0x9b   : > { %5894 = vmatmul.mubr.msk.bf16.gmra.mxu0 %vm364_vm1, %v6117_v14  ;;  %v2478_v14 = vor.u32 %v2477_v54, %v6579_v44  ;;  %v5156_v44 = vld [vmem:[%s6219_s26 + $0x208] sm:$0xf] }
  0x9c   : > { %5860 = vmatmul.mubr.msk.bf16.gmra.mxu1 %vm364_vm1, %v6116_v13  ;;  %5897 = vmatprep.mubr.msk.bf16.mxu0 %vm364_vm1, %v6119_v15  ;;  %v2537_v13 = vshll.u32 %v5149_v1, 16  ;;  %v2505_v15 = vshll.u32 %v5145_v57, 16  ;;  %v6642_v57 = vcombine.low %v2426_v47, %v2436_v62  ;;  %v5154_v1 = vld [vmem:[%s6219_s26 + $0x200] sm:$0x1]  ;;  %v2550_v47 = vor.u32 %v2549_v41, %v6636_v40 }
  0x9d   : > { %5863 = vmatprep.mubr.msk.bf16.mxu1 %vm364_vm1, %v6118_v20  ;;  %v2558_v20 = vshrl.u32 %v5152_v8, 16  ;;  %v2479_v36 = vrot.slane %v2478_v14, 4  ;;  %v2553_v62 = vshll.u32 %v5151_v46, 16  ;;  %v2577_v32 = vshll.u32 %v5154_v1, 16 }
  0x9e   : > { %v2539_v33 = vrot.slane %v2537_v13, 5  ;;  %v2507_v38 = vrot.slane %v2505_v15, 5  ;;  %v2585_v14 = vshll.u32 %v5155_v61, 16  ;;  %v5158_v15 = vld [vmem:[%s6219_s26 + $0x210] sm:$0xf] }
  0x9f   : > { %v2560_v54 = vrot.slane %v2558_v20, 4  ;;  %v2484_v37 = vsel %vm6274_vm4, %v2479_v36, %v6624_v19  ;;  %v6684_v12 = vrot.slane %v2553_v62, 5  ;;  %v6693_v18 = vrot.slane %v2577_v32, 5  ;;  %v5159_v20 = vld [vmem:[%s6219_s26 + $0x214] sm:$0xf] }
  0xa0   : > { %v2540_v53 = vor.u32 %v2539_v33, %v2536_v30  ;;  %v2508_v49 = vsel %vm6274_vm4, %v2503_v63, %v2507_v38  ;;  %v2591_v19 = vshll.u32 %v5156_v44, 16  ;;  %v6699_v24 = vcombine.low %v2474_v43, %v2484_v37  ;;  %v5164_v36 = vld [vmem:[%s6219_s26 + $0x228] sm:$0xf]  ;;  %v5157_v38 = vld [vmem:[%s6219_s26 + $0x20c] sm:$0x1] }
  0xa1   : > { %v2564_v55 = vor.u32 %v2563_v56, %v2560_v54  ;;  %v2606_v39 = vshrl.u32 %v5158_v15, 16  ;;  %v2609_v41 = vshll.u32 %v5158_v15, 16  ;;  %v2619_v46 = vshrl.u32 %v5159_v20, 16  ;;  %v5163_v43 = vld [vmem:[%s6219_s26 + $0x224] sm:$0x1] }
  0xa2   : > { %v6680_v11 = vrot.slane %v2540_v53, 4  ;;  %v2587_v54 = vrot.slane %v2585_v14, 5  ;;  %v2654_v63 = vshrl.u32 %v5164_v36, 16  ;;  %v2657_v1 = vshll.u32 %v5164_v36, 16  ;;  %v5160_v53 = vld [vmem:[%s6219_s26 + $0x218] sm:$0x1] }
  0xa3   : > { %5898 = vmatmul.mubr.msk.bf16.gmra.mxu0 %vm364_vm1, %v6121_v50  ;;  %v5153_v50 = vld [vmem:[%s6219_s26 + $0x1fc] sm:$0xf]  ;;  %v6689_v16 = vrot.slane %v2564_v55, 4  ;;  %v2621_v62 = vrot.slane %v2619_v46, 4  ;;  %v5166_v14 = vld [vmem:[%s6219_s26 + $0x230] sm:$0x1] }
  0xa4   : > { %5864 = vmatmul.mubr.msk.bf16.gmra.mxu1 %vm364_vm1, %v6120_v59  ;;  %5901 = vmatprep.mubr.msk.bf16.mxu0 %vm364_vm1, %v6123_v52  ;;  %v2493_v59 = vrot.slane %v2492_v9, 4  ;;  %v2526_v52 = vor.u32 %v2525_v29, %v6631_v28  ;;  %v2567_v23 = vshll.u32 %v5153_v50, 16  ;;  %v2571_v4 = vshrl.u32 %v5153_v50, 16  ;;  %v5165_v50 = vld [vmem:[%s6219_s26 + $0x22c] sm:$0xf] }
  0xa5   : > { %5867 = vmatprep.mubr.msk.bf16.mxu1 %vm364_vm1, %v6122_v2  ;;  %v2516_v2 = vor.u32 %v2515_v26, %v2512_v25  ;;  %v6697_v9 = vcombine.low %v2450_v58, %v2460_v31  ;;  %v6701_v25 = vrot.slane %v2582_v6, 4  ;;  %v2595_v26 = vshrl.u32 %v5156_v44, 16  ;;  %v5167_v44 = vld [vmem:[%s6219_s26 + $0x234] sm:$0xf] }
  0xa6   : > { %v2498_v3 = vsel %vm6274_vm4, %v2493_v59, %v6617_v5  ;;  %v6676_v8 = vrot.slane %v2526_v52, 4  ;;  %v6682_v5 = vrot.slane %v2550_v47, 4  ;;  %v6686_v13 = vrot.slane %v2567_v23, 5 }
  0xa7   : > { %v6674_v0 = vrot.slane %v2516_v2, 4  ;;  %v6691_v17 = vrot.slane %v2571_v4, 4  ;;  %v6704_v29 = vcombine.low %v2498_v3, %v2508_v49  ;;  %v6129_v2 = vld [vmem:[%s6219_s26 + $0x30] sm:$0xff]   ;;  %v6734_v52 = vrot.slane %v2591_v19, 5 }
  0xa8   : > { %v2532_v33 = vsel %vm6274_vm4, %v6676_v8, %v6678_v22  ;;  %v2597_v51 = vrot.slane %v2595_v26, 4  ;;  %v2663_v61 = vshll.u32 %v5165_v50, 16  ;;  %v2611_v31 = vrot.slane %v2609_v41, 5 }
  0xa9   : > { %v2522_v30 = vsel %vm6274_vm4, %v6674_v0, %v6631_v28  ;;  %v2556_v28 = vsel %vm6274_vm4, %v6682_v5, %v6684_v12  ;;  %v2574_v23 = vor.u32 %v6691_v17, %v6686_v13  ;;  %v2656_v3 = vrot.slane %v2654_v63, 4 }
  0xaa   : > { %v2659_v49 = vrot.slane %v2657_v1, 5  ;;  %v6747_v6 = vcombine.low %v2522_v30, %v2532_v33  ;;  %v6750_v0 = vrot.slane %v2663_v61, 5  ;;  %v2598_v22 = vor.u32 %v2597_v51, %v6734_v52  ;;  %v5168_v30 = vld [vmem:[%s6219_s26 + $0x238] sm:$0xf]  ;;  %v6131_v33 = vld [vmem:[%s6219_s26 + $0x48] sm:$0xff]  }
  0xab   : > { %5902 = vmatmul.mubr.msk.bf16.gmra.mxu0 %vm364_vm1, %v6125_v27  ;;  %v5161_v27 = vld [vmem:[%s6219_s26 + $0x21c] sm:$0xf]  ;;  %v2625_v12 = vshll.u32 %v5160_v53, 16  ;;  %v6758_v17 = vrot.slane %v2574_v23, 4  ;;  %v2678_v19 = vshrl.u32 %v5167_v44, 16 }
  0xac   : > { %5868 = vmatmul.mubr.msk.bf16.gmra.mxu1 %vm364_vm1, %v6124_v34  ;;  %5941 = vmatprep.mubr.msk.bf16.mxu0 %vm364_vm1, %v6126_v35  ;;  %v2546_v34 = vsel %vm6274_vm4, %v6680_v11, %v6636_v40  ;;  %v5162_v35 = vld [vmem:[%s6219_s26 + $0x220] sm:$0xf]  ;;  %v2630_v56 = vshrl.u32 %v5161_v27, 16  ;;  %v2633_v40 = vshll.u32 %v5161_v27, 16  ;;  %v2649_v27 = vshll.u32 %v5163_v43, 16 }
  0xad   : > { %5907 = vmatprep.mubr.msk.bf16.mxu1 %vm364_vm1, %v5177_v42  ;;  %v2615_v42 = vshll.u32 %v5159_v20, 16  ;;  %v2639_v58 = vshll.u32 %v5162_v35, 16  ;;  %v2643_v59 = vshrl.u32 %v5162_v35, 16  ;;  %v6756_v15 = vcombine.low %v2546_v34, %v2556_v28 }
  0xae   : > { %v2632_v55 = vrot.slane %v2630_v56, 4  ;;  %v2635_v4 = vrot.slane %v2633_v40, 5  ;;  %v2681_v20 = vshll.u32 %v5167_v44, 16  ;;  %v2660_v35 = vor.u32 %v2659_v49, %v2656_v3  ;;  %v5170_v40 = vld [vmem:[%s6219_s26 + $0x240] sm:$0xf]  ;;  %v6134_v44 = vld [vmem:[%s6219_s26 + $0x6c] sm:$0xff]  }
  0xaf   : > { %v6738_v47 = vrot.slane %v2615_v42, 5  ;;  %v6744_v32 = vrot.slane %v2639_v58, 5  ;;  %v2645_v37 = vrot.slane %v2643_v59, 4  ;;  %v2627_v46 = vrot.slane %v2625_v12, 5  ;;  %v5171_v58 = vld [vmem:[%s6219_s26 + $0x244] sm:$0xf] }
  0xb0   : > { %v2570_v28 = vsel %vm6274_vm4, %v6689_v16, %v6686_v13  ;;  %v2683_v56 = vrot.slane %v2681_v20, 5  ;;  %v2651_v1 = vrot.slane %v2649_v27, 5  ;;  %v2661_v51 = vrot.slane %v2660_v35, 4  ;;  %v5174_v3 = vld [vmem:[%s6219_s26 + $0x250] sm:$0xf]  ;;  %v6133_v49 = vld [vmem:[%s6219_s26 + $0x60] sm:$0xff]  }
  0xb1   : > { %v2622_v5 = vor.u32 %v2621_v62, %v6738_v47  ;;  %v2646_v26 = vor.u32 %v2645_v37, %v6744_v32  ;;  %v2711_v43 = vshll.u32 %v5171_v58, 16  ;;  %v5342_v35 = vld [vmem:[%s6219_s26 + $0x18] sm:$0xf] }
  0xb3   : > { %5942 = vmatmul.mubr.msk.bf16.vlgmr.msra.gmra.mxu0 %vm364_vm1, %v6127_v7  ;;  %v2588_v7 = vor.u32 %v2587_v54, %v6701_v25  ;;  %v2636_v25 = vor.u32 %v2635_v4, %v2632_v55  ;;  %v2623_v42 = vrot.slane %v2622_v5, 4  ;;  %v2680_v54 = vrot.slane %v2678_v19, 4 }
  0xb4   : > { %5908 = vmatmul.mubr.msk.bf16.vlgmr.msra.gmra.mxu1 %vm364_vm1, %v6638_v45  ;;  %6008 = vmatpush3.bf16.msra.mxu0 %v6548_v10  ;;  %v2667_v45 = vshrl.u32 %v5165_v50, 16  ;;  %v2608_v10 = vrot.slane %v2606_v39, 4  ;;  %v2599_v39 = vrot.slane %v2598_v22, 4  ;;  %v5169_v50 = vld [vmem:[%s6219_s26 + $0x23c] sm:$0x1]  ;;  %v2647_v63 = vrot.slane %v2646_v26, 4 }
  0xb5   : > { %5974 = vmatpush3.bf16.msra.mxu1 %v6528_v60  ;;  %5911 = vmatprep.mubr.msk.bf16.mxu1 %vm364_vm1, %v6642_v57  ;;  %v6130_v60 = vld [vmem:[%s6219_s26 + $0x3c] sm:$0xff]   ;;  %v2601_v57 = vshll.u32 %v5157_v38, 16  ;;  %v2589_v34 = vrot.slane %v2588_v7, 4  ;;  %v6132_v38 = vld [vmem:[%s6219_s26 + $0x54] sm:$0xff]   ;;  %v2637_v59 = vrot.slane %v2636_v25, 4  ;;  %v2628_v62 = vsel %vm6274_vm4, %v2623_v42, %v2627_v46 }
  0xb6   : > { %5945 = vmatprep.mubr.msk.bf16.mxu0 %vm364_vm1, %v6128_v21  ;;  %v2669_v8 = vrot.slane %v2667_v45, 4  ;;  %v2612_v11 = vor.u32 %v2611_v31, %v2608_v10  ;;  %v2691_v45 = vshrl.u32 %v5168_v30, 16  ;;  %v2705_v10 = vshll.u32 %v5170_v40, 16  ;;  %v5340_v26 = vld [vmem:[%s6219_s26 + $0x10] sm:$0xf] }
  0xb7   : > { %v2603_v21 = vrot.slane %v2601_v57, 5  ;;  %v2594_v13 = vsel %vm6274_vm4, %v2589_v34, %v6734_v52  ;;  %v2697_v23 = vshll.u32 %v5169_v50, 16  ;;  %v5173_v52 = vld [vmem:[%s6219_s26 + $0x24c] sm:$0xf]  ;;  %v2642_v57 = vsel %vm6274_vm4, %v2637_v59, %v6744_v32  ;;  %v5175_v42 = vld [vmem:[%s6219_s26 + $0x254] sm:$0x1] }
  0xb8   : > { %v2670_v36 = vor.u32 %v2669_v8, %v6750_v0  ;;  %v2613_v41 = vrot.slane %v2612_v11, 4  ;;  %v2715_v55 = vshrl.u32 %v5171_v58, 16  ;;  %v2666_v4 = vsel %vm6274_vm4, %v2661_v51, %v6750_v0 }
  0xb9   : > { %v2604_v16 = vsel %vm6274_vm4, %v2599_v39, %v2603_v21  ;;  %v2693_v32 = vrot.slane %v2691_v45, 4  ;;  %v2707_v8 = vrot.slane %v2705_v10, 5  ;;  %v2726_v22 = vshrl.u32 %v5173_v52, 16 }
  0xba   : > { %v2671_v53 = vrot.slane %v2670_v36, 4  ;;  %v2618_v31 = vsel %vm6274_vm4, %v2613_v41, %v6738_v47  ;;  %v2652_v47 = vsel %vm6274_vm4, %v2647_v63, %v2651_v1  ;;  %v6813_v5 = vcombine.low %v2594_v13, %v2604_v16  ;;  %v5343_v41 = vld [vmem:[%s6219_s26 + $0x1c] sm:$0xf] }
  0xbb   : > { %5946 = vmatmul.mubr.msk.bf16.gmra.mxu0 %vm364_vm1, %v6129_v2  ;;  %v2687_v2 = vshll.u32 %v5168_v30, 16  ;;  %v6817_v12 = vrot.slane %v2697_v23, 5  ;;  %v6821_v19 = vrot.slane %v2711_v43, 5  ;;  %v2717_v20 = vrot.slane %v2715_v55, 4  ;;  %v6135_v63 = vld [vmem:[%s6219_s26 + $0x78] sm:$0xff]  }
  0xbc   : > { %5912 = vmatmul.mubr.msk.bf16.gmra.mxu1 %vm364_vm1, %v6697_v9  ;;  %5949 = vmatprep.mubr.msk.bf16.mxu0 %vm364_vm1, %v6130_v60  ;;  %v2673_v9 = vshll.u32 %v5166_v14, 16  ;;  %v2684_v60 = vor.u32 %v2683_v56, %v2680_v54  ;;  %v5172_v14 = vld [vmem:[%s6219_s26 + $0x248] sm:$0x1]  ;;  %v2735_v21 = vshll.u32 %v5174_v3, 16  ;;  %v2739_v25 = vshrl.u32 %v5174_v3, 16 }
  0xbd   : > { %5915 = vmatprep.mubr.msk.bf16.mxu1 %vm364_vm1, %v6699_v24  ;;  %v2580_v24 = vsel %vm6274_vm4, %v6758_v17, %v6693_v18  ;;  %v2702_v18 = vshrl.u32 %v5170_v40, 16  ;;  %v6808_v37 = vrot.slane %v2687_v2, 5  ;;  %v5339_v17 = vld [vmem:[%s6219_s26 + $0xc] sm:$0xf]  ;;  %v6824_v27 = vcombine.low %v2618_v31, %v2628_v62  ;;  %v5341_v40 = vld [vmem:[%s6219_s26 + $0x14] sm:$0x1] }
  0xbe   : > { %v2675_v61 = vrot.slane %v2673_v9, 5  ;;  %v5185_v11 = vcombine.low %v2570_v28, %v2580_v24  ;;  %v6815_v0 = vrot.slane %v2684_v60, 4  ;;  %v6826_v30 = vcombine.low %v2642_v57, %v2652_v47  ;;  %v5346_v23 = vld [vmem:[%s6219_s26 + $0x28] sm:$0xf]  ;;  %v5344_v47 = vld [vmem:[%s6219_s26 + $0x20] sm:$0x1] }
  0xbf   : > { %v2704_v7 = vrot.slane %v2702_v18, 4  ;;  %v2694_v34 = vor.u32 %v2693_v32, %v6808_v37  ;;  %v2721_v9 = vshll.u32 %v5172_v14, 16  ;;  %v3810_v46 = vshrl.u32 %v5339_v17, 16  ;;  %v5345_v18 = vld [vmem:[%s6219_s26 + $0x24] sm:$0xf] }
  0xc0   : > { %v3813_v50 = vshll.u32 %v5339_v17, 16  ;;  %v3819_v28 = vshll.u32 %v5340_v26, 16  ;;  %v3823_v24 = vshrl.u32 %v5340_v26, 16  ;;  %v6838_v54 = vrot.slane %v2735_v21, 5  ;;  %v5348_v14 = vld [vmem:[%s6219_s26 + $0x30] sm:$0xf] }
  0xc1   : > { %v2708_v36 = vor.u32 %v2707_v8, %v2704_v7  ;;  %v2741_v56 = vrot.slane %v2739_v25, 4  ;;  %v3834_v58 = vshrl.u32 %v5342_v35, 16  ;;  %v3837_v59 = vshll.u32 %v5342_v35, 16  ;;  %v6137_v35 = vld [vmem:[%s6219_s26 + $0x90] sm:$0xff]  }
  0xc2   : > { %v6843_v1 = vrot.slane %v2694_v34, 4  ;;  %v2718_v2 = vor.u32 %v2717_v20, %v6821_v19  ;;  %v3843_v51 = vshll.u32 %v5343_v41, 16  ;;  %v6849_v45 = vrot.slane %v2721_v9, 5 }
  0xc3   : > { %5950 = vmatmul.mubr.msk.bf16.gmra.mxu0 %vm364_vm1, %v6131_v33  ;;  %v2745_v16 = vshll.u32 %v5175_v42, 16  ;;  %v3812_v10 = vrot.slane %v3810_v46, 4  ;;  %v3815_v31 = vrot.slane %v3813_v50, 5  ;;  %v6852_v62 = vrot.slane %v3819_v28, 5  ;;  %v5349_v50 = vld [vmem:[%s6219_s26 + $0x34] sm:$0xf] }
  0xc4   : > { %5916 = vmatmul.mubr.msk.bf16.gmra.mxu1 %vm364_vm1, %v6704_v29  ;;  %5953 = vmatprep.mubr.msk.bf16.mxu0 %vm364_vm1, %v6132_v38  ;;  %v2676_v29 = vsel %vm6274_vm4, %v2671_v53, %v2675_v61  ;;  %v2728_v38 = vrot.slane %v2726_v22, 4  ;;  %v6136_v53 = vld [vmem:[%s6219_s26 + $0x84] sm:$0xff]   ;;  %v6847_v61 = vrot.slane %v2708_v36, 4  ;;  %v3825_v60 = vrot.slane %v3823_v24, 4 }
  0xc5   : > { %5919 = vmatprep.mubr.msk.bf16.mxu1 %vm364_vm1, %v6747_v6  ;;  %v2729_v6 = vshll.u32 %v5173_v52, 16  ;;  %v6828_v33 = vcombine.low %v2666_v4, %v2676_v29  ;;  %v2690_v52 = vsel %vm6274_vm4, %v6815_v0, %v6808_v37  ;;  %v2742_v57 = vor.u32 %v2741_v56, %v6838_v54  ;;  %v5347_v56 = vld [vmem:[%s6219_s26 + $0x2c] sm:$0x1] }
  0xc6   : > { %v3836_v43 = vrot.slane %v3834_v58, 4  ;;  %v3839_v55 = vrot.slane %v3837_v59, 5  ;;  %v2719_v4 = vrot.slane %v2718_v2, 4  ;;  %v3829_v29 = vshll.u32 %v5341_v40, 16 }
  0xc7   : > { %v2731_v39 = vrot.slane %v2729_v6, 5  ;;  %v6861_v32 = vrot.slane %v3843_v51, 5  ;;  %v3867_v7 = vshll.u32 %v5346_v23, 16  ;;  %v3871_v8 = vshrl.u32 %v5346_v23, 16 }
  0xc8   : > { %v2747_v6 = vrot.slane %v2745_v16, 5  ;;  %v3826_v0 = vor.u32 %v3825_v60, %v6852_v62  ;;  %v2700_v20 = vsel %vm6274_vm4, %v6843_v1, %v6817_v12  ;;  %v2743_v21 = vrot.slane %v2742_v57, 4  ;;  %v5350_v57 = vld [vmem:[%s6219_s26 + $0x38] sm:$0x1] }
  0xc9   : > { %v2732_v13 = vor.u32 %v2731_v39, %v2728_v38  ;;  %v3840_v25 = vor.u32 %v3839_v55, %v3836_v43  ;;  %v3853_v26 = vshll.u32 %v5344_v47, 16  ;;  %v2724_v12 = vsel %vm6274_vm4, %v2719_v4, %v6849_v45  ;;  %v6138_v39 = vld [vmem:[%s6219_s26 + $0x9c] sm:$0xff]   ;;  %v5354_v47 = vld [vmem:[%s6219_s26 + $0x48] sm:$0xf] }
  0xca   : > { %v6889_v36 = vrot.slane %v3829_v29, 5  ;;  %v6895_v42 = vrot.slane %v3867_v7, 5  ;;  %v3873_v46 = vrot.slane %v3871_v8, 4  ;;  %v6902_v24 = vrot.slane %v3826_v0, 4 }
  0xcb   : > { %5954 = vmatmul.mubr.msk.bf16.gmra.mxu0 %vm364_vm1, %v6133_v49  ;;  %v3858_v49 = vshrl.u32 %v5345_v18, 16  ;;  %v2733_v37 = vrot.slane %v2732_v13, 4  ;;  %v3882_v40 = vshrl.u32 %v5348_v14, 16  ;;  %v3885_v58 = vshll.u32 %v5348_v14, 16 }
  0xcc   : > { %5920 = vmatmul.mubr.msk.bf16.gmra.mxu1 %vm364_vm1, %v6756_v15  ;;  %5957 = vmatprep.mubr.msk.bf16.mxu0 %vm364_vm1, %v6134_v44  ;;  %v3847_v15 = vshrl.u32 %v5343_v41, 16  ;;  %v3861_v44 = vshll.u32 %v5345_v18, 16  ;;  %v2748_v1 = vsel %vm6274_vm4, %v2743_v21, %v2747_v6  ;;  %v6912_v2 = vrot.slane %v3840_v25, 4  ;;  %v6140_v25 = vld [vmem:[%s6219_s26 + $0xb4] sm:$0xff]  }
  0xcd   : > { %5923 = vmatprep.mubr.msk.bf16.mxu1 %vm364_vm1, %v5185_v11  ;;  %v3816_v11 = vor.u32 %v3815_v31, %v3812_v10  ;;  %v3860_v41 = vrot.slane %v3858_v49, 4  ;;  %v6914_v51 = vrot.slane %v3853_v26, 5  ;;  %v3891_v13 = vshll.u32 %v5349_v50, 16 }
  0xce   : > { %v3849_v3 = vrot.slane %v3847_v15, 4  ;;  %v5351_v15 = vld [vmem:[%s6219_s26 + $0x3c] sm:$0xf]  ;;  %v3895_v16 = vshrl.u32 %v5349_v50, 16  ;;  %v3874_v60 = vor.u32 %v3873_v46, %v6895_v42  ;;  %v3877_v23 = vshll.u32 %v5347_v56, 16 }
  0xcf   : > { %v6940_v4 = vrot.slane %v3882_v40, 4  ;;  %v6942_v29 = vrot.slane %v3885_v58, 5  ;;  %v3909_v7 = vshll.u32 %v5351_v15, 16  ;;  %v6955_v0 = vrot.slane %v3891_v13, 5  ;;  %v5358_v50 = vld [vmem:[%s6219_s26 + $0x58] sm:$0xf] }
  0xd0   : > { %v3850_v9 = vor.u32 %v3849_v3, %v6861_v32  ;;  %v5355_v3 = vld [vmem:[%s6219_s26 + $0x4c] sm:$0xf]  ;;  %v3897_v14 = vrot.slane %v3895_v16, 4  ;;  %v3933_v21 = vshll.u32 %v5354_v47, 16  ;;  %v5353_v13 = vld [vmem:[%s6219_s26 + $0x44] sm:$0x1] }
  0xd1   : > { %v3943_v46 = vshrl.u32 %v5355_v3, 16  ;;  %v3911_v58 = vrot.slane %v3909_v7, 5 }
  0xd2   : > { %v6926_v10 = vrot.slane %v3850_v9, 4  ;;  %v5357_v9 = vld [vmem:[%s6219_s26 + $0x54] sm:$0xf] }
  0xd3   : > { %v6863_v22 = vpop.f32.mrf.mxu0  ;;  %5958 = vmatmul.mubr.msk.bf16.gmra.mxu0 %vm364_vm1, %v6135_v63  ;;  %v2738_v63 = vsel %vm6274_vm4, %v2733_v37, %v6838_v54  ;;  %v5352_v54 = vld [vmem:[%s6219_s26 + $0x40] sm:$0xf] }
  0xd4   : > { %v6868_v17 = vpop.f32.mrf.mxu1  ;;  %5924 = vmatmul.mubr.msk.bf16.gmra.mxu1 %vm364_vm1, %v6813_v5  ;;  %5961 = vmatprep.mubr.msk.bf16.mxu0 %vm364_vm1, %v6136_v53  ;;  %v2714_v5 = vsel %vm6274_vm4, %v6847_v61, %v6821_v19  ;;  %v6900_v19 = vrot.slane %v3816_v11, 4  ;;  %v6919_v61 = vcombine.low %v2690_v52, %v2700_v20  ;;  %v6934_v52 = vcombine.low %v2738_v63, %v2748_v1  ;;  %v6139_v11 = vld [vmem:[%s6219_s26 + $0xa8] sm:$0xff]  }
  0xd5   : > { %v6877_v34 = vpop.f32.mrf.mxu0  ;;  %5927 = vmatprep.mubr.msk.bf16.mxu1 %vm364_vm1, %v6824_v27  ;;  %v3863_v27 = vrot.slane %v3861_v44, 5  ;;  %v6921_v45 = vcombine.low %v2714_v5, %v2724_v12  ;;  %v3906_v44 = vshrl.u32 %v5351_v15, 16  ;;  %v3915_v8 = vshll.u32 %v5352_v54, 16 }
  0xd6   : > { %v6892_v38 = vpop.f32.mrf.mxu1  ;;  %v3822_v55 = vsel %vm6274_vm4, %v6900_v19, %v6852_v62  ;;  %v3919_v37 = vshrl.u32 %v5352_v54, 16  ;;  %v3930_v20 = vshrl.u32 %v5354_v47, 16  ;;  %v3879_v5 = vrot.slane %v3877_v23, 5  ;;  %v6142_v62 = vld [vmem:[%s6219_s26 + $0xd8] sm:$0xff]  }
  0xd7   : > { %v6898_v28 = vpop.f32.mrf.mxu0  ;;  %v3864_v31 = vor.u32 %v3863_v27, %v3860_v41  ;;  %v3901_v12 = vshll.u32 %v5350_v57, 16  ;;  %v3846_v41 = vsel %vm6274_vm4, %v6912_v2, %v6861_v32  ;;  %v3939_v27 = vshll.u32 %v5355_v3, 16 }
  0xd8   : > { %v6905_v59 = vpop.f32.mrf.mxu1  ;;  %v3908_v40 = vrot.slane %v3906_v44, 4  ;;  %v6976_v63 = vrot.slane %v3915_v8, 5  ;;  %v3921_v1 = vrot.slane %v3919_v37, 4  ;;  %v3932_v16 = vrot.slane %v3930_v20, 4 }
  0xd9   : > { %v6917_v53 = vpop.f32.mrf.mxu0  ;;  %v6960_v26 = vrot.slane %v3864_v31, 4  ;;  %v3935_v32 = vrot.slane %v3933_v21, 5  ;;  %v3954_v54 = vshrl.u32 %v5357_v9, 16  ;;  %v3957_v31 = vshll.u32 %v5357_v9, 16  ;;  %v5359_v21 = vld [vmem:[%s6219_s26 + $0x5c] sm:$0x1] }
  0xda   : > { %v6924_v18 = vpop.f32.mrf.mxu1  ;;  %v3967_v23 = vshrl.u32 %v5358_v50, 16  ;;  %v3856_v47 = vsel %vm6274_vm4, %v6926_v10, %v6914_v51  ;;  %v3945_v3 = vrot.slane %v3943_v46, 4  ;;  %v7004_v7 = vrot.slane %v3901_v12, 5  ;;  %v5360_v46 = vld [vmem:[%s6219_s26 + $0x60] sm:$0xf] }
  0xdb   : > { %v6931_v43 = vpop.f32.mrf.mxu0  ;;  %5962 = vmatmul.mubr.msk.bf16.gmra.mxu0 %vm364_vm1, %v6137_v35  ;;  %v3875_v35 = vrot.slane %v3874_v60, 4  ;;  %v3963_v60 = vshll.u32 %v5358_v50, 16  ;;  %v3912_v8 = vor.u32 %v3911_v58, %v3908_v40  ;;  %v3922_v51 = vor.u32 %v3921_v1, %v6976_v63  ;;  %v6141_v50 = vld [vmem:[%s6219_s26 + $0xc0] sm:$0xff]  }
  0xdc   : > { %v6945_v49 = vpop.f32.mrf.mxu1  ;;  %5928 = vmatmul.mubr.msk.bf16.gmra.mxu1 %vm364_vm1, %v6826_v30  ;;  %5965 = vmatprep.mubr.msk.bf16.mxu0 %vm364_vm1, %v6138_v39  ;;  %v3925_v10 = vshll.u32 %v5353_v13, 16  ;;  %v3936_v20 = vor.u32 %v3935_v32, %v3932_v16  ;;  %v3959_v12 = vrot.slane %v3957_v31, 5  ;;  %v5361_v1 = vld [vmem:[%s6219_s26 + $0x64] sm:$0xf]  ;;  %v5363_v31 = vld [vmem:[%s6219_s26 + $0x6c] sm:$0xf] }
  0xdd   : > { %v6950_v6 = vpop.f32.mrf.mxu0  ;;  %5931 = vmatprep.mubr.msk.bf16.mxu1 %vm364_vm1, %v6828_v33  ;;  %v3832_v33 = vsel %vm6274_vm4, %v6902_v24, %v6889_v36  ;;  %v3888_v36 = vor.u32 %v6942_v29, %v6940_v4  ;;  %v3898_v24 = vor.u32 %v3897_v14, %v6955_v0  ;;  %v3870_v4 = vsel %vm6274_vm4, %v6960_v26, %v6895_v42  ;;  %v5356_v42 = vld [vmem:[%s6219_s26 + $0x50] sm:$0x1] }
  0xde   : > { %v6957_v30 = vpop.f32.mrf.mxu1  ;;  %v6997_v29 = vrot.slane %v3939_v27, 5  ;;  %v3956_v26 = vrot.slane %v3954_v54, 4  ;;  %v7021_v9 = vrot.slane %v3963_v60, 5  ;;  %v3969_v27 = vrot.slane %v3967_v23, 4 }
  0xdf   : > { %v6963_v39 = vpop.f32.mrf.mxu0  ;;  %v7016_v14 = vrot.slane %v3898_v24, 4  ;;  %v3949_v58 = vshll.u32 %v5356_v42, 16  ;;  %v7040_v13 = vrot.slane %v3912_v8, 4  ;;  %v3923_v16 = vrot.slane %v3922_v51, 4  ;;  %v5364_v8 = vld [vmem:[%s6219_s26 + $0x70] sm:$0xf] }
  0xe0   : > { %v6974_v56 = vpop.f32.mrf.mxu1  ;;  %v3946_v40 = vor.u32 %v3945_v3, %v6997_v29  ;;  %v3927_v32 = vrot.slane %v3925_v10, 5  ;;  %v3937_v23 = vrot.slane %v3936_v20, 4  ;;  %v3973_v3 = vshll.u32 %v5359_v21, 16  ;;  %v5362_v20 = vld [vmem:[%s6219_s26 + $0x68] sm:$0x1] }
  0xe1   : > { %v6978_v15 = vpop.f32.mrf.mxu0  ;;  %v3951_v10 = vrot.slane %v3949_v58, 5  ;;  %v3987_v42 = vshll.u32 %v5361_v1, 16  ;;  %v4002_v21 = vshrl.u32 %v5363_v31, 16 }
  0xe2   : > { %v6984_v2 = vpop.f32.mrf.mxu1 }
  0xe3   : > { %v6986_v57 = vpop.f32.mrf.mxu0  ;;  %5966 = vmatmul.mubr.msk.bf16.gmra.mxu0 %vm364_vm1, %v6139_v11  ;;  %v3880_v11 = vsel %vm6274_vm4, %v3875_v35, %v3879_v5  ;;  %v5388_v35 = vcombine.low %v3822_v55, %v3832_v33  ;;  %v7032_v5 = vcombine.low %v3846_v41, %v3856_v47  ;;  %v3904_v55 = vsel %vm6274_vm4, %v7016_v14, %v7004_v7 }
  0xe4   : > { %v6999_v44 = vpop.f32.mrf.mxu1  ;;  %5932 = vmatmul.mubr.msk.bf16.gmra.mxu1 %vm364_vm1, %v6919_v61  ;;  %5969 = vmatprep.mubr.msk.bf16.mxu0 %vm364_vm1, %v6140_v25  ;;  %v7014_v61 = vrot.slane %v3888_v36, 4  ;;  %v7038_v24 = vcombine.low %v3870_v4, %v3880_v11  ;;  %v3978_v33 = vshrl.u32 %v5360_v46, 16  ;;  %v3981_v41 = vshll.u32 %v5360_v46, 16 }
  0xe5   : > { %7722 = vst [vmem:[#allocation2_spill] sm:$0xff] %v6999_v44  ;;  %v7008_v37 = vpop.f32.mrf.mxu0  ;;  %5935 = vmatprep.mubr.msk.bf16.mxu1 %vm364_vm1, %v6921_v45  ;;  %v3960_v47 = vor.u32 %v3959_v12, %v3956_v26  ;;  %v3970_v4 = vor.u32 %v3969_v27, %v7021_v9  ;;  %v3991_v7 = vshrl.u32 %v5361_v1, 16  ;;  %v3928_v14 = vsel %vm6274_vm4, %v3923_v16, %v3927_v32  ;;  %v5367_v16 = vld [vmem:[%s6219_s26 + $0x7c] sm:$0xf] }
  0xe6   : > { %v7019_v25 = vpop.f32.mrf.mxu1  ;;  %v3894_v19 = vsel %vm6274_vm4, %v7014_v61, %v6955_v0  ;;  %v3947_v0 = vrot.slane %v3946_v40, 4  ;;  %v3918_v61 = vsel %vm6274_vm4, %v7040_v13, %v6976_v63  ;;  %v4005_v26 = vshll.u32 %v5363_v31, 16 }
  0xe7   : > { %7723 = vst [vmem:[#allocation3_spill] sm:$0xff] %v7019_v25  ;;  %v7024_v45 = vpop.f32.mrf.mxu0  ;;  %v3983_v27 = vrot.slane %v3981_v41, 5  ;;  %v4011_v46 = vshll.u32 %v5364_v8, 16  ;;  %v3942_v63 = vsel %vm6274_vm4, %v3937_v23, %v6997_v29  ;;  %v3961_v58 = vrot.slane %v3960_v47, 4  ;;  %v5365_v25 = vld [vmem:[%s6219_s26 + $0x74] sm:$0x1] }
  0xe8   : > { %v7036_v36 = vpop.f32.mrf.mxu1  ;;  %v3971_v1 = vrot.slane %v3970_v4, 4  ;;  %v3975_v13 = vrot.slane %v3973_v3, 5  ;;  %v7088_v41 = vrot.slane %v3987_v42, 5  ;;  %v3993_v31 = vrot.slane %v3991_v7, 4  ;;  %v6144_v3 = vld [vmem:[%s6219_s26 + $0xf0] sm:$0xff]  }
  0xe9   : > { %7724 = vst [vmem:[#allocation4_spill] sm:$0xff] %v7036_v36  ;;  %v7042_v54 = vpop.f32.mrf.mxu0  ;;  %v4007_v29 = vrot.slane %v4005_v26, 5  ;;  %v7102_v7 = vcombine.low %v3918_v61, %v3928_v14  ;;  %v4035_v61 = vshll.u32 %v5367_v16, 16  ;;  %v4039_v14 = vshrl.u32 %v5367_v16, 16 }
  0xea   : > { %v7054_v60 = vpop.f32.mrf.mxu1 }
  0xeb   : > { %7725 = vst [vmem:[#allocation5_spill] sm:$0xff] %v7054_v60  ;;  %v7058_v51 = vpop.f32.mrf.mxu0  ;;  %5970 = vmatmul.mubr.msk.bf16.gmra.mxu0 %vm364_vm1, %v6141_v50  ;;  %v4015_v50 = vshrl.u32 %v5364_v8, 16  ;;  %v3997_v8 = vshll.u32 %v5362_v20, 16  ;;  %v7095_v60 = vcombine.low %v3894_v19, %v3904_v55  ;;  %v3976_v19 = vsel %vm6274_vm4, %v3971_v1, %v3975_v13  ;;  %v5369_v55 = vld [vmem:[%s6219_s26 + $0x84] sm:$0xf] }
  0xec   : > { %v7061_v11 = vpop.f32.mrf.mxu1  ;;  %5936 = vmatmul.mubr.msk.bf16.gmra.mxu1 %vm364_vm1, %v6934_v52  ;;  %6009 = vmatprep.mubr.msk.bf16.mxu0 %vm364_vm1, %v5388_v35  ;;  %v3980_v52 = vrot.slane %v3978_v33, 4  ;;  %v5366_v35 = vld [vmem:[%s6219_s26 + $0x78] sm:$0xf]  ;;  %v3952_v33 = vsel %vm6274_vm4, %v3947_v0, %v3951_v10  ;;  %v7098_v0 = vrot.slane %v4011_v46, 5  ;;  %v5370_v46 = vld [vmem:[%s6219_s26 + $0x88] sm:$0xf] }
  0xed   : > { %7726 = vst [vmem:[#allocation6_spill] sm:$0xff] %v7061_v11  ;;  %v7073_v12 = vpop.f32.mrf.mxu0  ;;  %5975 = vmatprep.mubr.msk.bf16.mxu1 %vm364_vm1, %v6142_v62  ;;  %v6143_v62 = vld [vmem:[%s6219_s26 + $0xe4] sm:$0xff]   ;;  %v4004_v11 = vrot.slane %v4002_v21, 4  ;;  %v4026_v23 = vshrl.u32 %v5366_v35, 16  ;;  %v4029_v47 = vshll.u32 %v5366_v35, 16  ;;  %v4017_v10 = vrot.slane %v4015_v50, 4 }
  0xee   : > { %v7077_v40 = vpop.f32.mrf.mxu1  ;;  %v3984_v36 = vor.u32 %v3983_v27, %v3980_v52  ;;  %v7104_v20 = vcombine.low %v3942_v63, %v3952_v33  ;;  %v3966_v21 = vsel %vm6274_vm4, %v3961_v58, %v7021_v9  ;;  %v3994_v52 = vor.u32 %v3993_v31, %v7088_v41  ;;  %v5368_v31 = vld [vmem:[%s6219_s26 + $0x80] sm:$0x1] }
  0xef   : > { %7727 = vst [vmem:[#allocation7_spill] sm:$0xff] %v7077_v40  ;;  %v7083_v32 = vpop.f32.mrf.mxu0  ;;  %v7115_v27 = vrot.slane %v3997_v8, 5  ;;  %v4008_v9 = vor.u32 %v4007_v29, %v4004_v11  ;;  %v4021_v35 = vshll.u32 %v5365_v25, 16  ;;  %v4028_v63 = vrot.slane %v4026_v23, 4 }
  0xf0   : > { %v7090_v40 = vpop.f32.mrf.mxu1  ;;  %v4031_v58 = vrot.slane %v4029_v47, 5  ;;  %v7123_v13 = vcombine.low %v3966_v21, %v3976_v19  ;;  %v7125_v16 = vrot.slane %v3984_v36, 4  ;;  %v4018_v33 = vor.u32 %v4017_v10, %v7098_v0  ;;  %v6145_v21 = vld [vmem:[%s6219_s26 + $0xfc] sm:$0xff]   ;;  %v7740_v48 = vld [vmem:[#allocation4_spill] sm:$0xff] }
  0xf1   : > { %7728 = vst [vmem:[#allocation8_spill] sm:$0xff] %v7090_v40  ;;  %v7092_v4 = vpop.f32.mrf.mxu0  ;;  %v4050_v8 = vshrl.u32 %v5369_v55, 16  ;;  %v4059_v11 = vshll.u32 %v5370_v46, 16  ;;  %v4063_v25 = vshrl.u32 %v5370_v46, 16  ;;  %v7132_v47 = vrot.slane %v4035_v61, 5 }
  0xf2   : > { %v7100_v42 = vpop.f32.mrf.mxu1  ;;  %v7135_v19 = vrot.slane %v3994_v52, 4  ;;  %v7137_v10 = vrot.slane %v4008_v9, 4  ;;  %v4045_v61 = vshll.u32 %v5368_v31, 16 }
  0xf3   : > { %7729 = vst [vmem:[#allocation9_spill] sm:$0xff] %v7100_v42  ;;  %v5807_v26 = vpop.f32.mrf.mxu0  ;;  %6010 = vmatmul.mubr.msk.bf16.vlgmr.msra.gmra.mxu0 %vm364_vm1, %v7032_v5  ;;  %v4052_v42 = vrot.slane %v4050_v8, 4  ;;  %v7148_v40 = vrot.slane %v4059_v11, 5  ;;  %v4065_v9 = vrot.slane %v4063_v25, 4 }
  0xf4   : > { %v5773_v50 = vpop.f32.mrf.mxu1  ;;  %5976 = vmatmul.mubr.msk.bf16.vlgmr.msra.gmra.mxu1 %vm364_vm1, %v6143_v62  ;;  %6013 = vmatprep.mubr.msk.bf16.mxu0 %vm364_vm1, %v7038_v24  ;;  %v4053_v24 = vshll.u32 %v5369_v55, 16  ;;  %v7139_v55 = vrot.slane %v4021_v35, 5  ;;  %v5372_v35 = vld [vmem:[%s6219_s26 + $0x90] sm:$0xf] }
  0xf5   : > { %v752_v5 = vadd.f32 %v5773_v50, %v6863_v22  ;;  %v1440_v1 = vpop.f32.mrf.mxu0  ;;  %5979 = vmatprep.mubr.msk.bf16.mxu1 %vm364_vm1, %v6144_v3  ;;  %v4041_v3 = vrot.slane %v4039_v14, 4  ;;  %v4032_v50 = vor.u32 %v4031_v58, %v4028_v63  ;;  %v5371_v14 = vld [vmem:[%s6219_s26 + $0x8c] sm:$0x1] }
  0xf6   : > { %v743_v62 = vpop.f32.mrf.mxu1  ;;  %v4055_v52 = vrot.slane %v4053_v24, 5  ;;  %v4069_v8 = vshll.u32 %v5371_v14, 16  ;;  %v5373_v24 = vld [vmem:[%s6219_s26 + $0x94] sm:$0xf] }
  0xf7   : > { %v7129_v29 = vadd.f32 %v5807_v26, %v752_v5  ;;  %v744_v22 = vadd.f32 %v743_v62, %v6877_v34  ;;  %v5808_v23 = vpop.f32.mrf.mxu0  ;;  %v6146_v5 = vld [vmem:[%s6219_s26 + $0x108] sm:$0xff]   ;;  %v7145_v62 = vrot.slane %v4018_v33, 4  ;;  %v7172_v31 = vrot.slane %v4032_v50, 4 }
  0xf8   : > { %v5774_v36 = vpop.f32.mrf.mxu1  ;;  %v4056_v50 = vor.u32 %v4055_v52, %v4052_v42  ;;  %v6148_v52 = vld [vmem:[%s6219_s26 + $0x120] sm:$0xff]  }
  0xf9   : > { %7730 = vst [vmem:[#allocation10_spill] sm:$0xff] %v7129_v29  ;;  %v7141_v46 = vadd.f32 %v1440_v1, %v744_v22  ;;  %v755_v26 = vadd.f32 %v5774_v36, %v6898_v28  ;;  %v1443_v34 = vpop.f32.mrf.mxu0  ;;  %v4042_v1 = vor.u32 %v4041_v3, %v7132_v47  ;;  %v4077_v22 = vshll.u32 %v5372_v35, 16 }
  0xfa   : > { %v746_v29 = vpop.f32.mrf.mxu1  ;;  %v4024_v36 = vsel %vm6274_vm4, %v7145_v62, %v7139_v55  ;;  %v4071_v28 = vrot.slane %v4069_v8, 5 }
  0xfb   : > { %7731 = vst [vmem:[#allocation11_spill] sm:$0xff] %v7141_v46  ;;  %v7151_v44 = vadd.f32 %v5808_v23, %v755_v26  ;;  %v747_v63 = vadd.f32 %v746_v29, %v6917_v53  ;;  %v5811_v58 = vpop.f32.mrf.mxu0  ;;  %6014 = vmatmul.mubr.msk.bf16.gmra.mxu0 %vm364_vm1, %v7095_v60  ;;  %v4074_v29 = vshrl.u32 %v5372_v35, 16  ;;  %v5375_v23 = vld [vmem:[%s6219_s26 + $0x9c] sm:$0xf]  ;;  %v4066_v26 = vor.u32 %v4065_v9, %v7148_v40  ;;  %v6147_v60 = vld [vmem:[%s6219_s26 + $0x114] sm:$0xff]  }
  0xfc   : > { %v5777_v33 = vpop.f32.mrf.mxu1  ;;  %5980 = vmatmul.mubr.msk.bf16.gmra.mxu1 %vm364_vm1, %v6145_v21  ;;  %6017 = vmatprep.mubr.msk.bf16.mxu0 %vm364_vm1, %v7102_v7  ;;  %v4047_v21 = vrot.slane %v4045_v61, 5  ;;  %v4043_v14 = vrot.slane %v4042_v1, 4  ;;  %v4083_v35 = vshll.u32 %v5373_v24, 16  ;;  %v4087_v53 = vshrl.u32 %v5373_v24, 16  ;;  %v5374_v9 = vld [vmem:[%s6219_s26 + $0x98] sm:$0x1] }
  0xfd   : > { %7732 = vst [vmem:[#allocation12_spill] sm:$0xff] %v7151_v44  ;;  %v7175_v11 = vadd.f32 %v1443_v34, %v747_v63  ;;  %v768_v25 = vadd.f32 %v5777_v33, %v6931_v43  ;;  %v1456_v7 = vpop.f32.mrf.mxu0  ;;  %5983 = vmatprep.mubr.msk.bf16.mxu1 %vm364_vm1, %v6146_v5  ;;  %v5376_v63 = vld [vmem:[%s6219_s26 + $0xa0] sm:$0xf]  ;;  %v4101_v55 = vshll.u32 %v5375_v23, 16  ;;  %v4067_v1 = vrot.slane %v4066_v26, 4 }
  0xfe   : > { %v759_v3 = vpop.f32.mrf.mxu1  ;;  %v4111_v44 = vshrl.u32 %v5376_v63, 16 }
  0xff   : > { %7733 = vst [vmem:[#allocation13_spill] sm:$0xff] %v7175_v11  ;;  %v7185_v43 = vadd.f32 %v5811_v58, %v768_v25  ;;  %v760_v34 = vadd.f32 %v759_v3, %v6950_v6  ;;  %v5812_v5 = vpop.f32.mrf.mxu0  ;;  %v4098_v11 = vshrl.u32 %v5375_v23, 16  ;;  %v4076_v58 = vrot.slane %v4074_v29, 4 }
 0x100   : > { %v5778_v33 = vpop.f32.mrf.mxu1  ;;  %v4079_v25 = vrot.slane %v4077_v22, 5  ;;  %v4057_v3 = vrot.slane %v4056_v50, 4  ;;  %v4089_v22 = vrot.slane %v4087_v53, 4  ;;  %v4093_v23 = vshll.u32 %v5374_v9, 16 }
 0x101   : > { %7734 = vst [vmem:[#allocation14_spill] sm:$0xff] %v7185_v43  ;;  %v7190_v62 = vadd.f32 %v1456_v7, %v760_v34  ;;  %v771_v42 = vadd.f32 %v5778_v33, %v6963_v39  ;;  %v1459_v61 = vpop.f32.mrf.mxu0  ;;  %v4107_v43 = vshll.u32 %v5376_v63, 16  ;;  %v4038_v39 = vsel %vm6274_vm4, %v7172_v31, %v7132_v47 }
 0x102   : > { %v762_v6 = vpop.f32.mrf.mxu1  ;;  %v7204_v7 = vrot.slane %v4083_v35, 5  ;;  %v4103_v50 = vrot.slane %v4101_v55, 5  ;;  %v4048_v47 = vsel %vm6274_vm4, %v4043_v14, %v4047_v21  ;;  %v4072_v53 = vsel %vm6274_vm4, %v4067_v1, %v4071_v28  ;;  %v5378_v14 = vld [vmem:[%s6219_s26 + $0xa8] sm:$0xf]  ;;  %v6149_v55 = vld [vmem:[%s6219_s26 + $0x12c] sm:$0xff]  }
 0x103   : > { %v7195_v46 = vadd.f32 %v5812_v5, %v771_v42  ;;  %v763_v8 = vadd.f32 %v762_v6, %v6978_v15  ;;  %v5815_v24 = vpop.f32.mrf.mxu0  ;;  %6018 = vmatmul.mubr.msk.bf16.gmra.mxu0 %vm364_vm1, %v7104_v20  ;;  %v4100_v15 = vrot.slane %v4098_v11, 4  ;;  %v7220_v11 = vrot.slane %v4107_v43, 5 }
 0x104   : > { %v5781_v29 = vpop.f32.mrf.mxu1  ;;  %5984 = vmatmul.mubr.msk.bf16.gmra.mxu1 %vm364_vm1, %v6147_v60  ;;  %6021 = vmatprep.mubr.msk.bf16.mxu0 %vm364_vm1, %v7123_v13  ;;  %v4080_v60 = vor.u32 %v4079_v25, %v4076_v58  ;;  %v4062_v13 = vsel %vm6274_vm4, %v4057_v3, %v7148_v40  ;;  %v7735_v21 = vsel %vm6274_vm4, %v7135_v19, %v7115_v27  ;;  %v7246_v19 = vrot.slane %v4093_v23, 5  ;;  %v5381_v58 = vld [vmem:[%s6219_s26 + $0xb4] sm:$0xf] }
 0x105   : > { %v7209_v26 = vadd.f32 %v1459_v61, %v763_v8  ;;  %v784_v20 = vadd.f32 %v5781_v29, %v6986_v57  ;;  %v1472_v34 = vpop.f32.mrf.mxu0  ;;  %5987 = vmatprep.mubr.msk.bf16.mxu1 %vm364_vm1, %v6148_v52  ;;  %v4113_v57 = vrot.slane %v4111_v44, 4  ;;  %v7736_v40 = vsel %vm6274_vm4, %v7125_v16, %v7088_v41  ;;  %v5379_v16 = vld [vmem:[%s6219_s26 + $0xac] sm:$0xf] }
 0x106   : > { %v775_v31 = vpop.f32.mrf.mxu1  ;;  %v5395_v28 = vcombine.low %v7736_v40, %v7735_v21  ;;  %v7737_v44 = vsel %vm6274_vm4, %v7137_v10, %v7098_v0  ;;  %v7243_v42 = vcombine.low %v4038_v39, %v4048_v47  ;;  %v4090_v27 = vor.u32 %v4089_v22, %v7204_v7  ;;  %v6150_v10 = vld [vmem:[%s6219_s26 + $0x138] sm:$0xff]  }
 0x107   : > { %v7222_v5 = vadd.f32 %v5815_v24, %v784_v20  ;;  %v776_v35 = vadd.f32 %v775_v31, %v7008_v37  ;;  %v5816_v63 = vpop.f32.mrf.mxu0  ;;  %v5396_v43 = vcombine.low %v7737_v44, %v4024_v36  ;;  %v5377_v37 = vld [vmem:[%s6219_s26 + $0xa4] sm:$0x1]  ;;  %v4104_v41 = vor.u32 %v4103_v50, %v4100_v15  ;;  %v5382_v24 = vld [vmem:[%s6219_s26 + $0xb8] sm:$0xf] }
 0x108   : > { %v5782_v33 = vpop.f32.mrf.mxu1  ;;  %v7253_v36 = vcombine.low %v4062_v13, %v4072_v53  ;;  %v7255_v9 = vrot.slane %v4080_v60, 4  ;;  %v4114_v6 = vor.u32 %v4113_v57, %v7220_v11  ;;  %v4117_v3 = vshll.u32 %v5377_v37, 16  ;;  %v5380_v37 = vld [vmem:[%s6219_s26 + $0xb0] sm:$0x1] }
 0x109   : > { %v7249_v61 = vadd.f32 %v1472_v34, %v776_v35  ;;  %v787_v52 = vadd.f32 %v5782_v33, %v7024_v45  ;;  %v1475_v0 = vpop.f32.mrf.mxu0  ;;  %v4122_v1 = vshrl.u32 %v5378_v14, 16  ;;  %v4125_v8 = vshll.u32 %v5378_v14, 16 }
 0x10a   : > { %v778_v25 = vpop.f32.mrf.mxu1  ;;  %v4131_v45 = vshll.u32 %v5379_v16, 16  ;;  %v4135_v23 = vshrl.u32 %v5379_v16, 16  ;;  %v4091_v50 = vrot.slane %v4090_v27, 4  ;;  %v4105_v20 = vrot.slane %v4104_v41, 4  ;;  %v6152_v27 = vld [vmem:[%s6219_s26 + $0x150] sm:$0xff]  }
 0x10b   : > { %v7260_v39 = vadd.f32 %v5816_v63, %v787_v52  ;;  %v779_v29 = vadd.f32 %v778_v25, %v7042_v54  ;;  %v5819_v22 = vpop.f32.mrf.mxu0  ;;  %6022 = vmatmul.mubr.msk.bf16.gmra.mxu0 %vm364_vm1, %v5395_v28  ;;  %v4146_v34 = vshrl.u32 %v5381_v58, 16  ;;  %v4149_v47 = vshll.u32 %v5381_v58, 16 }
 0x10c   : > { %v5785_v15 = vpop.f32.mrf.mxu1  ;;  %5988 = vmatmul.mubr.msk.bf16.gmra.mxu1 %vm364_vm1, %v6149_v55  ;;  %6025 = vmatprep.mubr.msk.bf16.mxu0 %vm364_vm1, %v5396_v43  ;;  %v4155_v13 = vshll.u32 %v5382_v24, 16  ;;  %v4159_v53 = vshrl.u32 %v5382_v24, 16  ;;  %v4115_v35 = vrot.slane %v4114_v6, 4  ;;  %v4119_v63 = vrot.slane %v4117_v3, 5  ;;  %v6151_v55 = vld [vmem:[%s6219_s26 + $0x144] sm:$0xff]  }
 0x10d   : > { %v7266_v60 = vadd.f32 %v1475_v0, %v779_v29  ;;  %v800_v31 = vadd.f32 %v5785_v15, %v7058_v51  ;;  %v1488_v54 = vpop.f32.mrf.mxu0  ;;  %5991 = vmatprep.mubr.msk.bf16.mxu1 %vm364_vm1, %v6150_v10  ;;  %v4124_v21 = vrot.slane %v4122_v1, 4  ;;  %v4127_v40 = vrot.slane %v4125_v8, 5  ;;  %v5384_v1 = vld [vmem:[%s6219_s26 + $0xc0] sm:$0xf]  ;;  %v5385_v8 = vld [vmem:[%s6219_s26 + $0xc4] sm:$0xf] }
 0x10e   : > { %v791_v57 = vpop.f32.mrf.mxu1  ;;  %v7274_v51 = vrot.slane %v4131_v45, 5  ;;  %v4137_v14 = vrot.slane %v4135_v23, 4  ;;  %v4086_v41 = vsel %vm6274_vm4, %v7255_v9, %v7204_v7  ;;  %v4096_v16 = vsel %vm6274_vm4, %v4091_v50, %v7246_v19 }
 0x10f   : > { %v7270_v28 = vadd.f32 %v5819_v22, %v800_v31  ;;  %v792_v44 = vadd.f32 %v791_v57, %v7073_v12  ;;  %v5820_v43 = vpop.f32.mrf.mxu0  ;;  %v5383_v12 = vld [vmem:[%s6219_s26 + $0xbc] sm:$0x1]  ;;  %v4148_v52 = vrot.slane %v4146_v34, 4  ;;  %v4151_v0 = vrot.slane %v4149_v47, 5 }
 0x110   : > { %v5786_v33 = vpop.f32.mrf.mxu1  ;;  %v7289_v6 = vrot.slane %v4155_v13, 5  ;;  %v4161_v3 = vrot.slane %v4159_v53, 4  ;;  %v4110_v7 = vsel %vm6274_vm4, %v4105_v20, %v7220_v11  ;;  %v4120_v19 = vsel %vm6274_vm4, %v4115_v35, %v4119_v63 }
 0x111   : > { %v7286_v10 = vadd.f32 %v1488_v54, %v792_v44  ;;  %v803_v58 = vadd.f32 %v5786_v33, %v7083_v32  ;;  %v1491_v25 = vpop.f32.mrf.mxu0  ;;  %v4128_v9 = vor.u32 %v4127_v40, %v4124_v21  ;;  %v4141_v29 = vshll.u32 %v5380_v37, 16 }
 0x112   : > { %v794_v24 = vpop.f32.mrf.mxu1  ;;  %v4138_v23 = vor.u32 %v4137_v14, %v7274_v51  ;;  %v4165_v15 = vshll.u32 %v5383_v12, 16  ;;  %v4170_v11 = vshrl.u32 %v5384_v1, 16  ;;  %v4173_v20 = vshll.u32 %v5384_v1, 16  ;;  %v6153_v14 = vld [vmem:[%s6219_s26 + $0x15c] sm:$0xff]  }
 0x113   : > { %v7298_v22 = vadd.f32 %v5820_v43, %v803_v58  ;;  %v795_v32 = vadd.f32 %v794_v24, %v7092_v4  ;;  %v5823_v45 = vpop.f32.mrf.mxu0  ;;  %6026 = vmatmul.mubr.msk.bf16.gmra.mxu0 %vm364_vm1, %v7243_v42  ;;  %v4179_v34 = vshll.u32 %v5385_v8, 16  ;;  %v4183_v47 = vshrl.u32 %v5385_v8, 16 }
 0x114   : > { %v5789_v50 = vpop.f32.mrf.mxu1  ;;  %5992 = vmatmul.mubr.msk.bf16.gmra.mxu1 %vm364_vm1, %v6151_v55  ;;  %6029 = vmatprep.mubr.msk.bf16.mxu0 %vm364_vm1, %v7253_v36  ;;  %v4152_v42 = vor.u32 %v4151_v0, %v4148_v52  ;;  %v4162_v13 = vor.u32 %v4161_v3, %v7289_v6  ;;  %v5399_v57 = vcombine.low %v4086_v41, %v4096_v16  ;;  %v4129_v63 = vrot.slane %v4128_v9, 4  ;;  %v6154_v0 = vld [vmem:[%s6219_s26 + $0x168] sm:$0xff]  }
 0x115   : > { %v7307_v31 = vadd.f32 %v1491_v25, %v795_v32  ;;  %v816_v4 = vadd.f32 %v5789_v50, %v6868_v17  ;;  %v1504_v54 = vpop.f32.mrf.mxu0  ;;  %5995 = vmatprep.mubr.msk.bf16.mxu1 %vm364_vm1, %v6152_v27  ;;  %v5400_v35 = vcombine.low %v4110_v7, %v4120_v19  ;;  %v4143_v36 = vrot.slane %v4141_v29, 5  ;;  %v5386_v3 = vld [vmem:[%s6219_s26 + $0xc8] sm:$0x1] }
 0x116   : > { %v807_v53 = vpop.f32.mrf.mxu1  ;;  %v4139_v17 = vrot.slane %v4138_v23, 4  ;;  %v4167_v43 = vrot.slane %v4165_v15, 5  ;;  %v4172_v33 = vrot.slane %v4170_v11, 4  ;;  %v4175_v55 = vrot.slane %v4173_v20, 5 }
 0x117   : > { %v7312_v21 = vadd.f32 %v5823_v45, %v816_v4  ;;  %v808_v40 = vadd.f32 %v807_v53, %v6892_v38  ;;  %v5824_v44 = vpop.f32.mrf.mxu0  ;;  %v4181_v27 = vrot.slane %v4179_v34, 5  ;;  %v4185_v12 = vrot.slane %v4183_v47, 4 }
 0x118   : > { %v5790_v37 = vpop.f32.mrf.mxu1  ;;  %v4153_v58 = vrot.slane %v4152_v42, 4  ;;  %v4163_v25 = vrot.slane %v4162_v13, 4  ;;  %v4134_v7 = vsel %vm6274_vm4, %v4129_v63, %v7274_v51  ;;  %v4176_v9 = vor.u32 %v4175_v55, %v4172_v33  ;;  %v6156_v63 = vld [vmem:[%s6219_s26 + $0x180] sm:$0xff]  }
 0x119   : > { %v7316_v52 = vadd.f32 %v1504_v54, %v808_v40  ;;  %v819_v41 = vadd.f32 %v5790_v37, %v6905_v59  ;;  %v1507_v16 = vpop.f32.mrf.mxu0  ;;  %v4144_v59 = vsel %vm6274_vm4, %v4139_v17, %v4143_v36  ;;  %v4186_v29 = vor.u32 %v4185_v12, %v4181_v27 }
 0x11a   : > { %v810_v38 = vpop.f32.mrf.mxu1  ;;  %v4189_v32 = vshll.u32 %v5386_v3, 16  ;;  %v4158_v51 = vsel %vm6274_vm4, %v4153_v58, %v7289_v6  ;;  %v4168_v15 = vsel %vm6274_vm4, %v4163_v25, %v4167_v43  ;;  %v5401_v47 = vcombine.low %v4134_v7, %v4144_v59  ;;  %v6157_v3 = vld [vmem:[%s6219_s26 + $0x18c] sm:$0xff]  }
 0x11b   : > { %v7321_v1 = vadd.f32 %v5824_v44, %v819_v41  ;;  %v811_v8 = vadd.f32 %v810_v38, %v6924_v18  ;;  %v5827_v24 = vpop.f32.mrf.mxu0  ;;  %6030 = vmatmul.mubr.msk.bf16.gmra.mxu0 %vm364_vm1, %v5399_v57  ;;  %v5402_v54 = vcombine.low %v4158_v51, %v4168_v15  ;;  %v4177_v42 = vrot.slane %v4176_v9, 4  ;;  %v7739_v41 = vld [vmem:[#allocation3_spill] sm:$0xff] }
 0x11c   : > { %v5793_v19 = vpop.f32.mrf.mxu1  ;;  %5996 = vmatmul.mubr.msk.bf16.gmra.mxu1 %vm364_vm1, %v6153_v14  ;;  %6033 = vmatprep.mubr.msk.bf16.mxu0 %vm364_vm1, %v5400_v35  ;;  %v4187_v13 = vrot.slane %v4186_v29, 4  ;;  %v4191_v53 = vrot.slane %v4189_v32, 5  ;;  %v7738_v14 = vld [vmem:[#allocation2_spill] sm:$0xff] }
 0x11d   : > { %v7332_v18 = vadd.f32 %v1507_v16, %v811_v8  ;;  %v832_v45 = vadd.f32 %v5793_v19, %v6945_v49  ;;  %v1520_v23 = vpop.f32.mrf.mxu0  ;;  %5999 = vmatprep.mubr.msk.bf16.mxu1 %vm364_vm1, %v6154_v0  ;;  %v6155_v49 = vld [vmem:[%s6219_s26 + $0x174] sm:$0xff]   ;;  %v4182_v43 = vsel %vm6274_vm4, %v4177_v42, %v4181_v27 }
 0x11e   : > { %v823_v50 = vpop.f32.mrf.mxu1  ;;  %v7741_v19 = vld [vmem:[#allocation5_spill] sm:$0xff] }
 0x11f   : > { %v7341_v11 = vadd.f32 %v5827_v24, %v832_v45  ;;  %v824_v20 = vadd.f32 %v823_v50, %v6957_v30  ;;  %v5828_v34 = vpop.f32.mrf.mxu0  ;;  %v7742_v45 = vld [vmem:[#allocation6_spill] sm:$0xff] }
 0x120   : > { %v5794_v4 = vpop.f32.mrf.mxu1 }
 0x121   : > { %v7345_v57 = vadd.f32 %v1520_v23, %v824_v20  ;;  %v835_v6 = vadd.f32 %v5794_v4, %v6974_v56  ;;  %v1523_v35 = vpop.f32.mrf.mxu0  ;;  %v4192_v56 = vsel %vm6274_vm4, %v4187_v13, %v4191_v53  ;;  %v7743_v20 = vld [vmem:[#allocation7_spill] sm:$0xff] }
 0x122   : > { %v826_v36 = vpop.f32.mrf.mxu1  ;;  %v5403_v58 = vcombine.low %v4182_v43, %v4192_v56 }
 0x123   : > { %v7349_v40 = vadd.f32 %v5828_v34, %v835_v6  ;;  %v827_v44 = vadd.f32 %v826_v36, %v6984_v2  ;;  %v5831_v30 = vpop.f32.mrf.mxu0  ;;  %6034 = vmatmul.mubr.msk.bf16.gmra.mxu0 %vm364_vm1, %v5401_v47 }
 0x124   : > { %v5797_v17 = vpop.f32.mrf.mxu1  ;;  %6000 = vmatmul.mubr.msk.bf16.gmra.mxu1 %vm364_vm1, %v6155_v49  ;;  %6037 = vmatprep.mubr.msk.bf16.mxu0 %vm364_vm1, %v5402_v54  ;;  %v7744_v54 = vld [vmem:[#allocation8_spill] sm:$0xff] }
 0x125   : > { %v7359_v37 = vadd.f32 %v1523_v35, %v827_v44  ;;  %v848_v33 = vadd.f32 %v5797_v17, %v7738_v14  ;;  %v1536_v2 = vpop.f32.mrf.mxu0  ;;  %6003 = vmatprep.mubr.msk.bf16.mxu1 %vm364_vm1, %v6156_v63  ;;  %v7745_v35 = vld [vmem:[#allocation9_spill] sm:$0xff]  ;;  %v7746_v17 = vld [vmem:[#allocation10_spill] sm:$0xff] }
 0x126   : > { %v839_v55 = vpop.f32.mrf.mxu1 }
 0x127   : > { %v7363_v12 = vadd.f32 %v5831_v30, %v848_v33  ;;  %v840_v16 = vadd.f32 %v839_v55, %v7739_v41  ;;  %v5832_v0 = vpop.f32.mrf.mxu0 }
 0x128   : > { %v5798_v25 = vpop.f32.mrf.mxu1 }
 0x129   : > { %v7367_v27 = vadd.f32 %v1536_v2, %v840_v16  ;;  %v851_v38 = vadd.f32 %v5798_v25, %v7740_v48  ;;  %v1539_v8 = vpop.f32.mrf.mxu0  ;;  %v7747_v2 = vld [vmem:[#allocation11_spill] sm:$0xff] }
 0x12a   : > { %v842_v24 = vpop.f32.mrf.mxu1 }
 0x12b   : > { %v7370_v7 = vadd.f32 %v5832_v0, %v851_v38  ;;  %v843_v59 = vadd.f32 %v842_v24, %v7741_v19  ;;  %v5835_v9 = vpop.f32.mrf.mxu0  ;;  %6038 = vmatmul.mubr.msk.bf16.gmra.mxu0 %vm364_vm1, %v5403_v58  ;;  %v7748_v58 = vld [vmem:[#allocation12_spill] sm:$0xff] }
 0x12c   : > { %v5801_v29 = vpop.f32.mrf.mxu1  ;;  %6004 = vmatmul.mubr.msk.bf16.gmra.mxu1 %vm364_vm1, %v6157_v3 }
 0x12d   : > { %v7375_v32 = vadd.f32 %v1539_v8, %v843_v59  ;;  %v864_v23 = vadd.f32 %v5801_v29, %v7742_v45  ;;  %v1552_v51 = vpop.f32.mrf.mxu0  ;;  %v7749_v8 = vld [vmem:[#allocation13_spill] sm:$0xff]  ;;  %v7750_v29 = vld [vmem:[#allocation14_spill] sm:$0xff] }
 0x12e   : > { %v855_v15 = vpop.f32.mrf.mxu1 }
 0x12f   : > { %v7378_v50 = vadd.f32 %v5835_v9, %v864_v23  ;;  %v856_v34 = vadd.f32 %v855_v15, %v7743_v20  ;;  %v5836_v47 = vpop.f32.mrf.mxu0 }
 0x130   : > { %v5802_v4 = vpop.f32.mrf.mxu1 }
 0x131   : > { %v7381_v49 = vadd.f32 %v1552_v51, %v856_v34  ;;  %v867_v42 = vadd.f32 %v5802_v4, %v7744_v54  ;;  %v1555_v13 = vpop.f32.mrf.mxu0 }
 0x132   : > { %v858_v53 = vpop.f32.mrf.mxu1 }
 0x133   : > { %v7384_v6 = vadd.f32 %v5836_v47, %v867_v42  ;;  %v859_v63 = vadd.f32 %v858_v53, %v7745_v35  ;;  %v5875_v36 = vpop.f32.mrf.mxu0 }
 0x134   : > { %v5841_v44 = vpop.f32.mrf.mxu1 }
 0x135   : > { %v7387_v30 = vadd.f32 %v1555_v13, %v859_v63  ;;  %v1928_v43 = vadd.f32 %v5841_v44, %v7746_v17  ;;  %v2158_v56 = vpop.f32.mrf.mxu0 }
 0x136   : > { %v1799_v14 = vpop.f32.mrf.mxu1 }
 0x137   : > { %v7390_v33 = vadd.f32 %v5875_v36, %v1928_v43  ;;  %v1926_v55 = vadd.f32 %v1799_v14, %v7747_v2  ;;  %v5876_v41 = vpop.f32.mrf.mxu0 }
 0x138   : > { %v5842_v16 = vpop.f32.mrf.mxu1 }
 0x139   : > { %v7393_v0 = vadd.f32 %v2158_v56, %v1926_v55  ;;  %v1929_v25 = vadd.f32 %v5842_v16, %v7748_v58  ;;  %v2161_v3 = vpop.f32.mrf.mxu0 }
 0x13a   : > { %v1802_v48 = vpop.f32.mrf.mxu1 }
 0x13b   : > { %v7396_v38 = vadd.f32 %v5876_v41, %v1929_v25  ;;  %v1927_v24 = vadd.f32 %v1802_v48, %v7749_v8  ;;  %v5879_v19 = vpop.f32.mrf.mxu0 }
 0x13c   : > { %v5845_v59 = vpop.f32.mrf.mxu1 }
 0x13d   : > { %v7399_v9 = vadd.f32 %v2161_v3, %v1927_v24  ;;  %v1932_v45 = vadd.f32 %v5845_v59, %v7750_v29  ;;  %v2174_v23 = vpop.f32.mrf.mxu0 }
 0x13e   : > { %v1815_v51 = vpop.f32.mrf.mxu1 }
 0x13f   : > { %v7402_v15 = vadd.f32 %v5879_v19, %v1932_v45  ;;  %v1930_v20 = vadd.f32 %v1815_v51, %v7190_v62  ;;  %v5880_v34 = vpop.f32.mrf.mxu0 }
 0x140   : > { %v5846_v47 = vpop.f32.mrf.mxu1 }
 0x141   : > { %v7405_v4 = vadd.f32 %v2174_v23, %v1930_v20  ;;  %v1933_v54 = vadd.f32 %v5846_v47, %v7195_v46  ;;  %v2177_v42 = vpop.f32.mrf.mxu0 }
 0x142   : > { %v1818_v13 = vpop.f32.mrf.mxu1 }
 0x143   : > { %v7408_v53 = vadd.f32 %v5880_v34, %v1933_v54  ;;  %v1931_v35 = vadd.f32 %v1818_v13, %v7209_v26  ;;  %v5883_v63 = vpop.f32.mrf.mxu0 }
 0x144   : > { %v5849_v36 = vpop.f32.mrf.mxu1 }
 0x145   : > { %v7411_v44 = vadd.f32 %v2177_v42, %v1931_v35  ;;  %v1936_v17 = vadd.f32 %v5849_v36, %v7222_v5  ;;  %v2190_v43 = vpop.f32.mrf.mxu0 }
 0x146   : > { %v1831_v62 = vpop.f32.mrf.mxu1 }
 0x147   : > { %v7414_v56 = vadd.f32 %v5883_v63, %v1936_v17  ;;  %v1934_v14 = vadd.f32 %v1831_v62, %v7249_v61  ;;  %v5884_v2 = vpop.f32.mrf.mxu0 }
 0x148   : > { %v5850_v46 = vpop.f32.mrf.mxu1 }
 0x149   : > { %v7417_v55 = vadd.f32 %v2190_v43, %v1934_v14  ;;  %v1937_v41 = vadd.f32 %v5850_v46, %v7260_v39  ;;  %v2193_v16 = vpop.f32.mrf.mxu0 }
 0x14a   : > { %v1834_v26 = vpop.f32.mrf.mxu1 }
 0x14b   : > { %v7420_v58 = vadd.f32 %v5884_v2, %v1937_v41  ;;  %v1935_v25 = vadd.f32 %v1834_v26, %v7266_v60  ;;  %v5887_v3 = vpop.f32.mrf.mxu0 }
 0x14c   : > { %v5853_v5 = vpop.f32.mrf.mxu1 }
 0x14d   : > { %v7423_v48 = vadd.f32 %v2193_v16, %v1935_v25  ;;  %v1940_v8 = vadd.f32 %v5853_v5, %v7270_v28  ;;  %v2206_v24 = vpop.f32.mrf.mxu0 }
 0x14e   : > { %v1847_v61 = vpop.f32.mrf.mxu1 }
 0x14f   : > { %v7426_v19 = vadd.f32 %v5887_v3, %v1940_v8  ;;  %v1938_v59 = vadd.f32 %v1847_v61, %v7286_v10  ;;  %v5888_v29 = vpop.f32.mrf.mxu0 }
 0x150   : > { %v5854_v39 = vpop.f32.mrf.mxu1 }
 0x151   : > { %v7429_v45 = vadd.f32 %v2206_v24, %v1938_v59  ;;  %v1941_v23 = vadd.f32 %v5854_v39, %v7298_v22  ;;  %v2209_v51 = vpop.f32.mrf.mxu0 }
 0x152   : > { %v1850_v60 = vpop.f32.mrf.mxu1 }
 0x153   : > { %v7432_v20 = vadd.f32 %v5888_v29, %v1941_v23  ;;  %v1939_v34 = vadd.f32 %v1850_v60, %v7307_v31  ;;  %v5891_v47 = vpop.f32.mrf.mxu0 }
 0x154   : > { %v5857_v28 = vpop.f32.mrf.mxu1 }
 0x155   : > { %v7435_v54 = vadd.f32 %v2209_v51, %v1939_v34  ;;  %v1944_v42 = vadd.f32 %v5857_v28, %v7312_v21  ;;  %v2222_v13 = vpop.f32.mrf.mxu0 }
 0x156   : > { %v1863_v10 = vpop.f32.mrf.mxu1 }
 0x157   : > { %v7438_v35 = vadd.f32 %v5891_v47, %v1944_v42  ;;  %v1942_v63 = vadd.f32 %v1863_v10, %v7316_v52  ;;  %v5892_v36 = vpop.f32.mrf.mxu0 }
 0x158   : > { %v5858_v22 = vpop.f32.mrf.mxu1 }
 0x159   : > { %v7441_v17 = vadd.f32 %v2222_v13, %v1942_v63  ;;  %v1945_v43 = vadd.f32 %v5858_v22, %v7321_v1  ;;  %v2225_v62 = vpop.f32.mrf.mxu0 }
 0x15a   : > { %v1866_v31 = vpop.f32.mrf.mxu1 }
 0x15b   : > { %v7444_v14 = vadd.f32 %v5892_v36, %v1945_v43  ;;  %v1943_v2 = vadd.f32 %v1866_v31, %v7332_v18  ;;  %v5895_v46 = vpop.f32.mrf.mxu0 }
 0x15c   : > { %v5861_v21 = vpop.f32.mrf.mxu1 }
 0x15d   : > { %v7447_v41 = vadd.f32 %v2225_v62, %v1943_v2  ;;  %v1948_v16 = vadd.f32 %v5861_v21, %v7341_v11  ;;  %v2238_v26 = vpop.f32.mrf.mxu0 }
 0x15e   : > { %v1879_v52 = vpop.f32.mrf.mxu1 }
 0x15f   : > { %v7450_v25 = vadd.f32 %v5895_v46, %v1948_v16  ;;  %v1946_v3 = vadd.f32 %v1879_v52, %v7345_v57  ;;  %v5896_v5 = vpop.f32.mrf.mxu0 }
 0x160   : > { %v5862_v1 = vpop.f32.mrf.mxu1 }
 0x161   : > { %v7453_v8 = vadd.f32 %v2238_v26, %v1946_v3  ;;  %v1949_v24 = vadd.f32 %v5862_v1, %v7349_v40  ;;  %v2241_v61 = vpop.f32.mrf.mxu0 }
 0x162   : > { %v1882_v18 = vpop.f32.mrf.mxu1 }
 0x163   : > { %7751 = vst [vmem:[#allocation2_spill] sm:$0xff] %v7453_v8  ;;  %v7456_v59 = vadd.f32 %v5896_v5, %v1949_v24  ;;  %v1947_v29 = vadd.f32 %v1882_v18, %v7359_v37  ;;  %v5899_v39 = vpop.f32.mrf.mxu0 }
 0x164   : > { %v5865_v11 = vpop.f32.mrf.mxu1 }
 0x165   : > { %7752 = vst [vmem:[#allocation3_spill] sm:$0xff] %v7456_v59  ;;  %v7459_v23 = vadd.f32 %v2241_v61, %v1947_v29  ;;  %v1952_v51 = vadd.f32 %v5865_v11, %v7363_v12  ;;  %v2254_v60 = vpop.f32.mrf.mxu0 }
 0x166   : > { %v1895_v57 = vpop.f32.mrf.mxu1 }
 0x167   : > { %7753 = vst [vmem:[#allocation4_spill] sm:$0xff] %v7459_v23  ;;  %v7462_v34 = vadd.f32 %v5899_v39, %v1952_v51  ;;  %v1950_v47 = vadd.f32 %v1895_v57, %v7367_v27  ;;  %v5900_v28 = vpop.f32.mrf.mxu0 }
 0x168   : > { %v5866_v40 = vpop.f32.mrf.mxu1 }
 0x169   : > { %v7465_v42 = vadd.f32 %v2254_v60, %v1950_v47  ;;  %v1953_v13 = vadd.f32 %v5866_v40, %v7370_v7  ;;  %v2257_v10 = vpop.f32.mrf.mxu0 }
 0x16a   : > { %v1898_v37 = vpop.f32.mrf.mxu1 }
 0x16b   : > { %7754 = vst [vmem:[#allocation5_spill] sm:$0xff] %v7465_v42  ;;  %v7468_v63 = vadd.f32 %v5900_v28, %v1953_v13  ;;  %v1951_v36 = vadd.f32 %v1898_v37, %v7375_v32  ;;  %v5903_v22 = vpop.f32.mrf.mxu0 }
 0x16c   : > { %v5869_v12 = vpop.f32.mrf.mxu1 }
 0x16d   : > { %7755 = vst [vmem:[#allocation6_spill] sm:$0xff] %v7468_v63  ;;  %v7471_v43 = vadd.f32 %v2257_v10, %v1951_v36  ;;  %v1956_v62 = vadd.f32 %v5869_v12, %v7378_v50  ;;  %v2270_v31 = vpop.f32.mrf.mxu0 }
 0x16e   : > { %v1911_v27 = vpop.f32.mrf.mxu1 }
 0x16f   : > { %7756 = vst [vmem:[#allocation7_spill] sm:$0xff] %v7471_v43  ;;  %v7474_v2 = vadd.f32 %v5903_v22, %v1956_v62  ;;  %v1954_v46 = vadd.f32 %v1911_v27, %v7381_v49  ;;  %v5904_v21 = vpop.f32.mrf.mxu0 }
 0x170   : > { %v5870_v7 = vpop.f32.mrf.mxu1 }
 0x171   : > { %v7477_v16 = vadd.f32 %v2270_v31, %v1954_v46  ;;  %v1957_v26 = vadd.f32 %v5870_v7, %v7384_v6  ;;  %v2273_v52 = vpop.f32.mrf.mxu0 }
 0x172   : > { %v1914_v32 = vpop.f32.mrf.mxu1 }
 0x173   : > { %7757 = vst [vmem:[#allocation8_spill] sm:$0xff] %v7477_v16  ;;  %v7480_v3 = vadd.f32 %v5904_v21, %v1957_v26  ;;  %v1955_v5 = vadd.f32 %v1914_v32, %v7387_v30  ;;  %v5943_v1 = vpop.f32.mrf.mxu0 }
 0x174   : > { %v5909_v50 = vpop.f32.mrf.mxu1 }
 0x175   : > { %7758 = vst [vmem:[#allocation9_spill] sm:$0xff] %v7480_v3  ;;  %v7483_v24 = vadd.f32 %v2273_v52, %v1955_v5  ;;  %v3013_v61 = vadd.f32 %v5909_v50, %v7390_v33  ;;  %v3243_v18 = vpop.f32.mrf.mxu0 }
 0x176   : > { %v2884_v49 = vpop.f32.mrf.mxu1 }
 0x177   : > { %7759 = vst [vmem:[#allocation10_spill] sm:$0xff] %v7483_v24  ;;  %v7486_v29 = vadd.f32 %v5943_v1, %v3013_v61  ;;  %v3011_v39 = vadd.f32 %v2884_v49, %v7393_v0  ;;  %v7489_v11 = vpop.f32.mrf.mxu0 }
 0x178   : > { %v7491_v6 = vpop.f32.mrf.mxu1 }
 0x179   : > { %v7493_v51 = vadd.f32 %v3243_v18, %v3011_v39  ;;  %v7495_v60 = vpop.f32.mrf.mxu0 }
 0x17a   : > { %v7497_v30 = vpop.f32.mrf.mxu1 }
 0x17b   : > { %v5947_v57 = vpop.f32.mrf.mxu0 }
 0x17c   : > { %v5913_v47 = vpop.f32.mrf.mxu1 }
 0x17d   : > { %v3017_v33 = vadd.f32 %v5913_v47, %v7402_v15  ;;  %v7500_v28 = vpop.f32.mrf.mxu0 }
 0x17e   : > { %v7502_v40 = vpop.f32.mrf.mxu1 }
 0x17f   : > { %v7504_v13 = vadd.f32 %v5947_v57, %v3017_v33  ;;  %v7506_v0 = vpop.f32.mrf.mxu0 }
 0x180   : > { %v7508_v10 = vpop.f32.mrf.mxu1 }
 0x181   : > { %v7510_v37 = vpop.f32.mrf.mxu0 }
 0x182   : > { %v7512_v36 = vpop.f32.mrf.mxu1 }
 0x183   : > { %v5951_v22 = vpop.f32.mrf.mxu0 }
 0x184   : > { %v5917_v12 = vpop.f32.mrf.mxu1 }
 0x185   : > { %v3021_v62 = vadd.f32 %v5917_v12, %v7414_v56  ;;  %v7515_v31 = vpop.f32.mrf.mxu0 }
 0x186   : > { %v7517_v15 = vpop.f32.mrf.mxu1 }
 0x187   : > { %v7519_v27 = vadd.f32 %v5951_v22, %v3021_v62  ;;  %v7521_v46 = vpop.f32.mrf.mxu0 }
 0x188   : > { %v7523_v21 = vpop.f32.mrf.mxu1 }
 0x189   : > { %v7525_v7 = vpop.f32.mrf.mxu0 }
 0x18a   : > { %v7527_v26 = vpop.f32.mrf.mxu1 }
 0x18b   : > { %v5955_v52 = vpop.f32.mrf.mxu0 }
 0x18c   : > { %v5921_v32 = vpop.f32.mrf.mxu1 }
 0x18d   : > { %v3025_v5 = vadd.f32 %v5921_v32, %v7426_v19  ;;  %v7530_v1 = vpop.f32.mrf.mxu0 }
 0x18e   : > { %v7532_v56 = vpop.f32.mrf.mxu1 }
 0x18f   : > { %v7534_v50 = vadd.f32 %v5955_v52, %v3025_v5  ;;  %v7536_v61 = vpop.f32.mrf.mxu0 }
 0x190   : > { %v7538_v18 = vpop.f32.mrf.mxu1 }
 0x191   : > { %v7540_v49 = vpop.f32.mrf.mxu0 }
 0x192   : > { %v7542_v39 = vpop.f32.mrf.mxu1 }
 0x193   : > { %v5959_v57 = vpop.f32.mrf.mxu0 }
 0x194   : > { %v5925_v47 = vpop.f32.mrf.mxu1 }
 0x195   : > { %v3029_v33 = vadd.f32 %v5925_v47, %v7438_v35  ;;  %v7545_v22 = vpop.f32.mrf.mxu0 }
 0x196   : > { %v7547_v19 = vpop.f32.mrf.mxu1 }
 0x197   : > { %v7549_v12 = vadd.f32 %v5959_v57, %v3029_v33  ;;  %v7551_v62 = vpop.f32.mrf.mxu0 }
 0x198   : > { %v7553_v52 = vpop.f32.mrf.mxu1 }
 0x199   : > { %v7555_v32 = vpop.f32.mrf.mxu0 }
 0x19a   : > { %7760 = vst [vmem:[#allocation11_spill] sm:$0xff] %v7555_v32  ;;  %v7557_v5 = vpop.f32.mrf.mxu1 }
 0x19b   : > { %v5963_v24 = vpop.f32.mrf.mxu0 }
 0x19c   : > { %v5929_v3 = vpop.f32.mrf.mxu1 }
 0x19d   : > { %v3033_v16 = vadd.f32 %v5929_v3, %v7450_v25  ;;  %v7560_v43 = vpop.f32.mrf.mxu0 }
 0x19e   : > { %7761 = vst [vmem:[#allocation12_spill] sm:$0xff] %v7560_v43  ;;  %v7562_v35 = vpop.f32.mrf.mxu1 }
 0x19f   : > { %v7564_v47 = vadd.f32 %v5963_v24, %v3033_v16  ;;  %v7566_v57 = vpop.f32.mrf.mxu0 }
 0x1a0   : > { %7763 = vst [vmem:[#allocation14_spill] sm:$0xff] %v7566_v57  ;;  %v7568_v33 = vpop.f32.mrf.mxu1 }
 0x1a1   : > { %7762 = vst [vmem:[#allocation13_spill] sm:$0xff] %v7564_v47  ;;  %7764 = vst [vmem:[#allocation15_spill] sm:$0xff] %v7568_v33  ;;  %v7570_v63 = vpop.f32.mrf.mxu0 }
 0x1a2   : > { %7765 = vst [vmem:[#allocation16_spill] sm:$0xff] %v7570_v63  ;;  %v7572_v42 = vpop.f32.mrf.mxu1 }
 0x1a3   : > { %7766 = vst [vmem:[#allocation17_spill] sm:$0xff] %v7572_v42  ;;  %v5967_v23 = vpop.f32.mrf.mxu0 }
 0x1a4   : > { %v5933_v59 = vpop.f32.mrf.mxu1 }
 0x1a5   : > { %v3037_v8 = vadd.f32 %v5933_v59, %v7462_v34  ;;  %v7575_v32 = vpop.f32.mrf.mxu0 }
 0x1a6   : > { %7767 = vst [vmem:[#allocation18_spill] sm:$0xff] %v7575_v32  ;;  %v7577_v25 = vpop.f32.mrf.mxu1 }
 0x1a7   : > { %v7579_v3 = vadd.f32 %v5967_v23, %v3037_v8  ;;  %v7581_v16 = vpop.f32.mrf.mxu0 }
 0x1a8   : > { %7769 = vst [vmem:[#allocation20_spill] sm:$0xff] %v7581_v16  ;;  %v7583_v24 = vpop.f32.mrf.mxu1  ;;  %v3014_v16 = vadd.f32 %v7491_v6, %v7396_v38  ;;  %v3015_v6 = vadd.f32 %v7502_v40, %v7405_v4 }
 0x1a9   : > { %7768 = vst [vmem:[#allocation19_spill] sm:$0xff] %v7579_v3  ;;  %v7585_v47 = vpop.f32.mrf.mxu0 }
 0x1aa   : > { %7770 = vst [vmem:[#allocation21_spill] sm:$0xff] %v7585_v47  ;;  %v7587_v57 = vpop.f32.mrf.mxu1 }
 0x1ab   : > { %7771 = vst [vmem:[#allocation22_spill] sm:$0xff] %v7587_v57  ;;  %v5971_v63 = vpop.f32.mrf.mxu0 }
 0x1ac   : > { %v5937_v42 = vpop.f32.mrf.mxu1 }
 0x1ad   : > { %v3041_v43 = vadd.f32 %v5937_v42, %v7474_v2  ;;  %v7590_v33 = vpop.f32.mrf.mxu0  ;;  %v3012_v2 = vadd.f32 %v7497_v30, %v7399_v9  ;;  %v3018_v9 = vadd.f32 %v7508_v10, %v7408_v53  ;;  %v3374_v53 = vadd.f32 %v7500_v28, %v3015_v6 }
 0x1ae   : > { %7772 = vst [vmem:[#allocation23_spill] sm:$0xff] %v7590_v33  ;;  %v7592_v59 = vpop.f32.mrf.mxu1  ;;  %v3022_v6 = vadd.f32 %v7523_v21, %v7420_v58 }
 0x1af   : > { %7773 = vst [vmem:[#allocation24_spill] sm:$0xff] %v7592_v59  ;;  %v7594_v34 = vadd.f32 %v5971_v63, %v3041_v43  ;;  %v7596_v8 = vpop.f32.mrf.mxu0  ;;  %v3373_v43 = vadd.f32 %v7489_v11, %v3014_v16  ;;  %v3377_v10 = vadd.f32 %v7506_v0, %v3018_v9 }
 0x1b0   : > { %7775 = vst [vmem:[#allocation26_spill] sm:$0xff] %v7596_v8  ;;  %v7598_v23 = vpop.f32.mrf.mxu1 }
 0x1b1   : > { %7774 = vst [vmem:[#allocation25_spill] sm:$0xff] %v7594_v34  ;;  %7776 = vst [vmem:[#allocation27_spill] sm:$0xff] %v7598_v23  ;;  %v7600_v3 = vpop.f32.mrf.mxu0 }
 0x1b2   : > { %7777 = vst [vmem:[#allocation28_spill] sm:$0xff] %v7600_v3  ;;  %v7602_v47 = vpop.f32.mrf.mxu1 }
 0x1b3   : > { %7778 = vst [vmem:[#allocation29_spill] sm:$0xff] %v7602_v47  ;;  %v6011_v57 = vpop.f32.mrf.mxu0  ;;  %v3371_v47 = vadd.f32 %v7495_v60, %v3012_v2 }
 0x1b4   : > { %v5977_v42 = vpop.f32.mrf.mxu1 }
 0x1b5   : > { %v4328_v33 = vpop.f32.mrf.mxu0  ;;  %v3731_v34 = vadd.f32 %v5977_v42, %v7486_v29 }
 0x1b6   : > { %v3602_v63 = vpop.f32.mrf.mxu1 }
 0x1b7   : > { %v3729_v8 = vadd.f32 %v3602_v63, %v7493_v51  ;;  %v6012_v23 = vpop.f32.mrf.mxu0  ;;  %v4457_v32 = vadd.f32 %v6011_v57, %v3731_v34  ;;  %v3016_v51 = vadd.f32 %v7512_v36, %v7411_v44 }
 0x1b8   : > { %v5978_v3 = vpop.f32.mrf.mxu1 }
 0x1b9   : > { %v3732_v59 = vadd.f32 %v5978_v3, %v3373_v43  ;;  %v4331_v38 = vpop.f32.mrf.mxu0  ;;  %v4455_v11 = vadd.f32 %v4328_v33, %v3729_v8  ;;  %v3375_v8 = vadd.f32 %v7510_v37, %v3016_v51  ;;  %v4687_v43 = vmul.f32 %v4457_v32, %v4457_v32 }
 0x1ba   : > { %v3605_v30 = vpop.f32.mrf.mxu1 }
 0x1bb   : > { %v4458_v16 = vadd.f32 %v6012_v23, %v3732_v59  ;;  %v3730_v29 = vadd.f32 %v3605_v30, %v3371_v47  ;;  %v6015_v42 = vpop.f32.mrf.mxu0  ;;  %v4685_v33 = vmul.f32 %v4455_v11, %v4455_v11  ;;  %v3019_v23 = vadd.f32 %v7517_v15, %v7417_v55 }
 0x1bc   : > { %v5981_v60 = vpop.f32.mrf.mxu1 }
 0x1bd   : > { %v5495_v4 = vpack.c.bf16 %v4458_v16, %v4457_v32  ;;  %v4456_v40 = vadd.f32 %v4331_v38, %v3730_v29  ;;  %v4344_v3 = vpop.f32.mrf.mxu0  ;;  %v3735_v47 = vadd.f32 %v5981_v60, %v7504_v13  ;;  %v4688_v9 = vmul.f32 %v4458_v16, %v4458_v16 }
 0x1be   : > { %v3618_v57 = vpop.f32.mrf.mxu1 }
 0x1bf   : > { %5567 = vst [vmem:[%s7622_s18 + $0x8] sm:$0xff] %v5495_v4   ;;  %v5490_v44 = vpack.c.bf16 %v4456_v40, %v4455_v11  ;;  %v4647_v36 = vadd.f32 %v4456_v40, %v4455_v11  ;;  %v4686_v59 = vmul.f32 %v4456_v40, %v4456_v40  ;;  %v6016_v34 = vpop.f32.mrf.mxu0  ;;  %v3733_v2 = vadd.f32 %v3618_v57, %v3374_v53 }
 0x1c0   : > { %v5982_v63 = vpop.f32.mrf.mxu1  ;;  %v4461_v30 = vadd.f32 %v6015_v42, %v3735_v47  ;;  %v3378_v4 = vadd.f32 %v7515_v31, %v3019_v23  ;;  %v3381_v47 = vadd.f32 %v7521_v46, %v3022_v6  ;;  %v3026_v23 = vadd.f32 %v7538_v18, %v7432_v20 }
 0x1c1   : > { %5491 = vst [vmem:[%s7622_s18] sm:$0xff] %v5490_v44   ;;  %v4648_v28 = vadd.f32 %v4647_v36, %v4457_v32  ;;  %v4717_v0 = vadd.f32 %v4686_v59, %v4685_v33  ;;  %v3736_v38 = vadd.f32 %v5982_v63, %v3377_v10  ;;  %v4347_v13 = vpop.f32.mrf.mxu0  ;;  %v4459_v11 = vadd.f32 %v4344_v3, %v3733_v2 }
 0x1c2   : > { %v3621_v29 = vpop.f32.mrf.mxu1  ;;  %v3020_v32 = vadd.f32 %v7527_v26, %v7423_v48  ;;  %v4691_v63 = vmul.f32 %v4461_v30, %v4461_v30  ;;  %v3024_v20 = vadd.f32 %v7542_v39, %v7435_v54 }
 0x1c3   : > { %v4718_v60 = vadd.f32 %v4717_v0, %v4687_v43  ;;  %v4649_v37 = vadd.f32 %v4648_v28, %v4458_v16  ;;  %v4462_v51 = vadd.f32 %v6016_v34, %v3736_v38  ;;  %v3734_v55 = vadd.f32 %v3621_v29, %v3375_v8  ;;  %v6019_v15 = vpop.f32.mrf.mxu0 }
 0x1c4   : > { %v5985_v40 = vpop.f32.mrf.mxu1  ;;  %v4689_v10 = vmul.f32 %v4459_v11, %v4459_v11  ;;  %v3379_v34 = vadd.f32 %v7525_v7, %v3020_v32  ;;  %v3023_v8 = vadd.f32 %v7532_v56, %v7429_v45  ;;  %v3383_v39 = vadd.f32 %v7540_v49, %v3024_v20 }
 0x1c5   : > { %v4650_v53 = vadd.f32 %v4649_v37, %v4459_v11  ;;  %v4719_v57 = vadd.f32 %v4718_v60, %v4688_v9  ;;  %v5505_v58 = vpack.c.bf16 %v4462_v51, %v4461_v30  ;;  %v4360_v21 = vpop.f32.mrf.mxu0  ;;  %v4460_v42 = vadd.f32 %v4347_v13, %v3734_v55 }
 0x1c6   : > { %v3634_v3 = vpop.f32.mrf.mxu1  ;;  %v3739_v33 = vadd.f32 %v5985_v40, %v7519_v27  ;;  %v4692_v7 = vmul.f32 %v4462_v51, %v4462_v51  ;;  %v3382_v56 = vadd.f32 %v7530_v1, %v3023_v8  ;;  %v3385_v37 = vadd.f32 %v7536_v61, %v3026_v23 }
 0x1c7   : > { %v4720_v16 = vadd.f32 %v4719_v57, %v4689_v10  ;;  %5569 = vst [vmem:[%s7622_s18 + $0x18] sm:$0xff] %v5505_v58   ;;  %v3737_v44 = vadd.f32 %v3634_v3, %v3378_v4  ;;  %v6020_v31 = vpop.f32.mrf.mxu0  ;;  %v5500_v36 = vpack.c.bf16 %v4460_v42, %v4459_v11  ;;  %v4651_v59 = vadd.f32 %v4650_v53, %v4460_v42 }
 0x1c8   : > { %v4690_v48 = vmul.f32 %v4460_v42, %v4460_v42  ;;  %v5986_v26 = vpop.f32.mrf.mxu1  ;;  %v4465_v38 = vadd.f32 %v6019_v15, %v3739_v33  ;;  %v3027_v61 = vadd.f32 %v7547_v19, %v7441_v17 }
 0x1c9   : > { %v3740_v46 = vadd.f32 %v5986_v26, %v3381_v47  ;;  %v4363_v2 = vpop.f32.mrf.mxu0  ;;  %5568 = vst [vmem:[%s7622_s18 + $0x10] sm:$0xff] %v5500_v36   ;;  %v4652_v43 = vadd.f32 %v4651_v59, %v4461_v30  ;;  %v4463_v28 = vadd.f32 %v4360_v21, %v3737_v44  ;;  %v3030_v21 = vadd.f32 %v7553_v52, %v7444_v14 }
 0x1ca   : > { %v4721_v27 = vadd.f32 %v4720_v16, %v4690_v48  ;;  %v3637_v0 = vpop.f32.mrf.mxu1  ;;  %v4695_v47 = vmul.f32 %v4465_v38, %v4465_v38  ;;  %v3386_v19 = vadd.f32 %v7545_v22, %v3027_v61  ;;  %v3028_v14 = vadd.f32 %v7557_v5, %v7447_v41  ;;  %v7779_v5 = vld [vmem:[#allocation11_spill] sm:$0xff] }
 0x1cb   : > { %v4466_v13 = vadd.f32 %v6020_v31, %v3740_v46  ;;  %v3738_v6 = vadd.f32 %v3637_v0, %v3379_v34  ;;  %v6023_v9 = vpop.f32.mrf.mxu0  ;;  %v4653_v29 = vadd.f32 %v4652_v43, %v4462_v51  ;;  %v4693_v15 = vmul.f32 %v4463_v28, %v4463_v28 }
 0x1cc   : > { %v4722_v11 = vadd.f32 %v4721_v27, %v4691_v63  ;;  %v5989_v45 = vpop.f32.mrf.mxu1  ;;  %v3389_v46 = vadd.f32 %v7551_v62, %v3030_v21 }
 0x1cd   : > { %v5515_v18 = vpack.c.bf16 %v4466_v13, %v4465_v38  ;;  %v4464_v60 = vadd.f32 %v4363_v2, %v3738_v6  ;;  %v4376_v30 = vpop.f32.mrf.mxu0  ;;  %v4654_v55 = vadd.f32 %v4653_v29, %v4463_v28  ;;  %v3743_v51 = vadd.f32 %v5989_v45, %v7534_v50  ;;  %v7781_v29 = vld [vmem:[#allocation3_spill] sm:$0xff] }
 0x1ce   : > { %v4723_v4 = vadd.f32 %v4722_v11, %v4692_v7  ;;  %v3650_v32 = vpop.f32.mrf.mxu1  ;;  %v4696_v49 = vmul.f32 %v4466_v13, %v4466_v13  ;;  %v3387_v7 = vadd.f32 %v7779_v5, %v3028_v14  ;;  %v7780_v11 = vld [vmem:[#allocation2_spill] sm:$0xff]  ;;  %v7782_v45 = vld [vmem:[#allocation15_spill] sm:$0xff]  ;;  %v7788_v14 = vld [vmem:[#allocation16_spill] sm:$0xff] }
 0x1cf   : > { %5571 = vst [vmem:[%s7622_s18 + $0x28] sm:$0xff] %v5515_v18   ;;  %v5510_v40 = vpack.c.bf16 %v4464_v60, %v4463_v28  ;;  %v4694_v53 = vmul.f32 %v4464_v60, %v4464_v60  ;;  %v3741_v10 = vadd.f32 %v3650_v32, %v3382_v56  ;;  %v6024_v1 = vpop.f32.mrf.mxu0  ;;  %v4655_v58 = vadd.f32 %v4654_v55, %v4464_v60 }
 0x1d0   : > { %v4724_v57 = vadd.f32 %v4723_v4, %v4693_v15  ;;  %v5990_v54 = vpop.f32.mrf.mxu1  ;;  %v4469_v31 = vadd.f32 %v6023_v9, %v3743_v51  ;;  %v3031_v62 = vadd.f32 %v7562_v35, %v7780_v11  ;;  %v3034_v56 = vadd.f32 %v7782_v45, %v7781_v29  ;;  %v7793_v45 = vld [vmem:[#allocation22_spill] sm:$0xff] }
 0x1d1   : > { %5570 = vst [vmem:[%s7622_s18 + $0x20] sm:$0xff] %v5510_v40   ;;  %v3744_v42 = vadd.f32 %v5990_v54, %v3385_v37  ;;  %v4379_v3 = vpop.f32.mrf.mxu0  ;;  %v4656_v16 = vadd.f32 %v4655_v58, %v4465_v38  ;;  %v4467_v50 = vadd.f32 %v4376_v30, %v3741_v10  ;;  %v7784_v58 = vld [vmem:[#allocation4_spill] sm:$0xff]  ;;  %v7785_v54 = vld [vmem:[#allocation17_spill] sm:$0xff] }
 0x1d2   : > { %v4725_v33 = vadd.f32 %v4724_v57, %v4694_v53  ;;  %v3653_v44 = vpop.f32.mrf.mxu1  ;;  %v4699_v60 = vmul.f32 %v4469_v31, %v4469_v31 }
 0x1d3   : > { %v4470_v36 = vadd.f32 %v6024_v1, %v3744_v42  ;;  %v3742_v59 = vadd.f32 %v3653_v44, %v3383_v39  ;;  %v6027_v48 = vpop.f32.mrf.mxu0  ;;  %v4657_v34 = vadd.f32 %v4656_v16, %v4466_v13  ;;  %v4697_v63 = vmul.f32 %v4467_v50, %v4467_v50  ;;  %v7783_v1 = vld [vmem:[#allocation12_spill] sm:$0xff] }
 0x1d4   : > { %v4726_v26 = vadd.f32 %v4725_v33, %v4695_v47  ;;  %v5993_v17 = vpop.f32.mrf.mxu1  ;;  %v3390_v57 = vadd.f32 %v7783_v1, %v3031_v62  ;;  %v3032_v39 = vadd.f32 %v7785_v54, %v7784_v58  ;;  %v7791_v62 = vld [vmem:[#allocation18_spill] sm:$0xff]  ;;  %v7796_v54 = vld [vmem:[#allocation21_spill] sm:$0xff] }
 0x1d5   : > { %v5525_v52 = vpack.c.bf16 %v4470_v36, %v4469_v31  ;;  %v4468_v8 = vadd.f32 %v4379_v3, %v3742_v59  ;;  %v4392_v23 = vpop.f32.mrf.mxu0  ;;  %v4658_v2 = vadd.f32 %v4657_v34, %v4467_v50  ;;  %v3747_v38 = vadd.f32 %v5993_v17, %v7549_v12  ;;  %v7786_v3 = vld [vmem:[#allocation14_spill] sm:$0xff] }
 0x1d6   : > { %v4727_v43 = vadd.f32 %v4726_v26, %v4696_v49  ;;  %v3666_v27 = vpop.f32.mrf.mxu1  ;;  %v4700_v53 = vmul.f32 %v4470_v36, %v4470_v36  ;;  %v3393_v47 = vadd.f32 %v7786_v3, %v3034_v56  ;;  %v7799_v3 = vld [vmem:[#allocation9_spill] sm:$0xff] }
 0x1d7   : > { %5573 = vst [vmem:[%s7622_s18 + $0x38] sm:$0xff] %v5525_v52   ;;  %v5520_v28 = vpack.c.bf16 %v4468_v8, %v4467_v50  ;;  %v4698_v0 = vmul.f32 %v4468_v8, %v4468_v8  ;;  %v3745_v13 = vadd.f32 %v3666_v27, %v3386_v19  ;;  %v6028_v22 = vpop.f32.mrf.mxu0  ;;  %v4659_v9 = vadd.f32 %v4658_v2, %v4468_v8  ;;  %v7789_v8 = vld [vmem:[#allocation5_spill] sm:$0xff] }
 0x1d8   : > { %v4728_v6 = vadd.f32 %v4727_v43, %v4697_v63  ;;  %v5994_v41 = vpop.f32.mrf.mxu1  ;;  %v4473_v15 = vadd.f32 %v6027_v48, %v3747_v38  ;;  %v3391_v52 = vadd.f32 %v7788_v14, %v3032_v39 }
 0x1d9   : > { %5572 = vst [vmem:[%s7622_s18 + $0x30] sm:$0xff] %v5520_v28   ;;  %v3748_v20 = vadd.f32 %v5994_v41, %v3389_v46  ;;  %v4395_v18 = vpop.f32.mrf.mxu0  ;;  %v4660_v30 = vadd.f32 %v4659_v9, %v4469_v31  ;;  %v4471_v12 = vadd.f32 %v4392_v23, %v3745_v13  ;;  %v3035_v23 = vadd.f32 %v7577_v25, %v7789_v8  ;;  %v7790_v46 = vld [vmem:[#allocation6_spill] sm:$0xff] }
 0x1da   : > { %v4729_v37 = vadd.f32 %v4728_v6, %v4698_v0  ;;  %v3669_v55 = vpop.f32.mrf.mxu1  ;;  %v3038_v2 = vadd.f32 %v7583_v24, %v7790_v46  ;;  %v4703_v27 = vmul.f32 %v4473_v15, %v4473_v15  ;;  %v7792_v24 = vld [vmem:[#allocation7_spill] sm:$0xff] }
 0x1db   : > { %v4474_v4 = vadd.f32 %v6028_v22, %v3748_v20  ;;  %v3746_v32 = vadd.f32 %v3669_v55, %v3387_v7  ;;  %v6031_v40 = vpop.f32.mrf.mxu0  ;;  %v4661_v10 = vadd.f32 %v4660_v30, %v4470_v36  ;;  %v4701_v33 = vmul.f32 %v4471_v12, %v4471_v12  ;;  %v7787_v36 = vld [vmem:[#allocation13_spill] sm:$0xff]  ;;  %v7794_v30 = vld [vmem:[#allocation20_spill] sm:$0xff] }
 0x1dc   : > { %v4730_v51 = vadd.f32 %v4729_v37, %v4699_v60  ;;  %v5997_v35 = vpop.f32.mrf.mxu1  ;;  %v3394_v29 = vadd.f32 %v7791_v62, %v3035_v23  ;;  %v3036_v56 = vadd.f32 %v7793_v45, %v7792_v24  ;;  %v3397_v37 = vadd.f32 %v7794_v30, %v3038_v2  ;;  %v7801_v23 = vld [vmem:[#allocation23_spill] sm:$0xff]  ;;  %v7802_v2 = vld [vmem:[#allocation10_spill] sm:$0xff] }
 0x1dd   : > { %v5535_v61 = vpack.c.bf16 %v4474_v4, %v4473_v15  ;;  %v4472_v21 = vadd.f32 %v4395_v18, %v3746_v32  ;;  %v4408_v42 = vpop.f32.mrf.mxu0  ;;  %v4662_v16 = vadd.f32 %v4661_v10, %v4471_v12  ;;  %v3751_v48 = vadd.f32 %v5997_v35, %v7787_v36 }
 0x1de   : > { %v4731_v50 = vadd.f32 %v4730_v51, %v4700_v53  ;;  %v3682_v44 = vpop.f32.mrf.mxu1  ;;  %v4704_v5 = vmul.f32 %v4474_v4, %v4474_v4  ;;  %v3395_v39 = vadd.f32 %v7796_v54, %v3036_v56 }
 0x1df   : > { %5575 = vst [vmem:[%s7622_s18 + $0x48] sm:$0xff] %v5535_v61   ;;  %v5530_v31 = vpack.c.bf16 %v4472_v21, %v4471_v12  ;;  %v4702_v59 = vmul.f32 %v4472_v21, %v4472_v21  ;;  %v3749_v49 = vadd.f32 %v3682_v44, %v3390_v57  ;;  %v6032_v26 = vpop.f32.mrf.mxu0  ;;  %v4663_v17 = vadd.f32 %v4662_v16, %v4472_v21  ;;  %v7797_v61 = vld [vmem:[#allocation8_spill] sm:$0xff] }
 0x1e0   : > { %v4732_v34 = vadd.f32 %v4731_v50, %v4701_v33  ;;  %v5998_v19 = vpop.f32.mrf.mxu1  ;;  %v4477_v22 = vadd.f32 %v6031_v40, %v3751_v48  ;;  %v7798_v21 = vld [vmem:[#allocation24_spill] sm:$0xff] }
 0x1e1   : > { %5574 = vst [vmem:[%s7622_s18 + $0x40] sm:$0xff] %v5530_v31   ;;  %v3752_v63 = vadd.f32 %v5998_v19, %v3393_v47  ;;  %v4411_v43 = vpop.f32.mrf.mxu0  ;;  %v4664_v28 = vadd.f32 %v4663_v17, %v4473_v15  ;;  %v4475_v38 = vadd.f32 %v4408_v42, %v3749_v49  ;;  %v3039_v42 = vadd.f32 %v7798_v21, %v7797_v61  ;;  %v7800_v47 = vld [vmem:[#allocation27_spill] sm:$0xff] }
 0x1e2   : > { %v4733_v0 = vadd.f32 %v4732_v34, %v4702_v59  ;;  %v3685_v13 = vpop.f32.mrf.mxu1  ;;  %v3042_v16 = vadd.f32 %v7800_v47, %v7799_v3  ;;  %v4707_v44 = vmul.f32 %v4477_v22, %v4477_v22 }
 0x1e3   : > { %v4478_v6 = vadd.f32 %v6032_v26, %v3752_v63  ;;  %v3750_v9 = vadd.f32 %v3685_v13, %v3391_v52  ;;  %v6035_v41 = vpop.f32.mrf.mxu0  ;;  %v4665_v11 = vadd.f32 %v4664_v28, %v4474_v4  ;;  %v4705_v55 = vmul.f32 %v4475_v38, %v4475_v38  ;;  %v7795_v4 = vld [vmem:[#allocation19_spill] sm:$0xff]  ;;  %v7803_v63 = vld [vmem:[#allocation29_spill] sm:$0xff] }
 0x1e4   : > { %v4734_v7 = vadd.f32 %v4733_v0, %v4703_v27  ;;  %v6001_v25 = vpop.f32.mrf.mxu1  ;;  %v3398_v46 = vadd.f32 %v7801_v23, %v3039_v42 }
 0x1e5   : > { %v5545_v20 = vpack.c.bf16 %v4478_v6, %v4477_v22  ;;  %v4476_v18 = vadd.f32 %v4411_v43, %v3750_v9  ;;  %v4424_v60 = vpop.f32.mrf.mxu0  ;;  %v4666_v12 = vadd.f32 %v4665_v11, %v4475_v38  ;;  %v3755_v51 = vadd.f32 %v6001_v25, %v7795_v4 }
 0x1e6   : > { %v4735_v15 = vadd.f32 %v4734_v7, %v4704_v5  ;;  %v3698_v32 = vpop.f32.mrf.mxu1  ;;  %v4708_v19 = vmul.f32 %v4478_v6, %v4478_v6  ;;  %v3040_v43 = vadd.f32 %v7803_v63, %v7802_v2 }
 0x1e7   : > { %5577 = vst [vmem:[%s7622_s18 + $0x58] sm:$0xff] %v5545_v20   ;;  %v5540_v40 = vpack.c.bf16 %v4476_v18, %v4475_v38  ;;  %v4706_v53 = vmul.f32 %v4476_v18, %v4476_v18  ;;  %v3753_v10 = vadd.f32 %v3698_v32, %v3394_v29  ;;  %v6036_v35 = vpop.f32.mrf.mxu0  ;;  %v4667_v57 = vadd.f32 %v4666_v12, %v4476_v18  ;;  %v7804_v38 = vld [vmem:[#allocation26_spill] sm:$0xff]  ;;  %v7806_v20 = vld [vmem:[#allocation28_spill] sm:$0xff] }
 0x1e8   : > { %v4736_v1 = vadd.f32 %v4735_v15, %v4705_v55  ;;  %v6002_v58 = vpop.f32.mrf.mxu1  ;;  %v4481_v49 = vadd.f32 %v6035_v41, %v3755_v51  ;;  %v3401_v13 = vadd.f32 %v7804_v38, %v3042_v16  ;;  %v3399_v18 = vadd.f32 %v7806_v20, %v3040_v43 }
 0x1e9   : > { %5576 = vst [vmem:[%s7622_s18 + $0x50] sm:$0xff] %v5540_v40   ;;  %v3756_v33 = vadd.f32 %v6002_v58, %v3397_v37  ;;  %v4427_v50 = vpop.f32.mrf.mxu0  ;;  %v4668_v31 = vadd.f32 %v4667_v57, %v4477_v22  ;;  %v4479_v36 = vadd.f32 %v4424_v60, %v3753_v10 }
 0x1ea   : > { %v4737_v59 = vadd.f32 %v4736_v1, %v4706_v53  ;;  %v3701_v48 = vpop.f32.mrf.mxu1  ;;  %v4711_v30 = vmul.f32 %v4481_v49, %v4481_v49 }
 0x1eb   : > { %v4482_v26 = vadd.f32 %v6036_v35, %v3756_v33  ;;  %v3754_v34 = vadd.f32 %v3701_v48, %v3395_v39  ;;  %v6039_v17 = vpop.f32.mrf.mxu0  ;;  %v4669_v52 = vadd.f32 %v4668_v31, %v4478_v6  ;;  %v4709_v9 = vmul.f32 %v4479_v36, %v4479_v36  ;;  %v7805_v6 = vld [vmem:[#allocation25_spill] sm:$0xff] }
 0x1ec   : > { %v4738_v14 = vadd.f32 %v4737_v59, %v4707_v44  ;;  %v6005_v8 = vpop.f32.mrf.mxu1 }
 0x1ed   : > { %v5555_v27 = vpack.c.bf16 %v4482_v26, %v4481_v49  ;;  %v4480_v28 = vadd.f32 %v4427_v50, %v3754_v34  ;;  %v4440_v0 = vpop.f32.mrf.mxu0  ;;  %v4670_v22 = vadd.f32 %v4669_v52, %v4479_v36  ;;  %v3759_v25 = vadd.f32 %v6005_v8, %v7805_v6 }
 0x1ee   : > { %v4739_v41 = vadd.f32 %v4738_v14, %v4708_v19  ;;  %v3714_v5 = vpop.f32.mrf.mxu1  ;;  %v4712_v4 = vmul.f32 %v4482_v26, %v4482_v26 }
 0x1ef   : > { %5579 = vst [vmem:[%s7622_s18 + $0x68] sm:$0xff] %v5555_v27   ;;  %v5550_v7 = vpack.c.bf16 %v4480_v28, %v4479_v36  ;;  %v4710_v11 = vmul.f32 %v4480_v28, %v4480_v28  ;;  %v3757_v62 = vadd.f32 %v3714_v5, %v3398_v46  ;;  %v4671_v24 = vadd.f32 %v4670_v22, %v4480_v28  ;;  %v6040_v56 = vpop.f32.mrf.mxu0 }
 0x1f0   : > { %v4740_v29 = vadd.f32 %v4739_v41, %v4709_v9  ;;  %v6006_v45 = vpop.f32.mrf.mxu1  ;;  %v4485_v32 = vadd.f32 %v6039_v17, %v3759_v25 }
 0x1f1   : > { %5578 = vst [vmem:[%s7622_s18 + $0x60] sm:$0xff] %v5550_v7   ;;  %v3760_v60 = vadd.f32 %v6006_v45, %v3401_v13  ;;  %v4672_v37 = vadd.f32 %v4671_v24, %v4481_v49  ;;  %v4483_v55 = vadd.f32 %v4440_v0, %v3757_v62  ;;  %v4443_v35 = vpop.f32.mrf.mxu0 }
 0x1f2   : > { %v4741_v12 = vadd.f32 %v4740_v29, %v4710_v11  ;;  %v3717_v15 = vpop.f32.mrf.mxu1  ;;  %v4715_v47 = vmul.f32 %v4485_v32, %v4485_v32 }
 0x1f3   : > { %v4486_v40 = vadd.f32 %v6040_v56, %v3760_v60  ;;  %v3758_v53 = vadd.f32 %v3717_v15, %v3399_v18  ;;  %v4673_v10 = vadd.f32 %v4672_v37, %v4482_v26  ;;  %v4713_v54 = vmul.f32 %v4483_v55, %v4483_v55 }
 0x1f4   : > { %v4742_v51 = vadd.f32 %v4741_v12, %v4711_v30 }
 0x1f5   : > { %v5565_v1 = vpack.c.bf16 %v4486_v40, %v4485_v32  ;;  %v4484_v57 = vadd.f32 %v4443_v35, %v3758_v53  ;;  %v4674_v58 = vadd.f32 %v4673_v10, %v4483_v55  ;;  %v4716_v50 = vmul.f32 %v4486_v40, %v4486_v40 }
 0x1f6   : > { %v4743_v39 = vadd.f32 %v4742_v51, %v4712_v4 }
 0x1f7   : > { %5581 = vst [vmem:[%s7622_s18 + $0x78] sm:$0xff] %v5565_v1   ;;  %v5560_v61 = vpack.c.bf16 %v4484_v57, %v4483_v55  ;;  %v4714_v21 = vmul.f32 %v4484_v57, %v4484_v57  ;;  %v4675_v3 = vadd.f32 %v4674_v58, %v4484_v57 }
 0x1f8   : > { %v4744_v42 = vadd.f32 %v4743_v39, %v4713_v54 }
 0x1f9   : > { %5580 = vst [vmem:[%s7622_s18 + $0x70] sm:$0xff] %v5560_v61   ;;  %v4676_v16 = vadd.f32 %v4675_v3, %v4485_v32 }
 0x1fa   : > { %v4745_v33 = vadd.f32 %v4744_v42, %v4714_v21 }
 0x1fb   : > { %v4677_v44 = vadd.f32 %v4676_v16, %v4486_v40 }
 0x1fc   : > { %v4746_v31 = vadd.f32 %v4745_v33, %v4715_v47 }
 0x1fd   : > { %v4678_v59 = vrot.slane %v4677_v44, 4 }
 0x1fe   : > { %v4747_v36 = vadd.f32 %v4746_v31, %v4716_v50 }
 0x1ff   : > { %v4679_v48 = vadd.f32 %v4678_v59, %v4677_v44 }
 0x200   : > { %v4748_v49 = vrot.slane %v4747_v36, 4 }
 0x201   : > { %v4680_v26 = vrot.slane %v4679_v48, 2 }
 0x202   : > { %v4749_v34 = vadd.f32 %v4748_v49, %v4747_v36 }
 0x203   : > { %v4681_v17 = vadd.f32 %v4680_v26, %v4679_v48 }
 0x204   : > { %v4750_v19 = vrot.slane %v4749_v34, 2 }
 0x205   : > { %v4682_v14 = vrot.slane %v4681_v17, 1 }
 0x206   : > { %v4751_v52 = vadd.f32 %v4750_v19, %v4749_v34 }
 0x207   : > { %v4683_v8 = vadd.f32 %v4682_v14, %v4681_v17 }
 0x208   : > { %v4752_v23 = vrot.slane %v4751_v52, 1 }
 0x209   : > { %4684 = vst [vmem:[%s211_s21] sm:$0x1] %v4683_v8 }
 0x20a   : > { %v4753_v46 = vadd.f32 %v4752_v23, %v4751_v52 }
 0x20c   : > { %4754 = vst [vmem:[%s214_s24] sm:$0x1] %v4753_v46 }
 0x20d PF: > { %s15_s15 = sadd.s32 1, %s6164_s15  }
 0x20e   : > { %p12_p4 = scmp.ge.s32.totalorder %s15_s15, 4  }
 0x210   :  { %14 = sbr.rel (!%p12_p4) target bundleno = 1 (0x1), region = 95 }

// kernel: _lambda_.8
= control target key start
LH: loop header
LB: loop body
LE: loop exit
PB: predicated region body
PF: predicated region fallthrough
CT: control target
= control target key end

     0   :  { %s1232_s15 = smov 0   ;;  %s1376_s0 = inlined_call_operand.vmem [shape: bf16[2,64,16,4], index: 0, kind: input, shape index: {}]   ;;  %s1377_s1 = inlined_call_operand.vmem [shape: bf16[1,1,4,128], index: 1, kind: input, shape index: {}]   ;;  %s1378_s2 = inlined_call_operand.vmem [shape: bf16[2,256,128], index: 2, kind: output, shape index: {0}]   ;;  %s1379_s3 = inlined_call_operand.vmem [shape: f32[2,1,128], index: 3, kind: output, shape index: {1}]   ;;  %s1380_s4 = inlined_call_operand.vmem [shape: f32[2,1,128], index: 4, kind: output, shape index: {2}]  }
   0x1 LB: > { %s916_s16 = sadd.s32 4294967295, %s1205_s15   ;;  %p920_p0 = scmp.ge.s32.totalorder %s1205_s15, 1  ;;  %s1205_s15 = sphi %s1232_s15, %s15_s15  }
   0x2   : > { %p167_p1 = scmp.lt.s32.totalorder %s1205_s15, 3 }
   0x4   : > { %p168_p2 = pnand %p920_p0, %p167_p1 }
   0x5   : > { %p199_p3 = scmp.lt.s32.totalorder (!%p168_p2), %s916_s16, 1 }
   0x6   : > { %171 = sbr.rel (%p168_p2) target bundleno = 292 (0x124), region = 28 }
   0xb   : > { %v248_v0 = vld [vmem:[%s1377_s1] sm:$0x3]  ;;  %vm378_vm0 = vcmask 1041408   ;;  %s1382_s16 = smov (!%p199_p3, %s916_s16), 1  ;;  %vm329_vm1 = vcmask 31744  }
   0xc   : > { %1173 = vmatprep.subr.msk.bf16.mxu0 %vm378_vm0, %v248_v0  ;;  %v380_v1 = vsel %vm378_vm0, %v248_v0, 0  ;;  %1174 = vmatprep.subr.msk.bf16.mxu1 %vm378_vm0, %v248_v0  ;;  %s991_s19 = sshll.u32 %s1382_s16, 9  ;;  %s992_s23 = sshll.u32 %s1382_s16, 7 }
   0xd   : > { %1138 = vmatpush3.bf16.msra.mxu0 %v380_v1  ;;  %1172 = vmatpush3.bf16.msra.mxu1 %v380_v1  ;;  %s1249_s22 = scalar_lea.vmem %s1376_s0, %s991_s19  ;;  %s1287_s26 = scalar_lea.vmem %s1378_s2, %s992_s23 }
   0xe   : > { %v1183_v2 = vld [vmem:[%s1249_s22] sm:$0xff]   ;;  %v1184_v3 = vld [vmem:[%s1249_s22 + $0x8] sm:$0xff]   ;;  %v1185_v4 = vld [vmem:[%s1249_s22 + $0x10] sm:$0xff]   ;;  %s211_s29 = scalar_lea.vmem %s1379_s3, %s1382_s16  ;;  %s214_s6 = scalar_lea.vmem %s1380_s4, %s1382_s16 }
   0xf   : > { %1139 = vmatprep.mubr.msk.bf16.mxu0 %vm329_vm1, %v1183_v2  ;;  %v1186_v5 = vld [vmem:[%s1249_s22 + $0x18] sm:$0xff]   ;;  %v1187_v6 = vld [vmem:[%s1249_s22 + $0x20] sm:$0xff]   ;;  %v1192_v8 = vld [vmem:[%s1249_s22 + $0x48] sm:$0xff]  }
  0x10   : > { %1140 = vmatmul.mubr.msk.bf16.vlgmr.msra.gmra.mxu0 %vm329_vm1, %v1184_v3  ;;  %v1191_v7 = vld [vmem:[%s1249_s22 + $0x40] sm:$0xff]   ;;  %v1193_v9 = vld [vmem:[%s1249_s22 + $0x50] sm:$0xff]   ;;  %v1188_v10 = vld [vmem:[%s1249_s22 + $0x28] sm:$0xff]  }
  0x11   : > { %1143 = vmatprep.mubr.msk.bf16.mxu0 %vm329_vm1, %v1185_v4  ;;  %1155 = vmatprep.mubr.msk.bf16.mxu1 %vm329_vm1, %v1191_v7  ;;  %v1194_v11 = vld [vmem:[%s1249_s22 + $0x58] sm:$0xff]   ;;  %v1189_v12 = vld [vmem:[%s1249_s22 + $0x30] sm:$0xff]   ;;  %v1195_v13 = vld [vmem:[%s1249_s22 + $0x60] sm:$0xff]  }
  0x12   : > { %1156 = vmatmul.mubr.msk.bf16.vlgmr.msra.gmra.mxu1 %vm329_vm1, %v1192_v8  ;;  %v1190_v14 = vld [vmem:[%s1249_s22 + $0x38] sm:$0xff]   ;;  %v1196_v15 = vld [vmem:[%s1249_s22 + $0x68] sm:$0xff]   ;;  %v1197_v16 = vld [vmem:[%s1249_s22 + $0x70] sm:$0xff]  }
  0x13   : > { %1159 = vmatprep.mubr.msk.bf16.mxu1 %vm329_vm1, %v1193_v9  ;;  %v1198_v17 = vld [vmem:[%s1249_s22 + $0x78] sm:$0xff]  }
  0x18   : > { %1144 = vmatmul.mubr.msk.bf16.gmra.mxu0 %vm329_vm1, %v1186_v5 }
  0x19   : > { %1147 = vmatprep.mubr.msk.bf16.mxu0 %vm329_vm1, %v1187_v6 }
  0x1a   : > { %1160 = vmatmul.mubr.msk.bf16.gmra.mxu1 %vm329_vm1, %v1194_v11 }
  0x1b   : > { %1163 = vmatprep.mubr.msk.bf16.mxu1 %vm329_vm1, %v1195_v13 }
  0x20   : > { %1148 = vmatmul.mubr.msk.bf16.gmra.mxu0 %vm329_vm1, %v1188_v10 }
  0x21   : > { %1151 = vmatprep.mubr.msk.bf16.mxu0 %vm329_vm1, %v1189_v12 }
  0x22   : > { %1164 = vmatmul.mubr.msk.bf16.gmra.mxu1 %vm329_vm1, %v1196_v15 }
  0x23   : > { %1167 = vmatprep.mubr.msk.bf16.mxu1 %vm329_vm1, %v1197_v16 }
  0x28   : > { %1152 = vmatmul.mubr.msk.bf16.gmra.mxu0 %vm329_vm1, %v1190_v14 }
  0x2a   : > { %1168 = vmatmul.mubr.msk.bf16.gmra.mxu1 %vm329_vm1, %v1198_v17 }
  0xd0   : > { %v1141_v18 = vpop.f32.mrf.mxu0 }
  0xd1   : > { %v743_v29 = vmul.f32 %v1141_v18, %v1141_v18 }
  0xd2   : > { %v416_v19 = vpop.f32.mrf.mxu0  ;;  %v1290_v28 = vpop.f32.mrf.mxu1 }
  0xd3   : > { %v741_v23 = vmul.f32 %v416_v19, %v416_v19 }
  0xd4   : > { %v1142_v20 = vpop.f32.mrf.mxu0  ;;  %v1293_v33 = vpop.f32.mrf.mxu1 }
  0xd5   : > { %v1033_v21 = vpack.c.bf16 %v1142_v20, %v1141_v18  ;;  %v744_v34 = vmul.f32 %v1142_v20, %v1142_v20 }
  0xd6   : > { %v419_v22 = vpop.f32.mrf.mxu0  ;;  %v1295_v38 = vpop.f32.mrf.mxu1 }
  0xd7   : > { %1105 = vst [vmem:[%s1287_s26 + $0x8] sm:$0xff] %v1033_v21   ;;  %v1028_v24 = vpack.c.bf16 %v419_v22, %v416_v19  ;;  %v703_v25 = vadd.f32 %v419_v22, %v416_v19  ;;  %v742_v26 = vmul.f32 %v419_v22, %v419_v22  ;;  %v1073_v44 = vpack.c.bf16 %v1295_v38, %v1290_v28 }
  0xd8   : > { %v1145_v27 = vpop.f32.mrf.mxu0  ;;  %v1299_v45 = vpop.f32.mrf.mxu1 }
  0xd9   : > { %1029 = vst [vmem:[%s1287_s26] sm:$0xff] %v1028_v24   ;;  %v704_v30 = vadd.f32 %v1141_v18, %v703_v25  ;;  %v773_v31 = vadd.f32 %v742_v26, %v741_v23  ;;  %1113 = vst [vmem:[%s1287_s26 + $0x48] sm:$0xff] %v1073_v44   ;;  %v1068_v51 = vpack.c.bf16 %v1299_v45, %v1293_v33 }
  0xda   : > { %v432_v32 = vpop.f32.mrf.mxu0  ;;  %v1305_v52 = vpop.f32.mrf.mxu1  ;;  %v747_v53 = vmul.f32 %v1145_v27, %v1145_v27 }
  0xdb   : > { %v774_v35 = vadd.f32 %v773_v31, %v743_v29  ;;  %v705_v36 = vadd.f32 %v1142_v20, %v704_v30  ;;  %v745_v40 = vmul.f32 %v432_v32, %v432_v32  ;;  %1112 = vst [vmem:[%s1287_s26 + $0x40] sm:$0xff] %v1068_v51  }
  0xdc   : > { %v1146_v37 = vpop.f32.mrf.mxu0  ;;  %v1309_v57 = vpop.f32.mrf.mxu1 }
  0xdd   : > { %v706_v39 = vadd.f32 %v705_v36, %v432_v32  ;;  %v775_v41 = vadd.f32 %v774_v35, %v744_v34  ;;  %v1043_v42 = vpack.c.bf16 %v1146_v37, %v1145_v27  ;;  %v748_v58 = vmul.f32 %v1146_v37, %v1146_v37 }
  0xde   : > { %v435_v43 = vpop.f32.mrf.mxu0  ;;  %v1311_v62 = vpop.f32.mrf.mxu1 }
  0xdf   : > { %v776_v46 = vadd.f32 %v775_v41, %v745_v40  ;;  %1107 = vst [vmem:[%s1287_s26 + $0x18] sm:$0xff] %v1043_v42   ;;  %v1038_v47 = vpack.c.bf16 %v435_v43, %v432_v32  ;;  %v707_v48 = vadd.f32 %v706_v39, %v435_v43  ;;  %v746_v49 = vmul.f32 %v435_v43, %v435_v43 }
  0xe0   : > { %v1149_v50 = vpop.f32.mrf.mxu0  ;;  %v1083_v4 = vpack.c.bf16 %v1311_v62, %v1305_v52  ;;  %v1315_v5 = vpop.f32.mrf.mxu1 }
  0xe1   : > { %1106 = vst [vmem:[%s1287_s26 + $0x10] sm:$0xff] %v1038_v47   ;;  %v708_v54 = vadd.f32 %v1145_v27, %v707_v48  ;;  %v777_v55 = vadd.f32 %v776_v46, %v746_v49  ;;  %v1078_v11 = vpack.c.bf16 %v1315_v5, %v1309_v57  ;;  %v751_v13 = vmul.f32 %v1149_v50, %v1149_v50 }
  0xe2   : > { %v448_v56 = vpop.f32.mrf.mxu0  ;;  %1115 = vst [vmem:[%s1287_s26 + $0x58] sm:$0xff] %v1083_v4   ;;  %v1321_v12 = vpop.f32.mrf.mxu1  ;;  %v757_v48 = vmul.f32 %v1293_v33, %v1293_v33 }
  0xe3   : > { %v778_v59 = vadd.f32 %v777_v55, %v747_v53  ;;  %v709_v60 = vadd.f32 %v1146_v37, %v708_v54  ;;  %v749_v0 = vmul.f32 %v448_v56, %v448_v56  ;;  %1114 = vst [vmem:[%s1287_s26 + $0x50] sm:$0xff] %v1078_v11   ;;  %v758_v55 = vmul.f32 %v1299_v45, %v1299_v45 }
  0xe4   : > { %v1150_v61 = vpop.f32.mrf.mxu0  ;;  %v512_v17 = vpop.f32.mrf.mxu1 }
  0xe5   : > { %v710_v63 = vadd.f32 %v709_v60, %v448_v56  ;;  %v779_v1 = vadd.f32 %v778_v59, %v748_v58  ;;  %v1053_v2 = vpack.c.bf16 %v1150_v61, %v1149_v50  ;;  %v752_v18 = vmul.f32 %v1150_v61, %v1150_v61 }
  0xe6   : > { %v451_v3 = vpop.f32.mrf.mxu0  ;;  %v1325_v22 = vpop.f32.mrf.mxu1  ;;  %v759_v59 = vmul.f32 %v1290_v28, %v1290_v28  ;;  %v765_v11 = vmul.f32 %v512_v17, %v512_v17 }
  0xe7   : > { %v780_v6 = vadd.f32 %v779_v1, %v749_v0  ;;  %1109 = vst [vmem:[%s1287_s26 + $0x28] sm:$0xff] %v1053_v2   ;;  %v1048_v7 = vpack.c.bf16 %v451_v3, %v448_v56  ;;  %v711_v8 = vadd.f32 %v710_v63, %v451_v3  ;;  %v750_v9 = vmul.f32 %v451_v3, %v451_v3 }
  0xe8   : > { %v1153_v10 = vpop.f32.mrf.mxu0  ;;  %v1093_v29 = vpack.c.bf16 %v1325_v22, %v1321_v12  ;;  %v515_v30 = vpop.f32.mrf.mxu1 }
  0xe9   : > { %1108 = vst [vmem:[%s1287_s26 + $0x20] sm:$0xff] %v1048_v7   ;;  %v712_v14 = vadd.f32 %v1149_v50, %v711_v8  ;;  %v781_v15 = vadd.f32 %v780_v6, %v750_v9  ;;  %v1088_v36 = vpack.c.bf16 %v515_v30, %v512_v17  ;;  %v755_v39 = vmul.f32 %v1153_v10, %v1153_v10 }
  0xea   : > { %v464_v16 = vpop.f32.mrf.mxu0  ;;  %1117 = vst [vmem:[%s1287_s26 + $0x68] sm:$0xff] %v1093_v29   ;;  %v1169_v37 = vpop.f32.mrf.mxu1  ;;  %v763_v6 = vmul.f32 %v1305_v52, %v1305_v52 }
  0xeb   : > { %v782_v19 = vadd.f32 %v781_v15, %v751_v13  ;;  %v713_v20 = vadd.f32 %v1150_v61, %v712_v14  ;;  %v753_v24 = vmul.f32 %v464_v16, %v464_v16  ;;  %1116 = vst [vmem:[%s1287_s26 + $0x60] sm:$0xff] %v1088_v36  }
  0xec   : > { %v1154_v21 = vpop.f32.mrf.mxu0  ;;  %v528_v42 = vpop.f32.mrf.mxu1 }
  0xed   : > { %v714_v23 = vadd.f32 %v713_v20, %v464_v16  ;;  %v783_v25 = vadd.f32 %v782_v19, %v752_v18  ;;  %v1063_v26 = vpack.c.bf16 %v1154_v21, %v1153_v10  ;;  %v756_v43 = vmul.f32 %v1154_v21, %v1154_v21 }
  0xee   : > { %v467_v27 = vpop.f32.mrf.mxu0  ;;  %v1170_v47 = vpop.f32.mrf.mxu1 }
  0xef   : > { %v784_v31 = vadd.f32 %v783_v25, %v753_v24  ;;  %1111 = vst [vmem:[%s1287_s26 + $0x38] sm:$0xff] %v1063_v26   ;;  %v1058_v32 = vpack.c.bf16 %v467_v27, %v464_v16  ;;  %v715_v34 = vadd.f32 %v714_v23, %v467_v27  ;;  %v754_v35 = vmul.f32 %v467_v27, %v467_v27 }
  0xf0   : > { %v1103_v51 = vpack.c.bf16 %v1170_v47, %v1169_v37  ;;  %v531_v53 = vpop.f32.mrf.mxu1  ;;  %v766_v16 = vmul.f32 %v515_v30, %v515_v30  ;;  %v771_v27 = vmul.f32 %v1169_v37, %v1169_v37 }
  0xf1   : > { %1110 = vst [vmem:[%s1287_s26 + $0x30] sm:$0xff] %v1058_v32   ;;  %v716_v40 = vadd.f32 %v1153_v10, %v715_v34  ;;  %v785_v41 = vadd.f32 %v784_v31, %v754_v35  ;;  %v1098_v58 = vpack.c.bf16 %v531_v53, %v528_v42  ;;  %v770_v26 = vmul.f32 %v531_v53, %v531_v53 }
  0xf2   : > { %1119 = vst [vmem:[%s1287_s26 + $0x78] sm:$0xff] %v1103_v51   ;;  %v772_v31 = vmul.f32 %v1170_v47, %v1170_v47 }
  0xf3   : > { %v717_v44 = vadd.f32 %v1154_v21, %v716_v40  ;;  %v786_v46 = vadd.f32 %v785_v41, %v755_v39  ;;  %1118 = vst [vmem:[%s1287_s26 + $0x70] sm:$0xff] %v1098_v58  }
  0xf5   : > { %v787_v49 = vadd.f32 %v786_v46, %v756_v43  ;;  %v718_v50 = vadd.f32 %v717_v44, %v1293_v33  ;;  %v760_v33 = vmul.f32 %v1295_v38, %v1295_v38 }
  0xf7   : > { %v719_v54 = vadd.f32 %v718_v50, %v1299_v45  ;;  %v788_v56 = vadd.f32 %v787_v49, %v757_v48  ;;  %v761_v45 = vmul.f32 %v1309_v57, %v1309_v57 }
  0xf9   : > { %v720_v60 = vadd.f32 %v1290_v28, %v719_v54  ;;  %v789_v61 = vadd.f32 %v788_v56, %v758_v55  ;;  %v762_v28 = vmul.f32 %v1315_v5, %v1315_v5 }
  0xfb   : > { %v790_v63 = vadd.f32 %v789_v61, %v759_v59  ;;  %v721_v0 = vadd.f32 %v1295_v38, %v720_v60  ;;  %v764_v38 = vmul.f32 %v1311_v62, %v1311_v62 }
  0xfd   : > { %v722_v1 = vadd.f32 %v721_v0, %v1309_v57  ;;  %v791_v2 = vadd.f32 %v790_v63, %v760_v33 }
  0xff   : > { %v792_v3 = vadd.f32 %v791_v2, %v761_v45  ;;  %v723_v4 = vadd.f32 %v722_v1, %v1315_v5  ;;  %v767_v5 = vmul.f32 %v1321_v12, %v1321_v12 }
 0x101   : > { %v724_v7 = vadd.f32 %v1305_v52, %v723_v4  ;;  %v793_v8 = vadd.f32 %v792_v3, %v762_v28  ;;  %v768_v52 = vmul.f32 %v1325_v22, %v1325_v22 }
 0x103   : > { %v794_v9 = vadd.f32 %v793_v8, %v763_v6  ;;  %v725_v10 = vadd.f32 %v1311_v62, %v724_v7  ;;  %v769_v62 = vmul.f32 %v528_v42, %v528_v42 }
 0x105   : > { %v726_v57 = vadd.f32 %v725_v10, %v512_v17  ;;  %v795_v13 = vadd.f32 %v794_v9, %v764_v38 }
 0x107   : > { %v796_v14 = vadd.f32 %v795_v13, %v765_v11  ;;  %v727_v15 = vadd.f32 %v726_v57, %v515_v30 }
 0x109   : > { %v728_v18 = vadd.f32 %v1321_v12, %v727_v15  ;;  %v797_v19 = vadd.f32 %v796_v14, %v766_v16 }
 0x10b   : > { %v798_v20 = vadd.f32 %v797_v19, %v767_v5  ;;  %v729_v21 = vadd.f32 %v1325_v22, %v728_v18 }
 0x10d   : > { %v730_v23 = vadd.f32 %v729_v21, %v528_v42  ;;  %v799_v24 = vadd.f32 %v798_v20, %v768_v52 }
 0x10f   : > { %v800_v17 = vadd.f32 %v799_v24, %v769_v62  ;;  %v731_v25 = vadd.f32 %v730_v23, %v531_v53 }
 0x111   : > { %v732_v29 = vadd.f32 %v1169_v37, %v731_v25  ;;  %v801_v30 = vadd.f32 %v800_v17, %v770_v26 }
 0x113   : > { %v733_v12 = vadd.f32 %v1170_v47, %v732_v29  ;;  %v802_v32 = vadd.f32 %v801_v30, %v771_v27 }
 0x115   : > { %v734_v34 = vrot.slane %v733_v12, 4  ;;  %v803_v35 = vadd.f32 %v802_v32, %v772_v31 }
 0x117   : > { %v735_v36 = vadd.f32 %v734_v34, %v733_v12  ;;  %v804_v39 = vrot.slane %v803_v35, 4 }
 0x119   : > { %v736_v40 = vrot.slane %v735_v36, 2  ;;  %v805_v22 = vadd.f32 %v804_v39, %v803_v35 }
 0x11b   : > { %v737_v41 = vadd.f32 %v736_v40, %v735_v36  ;;  %v806_v42 = vrot.slane %v805_v22, 2 }
 0x11d   : > { %v738_v43 = vrot.slane %v737_v41, 1  ;;  %v807_v44 = vadd.f32 %v806_v42, %v805_v22 }
 0x11f   : > { %v739_v37 = vadd.f32 %v738_v43, %v737_v41  ;;  %v808_v46 = vrot.slane %v807_v44, 1 }
 0x121   : > { %740 = vst [vmem:[%s211_s29] sm:$0x1] %v739_v37  ;;  %v809_v47 = vadd.f32 %v808_v46, %v807_v44 }
 0x123   : > { %810 = vst [vmem:[%s214_s6] sm:$0x1] %v809_v47 }
 0x124 PF: > { %s15_s15 = sadd.s32 1, %s1205_s15  }
 0x125   : > { %p12_p4 = scmp.ge.s32.totalorder %s15_s15, 4  }
 0x127   :  { %14 = sbr.rel (!%p12_p4) target bundleno = 1 (0x1), region = 82 }

// kernel: _lambda_.10
= control target key start
LH: loop header
LB: loop body
LE: loop exit
PB: predicated region body
PF: predicated region fallthrough
CT: control target
= control target key end

     0   :  { %s6987_s15 = smov 0   ;;  %s9646_s0 = inlined_call_operand.vmem [shape: bf16[2,18,18,128], index: 0, kind: input, shape index: {}]   ;;  %s9647_s1 = inlined_call_operand.vmem [shape: bf16[3,3,128,128], index: 1, kind: input, shape index: {}]   ;;  %s9648_s2 = inlined_call_operand.vmem [shape: bf16[2,256,128], index: 2, kind: output, shape index: {0}]   ;;  %s9649_s3 = inlined_call_operand.vmem [shape: f32[2,1,128], index: 3, kind: output, shape index: {1}]   ;;  %s9650_s4 = inlined_call_operand.vmem [shape: f32[2,1,128], index: 4, kind: output, shape index: {2}]  }
   0x1 LB: > { %s5398_s16 = sadd.s32 4294967295, %s6960_s15   ;;  %p5402_p0 = scmp.ge.s32.totalorder %s6960_s15, 1  ;;  %s6960_s15 = sphi %s6987_s15, %s15_s15  }
   0x2   : > { %p167_p1 = scmp.lt.s32.totalorder %s6960_s15, 3 }
   0x4   : > { %p168_p2 = pnand %p5402_p0, %p167_p1 }
   0x6   : > { %171 = sbr.rel (%p168_p2) target bundleno = 573 (0x23d), region = 28 }
   0xb   : > { %v6825_v0 = vld [vmem:[%s9647_s1 + $0x78] sm:$0xff]   ;;  %p199_p3 = scmp.lt.s32.totalorder %s5398_s16, 1  ;;  %v6826_v1 = vld [vmem:[%s9647_s1 + $0x70] sm:$0xff]   ;;  %v6827_v2 = vld [vmem:[%s9647_s1 + $0x68] sm:$0xff]   ;;  %vm280_vm0 = vsmask.f32 3328 }
   0xc   : > { %6368 = vmatprep.subr.bf16.mxu0 %v6825_v0  ;;  %6800 = vmatprep.subr.bf16.mxu1 %v6825_v0  ;;  %v6828_v3 = vld [vmem:[%s9647_s1 + $0x60] sm:$0xff]   ;;  %vm281_vm1 = vsmask.f32 7440  ;;  %v6829_v17 = vld [vmem:[%s9647_s1 + $0x58] sm:$0xff]   ;;  %v6830_v33 = vld [vmem:[%s9647_s1 + $0x50] sm:$0xff]   ;;  %vm1310_vm3 = vcmask 1042432  }
   0xd   : > { %s9871_s16 = smov (!%p199_p3, %s5398_s16), 1  ;;  %6369 = vmatpush3.bf16.msra.mxu0 %v6825_v0  ;;  %6808 = vmatpush3.bf16.msra.mxu1 %v6825_v0  ;;  %vm7041_vm2 = vmor %vm280_vm0, %vm281_vm1  ;;  %v6831_v58 = vld [vmem:[%s9647_s1 + $0x48] sm:$0xff]   ;;  %vm1311_vm4 = vcmask 1046532  }
   0xe   : > { %6370 = vmatprep.subr.bf16.mxu0 %v6826_v1  ;;  %6801 = vmatprep.subr.bf16.mxu1 %v6826_v1  ;;  %s6816_s23 = smul.u32 216, %s9871_s16  ;;  %vm7352_vm5 = vmor %vm1310_vm3, %vm1311_vm4  ;;  %s211_s6 = scalar_lea.vmem %s9649_s3, %s9871_s16 }
   0xf   : > { %s214_s9 = scalar_lea.vmem %s9650_s4, %s9871_s16 }
  0x10   : > { %s7010_s26 = scalar_lea.vmem %s9646_s0, %s6816_s23 }
  0x11   : > { %6371 = vmatpush3.bf16.msra.mxu0 %v6826_v1  ;;  %6809 = vmatpush3.bf16.msra.mxu1 %v6826_v1  ;;  %v7016_v4 = vld [vmem:[%s7010_s26] sm:$0xf]  ;;  %v7019_v5 = vld [vmem:[%s7010_s26 + $0x4] sm:$0xf]  ;;  %v7022_v6 = vld [vmem:[%s7010_s26 + $0x8] sm:$0x1] }
  0x12   : > { %6372 = vmatprep.subr.bf16.mxu0 %v6827_v2  ;;  %6802 = vmatprep.subr.bf16.mxu1 %v6827_v2  ;;  %v284_v7 = vshrl.u32 %v7016_v4, 16  ;;  %v287_v8 = vshll.u32 %v7016_v4, 16  ;;  %v293_v9 = vshll.u32 %v7019_v5, 16  ;;  %v297_v10 = vshrl.u32 %v7019_v5, 16  ;;  %v232_v12 = vld [vmem:[%s7010_s26 + $0x60] sm:$0xf] }
  0x13   : > { %v303_v11 = vshll.u32 %v7022_v6, 16  ;;  %v233_v15 = vld [vmem:[%s7010_s26 + $0x64] sm:$0xf]  ;;  %v272_v16 = vld [vmem:[%s7010_s26 + $0x68] sm:$0x1]  ;;  %v476_v21 = vshrl.u32 %v232_v12, 16 }
  0x14   : > { %v286_v13 = vrot.slane %v284_v7, 4  ;;  %v289_v14 = vrot.slane %v287_v8, 5  ;;  %v295_v18 = vrot.slane %v293_v9, 5  ;;  %v299_v19 = vrot.slane %v297_v10, 4  ;;  %v7037_v26 = vld [vmem:[%s7010_s26 + $0xc] sm:$0xf] }
  0x15   : > { %6373 = vmatpush3.bf16.msra.mxu0 %v6827_v2  ;;  %6810 = vmatpush3.bf16.msra.mxu1 %v6827_v2  ;;  %v479_v23 = vshll.u32 %v232_v12, 16  ;;  %v485_v24 = vshll.u32 %v233_v15, 16  ;;  %v489_v25 = vshrl.u32 %v233_v15, 16  ;;  %v305_v29 = vrot.slane %v303_v11, 5  ;;  %v7046_v32 = vld [vmem:[%s7010_s26 + $0x10] sm:$0xf] }
  0x16   : > { %6374 = vmatprep.subr.bf16.mxu0 %v6828_v3  ;;  %6803 = vmatprep.subr.bf16.mxu1 %v6828_v3  ;;  %v290_v22 = vor.u32 %v289_v14, %v286_v13  ;;  %v300_v28 = vor.u32 %v299_v19, %v295_v18  ;;  %v478_v30 = vrot.slane %v476_v21, 4  ;;  %v495_v31 = vshll.u32 %v272_v16, 16  ;;  %v7052_v40 = vld [vmem:[%s7010_s26 + $0x14] sm:$0x1]  ;;  %v234_v47 = vld [vmem:[%s7010_s26 + $0x6c] sm:$0xf] }
  0x17   : > { %v481_v35 = vrot.slane %v479_v23, 5  ;;  %v487_v36 = vrot.slane %v485_v24, 5  ;;  %v491_v37 = vrot.slane %v489_v25, 4  ;;  %v308_v41 = vshrl.u32 %v7037_v26, 16  ;;  %v235_v52 = vld [vmem:[%s7010_s26 + $0x70] sm:$0xf] }
  0x18   : > { %v291_v34 = vrot.slane %v290_v22, 4  ;;  %v301_v38 = vrot.slane %v300_v28, 4  ;;  %v497_v39 = vrot.slane %v495_v31, 5  ;;  %v311_v42 = vshll.u32 %v7037_v26, 16  ;;  %v273_v57 = vld [vmem:[%s7010_s26 + $0x74] sm:$0x1] }
  0x19   : > { %6375 = vmatpush3.bf16.msra.mxu0 %v6828_v3  ;;  %6811 = vmatpush3.bf16.msra.mxu1 %v6828_v3  ;;  %v482_v44 = vor.u32 %v481_v35, %v478_v30  ;;  %v492_v45 = vor.u32 %v491_v37, %v487_v36  ;;  %v317_v46 = vshll.u32 %v7046_v32, 16  ;;  %v310_v49 = vrot.slane %v308_v41, 4  ;;  %v7075_v14 = vld [vmem:[%s7010_s26 + $0x18] sm:$0xf]  ;;  %v6832_v15 = vld [vmem:[%s9647_s1 + $0x40] sm:$0xff]  }
  0x1a   : > { %6376 = vmatprep.subr.bf16.mxu0 %v6829_v17  ;;  %6804 = vmatprep.subr.bf16.mxu1 %v6829_v17  ;;  %v296_v43 = vsel %vm7041_vm2, %v291_v34, %v295_v18  ;;  %v306_v48 = vsel %vm7041_vm2, %v301_v38, %v305_v29  ;;  %v313_v50 = vrot.slane %v311_v42, 5  ;;  %v321_v51 = vshrl.u32 %v7046_v32, 16  ;;  %v7083_v19 = vld [vmem:[%s7010_s26 + $0x1c] sm:$0xf]  ;;  %v7088_v25 = vld [vmem:[%s7010_s26 + $0x20] sm:$0x1] }
  0x1b   : > { %v5422_v53 = vcombine.low %v296_v43, %v306_v48  ;;  %v483_v54 = vrot.slane %v482_v44, 4  ;;  %v493_v55 = vrot.slane %v492_v45, 4  ;;  %v319_v56 = vrot.slane %v317_v46, 5  ;;  %v236_v34 = vld [vmem:[%s7010_s26 + $0x78] sm:$0xf] }
  0x1c   : > { %v314_v59 = vor.u32 %v313_v50, %v310_v49  ;;  %v323_v60 = vrot.slane %v321_v51, 4  ;;  %v327_v61 = vshll.u32 %v7052_v40, 16  ;;  %v500_v1 = vshrl.u32 %v234_v47, 16  ;;  %v6833_v41 = vld [vmem:[%s9647_s1 + $0x38] sm:$0xff]   ;;  %v274_v49 = vld [vmem:[%s7010_s26 + $0x80] sm:$0x1] }
  0x1d   : > { %6377 = vmatpush3.bf16.msra.mxu0 %v6829_v17  ;;  %6812 = vmatpush3.bf16.msra.mxu1 %v6829_v17  ;;  %v488_v63 = vsel %vm7041_vm2, %v483_v54, %v487_v36  ;;  %v498_v0 = vsel %vm7041_vm2, %v493_v55, %v497_v39  ;;  %v503_v2 = vshll.u32 %v234_v47, 16  ;;  %v509_v12 = vshll.u32 %v235_v52, 16  ;;  %v7097_v39 = vld [vmem:[%s7010_s26 + $0x7c] sm:$0xf] }
  0x1e   : > { %6378 = vmatprep.subr.bf16.mxu0 %v6830_v33  ;;  %6805 = vmatprep.subr.bf16.mxu1 %v6830_v33  ;;  %v5430_v3 = vcombine.low %v488_v63, %v498_v0  ;;  %v315_v7 = vrot.slane %v314_v59, 4  ;;  %v324_v8 = vor.u32 %v323_v60, %v319_v56  ;;  %v329_v9 = vrot.slane %v327_v61, 5  ;;  %v6834_v42 = vld [vmem:[%s9647_s1 + $0xb8] sm:$0xff]   ;;  %v6836_v59 = vld [vmem:[%s9647_s1 + $0xb0] sm:$0xff]   ;;  %v7124_v0 = vld [vmem:[%s7010_s26 + $0x28] sm:$0xf] }
  0x1f   : > { %6384 = vmatprep.mubr.bf16.mxu0 %v5422_v53  ;;  %v502_v10 = vrot.slane %v500_v1, 4  ;;  %v505_v11 = vrot.slane %v503_v2, 5  ;;  %v513_v13 = vshrl.u32 %v235_v52, 16  ;;  %v519_v18 = vshll.u32 %v273_v57, 16  ;;  %v6835_v52 = vld [vmem:[%s9647_s1 + $0x30] sm:$0xff]  }
  0x20   : > { %v320_v16 = vsel %vm7041_vm2, %v315_v7, %v319_v56  ;;  %v325_v17 = vrot.slane %v324_v8, 4  ;;  %6400 = vmatprep.mubr.bf16.mxu1 %v5430_v3  ;;  %v511_v23 = vrot.slane %v509_v12, 5  ;;  %v332_v28 = vshrl.u32 %v7075_v14, 16  ;;  %v7115_v57 = vld [vmem:[%s7010_s26 + $0x24] sm:$0xf] }
  0x21   : > { %6379 = vmatpush3.bf16.msra.mxu0 %v6830_v33  ;;  %6813 = vmatpush3.bf16.msra.mxu1 %v6830_v33  ;;  %v506_v22 = vor.u32 %v505_v11, %v502_v10  ;;  %v515_v24 = vrot.slane %v513_v13, 4  ;;  %v521_v30 = vrot.slane %v519_v18, 5  ;;  %v335_v31 = vshll.u32 %v7075_v14, 16  ;;  %v7127_v8 = vld [vmem:[%s7010_s26 + $0x2c] sm:$0x1] }
  0x22   : > { %6380 = vmatprep.subr.bf16.mxu0 %v6831_v58  ;;  %6806 = vmatprep.subr.bf16.mxu1 %v6831_v58  ;;  %v330_v29 = vsel %vm7041_vm2, %v325_v17, %v329_v9  ;;  %v341_v33 = vshll.u32 %v7083_v19, 16  ;;  %v334_v38 = vrot.slane %v332_v28, 4  ;;  %v345_v45 = vshrl.u32 %v7083_v19, 16  ;;  %v7131_v13 = vld [vmem:[%s7010_s26 + $0x84] sm:$0xf] }
  0x23   : > { %v5423_v35 = vcombine.low %v320_v16, %v330_v29  ;;  %v507_v36 = vrot.slane %v506_v22, 4  ;;  %v516_v37 = vor.u32 %v515_v24, %v511_v23  ;;  %v337_v43 = vrot.slane %v335_v31, 5  ;;  %v7138_v22 = vld [vmem:[%s7010_s26 + $0x88] sm:$0xf] }
  0x24   : > { %v343_v44 = vrot.slane %v341_v33, 5  ;;  %v351_v46 = vshll.u32 %v7088_v25, 16  ;;  %v524_v50 = vshrl.u32 %v236_v34, 16  ;;  %v527_v51 = vshll.u32 %v236_v34, 16 }
  0x25   : > { %6381 = vmatpush3.bf16.msra.mxu0 %v6831_v58  ;;  %6814 = vmatpush3.bf16.msra.mxu1 %v6831_v58  ;;  %v512_v47 = vsel %vm7041_vm2, %v507_v36, %v511_v23  ;;  %v517_v48 = vrot.slane %v516_v37, 4  ;;  %v338_v53 = vor.u32 %v337_v43, %v334_v38  ;;  %v347_v54 = vrot.slane %v345_v45, 4  ;;  %v7147_v36 = vld [vmem:[%s7010_s26 + $0x8c] sm:$0x1] }
  0x26   : > { %6382 = vmatprep.subr.bf16.mxu0 %v6832_v15  ;;  %6807 = vmatprep.subr.bf16.mxu1 %v6832_v15  ;;  %v353_v55 = vrot.slane %v351_v46, 5  ;;  %v533_v56 = vshll.u32 %v7097_v39, 16  ;;  %v526_v60 = vrot.slane %v524_v50, 4  ;;  %v529_v61 = vrot.slane %v527_v51, 5  ;;  %v6838_v37 = vld [vmem:[%s9647_s1 + $0xa8] sm:$0xff]  }
  0x27   : > { %v522_v58 = vsel %vm7041_vm2, %v517_v48, %v521_v30  ;;  %v537_v63 = vshrl.u32 %v7097_v39, 16  ;;  %v339_v2 = vrot.slane %v338_v53, 4  ;;  %v348_v3 = vor.u32 %v347_v54, %v343_v44  ;;  %v6837_v30 = vld [vmem:[%s9647_s1 + $0x28] sm:$0xff]   ;;  %v7162_v53 = vld [vmem:[%s7010_s26 + $0x30] sm:$0xf] }
  0x28   : > { %v5431_v1 = vcombine.low %v512_v47, %v522_v58  ;;  %v535_v7 = vrot.slane %v533_v56, 5  ;;  %v530_v9 = vor.u32 %v529_v61, %v526_v60  ;;  %v543_v11 = vshll.u32 %v274_v49, 16  ;;  %v7171_v60 = vld [vmem:[%s7010_s26 + $0x34] sm:$0xf] }
  0x29   : > { %6383 = vmatpush3.bf16.msra.mxu0 %v6832_v15  ;;  %6815 = vmatpush3.bf16.msra.mxu1 %v6832_v15  ;;  %v539_v10 = vrot.slane %v537_v63, 4  ;;  %v356_v12 = vshrl.u32 %v7115_v57, 16  ;;  %v344_v15 = vsel %vm7041_vm2, %v339_v2, %v343_v44  ;;  %v349_v16 = vrot.slane %v348_v3, 4 }
  0x2a   : > { %6416 = vmatprep.subr.bf16.mxu1 %v6833_v41  ;;  %6464 = vmatprep.subr.bf16.mxu0 %v6834_v42  ;;  %v359_v17 = vshll.u32 %v7115_v57, 16  ;;  %v365_v18 = vshll.u32 %v7124_v0, 16  ;;  %v531_v23 = vrot.slane %v530_v9, 4  ;;  %v545_v28 = vrot.slane %v543_v11, 5 }
  0x2b   : > { %v540_v24 = vor.u32 %v539_v10, %v535_v7  ;;  %v358_v29 = vrot.slane %v356_v12, 4  ;;  %v354_v31 = vsel %vm7041_vm2, %v349_v16, %v353_v55  ;;  %v375_v43 = vshll.u32 %v7127_v8, 16  ;;  %v7179_v16 = vld [vmem:[%s7010_s26 + $0x38] sm:$0x1] }
  0x2c   : > { %6385 = vmatmul.mubr.bf16.vlgmr.msra.gmra.mxu0 %v5423_v35  ;;  %6401 = vmatmul.mubr.bf16.vlgmr.msra.gmra.mxu1 %v5431_v1  ;;  %v361_v33 = vrot.slane %v359_v17, 5  ;;  %v367_v34 = vrot.slane %v365_v18, 5  ;;  %v369_v35 = vshrl.u32 %v7124_v0, 16  ;;  %v5424_v38 = vcombine.low %v344_v15, %v354_v31  ;;  %v7183_v18 = vld [vmem:[%s7010_s26 + $0x90] sm:$0xf] }
  0x2d   : > { %6417 = vmatpush3.bf16.msra.mxu1 %v6833_v41  ;;  %6465 = vmatpush3.bf16.msra.mxu0 %v6834_v42  ;;  %v536_v41 = vsel %vm7041_vm2, %v531_v23, %v535_v7  ;;  %v541_v42 = vrot.slane %v540_v24, 4  ;;  %v548_v46 = vshrl.u32 %v7131_v13, 16  ;;  %v551_v47 = vshll.u32 %v7131_v13, 16  ;;  %v7189_v31 = vld [vmem:[%s7010_s26 + $0x94] sm:$0xf] }
  0x2e   : > { %6418 = vmatprep.subr.bf16.mxu1 %v6835_v52  ;;  %6466 = vmatprep.subr.bf16.mxu0 %v6836_v59  ;;  %v362_v44 = vor.u32 %v361_v33, %v358_v29  ;;  %v371_v45 = vrot.slane %v369_v35, 4  ;;  %v377_v49 = vrot.slane %v375_v43, 5  ;;  %v557_v50 = vshll.u32 %v7138_v22, 16 }
  0x2f   : > { %v546_v48 = vsel %vm7041_vm2, %v541_v42, %v545_v28  ;;  %v561_v51 = vshrl.u32 %v7138_v22, 16  ;;  %6388 = vmatprep.mubr.bf16.mxu0 %v5424_v38  ;;  %v550_v58 = vrot.slane %v548_v46, 4  ;;  %v553_v61 = vrot.slane %v551_v47, 5  ;;  %v6842_v38 = vld [vmem:[%s9647_s1 + $0x98] sm:$0xff]   ;;  %v6843_v46 = vld [vmem:[%s9647_s1 + $0x10] sm:$0xff]  }
  0x30   : > { %v5432_v54 = vcombine.low %v536_v41, %v546_v48  ;;  %v363_v55 = vrot.slane %v362_v44, 4  ;;  %v372_v56 = vor.u32 %v371_v45, %v367_v34  ;;  %v559_v63 = vrot.slane %v557_v50, 5  ;;  %v7199_v44 = vld [vmem:[%s7010_s26 + $0x98] sm:$0x1] }
  0x31   : > { %6419 = vmatpush3.bf16.msra.mxu1 %v6835_v52  ;;  %6467 = vmatpush3.bf16.msra.mxu0 %v6836_v59  ;;  %v6839_v52 = vld [vmem:[%s9647_s1 + $0x20] sm:$0xff]   ;;  %v563_v1 = vrot.slane %v561_v51, 4  ;;  %v567_v2 = vshll.u32 %v7147_v36, 16  ;;  %v380_v9 = vshrl.u32 %v7162_v53, 16  ;;  %v383_v10 = vshll.u32 %v7162_v53, 16 }
  0x32   : > { %6420 = vmatprep.subr.bf16.mxu1 %v6837_v30  ;;  %v6840_v59 = vld [vmem:[%s9647_s1 + $0xa0] sm:$0xff]   ;;  %6468 = vmatprep.subr.bf16.mxu0 %v6838_v37  ;;  %v368_v3 = vsel %vm7041_vm2, %v363_v55, %v367_v34  ;;  %v373_v7 = vrot.slane %v372_v56, 4  ;;  %v554_v11 = vor.u32 %v553_v61, %v550_v58  ;;  %v389_v17 = vshll.u32 %v7171_v60, 16  ;;  %v7212_v51 = vld [vmem:[%s7010_s26 + $0x3c] sm:$0xf]  ;;  %v6844_v55 = vld [vmem:[%s9647_s1 + $0x90] sm:$0xff]  }
  0x33   : > { %6404 = vmatprep.mubr.bf16.mxu1 %v5432_v54  ;;  %v564_v12 = vor.u32 %v563_v1, %v559_v63  ;;  %v569_v15 = vrot.slane %v567_v2, 5  ;;  %v382_v24 = vrot.slane %v380_v9, 4  ;;  %v385_v28 = vrot.slane %v383_v10, 5  ;;  %v7215_v54 = vld [vmem:[%s7010_s26 + $0x40] sm:$0xf] }
  0x34   : > { %v378_v23 = vsel %vm7041_vm2, %v373_v7, %v377_v49  ;;  %v393_v29 = vshrl.u32 %v7171_v60, 16  ;;  %v555_v34 = vrot.slane %v554_v11, 4  ;;  %v399_v43 = vshll.u32 %v7179_v16, 16  ;;  %v7222_v7 = vld [vmem:[%s7010_s26 + $0x44] sm:$0x1] }
  0x35   : > { %6421 = vmatpush3.bf16.msra.mxu1 %v6837_v30  ;;  %6469 = vmatpush3.bf16.msra.mxu0 %v6838_v37  ;;  %v6841_v30 = vld [vmem:[%s9647_s1 + $0x18] sm:$0xff]   ;;  %v5425_v33 = vcombine.low %v368_v3, %v378_v23  ;;  %v565_v35 = vrot.slane %v564_v12, 4  ;;  %v391_v37 = vrot.slane %v389_v17, 5  ;;  %v386_v41 = vor.u32 %v385_v28, %v382_v24  ;;  %v7234_v28 = vld [vmem:[%s7010_s26 + $0xa0] sm:$0xf] }
  0x36   : > { %6422 = vmatprep.subr.bf16.mxu1 %v6839_v52  ;;  %6470 = vmatprep.subr.bf16.mxu0 %v6840_v59  ;;  %v395_v42 = vrot.slane %v393_v29, 4  ;;  %v572_v45 = vshrl.u32 %v7183_v18, 16  ;;  %v560_v47 = vsel %vm7041_vm2, %v555_v34, %v559_v63  ;;  %v575_v49 = vshll.u32 %v7183_v18, 16  ;;  %v7225_v9 = vld [vmem:[%s7010_s26 + $0x9c] sm:$0xf]  ;;  %v6845_v29 = vld [vmem:[%s9647_s1 + $0x8] sm:$0xff]  }
  0x37   : > { %6389 = vmatmul.mubr.bf16.gmra.mxu0 %v5425_v33  ;;  %v570_v48 = vsel %vm7041_vm2, %v565_v35, %v569_v15  ;;  %v581_v50 = vshll.u32 %v7189_v31, 16  ;;  %v387_v58 = vrot.slane %v386_v41, 4  ;;  %v401_v63 = vrot.slane %v399_v43, 5  ;;  %v6846_v41 = vld [vmem:[%s9647_s1 + $0x88] sm:$0xff]  }
  0x38   : > { %v5433_v56 = vcombine.low %v560_v47, %v570_v48  ;;  %v396_v61 = vor.u32 %v395_v42, %v391_v37  ;;  %v577_v1 = vrot.slane %v575_v49, 5  ;;  %v585_v3 = vshrl.u32 %v7189_v31, 16 }
  0x39   : > { %6423 = vmatpush3.bf16.msra.mxu1 %v6839_v52  ;;  %6471 = vmatpush3.bf16.msra.mxu0 %v6840_v59  ;;  %v574_v52 = vrot.slane %v572_v45, 4  ;;  %v583_v2 = vrot.slane %v581_v50, 5  ;;  %v392_v10 = vsel %vm7041_vm2, %v387_v58, %v391_v37  ;;  %v591_v11 = vshll.u32 %v7199_v44, 16 }
  0x3a   : > { %6424 = vmatprep.subr.bf16.mxu1 %v6841_v30  ;;  %6472 = vmatprep.subr.bf16.mxu0 %v6842_v38  ;;  %v397_v59 = vrot.slane %v396_v61, 4  ;;  %v404_v12 = vshrl.u32 %v7212_v51, 16  ;;  %v587_v17 = vrot.slane %v585_v3, 4  ;;  %v407_v23 = vshll.u32 %v7212_v51, 16  ;;  %v7250_v61 = vld [vmem:[%s7010_s26 + $0xa4] sm:$0x1] }
  0x3b   : > { %6405 = vmatmul.mubr.bf16.gmra.mxu1 %v5433_v56  ;;  %v578_v15 = vor.u32 %v577_v1, %v574_v52  ;;  %v413_v24 = vshll.u32 %v7215_v54, 16  ;;  %v593_v34 = vrot.slane %v591_v11, 5  ;;  %v417_v37 = vshrl.u32 %v7215_v54, 16 }
  0x3c   : > { %v402_v33 = vsel %vm7041_vm2, %v397_v59, %v401_v63  ;;  %v406_v35 = vrot.slane %v404_v12, 4  ;;  %v588_v43 = vor.u32 %v587_v17, %v583_v2  ;;  %v409_v45 = vrot.slane %v407_v23, 5  ;;  %v7255_v59 = vld [vmem:[%s7010_s26 + $0x48] sm:$0xf]  ;;  %v7264_v17 = vld [vmem:[%s7010_s26 + $0x4c] sm:$0xf] }
  0x3d   : > { %6425 = vmatpush3.bf16.msra.mxu1 %v6841_v30  ;;  %6473 = vmatpush3.bf16.msra.mxu0 %v6842_v38  ;;  %v5426_v42 = vcombine.low %v392_v10, %v402_v33  ;;  %v579_v30 = vrot.slane %v578_v15, 4  ;;  %v415_v47 = vrot.slane %v413_v24, 5  ;;  %v419_v48 = vrot.slane %v417_v37, 4 }
  0x3e   : > { %6426 = vmatprep.subr.bf16.mxu1 %v6843_v46  ;;  %6474 = vmatprep.subr.bf16.mxu0 %v6844_v55  ;;  %v423_v49 = vshll.u32 %v7222_v7, 16  ;;  %v596_v50 = vshrl.u32 %v7225_v9, 16  ;;  %v589_v56 = vrot.slane %v588_v43, 4  ;;  %v410_v58 = vor.u32 %v409_v45, %v406_v35 }
  0x3f   : > { %6392 = vmatprep.mubr.bf16.mxu0 %v5426_v42  ;;  %v584_v38 = vsel %vm7041_vm2, %v579_v30, %v583_v2  ;;  %v599_v63 = vshll.u32 %v7225_v9, 16  ;;  %v420_v52 = vor.u32 %v419_v48, %v415_v47  ;;  %v605_v10 = vshll.u32 %v7234_v28, 16  ;;  %v6847_v2 = vld [vmem:[%s9647_s1] sm:$0xff]   ;;  %v7273_v30 = vld [vmem:[%s7010_s26 + $0x50] sm:$0x1] }
  0x40   : > { %v425_v1 = vrot.slane %v423_v49, 5  ;;  %v598_v3 = vrot.slane %v596_v50, 4  ;;  %v594_v11 = vsel %vm7041_vm2, %v589_v56, %v593_v34  ;;  %v411_v12 = vrot.slane %v410_v58, 4 }
  0x41   : > { %6427 = vmatpush3.bf16.msra.mxu1 %v6843_v46  ;;  %6475 = vmatpush3.bf16.msra.mxu0 %v6844_v55  ;;  %v601_v15 = vrot.slane %v599_v63, 5  ;;  %v609_v46 = vshrl.u32 %v7234_v28, 16  ;;  %v6848_v55 = vld [vmem:[%s9647_s1 + $0x80] sm:$0xff]   ;;  %v5434_v23 = vcombine.low %v584_v38, %v594_v11  ;;  %v421_v24 = vrot.slane %v420_v52, 4  ;;  %v7281_v38 = vld [vmem:[%s7010_s26 + $0xa8] sm:$0xf] }
  0x42   : > { %6428 = vmatprep.subr.bf16.mxu1 %v6845_v29  ;;  %6476 = vmatprep.subr.bf16.mxu0 %v6846_v41  ;;  %v607_v33 = vrot.slane %v605_v10, 5  ;;  %v615_v35 = vshll.u32 %v7250_v61, 16  ;;  %v416_v34 = vsel %vm7041_vm2, %v411_v12, %v415_v47  ;;  %v428_v43 = vshrl.u32 %v7255_v59, 16  ;;  %9677 = vst [vmem:[#allocation2_spill] sm:$0xff] %v7281_v38  ;;  %v7286_v47 = vld [vmem:[%s9647_s1 + $0xf8] sm:$0xff]  }
  0x43   : > { %v602_v37 = vor.u32 %v601_v15, %v598_v3  ;;  %v611_v42 = vrot.slane %v609_v46, 4  ;;  %6408 = vmatprep.mubr.bf16.mxu1 %v5434_v23  ;;  %v426_v45 = vsel %vm7041_vm2, %v421_v24, %v425_v1  ;;  %v431_v49 = vshll.u32 %v7255_v59, 16  ;;  %v7289_v52 = vld [vmem:[%s7010_s26 + $0xac] sm:$0xf]  ;;  %v7294_v1 = vld [vmem:[%s9647_s1 + $0x138] sm:$0xff]  }
  0x44   : > { %v617_v48 = vrot.slane %v615_v35, 5  ;;  %v437_v50 = vshll.u32 %v7264_v17, 16  ;;  %v430_v63 = vrot.slane %v428_v43, 4  ;;  %v441_v10 = vshrl.u32 %v7264_v17, 16  ;;  %v7299_v12 = vld [vmem:[%s7010_s26 + $0xb0] sm:$0x1] }
  0x45   : > { %6429 = vmatpush3.bf16.msra.mxu1 %v6845_v29  ;;  %6477 = vmatpush3.bf16.msra.mxu0 %v6846_v41  ;;  %v5427_v29 = vcombine.low %v416_v34, %v426_v45  ;;  %v603_v56 = vrot.slane %v602_v37, 4  ;;  %v612_v58 = vor.u32 %v611_v42, %v607_v33  ;;  %v433_v41 = vrot.slane %v431_v49, 5  ;;  %9678 = vst [vmem:[#allocation3_spill] sm:$0xff] %v7299_v12  ;;  %v7302_v15 = vld [vmem:[%s7010_s26 + $0x54] sm:$0xf] }
  0x46   : > { %6430 = vmatprep.subr.bf16.mxu1 %v6847_v2  ;;  %6478 = vmatprep.subr.bf16.mxu0 %v6848_v55  ;;  %v439_v3 = vrot.slane %v437_v50, 5  ;;  %v447_v11 = vshll.u32 %v7273_v30, 16  ;;  %v620_v24 = vshrl.u32 %v7281_v38, 16  ;;  %v623_v35 = vshll.u32 %v7281_v38, 16  ;;  %v7309_v34 = vld [vmem:[%s7010_s26 + $0x58] sm:$0xf] }
  0x47   : > { %6393 = vmatmul.mubr.bf16.gmra.mxu0 %v5427_v29  ;;  %v608_v46 = vsel %vm7041_vm2, %v603_v56, %v607_v33  ;;  %v613_v23 = vrot.slane %v612_v58, 4  ;;  %v434_v37 = vor.u32 %v433_v41, %v430_v63  ;;  %v443_v42 = vrot.slane %v441_v10, 4 }
  0x48   : > { %v449_v43 = vrot.slane %v447_v11, 5  ;;  %v629_v45 = vshll.u32 %v7289_v52, 16  ;;  %v622_v49 = vrot.slane %v620_v24, 4  ;;  %v625_v50 = vrot.slane %v623_v35, 5 }
  0x49   : > { %6431 = vmatpush3.bf16.msra.mxu1 %v6847_v2  ;;  %6479 = vmatpush3.bf16.msra.mxu0 %v6848_v55  ;;  %v618_v33 = vsel %vm7041_vm2, %v613_v23, %v617_v48  ;;  %v633_v29 = vshrl.u32 %v7289_v52, 16  ;;  %v435_v56 = vrot.slane %v434_v37, 4  ;;  %v444_v58 = vor.u32 %v443_v42, %v439_v3  ;;  %v7318_v55 = vld [vmem:[%s7010_s26 + $0x5c] sm:$0x1]  ;;  %v7323_v48 = vld [vmem:[%s7010_s26 + $0xb4] sm:$0xf] }
  0x4a   : > { %6512 = vmatprep.subr.bf16.mxu1 %v7286_v47  ;;  %6560 = vmatprep.subr.bf16.mxu0 %v7294_v1  ;;  %v5435_v2 = vcombine.low %v608_v46, %v618_v33  ;;  %v631_v63 = vrot.slane %v629_v45, 5  ;;  %v626_v41 = vor.u32 %v625_v50, %v622_v49  ;;  %v639_v11 = vshll.u32 %v7299_v12, 16  ;;  %9679 = vst [vmem:[#allocation4_spill] sm:$0xff] %v7323_v48  ;;  %v7330_v37 = vld [vmem:[%s7010_s26 + $0xb8] sm:$0xf] }
  0x4b   : > { %v635_v10 = vrot.slane %v633_v29, 4  ;;  %v452_v21 = vshrl.u32 %v7302_v15, 16  ;;  %v440_v23 = vsel %vm7041_vm2, %v435_v56, %v439_v3  ;;  %v445_v24 = vrot.slane %v444_v58, 4  ;;  %9680 = vst [vmem:[#allocation5_spill] sm:$0xff] %v7330_v37  ;;  %v7336_v3 = vld [vmem:[%s7010_s26 + $0xbc] sm:$0x1] }
  0x4c   : > { %6409 = vmatmul.mubr.bf16.gmra.mxu1 %v5435_v2  ;;  %v455_v46 = vshll.u32 %v7302_v15, 16  ;;  %v461_v35 = vshll.u32 %v7309_v34, 16  ;;  %v627_v42 = vrot.slane %v626_v41, 4  ;;  %v641_v33 = vrot.slane %v639_v11, 5  ;;  %9681 = vst [vmem:[#allocation6_spill] sm:$0xff] %v7336_v3 }
  0x4d   : > { %v636_v45 = vor.u32 %v635_v10, %v631_v63  ;;  %v454_v49 = vrot.slane %v452_v21, 4  ;;  %v450_v50 = vsel %vm7041_vm2, %v445_v24, %v449_v43  ;;  %v465_v62 = vshrl.u32 %v7309_v34, 16  ;;  %v1262_v10 = vld [vmem:[%s7010_s26] sm:$0xe] }
  0x4e   : > { %v457_v29 = vrot.slane %v455_v46, 5  ;;  %v463_v2 = vrot.slane %v461_v35, 5  ;;  %v5428_v56 = vcombine.low %v440_v23, %v450_v50  ;;  %v632_v58 = vsel %vm7041_vm2, %v627_v42, %v631_v63 }
  0x4f   : > { %v637_v20 = vrot.slane %v636_v45, 4  ;;  %v471_v41 = vshll.u32 %v7318_v55, 16  ;;  %v467_v21 = vrot.slane %v465_v62, 4  ;;  %v644_v12 = vshrl.u32 %v7323_v48, 16 }
  0x50   : > { %v458_v11 = vor.u32 %v457_v29, %v454_v49  ;;  %v647_v43 = vshll.u32 %v7323_v48, 16  ;;  %6396 = vmatprep.mubr.bf16.mxu0 %v5428_v56  ;;  %v653_v46 = vshll.u32 %v7330_v37, 16  ;;  %v657_v63 = vshrl.u32 %v7330_v37, 16  ;;  %v1263_v49 = vld [vmem:[%s7010_s26 + $0xc] sm:$0xe] }
  0x51   : > { %v642_v24 = vsel %vm7041_vm2, %v637_v20, %v641_v33  ;;  %v473_v23 = vrot.slane %v471_v41, 5  ;;  %v468_v45 = vor.u32 %v467_v21, %v463_v2  ;;  %v646_v50 = vrot.slane %v644_v12, 4  ;;  %v1264_v20 = vld [vmem:[%s7010_s26 + $0x18] sm:$0xe] }
  0x52   : > { %v5436_v35 = vcombine.low %v632_v58, %v642_v24  ;;  %v459_v42 = vrot.slane %v458_v11, 4  ;;  %v649_v62 = vrot.slane %v647_v43, 5  ;;  %v655_v29 = vrot.slane %v653_v46, 5 }
  0x53   : > { %v659_v38 = vrot.slane %v657_v63, 4  ;;  %v663_v48 = vshll.u32 %v7336_v3, 16  ;;  %v469_v58 = vrot.slane %v468_v45, 4  ;;  %v5470_v41 = vrot.slane %v1262_v10, 9 }
  0x54   : > { %6412 = vmatprep.mubr.bf16.mxu1 %v5436_v35  ;;  %v464_v33 = vsel %vm7041_vm2, %v459_v42, %v463_v2  ;;  %v1315_v12 = vrot.slane %v7019_v5, 5  ;;  %v650_v11 = vor.u32 %v649_v62, %v646_v50  ;;  %v5471_v24 = vrot.slane %v1263_v49, 9 }
  0x55   : > { %v660_v21 = vor.u32 %v659_v38, %v655_v29  ;;  %v665_v43 = vrot.slane %v663_v48, 5  ;;  %v474_v46 = vsel %vm7041_vm2, %v469_v58, %v473_v23  ;;  %v1322_v35 = vrot.slane %v7046_v32, 5 }
  0x56   : > { %v1316_v63 = vsel %vm7352_vm5, %v5470_v41, %v1315_v12  ;;  %v1317_v3 = vrot.slane %v1315_v12, 4  ;;  %v5429_v37 = vcombine.low %v464_v33, %v474_v46  ;;  %v651_v2 = vrot.slane %v650_v11, 4  ;;  %v1266_v12 = vld [vmem:[%s7010_s26 + $0x30] sm:$0xe]  ;;  %v1268_v46 = vld [vmem:[%s7010_s26 + $0x48] sm:$0xe] }
  0x57   : > { %v661_v42 = vrot.slane %v660_v21, 4  ;;  %v5446_v10 = vcombine.low %v7016_v4, %v7019_v5  ;;  %v9684_v38 = vrot.slane %v7022_v6, 5  ;;  %v1324_v45 = vrot.slane %v1322_v35, 4 }
  0x58   : > { %v5472_v23 = vrot.slane %v1264_v20, 9  ;;  %6397 = vmatmul.mubr.bf16.gmra.mxu0 %v5429_v37  ;;  %v656_v50 = vsel %vm7041_vm2, %v651_v2, %v655_v29  ;;  %v1329_v33 = vrot.slane %v7083_v19, 5  ;;  %v1323_v4 = vsel %vm7352_vm5, %v5471_v24, %v1322_v35  ;;  %v1267_v24 = vld [vmem:[%s7010_s26 + $0x3c] sm:$0xe] }
  0x59   : > { %v1319_v48 = vsel %vm7352_vm5, %v1317_v3, %v9684_v38  ;;  %v666_v49 = vsel %vm7041_vm2, %v661_v42, %v665_v43  ;;  %v9685_v5 = vrot.slane %v7052_v40, 5  ;;  %v1332_v37 = vrot.slane %v7088_v25, 5  ;;  %v1265_v3 = vld [vmem:[%s7010_s26 + $0x24] sm:$0xe]  ;;  %v6856_v25 = vld [vmem:[%s9647_s1 + $0x130] sm:$0xff]  }
  0x5a   : > { %v5502_v62 = vcombine.low %v1316_v63, %v1319_v48  ;;  %v5437_v58 = vcombine.low %v656_v50, %v666_v49  ;;  %v1330_v29 = vsel %vm7352_vm5, %v5472_v23, %v1329_v33  ;;  %v1331_v20 = vrot.slane %v1329_v33, 4  ;;  %v6855_v23 = vld [vmem:[%s9647_s1 + $0xf0] sm:$0xff]  }
  0x5b   : > { %v1326_v6 = vsel %vm7352_vm5, %v1324_v45, %v9685_v5  ;;  %v1336_v41 = vrot.slane %v7124_v0, 5  ;;  %v5473_v21 = vrot.slane %v1265_v3, 9  ;;  %v1343_v43 = vrot.slane %v7171_v60, 5  ;;  %v7427_v3 = vld [vmem:[%s7010_s26 + $0x68] sm:$0x1] }
  0x5c   : > { %6480 = vmatprep.mubr.bf16.mxu0 %v5502_v62  ;;  %6413 = vmatmul.mubr.bf16.gmra.mxu1 %v5437_v58  ;;  %v5503_v11 = vcombine.low %v1323_v4, %v1326_v6  ;;  %v1333_v40 = vsel %vm7352_vm5, %v1331_v20, %v1332_v37  ;;  %v1339_v2 = vrot.slane %v7127_v8, 5  ;;  %v5474_v42 = vrot.slane %v1266_v12, 9  ;;  %v1269_v37 = vld [vmem:[%s7010_s26 + $0x54] sm:$0xe]  ;;  %v7451_v12 = vld [vmem:[%s7010_s26 + $0x60] sm:$0xe] }
  0x5d   : > { %6432 = vmatprep.mubr.bf16.mxu1 %v5446_v10  ;;  %v5504_v63 = vcombine.low %v1330_v29, %v1333_v40  ;;  %v1338_v35 = vrot.slane %v1336_v41, 4  ;;  %v1345_v38 = vrot.slane %v1343_v43, 4  ;;  %v1346_v10 = vrot.slane %v7179_v16, 5 }
  0x5e   : > { %v1350_v48 = vrot.slane %v7215_v54, 5  ;;  %v5448_v45 = vcombine.low %v7075_v14, %v7083_v19  ;;  %v1357_v50 = vrot.slane %v7264_v17, 5  ;;  %v5475_v49 = vrot.slane %v1267_v24, 9  ;;  %v6864_v24 = vld [vmem:[%s9647_s1 + $0x120] sm:$0xff]  }
  0x5f   : > { %v1353_v8 = vrot.slane %v7222_v7, 5  ;;  %v5476_v33 = vrot.slane %v1268_v46, 9  ;;  %v1337_v14 = vsel %vm7352_vm5, %v5473_v21, %v1336_v41  ;;  %v1340_v19 = vsel %vm7352_vm5, %v1338_v35, %v1339_v2  ;;  %v7463_v46 = vld [vmem:[%s7010_s26 + $0x78] sm:$0xe]  ;;  %v6863_v2 = vld [vmem:[%s9647_s1 + $0xe0] sm:$0xff]  }
  0x60   : > { %6481 = vmatmul.mubr.bf16.vlgmr.msra.gmra.mxu0 %v5503_v11  ;;  %v1352_v62 = vrot.slane %v1350_v48, 4  ;;  %v1359_v16 = vrot.slane %v1357_v50, 4  ;;  %v1360_v58 = vrot.slane %v7273_v30, 5  ;;  %v1344_v4 = vsel %vm7352_vm5, %v5474_v42, %v1343_v43  ;;  %v7454_v11 = vld [vmem:[%s7010_s26 + $0x6c] sm:$0xe] }
  0x61   : > { %6561 = vmatpush3.bf16.msra.mxu0 %v7294_v1  ;;  %6484 = vmatprep.mubr.bf16.mxu0 %v5504_v63  ;;  %v1347_v7 = vsel %vm7352_vm5, %v1345_v38, %v1346_v10  ;;  %v6860_v1 = vld [vmem:[%s9647_s1 + $0x128] sm:$0xff]   ;;  %v1364_v5 = vrot.slane %v7309_v34, 5  ;;  %v9686_v6 = vcombine.low %v7037_v26, %v7046_v32  ;;  %v5449_v30 = vcombine.low %v7115_v57, %v7124_v0  ;;  %v1273_v63 = vld [vmem:[%s7010_s26 + $0x84] sm:$0xe]  ;;  %v1274_v42 = vld [vmem:[%s7010_s26 + $0x90] sm:$0xe] }
  0x62   : > { %6562 = vmatprep.subr.bf16.mxu0 %v6856_v25  ;;  %v1374_v29 = vrot.slane %v7427_v3, 5  ;;  %v5505_v20 = vcombine.low %v1337_v14, %v1340_v19  ;;  %v7433_v41 = vsel %vm7352_vm5, %v5475_v49, %v1350_v48  ;;  %v7437_v26 = vsel %vm7352_vm5, %v1352_v62, %v1353_v8  ;;  %v6859_v32 = vld [vmem:[%s9647_s1 + $0xe8] sm:$0xff]   ;;  %v7482_v48 = vld [vmem:[%s7010_s26 + $0x64] sm:$0xf]  ;;  %v1275_v49 = vld [vmem:[%s7010_s26 + $0x9c] sm:$0xe] }
  0x63   : > { %v5506_v57 = vcombine.low %v1344_v4, %v1347_v7  ;;  %v7444_v0 = vsel %vm7352_vm5, %v5476_v33, %v1357_v50  ;;  %v5450_v40 = vcombine.low %v7162_v53, %v7171_v60  ;;  %v5477_v21 = vrot.slane %v1269_v37, 9  ;;  %v7504_v4 = vld [vmem:[%s7010_s26 + $0x74] sm:$0x1] }
  0x64   : > { %6433 = vmatmul.mubr.bf16.vlgmr.msra.gmra.mxu1 %v9686_v6  ;;  %v1367_v43 = vrot.slane %v7318_v55, 5  ;;  %v5451_v35 = vcombine.low %v7212_v51, %v7215_v54  ;;  %v5507_v53 = vcombine.low %v7433_v41, %v7437_v26  ;;  %v5452_v60 = vcombine.low %v7255_v59, %v7264_v17  ;;  %v6949_v54 = vld [vmem:[%s7010_s26 + $0x80] sm:$0x1] }
  0x65   : > { %6513 = vmatpush3.bf16.msra.mxu1 %v7286_v47  ;;  %6436 = vmatprep.mubr.bf16.mxu1 %v5448_v45  ;;  %v7448_v47 = vsel %vm7352_vm5, %v1359_v16, %v1360_v58  ;;  %v5453_v55 = vcombine.low %v7302_v15, %v7309_v34  ;;  %v5478_v10 = vrot.slane %v7451_v12, 9  ;;  %v1371_v45 = vrot.slane %v7482_v48, 5  ;;  %v7500_v16 = vld [vmem:[%s7010_s26 + $0x70] sm:$0xf]  ;;  %v6950_v17 = vld [vmem:[%s7010_s26 + $0x60] sm:$0xf] }
  0x66   : > { %6514 = vmatprep.subr.bf16.mxu1 %v6855_v23  ;;  %6563 = vmatpush3.bf16.msra.mxu0 %v6856_v25  ;;  %v1366_v25 = vrot.slane %v1364_v5, 4  ;;  %v5508_v38 = vcombine.low %v7444_v0, %v7448_v47  ;;  %v5479_v62 = vrot.slane %v7454_v11, 9  ;;  %v1392_v8 = vrot.slane %v7138_v22, 5  ;;  %v1276_v0 = vld [vmem:[%s7010_s26 + $0xa8] sm:$0xe]  ;;  %v7684_v15 = vld [vmem:[%s9647_s1 + $0x1b8] sm:$0xff]  }
  0x67   : > { %6564 = vmatprep.subr.bf16.mxu0 %v6860_v1  ;;  %v1395_v33 = vrot.slane %v7147_v36, 5  ;;  %v7493_v14 = vsel %vm7352_vm5, %v5477_v21, %v1364_v5  ;;  %v1378_v58 = vrot.slane %v7500_v16, 5  ;;  %v1381_v7 = vrot.slane %v7504_v4, 5  ;;  %v6867_v36 = vld [vmem:[%s9647_s1 + $0xd8] sm:$0xff]  }
  0x68   : > { %6485 = vmatmul.mubr.bf16.gmra.mxu0 %v5505_v20  ;;  %v7497_v19 = vsel %vm7352_vm5, %v1366_v25, %v1367_v43  ;;  %v5480_v5 = vrot.slane %v7463_v46, 9  ;;  %v1394_v37 = vrot.slane %v1392_v8, 4  ;;  %v5482_v41 = vrot.slane %v1274_v42, 9  ;;  %v5598_v42 = vld [vmem:[%s7010_s26 + $0xc] sm:$0xf] }
  0x69   : > { %6515 = vmatpush3.bf16.msra.mxu1 %v6855_v23  ;;  %6488 = vmatprep.mubr.bf16.mxu0 %v5506_v57  ;;  %v5481_v23 = vrot.slane %v1273_v63, 9  ;;  %v1399_v26 = vrot.slane %v7189_v31, 5  ;;  %v1402_v57 = vrot.slane %v7199_v44, 5  ;;  %v1385_v47 = vrot.slane %v7097_v39, 5 }
  0x6a   : > { %6516 = vmatprep.subr.bf16.mxu1 %v6859_v32  ;;  %6565 = vmatpush3.bf16.msra.mxu0 %v6860_v1  ;;  %v6868_v1 = vld [vmem:[%s9647_s1 + $0x118] sm:$0xff]   ;;  %v7528_v21 = vsel %vm7352_vm5, %v1394_v37, %v1395_v33  ;;  %v1406_v63 = vrot.slane %v7234_v28, 5  ;;  %v5484_v33 = vrot.slane %v1276_v0, 9  ;;  %v1413_v37 = vrot.slane %v7289_v52, 5  ;;  %v6871_v0 = vld [vmem:[%s9647_s1 + $0xd0] sm:$0xff]  }
  0x6b   : > { %6566 = vmatprep.subr.bf16.mxu0 %v6864_v24  ;;  %v7516_v6 = vsel %vm7352_vm5, %v5481_v23, %v1392_v8  ;;  %v7536_v44 = vsel %vm7352_vm5, %v5482_v41, %v1399_v26  ;;  %v1401_v43 = vrot.slane %v1399_v26, 4  ;;  %v6872_v23 = vld [vmem:[%s9647_s1 + $0x110] sm:$0xff]   ;;  %v1409_v8 = vrot.slane %v7250_v61, 5  ;;  %v9688_v61 = vld [vmem:[#allocation3_spill] sm:$0xff] }
  0x6c   : > { %6437 = vmatmul.mubr.bf16.gmra.mxu1 %v5449_v30  ;;  %v1373_v30 = vrot.slane %v1371_v45, 4  ;;  %v1408_v20 = vrot.slane %v1406_v63, 4  ;;  %v1416_v50 = vrot.slane %v9688_v61, 5  ;;  %v1372_v61 = vsel %vm7352_vm5, %v5478_v10, %v1371_v45  ;;  %v5601_v45 = vld [vmem:[%s7010_s26 + $0x18] sm:$0xf] }
  0x6d   : > { %6440 = vmatprep.mubr.bf16.mxu1 %v5450_v40  ;;  %6517 = vmatpush3.bf16.msra.mxu1 %v6859_v32  ;;  %v5483_v40 = vrot.slane %v1275_v49, 9  ;;  %v7548_v32 = vld [vmem:[%s7010_s26 + $0x10] sm:$0xf]  ;;  %v7552_v41 = vsel %vm7352_vm5, %v1401_v43, %v1402_v57  ;;  %v1415_v57 = vrot.slane %v1413_v37, 4  ;;  %v2183_v12 = vshrl.u32 %v5598_v42, 16 }
  0x6e   : > { %6518 = vmatprep.subr.bf16.mxu1 %v6863_v2  ;;  %6567 = vmatpush3.bf16.msra.mxu0 %v6864_v24  ;;  %v9687_v24 = vld [vmem:[#allocation2_spill] sm:$0xff]  ;;  %v9690_v43 = vld [vmem:[#allocation4_spill] sm:$0xff]  ;;  %v2186_v10 = vshll.u32 %v5598_v42, 16  ;;  %v1380_v51 = vrot.slane %v1378_v58, 4  ;;  %v2192_v59 = vshll.u32 %v7548_v32, 16  ;;  %v1386_v4 = vsel %vm7352_vm5, %v5480_v5, %v1385_v47 }
  0x6f   : > { %6568 = vmatprep.subr.bf16.mxu0 %v6868_v1  ;;  %v7556_v26 = vsel %vm7352_vm5, %v5483_v40, %v1406_v63  ;;  %v9689_v40 = vld [vmem:[#allocation5_spill] sm:$0xff]  ;;  %v7622_v42 = vld [vmem:[%s7010_s26 + $0x14] sm:$0x1]  ;;  %v2185_v63 = vrot.slane %v2183_v12, 4  ;;  %v9692_v5 = vld [vmem:[#allocation6_spill] sm:$0xff] }
  0x70   : > { %6489 = vmatmul.mubr.bf16.gmra.mxu0 %v5507_v53  ;;  %v2188_v49 = vrot.slane %v2186_v10, 5  ;;  %v5604_v53 = vld [vmem:[%s7010_s26 + $0x24] sm:$0xf]  ;;  %v1382_v11 = vsel %vm7352_vm5, %v1380_v51, %v1381_v7 }
  0x71   : > { %6519 = vmatpush3.bf16.msra.mxu1 %v6863_v2  ;;  %6492 = vmatprep.mubr.bf16.mxu0 %v5508_v38  ;;  %v7566_v2 = vsel %vm7352_vm5, %v5484_v33, %v1413_v37  ;;  %v5509_v38 = vcombine.low %v7493_v14, %v7497_v19  ;;  %v1375_v33 = vsel %vm7352_vm5, %v1373_v30, %v1374_v29  ;;  %v6876_v14 = vld [vmem:[%s9647_s1 + $0x108] sm:$0xff]   ;;  %v6880_v30 = vld [vmem:[%s9647_s1 + $0x100] sm:$0xff]   ;;  %v7641_v19 = vrot.slane %v2192_v59, 5 }
  0x72   : > { %6520 = vmatprep.subr.bf16.mxu1 %v6867_v36  ;;  %6569 = vmatpush3.bf16.msra.mxu0 %v6868_v1  ;;  %v7584_v37 = vsel %vm7352_vm5, %v1408_v20, %v1409_v8  ;;  %v7596_v29 = vsel %vm7352_vm5, %v1415_v57, %v1416_v50  ;;  %v6875_v50 = vld [vmem:[%s9647_s1 + $0xc8] sm:$0xff]   ;;  %v7611_v1 = vld [vmem:[%s7010_s26 + $0xb4] sm:$0xe]  ;;  %v5510_v20 = vcombine.low %v1372_v61, %v1375_v33  ;;  %v2196_v8 = vshrl.u32 %v7548_v32, 16  ;;  %v7639_v61 = vld [vmem:[%s7010_s26 + $0x1c] sm:$0xf] }
  0x73   : > { %6570 = vmatprep.subr.bf16.mxu0 %v6872_v23  ;;  %v7626_v57 = vld [vmem:[%s7010_s26 + $0x6c] sm:$0xf]  ;;  %v2207_v33 = vshrl.u32 %v5601_v45, 16  ;;  %v2216_v51 = vshll.u32 %v7639_v61, 16  ;;  %v2220_v39 = vshrl.u32 %v7639_v61, 16  ;;  %v2231_v59 = vshrl.u32 %v5604_v53, 16 }
  0x74   : > { %6441 = vmatmul.mubr.bf16.gmra.mxu1 %v5451_v35  ;;  %v1388_v35 = vrot.slane %v6949_v54, 5  ;;  %v5455_v54 = vcombine.low %v7626_v57, %v7500_v16  ;;  %v2198_v3 = vrot.slane %v2196_v8, 4  ;;  %v2234_v46 = vshll.u32 %v5604_v53, 16  ;;  %v6953_v8 = vld [vmem:[%s7010_s26 + $0x7c] sm:$0xf] }
  0x75   : > { %6444 = vmatprep.mubr.bf16.mxu1 %v5452_v60  ;;  %6521 = vmatpush3.bf16.msra.mxu1 %v6867_v36  ;;  %v5454_v60 = vcombine.low %v6950_v17, %v7482_v48  ;;  %v1387_v36 = vrot.slane %v1385_v47, 4  ;;  %v7636_v48 = vsel %vm7352_vm5, %v5479_v62, %v1378_v58  ;;  %v2210_v17 = vshll.u32 %v5601_v45, 16  ;;  %v6879_v58 = vld [vmem:[%s9647_s1 + $0xc0] sm:$0xff]   ;;  %v7666_v45 = vld [vmem:[%s7010_s26 + $0x28] sm:$0xf] }
  0x76   : > { %6522 = vmatprep.subr.bf16.mxu1 %v6871_v0  ;;  %6571 = vmatpush3.bf16.msra.mxu0 %v6872_v23  ;;  %v9660_v62 = vrot.slane %v9689_v40, 5  ;;  %v7653_v23 = vld [vmem:[%s7010_s26 + $0x20] sm:$0x1]  ;;  %v2209_v12 = vrot.slane %v2207_v33, 4  ;;  %9691 = vst [vmem:[#allocation2_spill] sm:$0xff] %v7666_v45  ;;  %v5511_v34 = vcombine.low %v7636_v48, %v1382_v11  ;;  %v2240_v53 = vshll.u32 %v7666_v45, 16 }
  0x77   : > { %6572 = vmatprep.subr.bf16.mxu0 %v6876_v14  ;;  %v2212_v10 = vrot.slane %v2210_v17, 5  ;;  %v1389_v7 = vsel %vm7352_vm5, %v1387_v36, %v1388_v35  ;;  %v2189_v35 = vor.u32 %v2188_v49, %v2185_v63  ;;  %v7679_v36 = vld [vmem:[%s9647_s1 + $0x178] sm:$0xff]   ;;  %v5607_v63 = vld [vmem:[%s7010_s26 + $0x30] sm:$0xf]  ;;  %v7700_v48 = vld [vmem:[%s7010_s26 + $0x34] sm:$0xf] }
  0x78   : > { %6493 = vmatmul.mubr.bf16.gmra.mxu0 %v5509_v38  ;;  %v2202_v38 = vshll.u32 %v7622_v42, 16  ;;  %v5512_v17 = vcombine.low %v1386_v4, %v1389_v7  ;;  %9694 = vst [vmem:[#allocation5_spill] sm:$0xff] %v7700_v48  ;;  %v7702_v11 = vrot.slane %v2216_v51, 5  ;;  %v2236_v47 = vrot.slane %v2234_v46, 5  ;;  %v7721_v46 = vld [vmem:[%s7010_s26 + $0x40] sm:$0xf] }
  0x79   : > { %6523 = vmatpush3.bf16.msra.mxu1 %v6871_v0  ;;  %6496 = vmatprep.mubr.bf16.mxu0 %v5510_v20  ;;  %v2199_v20 = vor.u32 %v2198_v3, %v7641_v19  ;;  %v2213_v49 = vor.u32 %v2212_v10, %v2209_v12  ;;  %v6952_v3 = vld [vmem:[%s7010_s26 + $0x78] sm:$0xf]  ;;  %v2222_v12 = vrot.slane %v2220_v39, 4  ;;  %v2233_v10 = vrot.slane %v2231_v59, 4  ;;  %9695 = vst [vmem:[#allocation4_spill] sm:$0xff] %v7721_v46 }
  0x7a   : > { %6524 = vmatprep.subr.bf16.mxu1 %v6875_v50  ;;  %6573 = vmatpush3.bf16.msra.mxu0 %v6876_v14  ;;  %v2226_v14 = vshll.u32 %v7653_v23, 16  ;;  %v5456_v33 = vcombine.low %v6952_v3, %v6953_v8  ;;  %v7693_v25 = vrot.slane %v2202_v38, 5  ;;  %v7705_v0 = vld [vmem:[%s7010_s26 + $0x38] sm:$0x1]  ;;  %v7707_v4 = vrot.slane %v2189_v35, 4 }
  0x7b   : > { %6574 = vmatprep.subr.bf16.mxu0 %v6880_v30  ;;  %v7709_v7 = vrot.slane %v2199_v20, 4  ;;  %v2255_v3 = vshrl.u32 %v5607_v63, 16  ;;  %v5610_v8 = vld [vmem:[%s7010_s26 + $0x3c] sm:$0xf]  ;;  %v7717_v51 = vrot.slane %v2240_v53, 5  ;;  %v2258_v39 = vshll.u32 %v5607_v63, 16 }
  0x7c   : > { %6445 = vmatmul.mubr.bf16.gmra.mxu1 %v5453_v55  ;;  %v1422_v55 = vrot.slane %v9660_v62, 4  ;;  %v7711_v38 = vrot.slane %v2226_v14, 5  ;;  %v2264_v59 = vshll.u32 %v7700_v48, 16  ;;  %v2268_v20 = vshrl.u32 %v7700_v48, 16 }
  0x7d   : > { %6448 = vmatprep.mubr.bf16.mxu1 %v5454_v60  ;;  %6525 = vmatpush3.bf16.msra.mxu1 %v6875_v50  ;;  %v7696_v60 = vld [vmem:[%s7010_s26 + $0x2c] sm:$0x1]  ;;  %v2244_v50 = vshrl.u32 %v7666_v45, 16  ;;  %v2223_v14 = vor.u32 %v2222_v12, %v7702_v11  ;;  %v2257_v53 = vrot.slane %v2255_v3, 4  ;;  %v2260_v63 = vrot.slane %v2258_v39, 5 }
  0x7e   : > { %6526 = vmatprep.subr.bf16.mxu1 %v6879_v58  ;;  %9693 = vst [vmem:[#allocation3_spill] sm:$0xff] %v7696_v60  ;;  %6575 = vmatpush3.bf16.msra.mxu0 %v6880_v30  ;;  %v7715_v30 = vrot.slane %v2213_v49, 4  ;;  %v2279_v49 = vshrl.u32 %v5610_v8, 16  ;;  %v2282_v62 = vshll.u32 %v5610_v8, 16  ;;  %v2270_v48 = vrot.slane %v2268_v20, 4 }
  0x7f   : > { %6656 = vmatprep.subr.bf16.mxu0 %v7684_v15  ;;  %v2246_v35 = vrot.slane %v2244_v50, 4  ;;  %v7731_v50 = vrot.slane %v2264_v59, 5  ;;  %v7734_v45 = vld [vmem:[%s7010_s26 + $0x44] sm:$0x1]  ;;  %v2292_v12 = vshrl.u32 %v7721_v46, 16  ;;  %v9696_v16 = vrot.slane %v9689_v40, 5 }
  0x80   : > { %6497 = vmatmul.mubr.bf16.gmra.mxu0 %v5511_v34  ;;  %v2250_v34 = vshll.u32 %v7696_v60, 16  ;;  %v9697_v57 = vrot.slane %v7611_v1, 9  ;;  %v7755_v39 = vld [vmem:[%s7010_s26 + $0x4c] sm:$0xf]  ;;  %v2281_v59 = vrot.slane %v2279_v49, 4  ;;  %v2284_v20 = vrot.slane %v2282_v62, 5 }
  0x81   : > { %6527 = vmatpush3.bf16.msra.mxu1 %v6879_v58  ;;  %6500 = vmatprep.mubr.bf16.mxu0 %v5512_v17  ;;  %v2237_v58 = vor.u32 %v2236_v47, %v2233_v10  ;;  %v2274_v17 = vshll.u32 %v7705_v0, 16  ;;  %v2288_v47 = vshll.u32 %v7721_v46, 16  ;;  %v5613_v10 = vld [vmem:[%s7010_s26 + $0x48] sm:$0xf]  ;;  %v2247_v8 = vor.u32 %v2246_v35, %v7717_v51 }
  0x82   : > { %6608 = vmatprep.subr.bf16.mxu1 %v7679_v36  ;;  %v2294_v1 = vrot.slane %v2292_v12, 4  ;;  %v7759_v46 = vrot.slane %v2223_v14, 4  ;;  %v2195_v62 = vsel %vm7041_vm2, %v7707_v4, %v7641_v19  ;;  %v2205_v35 = vsel %vm7041_vm2, %v7709_v7, %v7693_v25  ;;  %v5616_v4 = vld [vmem:[%s7010_s26 + $0x54] sm:$0xf] }
  0x83   : > { %v7757_v60 = vrot.slane %v2288_v47, 5  ;;  %v2306_v14 = vshll.u32 %v5613_v10, 16  ;;  %v2298_v49 = vshll.u32 %v7734_v45, 16  ;;  %v2316_v19 = vshrl.u32 %v7755_v39, 16 }
  0x84   : > { %6449 = vmatmul.mubr.bf16.gmra.mxu1 %v5455_v54  ;;  %v7745_v54 = vsel %vm7352_vm5, %v9697_v57, %v9696_v16  ;;  %v7761_v16 = vrot.slane %v2237_v58, 4  ;;  %v7763_v57 = vrot.slane %v2250_v34, 5  ;;  %v2312_v58 = vshll.u32 %v7755_v39, 16 }
  0x85   : > { %6452 = vmatprep.mubr.bf16.mxu1 %v5456_v33  ;;  %v9698_v33 = vrot.slane %v9692_v5, 5  ;;  %v2303_v5 = vshrl.u32 %v5613_v10, 16  ;;  %v9700_v34 = vcombine.low %v7536_v44, %v7552_v41  ;;  %v7784_v47 = vrot.slane %v2247_v8, 4  ;;  %v7790_v10 = vld [vmem:[%s7010_s26 + $0x58] sm:$0xf] }
  0x86   : > { %v7786_v12 = vrot.slane %v2274_v17, 5  ;;  %v2285_v25 = vor.u32 %v2284_v20, %v2281_v59  ;;  %v2295_v7 = vor.u32 %v2294_v1, %v7757_v60  ;;  %v9701_v44 = vcombine.low %v7131_v13, %v7138_v22  ;;  %v7796_v41 = vld [vmem:[%s7010_s26 + $0x50] sm:$0x1] }
  0x87   : > { %v7751_v3 = vsel %vm7352_vm5, %v1422_v55, %v9698_v33  ;;  %v9699_v55 = vcombine.low %v7516_v6, %v7528_v21  ;;  %v2261_v6 = vor.u32 %v2260_v63, %v2257_v53  ;;  %v2271_v21 = vor.u32 %v2270_v48, %v7731_v50 }
  0x88   : > { %v2305_v48 = vrot.slane %v2303_v5, 4  ;;  %v2308_v53 = vrot.slane %v2306_v14, 5  ;;  %v7798_v63 = vrot.slane %v2312_v58, 5  ;;  %v2318_v17 = vrot.slane %v2316_v19, 4  ;;  %v5619_v5 = vld [vmem:[%s7010_s26 + $0x60] sm:$0xf] }
  0x89   : > { %6501 = vmatmul.mubr.bf16.gmra.mxu0 %v9699_v55  ;;  %v9702_v33 = vcombine.low %v7183_v18, %v7189_v31  ;;  %v2327_v8 = vshrl.u32 %v5616_v4, 16  ;;  %v2330_v59 = vshll.u32 %v5616_v4, 16  ;;  %v7803_v20 = vrot.slane %v2261_v6, 4  ;;  %v7820_v31 = vld [vmem:[%s7010_s26 + $0x64] sm:$0xf] }
  0x8a   : > { %6504 = vmatprep.mubr.bf16.mxu0 %v9700_v34  ;;  %v7805_v1 = vrot.slane %v2271_v21, 4  ;;  %v7807_v13 = vrot.slane %v2298_v49, 5  ;;  %v2336_v22 = vshll.u32 %v7790_v10, 16  ;;  %v5517_v55 = vcombine.low %v7745_v54, %v7751_v3  ;;  %v7816_v34 = vld [vmem:[%s7010_s26 + $0x5c] sm:$0x1] }
  0x8b   : > { %v5662_v14 = vcombine.low %v2195_v62, %v2205_v35  ;;  %v7813_v58 = vrot.slane %v2285_v25, 4  ;;  %v2340_v18 = vshrl.u32 %v7790_v10, 16  ;;  %v7822_v6 = vrot.slane %v2295_v7, 4 }
  0x8c   : > { %6453 = vmatmul.mubr.bf16.gmra.mxu1 %v9701_v44  ;;  %v2322_v21 = vshll.u32 %v7796_v41, 16  ;;  %v2351_v49 = vshrl.u32 %v5619_v5, 16  ;;  %v2354_v19 = vshll.u32 %v5619_v5, 16  ;;  %v9703_v4 = vcombine.low %v7556_v26, %v7584_v37 }
  0x8d   : > { %6456 = vmatprep.mubr.bf16.mxu1 %v9702_v33  ;;  %v2309_v54 = vor.u32 %v2308_v53, %v2305_v48  ;;  %v2319_v3 = vor.u32 %v2318_v17, %v7798_v63  ;;  %v2329_v62 = vrot.slane %v2327_v8, 4  ;;  %v2332_v35 = vrot.slane %v2330_v59, 5  ;;  %v7860_v8 = vld [vmem:[%s7010_s26 + $0x70] sm:$0xf] }
  0x8e   : > { %v9704_v25 = vcombine.low %v7566_v2, %v7596_v29  ;;  %v7832_v7 = vrot.slane %v2336_v22, 5  ;;  %v2342_v44 = vrot.slane %v2340_v18, 4  ;;  %v2346_v33 = vshll.u32 %v7816_v34, 16 }
  0x8f   : > { %v2360_v26 = vshll.u32 %v7820_v31, 16  ;;  %v2219_v37 = vsel %vm7041_vm2, %v7715_v30, %v7702_v11  ;;  %v2229_v2 = vsel %vm7041_vm2, %v7759_v46, %v7711_v38  ;;  %v2353_v29 = vrot.slane %v2351_v49, 4  ;;  %v5622_v46 = vld [vmem:[%s7010_s26 + $0x6c] sm:$0xf] }
  0x90   : > { %v2356_v48 = vrot.slane %v2354_v19, 5  ;;  %v9705_v53 = vcombine.low %v7225_v9, %v7234_v28  ;;  %v2243_v17 = vsel %vm7041_vm2, %v7761_v16, %v7717_v51  ;;  %v2253_v11 = vsel %vm7041_vm2, %v7784_v47, %v7763_v57  ;;  %v7868_v16 = vld [vmem:[%s7010_s26 + $0x68] sm:$0x1] }
  0x91   : > { %6505 = vmatmul.mubr.bf16.gmra.mxu0 %v9703_v4  ;;  %v7855_v30 = vrot.slane %v2322_v21, 5  ;;  %v2364_v38 = vshrl.u32 %v7820_v31, 16  ;;  %v9706_v9 = vcombine.low %v9687_v24, %v7289_v52  ;;  %v7865_v28 = vrot.slane %v2309_v54, 4  ;;  %v6881_v52 = vld [vmem:[%s7010_s26 + $0xc] sm:$0xff]  }
  0x92   : > { %6508 = vmatprep.mubr.bf16.mxu0 %v9704_v25  ;;  %v2333_v51 = vor.u32 %v2332_v35, %v2329_v62  ;;  %v2375_v59 = vshrl.u32 %v5622_v46, 16  ;;  %v2378_v57 = vshll.u32 %v5622_v46, 16  ;;  %v7870_v47 = vrot.slane %v2319_v3, 4  ;;  %v7881_v62 = vld [vmem:[%s7010_s26 + $0x74] sm:$0x1] }
  0x93   : > { %v2343_v22 = vor.u32 %v2342_v44, %v7832_v7  ;;  %v7873_v5 = vrot.slane %v2346_v33, 5  ;;  %v2384_v18 = vshll.u32 %v7860_v8, 16  ;;  %v2357_v24 = vor.u32 %v2356_v48, %v2353_v29  ;;  %v5625_v25 = vld [vmem:[%s7010_s26 + $0x78] sm:$0xf]  ;;  %v7885_v44 = vld [vmem:[%s7010_s26 + $0x7c] sm:$0xf] }
  0x94   : > { %6457 = vmatmul.mubr.bf16.gmra.mxu1 %v9705_v53  ;;  %v7877_v21 = vrot.slane %v2360_v26, 5  ;;  %v2366_v49 = vrot.slane %v2364_v38, 4  ;;  %v2388_v19 = vshrl.u32 %v7860_v8, 16  ;;  %v5663_v4 = vcombine.low %v2219_v37, %v2229_v2  ;;  %v7892_v26 = vld [vmem:[%s7010_s26 + $0x80] sm:$0x1] }
  0x95   : > { %6460 = vmatprep.mubr.bf16.mxu1 %v9706_v9  ;;  %v5664_v54 = vcombine.low %v2243_v17, %v2253_v11  ;;  %v2377_v3 = vrot.slane %v2375_v59, 4  ;;  %v2380_v35 = vrot.slane %v2378_v57, 5  ;;  %v7887_v33 = vrot.slane %v2333_v51, 4 }
  0x96   : > { %v7889_v53 = vrot.slane %v2384_v18, 5  ;;  %v2390_v29 = vrot.slane %v2388_v19, 4  ;;  %v2399_v48 = vshrl.u32 %v5625_v25, 16  ;;  %v2370_v37 = vshll.u32 %v7868_v16, 16  ;;  %v5628_v19 = vld [vmem:[%s7010_s26 + $0x84] sm:$0xf] }
  0x97   : > { %v2402_v2 = vshll.u32 %v5625_v25, 16  ;;  %v2408_v17 = vshll.u32 %v7885_v44, 16  ;;  %v2412_v11 = vshrl.u32 %v7885_v44, 16  ;;  %v7897_v38 = vrot.slane %v2343_v22, 4  ;;  %v6885_v25 = vld [vmem:[%s7010_s26 + $0x24] sm:$0xff]  }
  0x98   : > { %v7899_v46 = vrot.slane %v2357_v24, 4  ;;  %v2401_v9 = vrot.slane %v2399_v48, 4  ;;  %v9707_v51 = vcombine.low %v9690_v43, %v9689_v40  ;;  %v2267_v22 = vsel %vm7041_vm2, %v7803_v20, %v7731_v50 }
  0x99   : > { %6509 = vmatmul.mubr.bf16.gmra.mxu0 %v5517_v55  ;;  %v2367_v55 = vor.u32 %v2366_v49, %v7877_v21  ;;  %v2404_v59 = vrot.slane %v2402_v2, 5  ;;  %v7905_v57 = vrot.slane %v2408_v17, 5  ;;  %v2414_v18 = vrot.slane %v2412_v11, 4  ;;  %v7954_v17 = vld [vmem:[%s7010_s26 + $0x8c] sm:$0x1] }
  0x9a   : > { %6576 = vmatprep.mubr.bf16.mxu0 %v5662_v14  ;;  %v2381_v14 = vor.u32 %v2380_v35, %v2377_v3  ;;  %v2391_v24 = vor.u32 %v2390_v29, %v7889_v53  ;;  %v2394_v49 = vshll.u32 %v7881_v62, 16  ;;  %v2418_v40 = vshll.u32 %v7892_v26, 16  ;;  %v7928_v3 = vld [vmem:[%s7010_s26 + $0x88] sm:$0xf]  ;;  %v6882_v35 = vld [vmem:[%s7010_s26 + $0x18] sm:$0xff]  }
  0x9b   : > { %v2277_v43 = vsel %vm7041_vm2, %v7805_v1, %v7786_v12  ;;  %v2301_v50 = vsel %vm7041_vm2, %v7822_v6, %v7807_v13  ;;  %v2405_v20 = vor.u32 %v2404_v59, %v2401_v9  ;;  %v6888_v12 = vld [vmem:[%s9647_s1 + $0x1b0] sm:$0xff]   ;;  %v7935_v1 = vrot.slane %v2370_v37, 5  ;;  %v7959_v11 = vld [vmem:[%s9647_s1 + $0x1a8] sm:$0xff]  }
  0x9c   : > { %6461 = vmatmul.mubr.bf16.gmra.mxu1 %v9707_v51  ;;  %v2426_v29 = vshll.u32 %v5628_v19, 16  ;;  %v6887_v13 = vld [vmem:[%s9647_s1 + $0x170] sm:$0xff]   ;;  %v2315_v6 = vsel %vm7041_vm2, %v7865_v28, %v7798_v63  ;;  %v2325_v48 = vsel %vm7041_vm2, %v7870_v47, %v7855_v30  ;;  %v7949_v37 = vrot.slane %v2367_v55, 4 }
  0x9d   : > { %6528 = vmatprep.mubr.bf16.mxu1 %v6881_v52  ;;  %v2291_v52 = vsel %vm7041_vm2, %v7813_v58, %v7757_v60  ;;  %v2415_v60 = vor.u32 %v2414_v18, %v7905_v57  ;;  %v2423_v58 = vshrl.u32 %v5628_v19, 16  ;;  %v7951_v2 = vrot.slane %v2381_v14, 4  ;;  %v5631_v14 = vld [vmem:[%s7010_s26 + $0x90] sm:$0xf]  ;;  %v7982_v59 = vld [vmem:[%s7010_s26 + $0x94] sm:$0xf] }
  0x9e   : > { %v7961_v63 = vrot.slane %v2391_v24, 4  ;;  %v7963_v28 = vrot.slane %v2394_v49, 5  ;;  %v2432_v30 = vshll.u32 %v7928_v3, 16  ;;  %v2436_v47 = vshrl.u32 %v7928_v3, 16  ;;  %9708 = vst [vmem:[#allocation6_spill] sm:$0xff] %v7982_v59 }
  0x9f   : > { %v2349_v55 = vsel %vm7041_vm2, %v7897_v38, %v7873_v5  ;;  %v7976_v9 = vrot.slane %v2405_v20, 4  ;;  %v7978_v51 = vrot.slane %v2418_v40, 5  ;;  %v2428_v18 = vrot.slane %v2426_v29, 5  ;;  %v6891_v5 = vld [vmem:[%s9647_s1 + $0x168] sm:$0xff]  }
  0xa0   : > { %v2450_v38 = vshll.u32 %v5631_v14, 16  ;;  %v2456_v24 = vshll.u32 %v7982_v59, 16  ;;  %v2460_v49 = vshrl.u32 %v7982_v59, 16  ;;  %v5665_v40 = vcombine.low %v2267_v22, %v2277_v43 }
  0xa1   : > { %6577 = vmatmul.mubr.bf16.vlgmr.msra.gmra.mxu0 %v5663_v4  ;;  %v2339_v4 = vsel %vm7041_vm2, %v7887_v33, %v7832_v7  ;;  %v2442_v7 = vshll.u32 %v7954_v17, 16  ;;  %v2447_v33 = vshrl.u32 %v5631_v14, 16  ;;  %v5666_v20 = vcombine.low %v2291_v52, %v2301_v50 }
  0xa2   : > { %6657 = vmatpush3.bf16.msra.mxu0 %v7684_v15  ;;  %6580 = vmatprep.mubr.bf16.mxu0 %v5664_v54  ;;  %v7984_v15 = vrot.slane %v2415_v60, 4  ;;  %v2425_v54 = vrot.slane %v2423_v58, 4  ;;  %v7993_v19 = vrot.slane %v2432_v30, 5  ;;  %v6886_v60 = vld [vmem:[%s7010_s26 + $0x30] sm:$0xff]   ;;  %v6896_v58 = vld [vmem:[%s9647_s1 + $0x1a0] sm:$0xff]   ;;  %v2452_v14 = vrot.slane %v2450_v38, 5 }
  0xa3   : > { %6658 = vmatprep.subr.bf16.mxu0 %v6888_v12  ;;  %v2449_v29 = vrot.slane %v2447_v33, 4  ;;  %v2462_v22 = vrot.slane %v2460_v49, 4  ;;  %v8001_v43 = vcombine.low %v2315_v6, %v2325_v48  ;;  %v8004_v52 = vcombine.low %v2339_v4, %v2349_v55  ;;  %v5634_v30 = vld [vmem:[%s7010_s26 + $0x9c] sm:$0xf]  ;;  %v8026_v4 = vld [vmem:[%s7010_s26 + $0xa4] sm:$0x1] }
  0xa4   : > { %6529 = vmatmul.mubr.bf16.vlgmr.msra.gmra.mxu1 %v6882_v35  ;;  %v2438_v35 = vrot.slane %v2436_v47, 4  ;;  %v2429_v48 = vor.u32 %v2428_v18, %v2425_v54  ;;  %v8023_v47 = vld [vmem:[%s7010_s26 + $0xa0] sm:$0xf]  ;;  %9711 = vst [vmem:[#allocation9_spill] sm:$0xff] %v8026_v4  ;;  %v2471_v55 = vshrl.u32 %v5634_v30, 16  ;;  %v2474_v33 = vshll.u32 %v5634_v30, 16 }
  0xa5   : > { %6609 = vmatpush3.bf16.msra.mxu1 %v7679_v36  ;;  %6532 = vmatprep.mubr.bf16.mxu1 %v6885_v25  ;;  %v7999_v36 = vrot.slane %v2456_v24, 5  ;;  %v2373_v25 = vsel %vm7041_vm2, %v7949_v37, %v7935_v1  ;;  %9710 = vst [vmem:[#allocation8_spill] sm:$0xff] %v8023_v47  ;;  %v6889_v38 = vld [vmem:[%s7010_s26 + $0x3c] sm:$0xff]   ;;  %v2480_v37 = vshll.u32 %v8023_v47, 16  ;;  %v2484_v24 = vshrl.u32 %v8023_v47, 16 }
  0xa6   : > { %6610 = vmatprep.subr.bf16.mxu1 %v6887_v13  ;;  %6659 = vmatpush3.bf16.msra.mxu0 %v6888_v12  ;;  %v8015_v12 = vld [vmem:[%s7010_s26 + $0x98] sm:$0x1]  ;;  %v2439_v1 = vor.u32 %v2438_v35, %v7993_v19  ;;  %v6895_v54 = vld [vmem:[%s9647_s1 + $0x160] sm:$0xff]   ;;  %v2453_v18 = vor.u32 %v2452_v14, %v2449_v29  ;;  %v2473_v30 = vrot.slane %v2471_v55, 4  ;;  %v2476_v49 = vrot.slane %v2474_v33, 5 }
  0xa7   : > { %6660 = vmatprep.subr.bf16.mxu0 %v7959_v11  ;;  %9709 = vst [vmem:[#allocation7_spill] sm:$0xff] %v8015_v12  ;;  %v2466_v35 = vshll.u32 %v8015_v12, 16  ;;  %v2486_v6 = vrot.slane %v2484_v24, 4  ;;  %v2490_v50 = vshll.u32 %v8026_v4, 16  ;;  %v5637_v47 = vld [vmem:[%s7010_s26 + $0xa8] sm:$0xf] }
  0xa8   : > { %v6899_v29 = vld [vmem:[%s9647_s1 + $0x158] sm:$0xff]   ;;  %v8049_v14 = vrot.slane %v2429_v48, 4  ;;  %v2495_v55 = vshrl.u32 %v5637_v47, 16  ;;  %v2498_v33 = vshll.u32 %v5637_v47, 16  ;;  %v8062_v4 = vld [vmem:[%s7010_s26 + $0xb0] sm:$0x1] }
  0xa9   : > { %6581 = vmatmul.mubr.bf16.gmra.mxu0 %v5665_v40  ;;  %6611 = vmatpush3.bf16.msra.mxu1 %v6887_v13  ;;  %v6900_v13 = vld [vmem:[%s9647_s1 + $0x198] sm:$0xff]   ;;  %v2463_v40 = vor.u32 %v2462_v22, %v7999_v36  ;;  %v8051_v22 = vrot.slane %v2442_v7, 5  ;;  %v6890_v48 = vld [vmem:[%s7010_s26 + $0x48] sm:$0xff]   ;;  %v8065_v7 = vrot.slane %v2439_v1, 4  ;;  %v8067_v12 = vrot.slane %v2453_v18, 4 }
  0xaa   : > { %6584 = vmatprep.mubr.bf16.mxu0 %v5666_v20  ;;  %6612 = vmatprep.subr.bf16.mxu1 %v6891_v5  ;;  %v8042_v20 = vrot.slane %v2480_v37, 5  ;;  %v2477_v37 = vor.u32 %v2476_v49, %v2473_v30  ;;  %v8069_v59 = vrot.slane %v2466_v35, 5  ;;  %v6903_v49 = vld [vmem:[%s9647_s1 + $0x150] sm:$0xff]   ;;  %v8086_v18 = vrot.slane %v2498_v33, 5 }
  0xab   : > { %6661 = vmatpush3.bf16.msra.mxu0 %v7959_v11  ;;  %v8054_v11 = vld [vmem:[%s7010_s26 + $0xac] sm:$0xf]  ;;  %v2514_v35 = vshll.u32 %v8062_v4, 16 }
  0xac   : > { %6533 = vmatmul.mubr.bf16.gmra.mxu1 %v6886_v60  ;;  %6662 = vmatprep.subr.bf16.mxu0 %v6896_v58  ;;  %9712 = vst [vmem:[#allocation10_spill] sm:$0xff] %v8054_v11  ;;  %v2397_v60 = vsel %vm7041_vm2, %v7961_v63, %v7963_v28  ;;  %v2487_v24 = vor.u32 %v2486_v6, %v8042_v20  ;;  %v2504_v47 = vshll.u32 %v8054_v11, 16  ;;  %v6893_v63 = vld [vmem:[%s7010_s26 + $0x54] sm:$0xff]   ;;  %v8076_v28 = vrot.slane %v2463_v40, 4 }
  0xad   : > { %6536 = vmatprep.mubr.bf16.mxu1 %v6889_v38  ;;  %6613 = vmatpush3.bf16.msra.mxu1 %v6891_v5  ;;  %v6904_v5 = vld [vmem:[%s9647_s1 + $0x190] sm:$0xff]   ;;  %v8078_v6 = vrot.slane %v2490_v50, 5  ;;  %v8080_v38 = vrot.slane %v2495_v55, 4  ;;  %v2508_v1 = vshrl.u32 %v8054_v11, 16  ;;  %v8095_v40 = vrot.slane %v2477_v37, 4 }
  0xae   : > { %6614 = vmatprep.subr.bf16.mxu1 %v6895_v54  ;;  %v8097_v30 = vrot.slane %v2487_v24, 4  ;;  %v5640_v55 = vld [vmem:[%s7010_s26 + $0xb4] sm:$0xf]  ;;  %v8101_v11 = vld [vmem:[%s7010_s26 + $0xb8] sm:$0xf]  ;;  %v6907_v24 = vld [vmem:[%s9647_s1 + $0x148] sm:$0xff]  }
  0xaf   : > { %6663 = vmatpush3.bf16.msra.mxu0 %v6896_v58  ;;  %v9713_v58 = vsel %vm7041_vm2, %v7899_v46, %v7877_v21  ;;  %9714 = vst [vmem:[#allocation11_spill] sm:$0xff] %v8101_v11  ;;  %v2411_v21 = vsel %vm7041_vm2, %v7976_v9, %v7905_v57  ;;  %v8113_v46 = vrot.slane %v2504_v47, 5  ;;  %v5643_v37 = vld [vmem:[%s7010_s26 + $0xc0] sm:$0xf]  ;;  %v2421_v57 = vsel %vm7041_vm2, %v7984_v15, %v7978_v51  ;;  %v8140_v47 = vld [vmem:[%s7010_s26 + $0xc4] sm:$0xf] }
  0xb0   : > { %6664 = vmatprep.subr.bf16.mxu0 %v6900_v13  ;;  %v5669_v50 = vcombine.low %v9713_v58, %v2373_v25  ;;  %v2519_v25 = vshrl.u32 %v5640_v55, 16  ;;  %v2435_v9 = vsel %vm7041_vm2, %v8049_v14, %v7993_v19  ;;  %9717 = vst [vmem:[#allocation13_spill] sm:$0xff] %v8140_v47  ;;  %v8143_v51 = vld [vmem:[%s7010_s26 + $0xc8] sm:$0x1]  ;;  %v2552_v58 = vshll.u32 %v8140_v47, 16 }
  0xb1   : > { %6585 = vmatmul.mubr.bf16.gmra.mxu0 %v8001_v43  ;;  %6615 = vmatpush3.bf16.msra.mxu1 %v6895_v54  ;;  %v9715_v43 = vsel %vm7041_vm2, %v7951_v2, %v7889_v53  ;;  %v2510_v54 = vrot.slane %v2508_v1, 4  ;;  %v2522_v53 = vshll.u32 %v5640_v55, 16  ;;  %v2528_v2 = vshll.u32 %v8101_v11, 16 }
  0xb2   : > { %6588 = vmatprep.mubr.bf16.mxu0 %v8004_v52  ;;  %v5670_v33 = vcombine.low %v9715_v43, %v2397_v60  ;;  %6616 = vmatprep.subr.bf16.mxu1 %v6899_v29  ;;  %v6908_v52 = vld [vmem:[%s9647_s1 + $0x188] sm:$0xff]   ;;  %v2532_v60 = vshrl.u32 %v8101_v11, 16  ;;  %v2521_v15 = vrot.slane %v2519_v25, 4  ;;  %v9718_v55 = vrot.slane %v7548_v32, 5 }
  0xb3   : > { %6665 = vmatpush3.bf16.msra.mxu0 %v6900_v13  ;;  %v2445_v13 = vsel %vm7041_vm2, %v8065_v7, %v8051_v22  ;;  %v2524_v19 = vrot.slane %v2522_v53, 5  ;;  %v8145_v14 = vrot.slane %v2528_v2, 5  ;;  %v2543_v22 = vshrl.u32 %v5643_v37, 16  ;;  %v6894_v2 = vld [vmem:[%s7010_s26 + $0x60] sm:$0xff]  }
  0xb4   : > { %6537 = vmatmul.mubr.bf16.gmra.mxu1 %v6890_v48  ;;  %6666 = vmatprep.subr.bf16.mxu0 %v6904_v5  ;;  %v8137_v48 = vld [vmem:[%s7010_s26 + $0xbc] sm:$0x1]  ;;  %v2534_v1 = vrot.slane %v2532_v60, 4  ;;  %v2546_v7 = vshll.u32 %v5643_v37, 16  ;;  %v8150_v43 = vrot.slane %v9718_v55, 4  ;;  %v8155_v25 = vrot.slane %v2514_v35, 5 }
  0xb5   : > { %9716 = vst [vmem:[#allocation12_spill] sm:$0xff] %v8137_v48  ;;  %6540 = vmatprep.mubr.bf16.mxu1 %v6893_v63  ;;  %6617 = vmatpush3.bf16.msra.mxu1 %v6899_v29  ;;  %v2501_v63 = vor.u32 %v8086_v18, %v8080_v38  ;;  %v2511_v29 = vor.u32 %v2510_v54, %v8113_v46  ;;  %v2556_v53 = vshrl.u32 %v8140_v47, 16  ;;  %v2538_v60 = vshll.u32 %v8137_v48, 16  ;;  %v6897_v38 = vld [vmem:[%s7010_s26 + $0x6c] sm:$0xff]   ;;  %v8175_v48 = vld [vmem:[%s7010_s26 + $0x18] sm:$0xe] }
  0xb6   : > { %6618 = vmatprep.subr.bf16.mxu1 %v6903_v49  ;;  %v2545_v37 = vrot.slane %v2543_v22, 4  ;;  %v2548_v11 = vrot.slane %v2546_v7, 5  ;;  %v8160_v55 = vrot.slane %v2552_v58, 5  ;;  %v2525_v18 = vor.u32 %v2524_v19, %v2521_v15  ;;  %v6911_v22 = vld [vmem:[%s9647_s1 + $0x140] sm:$0xff]   ;;  %v8172_v58 = vld [vmem:[%s7010_s26 + $0xc] sm:$0xe] }
  0xb7   : > { %6667 = vmatpush3.bf16.msra.mxu0 %v6904_v5  ;;  %v6912_v5 = vld [vmem:[%s9647_s1 + $0x180] sm:$0xff]   ;;  %v2535_v35 = vor.u32 %v2534_v1, %v8145_v14  ;;  %v2558_v54 = vrot.slane %v2556_v53, 4  ;;  %v2562_v47 = vshll.u32 %v8143_v51, 16  ;;  %v5671_v15 = vcombine.low %v2411_v21, %v2421_v57 }
  0xb8   : > { %6668 = vmatprep.subr.bf16.mxu0 %v6908_v52  ;;  %v2549_v7 = vor.u32 %v2548_v11, %v2545_v37  ;;  %v5672_v19 = vcombine.low %v2435_v9, %v2445_v13  ;;  %v8183_v1 = vrot.slane %v2501_v63, 4  ;;  %v8185_v11 = vrot.slane %v2511_v29, 4  ;;  %v6898_v9 = vld [vmem:[%s7010_s26 + $0x78] sm:$0xff]   ;;  %v6901_v37 = vld [vmem:[%s7010_s26 + $0x84] sm:$0xff]  }
  0xb9   : > { %6589 = vmatmul.mubr.bf16.gmra.mxu0 %v5669_v50  ;;  %6619 = vmatpush3.bf16.msra.mxu1 %v6903_v49  ;;  %v8180_v49 = vld [vmem:[%s9647_s1 + $0x238] sm:$0xff]   ;;  %v2559_v50 = vor.u32 %v2558_v54, %v8160_v55  ;;  %v8194_v53 = vrot.slane %v2535_v35, 4  ;;  %v8196_v21 = vrot.slane %v2538_v60, 5  ;;  %v8202_v63 = vrot.slane %v2562_v47, 5  ;;  %v5689_v60 = vld [vmem:[%s7010_s26 + $0x30] sm:$0xe] }
  0xba   : > { %6592 = vmatprep.mubr.bf16.mxu0 %v5670_v33  ;;  %6620 = vmatprep.subr.bf16.mxu1 %v6907_v24  ;;  %v8190_v33 = vld [vmem:[%s9647_s1 + $0x1f8] sm:$0xff]   ;;  %v8200_v13 = vrot.slane %v2549_v7, 4  ;;  %v2957_v29 = vrot.slane %v7622_v42, 5  ;;  %v9719_v35 = vld [vmem:[#allocation2_spill] sm:$0xff]  ;;  %v5705_v47 = vrot.slane %v5689_v60, 9  ;;  %v9722_v60 = vld [vmem:[#allocation3_spill] sm:$0xff] }
  0xbb   : > { %6669 = vmatpush3.bf16.msra.mxu0 %v6908_v52  ;;  %v8192_v52 = vrot.slane %v2525_v18, 4  ;;  %v9720_v7 = vld [vmem:[#allocation5_spill] sm:$0xff]  ;;  %v2978_v18 = vrot.slane %v7705_v0, 5  ;;  %v2493_v0 = vsel %vm7041_vm2, %v8097_v30, %v8078_v6  ;;  %v2992_v30 = vrot.slane %v7796_v41, 5 }
  0xbc   : > { %6541 = vmatmul.mubr.bf16.gmra.mxu1 %v6894_v2  ;;  %6670 = vmatprep.subr.bf16.mxu0 %v6912_v5  ;;  %v2975_v57 = vrot.slane %v9720_v7, 5  ;;  %v9721_v2 = vld [vmem:[#allocation4_spill] sm:$0xff] }
  0xbd   : > { %6544 = vmatprep.mubr.bf16.mxu1 %v6897_v38  ;;  %6621 = vmatpush3.bf16.msra.mxu1 %v6907_v24  ;;  %v8207_v24 = vrot.slane %v2559_v50, 4  ;;  %v2961_v38 = vrot.slane %v7639_v61, 5  ;;  %v2459_v50 = vsel %vm7041_vm2, %v8067_v12, %v7999_v36  ;;  %v2982_v54 = vrot.slane %v9721_v2, 5  ;;  %v5690_v12 = vld [vmem:[%s7010_s26 + $0x3c] sm:$0xe] }
  0xbe   : > { %6622 = vmatprep.subr.bf16.mxu1 %v6911_v22  ;;  %v8229_v7 = vsel %vm7352_vm5, %v5705_v47, %v2975_v57  ;;  %v2977_v36 = vrot.slane %v2975_v57, 4  ;;  %v5706_v2 = vrot.slane %v5690_v12, 9  ;;  %v6902_v47 = vld [vmem:[%s7010_s26 + $0x90] sm:$0xff]   ;;  %v2999_v12 = vrot.slane %v7816_v34, 5 }
  0xbf   : > { %6671 = vmatpush3.bf16.msra.mxu0 %v6912_v5  ;;  %v2469_v5 = vsel %vm7041_vm2, %v8076_v28, %v8069_v59  ;;  %v2483_v59 = vsel %vm7041_vm2, %v8095_v40, %v8042_v20  ;;  %v2984_v28 = vrot.slane %v2982_v54, 4  ;;  %v2989_v20 = vrot.slane %v7755_v39, 5 }
  0xc0   : > { %6752 = vmatprep.subr.bf16.mxu0 %v8180_v49  ;;  %v8243_v57 = vsel %vm7352_vm5, %v2977_v36, %v2978_v18  ;;  %v5674_v18 = vcombine.low %v2483_v59, %v2493_v0  ;;  %v8258_v39 = vsel %vm7352_vm5, %v5706_v2, %v2982_v54  ;;  %v2507_v36 = vsel %vm7041_vm2, %v8183_v1, %v8113_v46  ;;  %v5692_v54 = vld [vmem:[%s7010_s26 + $0x54] sm:$0xe] }
  0xc1   : > { %6593 = vmatmul.mubr.bf16.gmra.mxu0 %v5671_v15  ;;  %6623 = vmatpush3.bf16.msra.mxu1 %v6911_v22  ;;  %v2971_v15 = vrot.slane %v9722_v60, 5  ;;  %v2985_v22 = vrot.slane %v7734_v45, 5  ;;  %v5737_v40 = vcombine.low %v8229_v7, %v8243_v57  ;;  %v5691_v45 = vld [vmem:[%s7010_s26 + $0x48] sm:$0xe]  ;;  %v2517_v46 = vsel %vm7041_vm2, %v8185_v11, %v8155_v25  ;;  %v6922_v7 = vld [vmem:[%s7010_s26 + $0x54] sm:$0xff]  }
  0xc2   : > { %6596 = vmatprep.mubr.bf16.mxu0 %v5672_v19  ;;  %6704 = vmatprep.subr.bf16.mxu1 %v8190_v33  ;;  %v5673_v19 = vcombine.low %v2459_v50, %v2469_v5  ;;  %v2991_v50 = vrot.slane %v2989_v20, 4  ;;  %v6905_v5 = vld [vmem:[%s7010_s26 + $0x9c] sm:$0xff]   ;;  %v3003_v2 = vrot.slane %v7820_v31, 5  ;;  %v2531_v34 = vsel %vm7041_vm2, %v8192_v52, %v8145_v14 }
  0xc3   : > { %v8250_v6 = vsel %vm7352_vm5, %v2984_v28, %v2985_v22  ;;  %v5708_v28 = vrot.slane %v5692_v54, 9  ;;  %v5693_v22 = vld [vmem:[%s7010_s26 + $0x60] sm:$0xe]  ;;  %v3006_v25 = vrot.slane %v7868_v16, 5  ;;  %v2541_v11 = vsel %vm7041_vm2, %v8194_v53, %v8196_v21 }
  0xc4   : > { %6545 = vmatmul.mubr.bf16.gmra.mxu1 %v6898_v9  ;;  %v2996_v9 = vrot.slane %v7790_v10, 5  ;;  %v5738_v41 = vcombine.low %v8258_v39, %v8250_v6  ;;  %v8273_v59 = vsel %vm7352_vm5, %v2991_v50, %v2992_v30  ;;  %v3010_v14 = vrot.slane %v7860_v8, 5  ;;  %v5919_v6 = vld [vmem:[%s7010_s26 + $0x24] sm:$0xe] }
  0xc5   : > { %6548 = vmatprep.mubr.bf16.mxu1 %v6901_v37  ;;  %v5707_v37 = vrot.slane %v5691_v45, 9  ;;  %v3005_v45 = vrot.slane %v3003_v2, 4  ;;  %v5675_v52 = vcombine.low %v2507_v36, %v2517_v46  ;;  %v3013_v8 = vrot.slane %v7881_v62, 5  ;;  %v5695_v36 = vld [vmem:[%s7010_s26 + $0x78] sm:$0xe] }
  0xc6   : > { %v2998_v0 = vrot.slane %v2996_v9, 4  ;;  %v8300_v31 = vsel %vm7352_vm5, %v5708_v28, %v2996_v9  ;;  %v3012_v9 = vrot.slane %v3010_v14, 4  ;;  %v3017_v54 = vrot.slane %v7885_v44, 5 }
  0xc7   : > { %v8269_v10 = vsel %vm7352_vm5, %v5707_v37, %v2989_v20  ;;  %v5709_v20 = vrot.slane %v5693_v22, 9  ;;  %v8312_v53 = vsel %vm7352_vm5, %v3005_v45, %v3006_v25  ;;  %v5676_v37 = vcombine.low %v2531_v34, %v2541_v11 }
  0xc8   : > { %v8328_v46 = vsel %vm7352_vm5, %v3012_v9, %v3013_v8  ;;  %v5711_v62 = vrot.slane %v5695_v36, 9  ;;  %v3024_v28 = vrot.slane %v7928_v3, 5  ;;  %v3019_v44 = vrot.slane %v3017_v54, 4  ;;  %v6913_v8 = vld [vmem:[%s7010_s26 + $0x18] sm:$0xff]   ;;  %v9727_v36 = vld [vmem:[#allocation8_spill] sm:$0xff] }
  0xc9   : > { %6597 = vmatmul.mubr.bf16.gmra.mxu0 %v5673_v19  ;;  %v8291_v19 = vsel %vm7352_vm5, %v2998_v0, %v2999_v12  ;;  %v8307_v16 = vsel %vm7352_vm5, %v5709_v20, %v3003_v2  ;;  %v3020_v0 = vrot.slane %v7892_v26, 5  ;;  %v3027_v26 = vrot.slane %v7954_v17, 5  ;;  %v5696_v20 = vld [vmem:[%s7010_s26 + $0x84] sm:$0xe] }
  0xca   : > { %6600 = vmatprep.mubr.bf16.mxu0 %v5674_v18  ;;  %v5694_v18 = vld [vmem:[%s7010_s26 + $0x6c] sm:$0xe]  ;;  %v2555_v2 = vsel %vm7041_vm2, %v8200_v13, %v8160_v55  ;;  %v8340_v34 = vsel %vm7352_vm5, %v5711_v62, %v3017_v54  ;;  %v2565_v3 = vsel %vm7041_vm2, %v8207_v24, %v8202_v63  ;;  %v5712_v25 = vrot.slane %v5696_v20, 9  ;;  %v9725_v63 = vld [vmem:[#allocation6_spill] sm:$0xff] }
  0xcb   : > { %v5710_v21 = vrot.slane %v5694_v18, 9  ;;  %v8349_v17 = vsel %vm7352_vm5, %v3019_v44, %v3020_v0  ;;  %v3026_v11 = vrot.slane %v3024_v28, 4  ;;  %v9723_v45 = vrot.slane %v7548_v32, 5  ;;  %v5697_v18 = vld [vmem:[%s7010_s26 + $0x90] sm:$0xe]  ;;  %v6925_v62 = vld [vmem:[%s7010_s26 + $0x60] sm:$0xff]  }
  0xcc   : > { %6549 = vmatmul.mubr.bf16.gmra.mxu1 %v6902_v47  ;;  %v6906_v47 = vld [vmem:[%s7010_s26 + $0xa8] sm:$0xff]   ;;  %v9724_v55 = vrot.slane %v8172_v58, 9  ;;  %v3031_v24 = vrot.slane %v9725_v63, 5  ;;  %v8366_v32 = vsel %vm7352_vm5, %v5712_v25, %v3024_v28  ;;  %v3038_v54 = vrot.slane %v9727_v36, 5 }
  0xcd   : > { %6552 = vmatprep.mubr.bf16.mxu1 %v6905_v5  ;;  %v6909_v5 = vld [vmem:[%s7010_s26 + $0xb4] sm:$0xff]   ;;  %v8324_v12 = vsel %vm7352_vm5, %v5710_v21, %v3010_v14  ;;  %v5688_v14 = vld [vmem:[%s7010_s26 + $0x24] sm:$0xe]  ;;  %v9726_v21 = vld [vmem:[#allocation7_spill] sm:$0xff]  ;;  %v8370_v58 = vsel %vm7352_vm5, %v3026_v11, %v3027_v26  ;;  %v5677_v0 = vcombine.low %v2555_v2, %v2565_v3  ;;  %v2958_v28 = vsel %vm7352_vm5, %v8150_v43, %v2957_v29 }
  0xce   : > { %v2955_v13 = vsel %vm7352_vm5, %v9724_v55, %v9723_v45  ;;  %v3034_v9 = vrot.slane %v9726_v21, 5  ;;  %v3033_v44 = vrot.slane %v3031_v24, 4  ;;  %v6910_v45 = vld [vmem:[%s7010_s26 + $0xc0] sm:$0xff]   ;;  %v2963_v26 = vrot.slane %v2961_v38, 4  ;;  %v5698_v2 = vld [vmem:[%s7010_s26 + $0x9c] sm:$0xe] }
  0xcf   : > { %v3040_v3 = vrot.slane %v3038_v54, 4  ;;  %v5714_v11 = vrot.slane %v5698_v2, 9  ;;  %v9729_v55 = vld [vmem:[#allocation10_spill] sm:$0xff]  ;;  %v5699_v63 = vld [vmem:[%s7010_s26 + $0xa8] sm:$0xe]  ;;  %v5734_v21 = vcombine.low %v2955_v13, %v2958_v28  ;;  %v9733_v28 = vrot.slane %v8175_v48, 9 }
  0xd0   : > { %v8391_v25 = vsel %vm7352_vm5, %v3033_v44, %v3034_v9  ;;  %v3045_v42 = vrot.slane %v9729_v55, 5  ;;  %v8514_v43 = vld [vmem:[%s7010_s26 + $0x34] sm:$0xf] }
  0xd1   : > { %6601 = vmatmul.mubr.bf16.gmra.mxu0 %v5675_v52  ;;  %v8404_v9 = vsel %vm7352_vm5, %v5714_v11, %v3038_v54  ;;  %v5700_v54 = vld [vmem:[%s7010_s26 + $0xb4] sm:$0xe]  ;;  %v3879_v39 = vshll.u32 %v8514_v43, 16 }
  0xd2   : > { %6604 = vmatprep.mubr.bf16.mxu0 %v5676_v37  ;;  %v5713_v37 = vrot.slane %v5697_v18, 9  ;;  %v5704_v18 = vrot.slane %v5688_v14, 9  ;;  %v3047_v36 = vrot.slane %v3045_v42, 4  ;;  %v9730_v14 = vrot.slane %v9719_v35, 5 }
  0xd3   : > { %v5716_v55 = vrot.slane %v5700_v54, 9 }
  0xd4   : > { %6553 = vmatmul.mubr.bf16.gmra.mxu1 %v6906_v47  ;;  %v9728_v47 = vld [vmem:[#allocation9_spill] sm:$0xff]  ;;  %v2970_v44 = vrot.slane %v9730_v14, 4  ;;  %v9735_v61 = vmov %v9730_v14  ;;  %v3062_v14 = vrot.slane %v8143_v51, 5  ;;  %v5836_v51 = vld [vmem:[%s7010_s26 + $0x30] sm:$0xf] }
  0xd5   : > { %6556 = vmatprep.mubr.bf16.mxu1 %v6909_v5  ;;  %v3041_v20 = vrot.slane %v9728_v47, 5  ;;  %v8386_v5 = vsel %vm7352_vm5, %v5713_v37, %v3031_v24  ;;  %v3048_v24 = vrot.slane %v8062_v4, 5  ;;  %v5715_v37 = vrot.slane %v5699_v63, 9 }
  0xd6   : > { %v9734_v63 = vrot.slane %v7653_v23, 5  ;;  %v2969_v48 = vsel %vm7352_vm5, %v5704_v18, %v9735_v61  ;;  %v2972_v23 = vsel %vm7352_vm5, %v2970_v44, %v2971_v15  ;;  %v8484_v61 = vld [vmem:[%s7010_s26 + $0x28] sm:$0xf] }
  0xd7   : > { %v8398_v29 = vsel %vm7352_vm5, %v3040_v3, %v3041_v20  ;;  %v9731_v20 = vld [vmem:[#allocation11_spill] sm:$0xff]  ;;  %v8413_v4 = vsel %vm7352_vm5, %v5715_v37, %v3045_v42  ;;  %v8417_v13 = vsel %vm7352_vm5, %v3047_v36, %v3048_v24  ;;  %v2962_v3 = vsel %vm7352_vm5, %v9733_v28, %v2961_v38  ;;  %v5701_v37 = vld [vmem:[%s7010_s26 + $0xc0] sm:$0xe]  ;;  %v9736_v38 = vld [vmem:[#allocation13_spill] sm:$0xff] }
  0xd8   : > { %v3052_v2 = vrot.slane %v9731_v20, 5  ;;  %v2965_v24 = vsel %vm7352_vm5, %v2963_v26, %v9734_v63  ;;  %v3059_v36 = vrot.slane %v9736_v38, 5  ;;  %v5717_v18 = vrot.slane %v5701_v37, 9  ;;  %v6920_v20 = vld [vmem:[%s9647_s1 + $0x230] sm:$0xff]   ;;  %v5833_v63 = vld [vmem:[%s7010_s26 + $0x24] sm:$0xf] }
  0xd9   : > { %6605 = vmatmul.mubr.bf16.gmra.mxu0 %v5677_v0  ;;  %v5735_v15 = vcombine.low %v2962_v3, %v2965_v24  ;;  %v5736_v54 = vcombine.low %v2969_v48, %v2972_v23  ;;  %v6919_v28 = vld [vmem:[%s9647_s1 + $0x1f0] sm:$0xff]   ;;  %v6918_v48 = vld [vmem:[%s7010_s26 + $0x3c] sm:$0xff]   ;;  %v3846_v37 = vshrl.u32 %v5833_v63, 16  ;;  %v6921_v38 = vld [vmem:[%s7010_s26 + $0x48] sm:$0xff]   ;;  %v3855_v23 = vshll.u32 %v8484_v61, 16 }
  0xda   : > { %6672 = vmatprep.mubr.bf16.mxu0 %v6913_v8  ;;  %v9732_v8 = vld [vmem:[#allocation12_spill] sm:$0xff]  ;;  %v3054_v42 = vrot.slane %v3052_v2, 4  ;;  %v8448_v26 = vsel %vm7352_vm5, %v5716_v55, %v3052_v2  ;;  %v3061_v60 = vrot.slane %v3059_v36, 4  ;;  %v8461_v44 = vsel %vm7352_vm5, %v5717_v18, %v3059_v36  ;;  %v5830_v2 = vld [vmem:[%s7010_s26 + $0x18] sm:$0xf]  ;;  %v6924_v55 = vld [vmem:[%s9647_s1 + $0x228] sm:$0xff]  }
  0xdb   : > { %v3055_v0 = vrot.slane %v9732_v8, 5  ;;  %v3825_v24 = vshll.u32 %v5830_v2, 16  ;;  %v6923_v36 = vld [vmem:[%s9647_s1 + $0x1e8] sm:$0xff]   ;;  %v5832_v18 = vld [vmem:[%s7010_s26 + $0x20] sm:$0x1]  ;;  %v3848_v11 = vrot.slane %v3846_v37, 4 }
  0xdc   : > { %6557 = vmatmul.mubr.bf16.gmra.mxu1 %v6910_v45  ;;  %v6914_v45 = vld [vmem:[%s7010_s26 + $0x24] sm:$0xff]   ;;  %v8466_v8 = vsel %vm7352_vm5, %v3061_v60, %v3062_v14  ;;  %v3849_v14 = vshll.u32 %v5833_v63, 16  ;;  %v8504_v63 = vld [vmem:[%s7010_s26 + $0x2c] sm:$0x1]  ;;  %v3870_v37 = vshrl.u32 %v5836_v51, 16 }
  0xdd   : > { %6624 = vmatprep.mubr.bf16.mxu1 %v5734_v21  ;;  %v6917_v21 = vld [vmem:[%s7010_s26 + $0x30] sm:$0xff]   ;;  %v8452_v35 = vsel %vm7352_vm5, %v3054_v42, %v3055_v0  ;;  %v8469_v0 = vld [vmem:[%s7010_s26 + $0x1c] sm:$0xf]  ;;  %v3822_v42 = vshrl.u32 %v5830_v2, 16 }
  0xde   : > { %v4593_v3 = vrot.slane %v8469_v0, 5  ;;  %v3851_v47 = vrot.slane %v3849_v14, 5 }
  0xdf   : > { %v3824_v60 = vrot.slane %v3822_v42, 4  ;;  %v6927_v42 = vld [vmem:[%s9647_s1 + $0x1e0] sm:$0xff]  }
  0xe1   : > { %6673 = vmatmul.mubr.bf16.vlgmr.msra.gmra.mxu0 %v6914_v45  ;;  %v3835_v45 = vshrl.u32 %v8469_v0, 16 }
  0xe2   : > { %6753 = vmatpush3.bf16.msra.mxu0 %v8180_v49  ;;  %6676 = vmatprep.mubr.bf16.mxu0 %v6917_v21  ;;  %v3831_v49 = vshll.u32 %v8469_v0, 16  ;;  %v3859_v21 = vshrl.u32 %v8484_v61, 16 }
  0xe3   : > { %6754 = vmatprep.subr.bf16.mxu0 %v6920_v20 }
  0xe4   : > { %6625 = vmatmul.mubr.bf16.vlgmr.msra.gmra.mxu1 %v5735_v15  ;;  %v5918_v15 = vld [vmem:[%s7010_s26 + $0x18] sm:$0xe]  ;;  %v8499_v2 = vrot.slane %v3831_v49, 5  ;;  %v3841_v49 = vshll.u32 %v5832_v18, 16  ;;  %v3861_v0 = vrot.slane %v3859_v21, 4 }
  0xe5   : > { %6705 = vmatpush3.bf16.msra.mxu1 %v8190_v33  ;;  %6628 = vmatprep.mubr.bf16.mxu1 %v5736_v54  ;;  %v6928_v33 = vld [vmem:[%s9647_s1 + $0x220] sm:$0xff]   ;;  %v3837_v54 = vrot.slane %v3835_v45, 4  ;;  %v8511_v45 = vrot.slane %v3855_v23, 5  ;;  %v6932_v23 = vld [vmem:[%s9647_s1 + $0x218] sm:$0xff]  }
  0xe6   : > { %6706 = vmatprep.subr.bf16.mxu1 %v6919_v28  ;;  %6755 = vmatpush3.bf16.msra.mxu0 %v6920_v20  ;;  %v3827_v20 = vrot.slane %v3825_v24, 5 }
  0xe7   : > { %6756 = vmatprep.subr.bf16.mxu0 %v6924_v55  ;;  %v3838_v21 = vor.u32 %v3837_v54, %v8499_v2  ;;  %v3862_v54 = vor.u32 %v3861_v0, %v8511_v45 }
  0xe9   : > { %6677 = vmatmul.mubr.bf16.gmra.mxu0 %v6918_v48  ;;  %6707 = vmatpush3.bf16.msra.mxu1 %v6919_v28  ;;  %v5934_v48 = vrot.slane %v5918_v15, 9  ;;  %v4596_v28 = vrot.slane %v5832_v18, 5  ;;  %v4595_v18 = vrot.slane %v4593_v3, 4  ;;  %v3865_v15 = vshll.u32 %v8504_v63, 16 }
  0xea   : > { %6680 = vmatprep.mubr.bf16.mxu0 %v6921_v38  ;;  %6708 = vmatprep.subr.bf16.mxu1 %v6923_v36  ;;  %v3873_v38 = vshll.u32 %v5836_v51, 16  ;;  %v4600_v51 = vrot.slane %v8484_v61, 5  ;;  %v3883_v61 = vshrl.u32 %v8514_v43, 16 }
  0xeb   : > { %6757 = vmatpush3.bf16.msra.mxu0 %v6924_v55  ;;  %v3828_v55 = vor.u32 %v3827_v20, %v3824_v60  ;;  %v6931_v60 = vld [vmem:[%s9647_s1 + $0x1d8] sm:$0xff]   ;;  %v8537_v20 = vrot.slane %v3841_v49, 5  ;;  %v6936_v49 = vld [vmem:[%s9647_s1 + $0x210] sm:$0xff]  }
  0xec   : > { %v8509_v24 = vpop.f32.mrf.mxu0  ;;  %6629 = vmatmul.mubr.bf16.gmra.mxu1 %v5737_v40  ;;  %6758 = vmatprep.subr.bf16.mxu0 %v6928_v33  ;;  %v8519_v14 = vpop.f32.mrf.mxu1  ;;  %v3852_v40 = vor.u32 %v3851_v47, %v3848_v11  ;;  %v3872_v47 = vrot.slane %v3870_v37, 4  ;;  %v3875_v11 = vrot.slane %v3873_v38, 5  ;;  %v8564_v37 = vld [vmem:[%s7010_s26 + $0x40] sm:$0xf]  ;;  %v4602_v50 = vrot.slane %v4600_v51, 4 }
  0xed   : > { %9737 = vst [vmem:[#allocation2_spill] sm:$0xff] %v8519_v14  ;;  %6632 = vmatprep.mubr.bf16.mxu1 %v5738_v41  ;;  %6709 = vmatpush3.bf16.msra.mxu1 %v6923_v36  ;;  %v8544_v41 = vsel %vm7352_vm5, %v5934_v48, %v4593_v3  ;;  %v5839_v36 = vld [vmem:[%s7010_s26 + $0x3c] sm:$0xf]  ;;  %v8553_v0 = vrot.slane %v3828_v55, 4  ;;  %v8559_v3 = vsel %vm7352_vm5, %v4595_v18, %v4596_v28  ;;  %v8561_v48 = vrot.slane %v3865_v15, 5  ;;  %v6935_v55 = vld [vmem:[%s9647_s1 + $0x1d0] sm:$0xff]  }
  0xee   : > { %v8530_v57 = vpop.f32.mrf.mxu0  ;;  %6710 = vmatprep.subr.bf16.mxu1 %v6927_v42  ;;  %v8548_v52 = vpop.f32.mrf.mxu1  ;;  %v8571_v22 = vrot.slane %v3852_v40, 4  ;;  %v4603_v28 = vrot.slane %v8504_v63, 5  ;;  %v3863_v18 = vrot.slane %v3862_v54, 4  ;;  %v8575_v15 = vld [vmem:[%s7010_s26 + $0x38] sm:$0x1]  ;;  %v3897_v30 = vshll.u32 %v5839_v36, 16 }
  0xef   : > { %6759 = vmatpush3.bf16.msra.mxu0 %v6928_v33  ;;  %9738 = vst [vmem:[#allocation5_spill] sm:$0xff] %v8548_v52  ;;  %v8555_v33 = vrot.slane %v3838_v21, 4  ;;  %v5935_v21 = vrot.slane %v5919_v6, 9  ;;  %v3876_v1 = vor.u32 %v3875_v11, %v3872_v47  ;;  %v8579_v52 = vrot.slane %v3883_v61, 4  ;;  %v5920_v40 = vld [vmem:[%s7010_s26 + $0x30] sm:$0xe] }
  0xf0   : > { %6760 = vmatprep.subr.bf16.mxu0 %v6932_v23  ;;  %v8566_v38 = vpop.f32.mrf.mxu0  ;;  %v3903_v6 = vshll.u32 %v8564_v37, 16  ;;  %v3907_v63 = vshrl.u32 %v8564_v37, 16  ;;  %v8587_v54 = vpop.f32.mrf.mxu1  ;;  %v9741_v11 = vcombine.low %v8300_v31, %v8291_v19  ;;  %v6926_v61 = vld [vmem:[%s7010_s26 + $0x6c] sm:$0xff]   ;;  %v8620_v19 = vsel %vm7352_vm5, %v4602_v50, %v4603_v28  ;;  %v8638_v28 = vld [vmem:[%s7010_s26 + $0x44] sm:$0x1] }
  0xf1   : > { %6681 = vmatmul.mubr.bf16.gmra.mxu0 %v6922_v7  ;;  %6711 = vmatpush3.bf16.msra.mxu1 %v6927_v42  ;;  %v8577_v7 = vrot.slane %v3879_v39, 5  ;;  %v3894_v42 = vshrl.u32 %v5839_v36, 16  ;;  %9740 = vst [vmem:[#allocation4_spill] sm:$0xff] %v8587_v54  ;;  %v3834_v39 = vsel %vm7041_vm2, %v8553_v0, %v8499_v2  ;;  %v3844_v47 = vsel %vm7041_vm2, %v8555_v33, %v8537_v20  ;;  %v6929_v36 = vld [vmem:[%s7010_s26 + $0x78] sm:$0xff]   ;;  %v8631_v33 = vld [vmem:[%s7010_s26 + $0x4c] sm:$0xf] }
  0xf2   : > { %6684 = vmatprep.mubr.bf16.mxu0 %v6925_v62  ;;  %6712 = vmatprep.subr.bf16.mxu1 %v6931_v60  ;;  %v9739_v62 = vcombine.low %v8269_v10, %v8273_v59  ;;  %v4607_v59 = vrot.slane %v8514_v43, 5  ;;  %v3858_v2 = vsel %vm7041_vm2, %v8571_v22, %v8511_v45  ;;  %v8616_v20 = vsel %vm7352_vm5, %v5935_v21, %v4600_v51  ;;  %v5842_v43 = vld [vmem:[%s7010_s26 + $0x48] sm:$0xf]  ;;  %v8642_v54 = vpop.f32.mrf.mxu1  ;;  %v5921_v14 = vld [vmem:[%s7010_s26 + $0x3c] sm:$0xe] }
  0xf3   : > { %6761 = vmatpush3.bf16.msra.mxu0 %v6932_v23  ;;  %v6940_v23 = vld [vmem:[%s9647_s1 + $0x208] sm:$0xff]   ;;  %v3889_v31 = vshll.u32 %v8575_v15, 16  ;;  %v3868_v22 = vsel %vm7041_vm2, %v3863_v18, %v8561_v48  ;;  %v5936_v45 = vrot.slane %v5920_v40, 9  ;;  %v3896_v0 = vrot.slane %v3894_v42, 4  ;;  %9743 = vst [vmem:[#allocation6_spill] sm:$0xff] %v8642_v54  ;;  %v6943_v42 = vld [vmem:[%s9647_s1 + $0x1c0] sm:$0xff]  }
  0xf4   : > { %6633 = vmatmul.mubr.bf16.gmra.mxu1 %v9739_v62  ;;  %6762 = vmatprep.subr.bf16.mxu0 %v6936_v49  ;;  %v8608_v62 = vpop.f32.mrf.mxu0  ;;  %v3899_v51 = vrot.slane %v3897_v30, 5  ;;  %v8633_v50 = vrot.slane %v3876_v1, 4  ;;  %v3886_v21 = vor.u32 %v8579_v52, %v8577_v7  ;;  %v3909_v10 = vrot.slane %v3907_v63, 4  ;;  %v6944_v30 = vld [vmem:[%s9647_s1 + $0x200] sm:$0xff]  }
  0xf5   : > { %6636 = vmatprep.mubr.bf16.mxu1 %v9741_v11  ;;  %6713 = vmatpush3.bf16.msra.mxu1 %v6931_v60  ;;  %9742 = vst [vmem:[#allocation3_spill] sm:$0xff] %v8608_v62  ;;  %v6939_v60 = vld [vmem:[%s9647_s1 + $0x1c8] sm:$0xff]   ;;  %v8640_v11 = vrot.slane %v3903_v6, 5  ;;  %v4609_v48 = vrot.slane %v4607_v59, 4  ;;  %v3918_v1 = vshrl.u32 %v5842_v43, 16  ;;  %v3921_v18 = vshll.u32 %v5842_v43, 16 }
  0xf6   : > { %6714 = vmatprep.subr.bf16.mxu1 %v6935_v55  ;;  %v8653_v40 = vcombine.low %v3834_v39, %v3844_v47  ;;  %v3931_v63 = vshrl.u32 %v8631_v33, 16  ;;  %v8661_v43 = vrot.slane %v3889_v31, 5  ;;  %v3913_v54 = vshll.u32 %v8638_v28, 16  ;;  %v5845_v39 = vld [vmem:[%s7010_s26 + $0x54] sm:$0xf]  ;;  %v6930_v6 = vld [vmem:[%s7010_s26 + $0x84] sm:$0xff]  }
  0xf7   : > { %6763 = vmatpush3.bf16.msra.mxu0 %v6936_v49  ;;  %v4610_v49 = vrot.slane %v8575_v15, 5  ;;  %v8648_v52 = vpop.f32.mrf.mxu0  ;;  %v3927_v15 = vshll.u32 %v8631_v33, 16  ;;  %v4614_v31 = vrot.slane %v8564_v37, 5  ;;  %v9747_v37 = vcombine.low %v8324_v12, %v8328_v46  ;;  %v6933_v47 = vld [vmem:[%s7010_s26 + $0x90] sm:$0xff]  }
  0xf8   : > { %6764 = vmatprep.subr.bf16.mxu0 %v6940_v23  ;;  %9744 = vst [vmem:[#allocation7_spill] sm:$0xff] %v8648_v52 }
  0xf9   : > { %6685 = vmatmul.mubr.bf16.gmra.mxu0 %v6926_v61  ;;  %6715 = vmatpush3.bf16.msra.mxu1 %v6935_v55  ;;  %v8659_v61 = vcombine.low %v3858_v2, %v3868_v22  ;;  %v3900_v55 = vor.u32 %v3899_v51, %v3896_v0  ;;  %v3910_v2 = vor.u32 %v3909_v10, %v8640_v11  ;;  %v8677_v22 = vld [vmem:[%s7010_s26 + $0x58] sm:$0xf]  ;;  %v8684_v51 = vrot.slane %v3886_v21, 4 }
  0xfa   : > { %6688 = vmatprep.mubr.bf16.mxu0 %v6929_v36  ;;  %6716 = vmatprep.subr.bf16.mxu1 %v6939_v60  ;;  %v8672_v36 = vsel %vm7352_vm5, %v5936_v45, %v4607_v59  ;;  %v9745_v0 = vcombine.low %v8307_v16, %v8312_v53  ;;  %v8688_v59 = vsel %vm7352_vm5, %v4609_v48, %v4610_v49  ;;  %v3920_v45 = vrot.slane %v3918_v1, 4  ;;  %v8695_v16 = vpop.f32.mrf.mxu0  ;;  %v5844_v1 = vld [vmem:[%s7010_s26 + $0x50] sm:$0x1] }
  0xfb   : > { %6765 = vmatpush3.bf16.msra.mxu0 %v6940_v23  ;;  %v8682_v23 = vpop.f32.mrf.mxu1  ;;  %v3923_v10 = vrot.slane %v3921_v18, 5  ;;  %9748 = vst [vmem:[#allocation9_spill] sm:$0xff] %v8695_v16  ;;  %v5937_v53 = vrot.slane %v5921_v14, 9  ;;  %v3933_v21 = vrot.slane %v3931_v63, 4  ;;  %v3901_v48 = vrot.slane %v3900_v55, 4 }
  0xfc   : > { %6637 = vmatmul.mubr.bf16.gmra.mxu1 %v9745_v0  ;;  %9746 = vst [vmem:[#allocation8_spill] sm:$0xff] %v8682_v23  ;;  %6766 = vmatprep.subr.bf16.mxu0 %v6944_v30  ;;  %v8697_v0 = vrot.slane %v3927_v15, 5  ;;  %v3942_v23 = vshrl.u32 %v5845_v39, 16  ;;  %v3915_v49 = vrot.slane %v3913_v54, 5  ;;  %v3945_v18 = vshll.u32 %v5845_v39, 16  ;;  %v8713_v39 = vpop.f32.mrf.mxu0 }
  0xfd   : > { %6640 = vmatprep.mubr.bf16.mxu1 %v9747_v37  ;;  %6717 = vmatpush3.bf16.msra.mxu1 %v6939_v60  ;;  %v3951_v52 = vshll.u32 %v8677_v22, 16  ;;  %v3911_v12 = vrot.slane %v3910_v2, 4  ;;  %v4616_v46 = vrot.slane %v4614_v31, 4  ;;  %v4617_v37 = vrot.slane %v8638_v28, 5  ;;  %v8703_v60 = vpop.f32.mrf.mxu1  ;;  %v5848_v55 = vld [vmem:[%s7010_s26 + $0x60] sm:$0xf] }
  0xfe   : > { %6718 = vmatprep.subr.bf16.mxu1 %v6943_v42  ;;  %v3955_v14 = vshrl.u32 %v8677_v22, 16  ;;  %9749 = vst [vmem:[#allocation10_spill] sm:$0xff] %v8703_v60  ;;  %v3892_v15 = vsel %vm7041_vm2, %v8684_v51, %v8661_v43  ;;  %v3924_v63 = vor.u32 %v3923_v10, %v3920_v45  ;;  %v3934_v28 = vor.u32 %v3933_v21, %v8697_v0  ;;  %v5922_v60 = vld [vmem:[%s7010_s26 + $0x48] sm:$0xe] }
  0xff   : > { %6767 = vmatpush3.bf16.msra.mxu0 %v6944_v30  ;;  %v4621_v30 = vrot.slane %v8631_v33, 5  ;;  %v3937_v2 = vshll.u32 %v5844_v1, 16  ;;  %v3944_v16 = vrot.slane %v3942_v23, 4  ;;  %v3947_v62 = vrot.slane %v3945_v18, 5  ;;  %v8738_v10 = vpop.f32.mrf.mxu1 }
 0x100   : > { %v3906_v43 = vsel %vm7041_vm2, %v3901_v48, %v8640_v11  ;;  %v8722_v33 = vsel %vm7352_vm5, %v5937_v53, %v4614_v31  ;;  %v3916_v51 = vsel %vm7041_vm2, %v3911_v12, %v3915_v49  ;;  %v8730_v23 = vsel %vm7352_vm5, %v4616_v46, %v4617_v37  ;;  %9751 = vst [vmem:[#allocation11_spill] sm:$0xff] %v8738_v10  ;;  %v8741_v49 = vld [vmem:[%s7010_s26 + $0x64] sm:$0xf]  ;;  %v6934_v12 = vld [vmem:[%s7010_s26 + $0x9c] sm:$0xff]   ;;  %v8747_v46 = vpop.f32.mrf.mxu0 }
 0x101   : > { %6689 = vmatmul.mubr.bf16.gmra.mxu0 %v6930_v6  ;;  %6719 = vmatpush3.bf16.msra.mxu1 %v6943_v42  ;;  %v8724_v6 = vrot.slane %v3951_v52, 5  ;;  %v3957_v42 = vrot.slane %v3955_v14, 4  ;;  %v3966_v45 = vshrl.u32 %v5848_v55, 16  ;;  %v3969_v11 = vshll.u32 %v5848_v55, 16  ;;  %v6937_v55 = vld [vmem:[%s7010_s26 + $0xa8] sm:$0xff]  }
 0x102   : > { %6692 = vmatprep.mubr.bf16.mxu0 %v6933_v47  ;;  %v8733_v47 = vld [vmem:[%s7010_s26 + $0x5c] sm:$0x1]  ;;  %v9750_v31 = vcombine.low %v8340_v34, %v8349_v17  ;;  %v3925_v52 = vrot.slane %v3924_v63, 4  ;;  %v5938_v53 = vrot.slane %v5922_v60, 9  ;;  %v4623_v21 = vrot.slane %v4621_v30, 4 }
 0x103   : > { %v4624_v48 = vrot.slane %v5844_v1, 5  ;;  %v9752_v18 = vcombine.low %v8366_v32, %v8370_v58  ;;  %v3935_v37 = vrot.slane %v3934_v28, 4  ;;  %v3939_v14 = vrot.slane %v3937_v2, 5  ;;  %v5923_v63 = vld [vmem:[%s7010_s26 + $0x54] sm:$0xe]  ;;  %v8765_v28 = vpop.f32.mrf.mxu1 }
 0x104   : > { %6641 = vmatmul.mubr.bf16.gmra.mxu1 %v9750_v31  ;;  %v3948_v34 = vor.u32 %v3947_v62, %v3944_v16  ;;  %v4628_v17 = vrot.slane %v8677_v22, 5  ;;  %v3958_v60 = vor.u32 %v3957_v42, %v8724_v6  ;;  %v3961_v1 = vshll.u32 %v8733_v47, 16  ;;  %9754 = vst [vmem:[#allocation12_spill] sm:$0xff] %v8765_v28  ;;  %v5924_v62 = vld [vmem:[%s7010_s26 + $0x60] sm:$0xe] }
 0x105   : > { %6644 = vmatprep.mubr.bf16.mxu1 %v9752_v18  ;;  %v3968_v31 = vrot.slane %v3966_v45, 4  ;;  %v3971_v54 = vrot.slane %v3969_v11, 5  ;;  %v9753_v32 = vsel %vm7041_vm2, %v8633_v50, %v8577_v7  ;;  %v3975_v22 = vshll.u32 %v8741_v49, 16 }
 0x106   : > { %v8759_v58 = vcombine.low %v9753_v32, %v3892_v15  ;;  %v3979_v16 = vshrl.u32 %v8741_v49, 16  ;;  %v8767_v2 = vcombine.low %v3906_v43, %v3916_v51  ;;  %v3930_v42 = vsel %vm7041_vm2, %v3925_v52, %v8697_v0  ;;  %v5851_v15 = vld [vmem:[%s7010_s26 + $0x6c] sm:$0xf]  ;;  %v8785_v32 = vld [vmem:[%s7010_s26 + $0x70] sm:$0xf] }
 0x107   : > { %v8774_v7 = vsel %vm7352_vm5, %v5938_v53, %v4621_v30  ;;  %v8778_v50 = vsel %vm7352_vm5, %v4623_v21, %v4624_v48  ;;  %v8781_v45 = vpop.f32.mrf.mxu0  ;;  %v3949_v43 = vrot.slane %v3948_v34, 4  ;;  %v5939_v51 = vrot.slane %v5923_v63, 9  ;;  %v5850_v53 = vld [vmem:[%s7010_s26 + $0x68] sm:$0x1] }
 0x108   : > { %9755 = vst [vmem:[#allocation13_spill] sm:$0xff] %v8781_v45  ;;  %v4630_v11 = vrot.slane %v4628_v17, 4  ;;  %v4631_v18 = vrot.slane %v8733_v47, 5  ;;  %v3940_v0 = vsel %vm7041_vm2, %v3935_v37, %v3939_v14  ;;  %v3959_v30 = vrot.slane %v3958_v60, 4  ;;  %v5926_v45 = vld [vmem:[%s7010_s26 + $0x78] sm:$0xe] }
 0x109   : > { %6693 = vmatmul.mubr.bf16.gmra.mxu0 %v6934_v12  ;;  %v3963_v52 = vrot.slane %v3961_v1, 5  ;;  %v3972_v21 = vor.u32 %v3971_v54, %v3968_v31  ;;  %v8790_v48 = vrot.slane %v3975_v22, 5  ;;  %v3981_v12 = vrot.slane %v3979_v16, 4  ;;  %v6938_v31 = vld [vmem:[%s7010_s26 + $0xb4] sm:$0xff]  }
 0x10a   : > { %6696 = vmatprep.mubr.bf16.mxu0 %v6937_v55  ;;  %v3990_v34 = vshrl.u32 %v5851_v15, 16  ;;  %v3993_v63 = vshll.u32 %v5851_v15, 16  ;;  %v9756_v47 = vcombine.low %v8386_v5, %v8391_v25  ;;  %v4635_v14 = vrot.slane %v8741_v49, 5  ;;  %v8807_v5 = vpop.f32.mrf.mxu0 }
 0x10b   : > { %v3999_v54 = vshll.u32 %v8785_v32, 16  ;;  %v4003_v60 = vshrl.u32 %v8785_v32, 16  ;;  %v9758_v1 = vcombine.low %v8404_v9, %v8398_v29  ;;  %9759 = vst [vmem:[#allocation15_spill] sm:$0xff] %v8807_v5  ;;  %v8809_v25 = vcombine.low %v3930_v42, %v3940_v0  ;;  %v5854_v29 = vld [vmem:[%s7010_s26 + $0x78] sm:$0xf]  ;;  %v6941_v9 = vld [vmem:[%s7010_s26 + $0xc0] sm:$0xff]  }
 0x10c   : > { %6645 = vmatmul.mubr.bf16.gmra.mxu1 %v9756_v47  ;;  %v8796_v55 = vpop.f32.mrf.mxu1  ;;  %v3954_v22 = vsel %vm7041_vm2, %v3949_v43, %v8724_v6  ;;  %v8816_v49 = vsel %vm7352_vm5, %v5939_v51, %v4628_v17  ;;  %v8820_v16 = vsel %vm7352_vm5, %v4630_v11, %v4631_v18  ;;  %v3964_v15 = vsel %vm7041_vm2, %v3959_v30, %v3963_v52  ;;  %v8833_v43 = vld [vmem:[%s7010_s26 + $0x74] sm:$0x1]  ;;  %v8890_v5 = vld [vmem:[%s7010_s26 + $0x8c] sm:$0x1] }
 0x10d   : > { %9757 = vst [vmem:[#allocation14_spill] sm:$0xff] %v8796_v55  ;;  %6648 = vmatprep.mubr.bf16.mxu1 %v9758_v1  ;;  %v8826_v47 = vrot.slane %v3972_v21, 4  ;;  %v3985_v42 = vshll.u32 %v5850_v53, 16  ;;  %v5940_v0 = vrot.slane %v5924_v62, 9  ;;  %v8829_v1 = vld [vmem:[%s7010_s26 + $0x7c] sm:$0xf]  ;;  %v3982_v6 = vor.u32 %v3981_v12, %v8790_v48  ;;  %v8839_v21 = vpop.f32.mrf.mxu0 }
 0x10e   : > { %v4638_v17 = vrot.slane %v5850_v53, 5  ;;  %v3992_v51 = vrot.slane %v3990_v34, 4  ;;  %v3995_v11 = vrot.slane %v3993_v63, 5  ;;  %v8835_v18 = vpop.f32.mrf.mxu1  ;;  %v4637_v37 = vrot.slane %v4635_v14, 4  ;;  %9761 = vst [vmem:[#allocation17_spill] sm:$0xff] %v8839_v21 }
 0x10f   : > { %9760 = vst [vmem:[#allocation16_spill] sm:$0xff] %v8835_v18  ;;  %v8837_v55 = vrot.slane %v3999_v54, 5  ;;  %v4005_v30 = vrot.slane %v4003_v60, 4  ;;  %v4014_v52 = vshrl.u32 %v5854_v29, 16  ;;  %v5925_v53 = vld [vmem:[%s7010_s26 + $0x6c] sm:$0xe]  ;;  %v8846_v18 = vcombine.low %v3954_v22, %v3964_v15 }
 0x110   : > { %v4017_v12 = vshll.u32 %v5854_v29, 16  ;;  %v4023_v34 = vshll.u32 %v8829_v1, 16  ;;  %v4027_v63 = vshrl.u32 %v8829_v1, 16  ;;  %v8848_v54 = vrot.slane %v3985_v42, 5  ;;  %v5857_v62 = vld [vmem:[%s7010_s26 + $0x84] sm:$0xf]  ;;  %v8869_v42 = vpop.f32.mrf.mxu1 }
 0x111   : > { %6697 = vmatmul.mubr.bf16.gmra.mxu0 %v6938_v31  ;;  %9762 = vst [vmem:[#allocation18_spill] sm:$0xff] %v8846_v18  ;;  %v8852_v60 = vsel %vm7352_vm5, %v5940_v0, %v4635_v14  ;;  %v4009_v31 = vshll.u32 %v8833_v43, 16  ;;  %v8860_v28 = vrot.slane %v3982_v6, 4  ;;  %v4642_v22 = vrot.slane %v8785_v32, 5  ;;  %v8864_v15 = vld [vmem:[%s7010_s26 + $0x88] sm:$0xf] }
 0x112   : > { %6700 = vmatprep.mubr.bf16.mxu0 %v6941_v9  ;;  %v3996_v9 = vor.u32 %v3995_v11, %v3992_v51  ;;  %v9763_v14 = vcombine.low %v8413_v4, %v8417_v13  ;;  %9764 = vst [vmem:[#allocation19_spill] sm:$0xff] %v8869_v42  ;;  %v6942_v0 = vld [vmem:[%s7010_s26 + $0xcc] sm:$0xff]   ;;  %v8874_v10 = vsel %vm7352_vm5, %v4637_v37, %v4638_v17  ;;  %v5941_v6 = vrot.slane %v5925_v53, 9  ;;  %v8877_v11 = vpop.f32.mrf.mxu0  ;;  %v8883_v4 = vld [vmem:[%s7010_s26 + $0x80] sm:$0x1] }
 0x113   : > { %v4006_v29 = vor.u32 %v4005_v30, %v8837_v55  ;;  %v4016_v51 = vrot.slane %v4014_v52, 4  ;;  %9765 = vst [vmem:[#allocation20_spill] sm:$0xff] %v8877_v11  ;;  %v9766_v32 = vcombine.low %v8448_v26, %v8452_v35  ;;  %v4019_v13 = vrot.slane %v4017_v12, 5 }
 0x114   : > { %6649 = vmatmul.mubr.bf16.gmra.mxu1 %v9763_v14  ;;  %v8885_v14 = vrot.slane %v4023_v34, 5  ;;  %v4029_v42 = vrot.slane %v4027_v63, 4  ;;  %v4038_v21 = vshrl.u32 %v5857_v62, 16  ;;  %v4011_v37 = vrot.slane %v4009_v31, 5 }
 0x115   : > { %6652 = vmatprep.mubr.bf16.mxu1 %v9766_v32  ;;  %v4645_v17 = vrot.slane %v8833_v43, 5  ;;  %v4041_v30 = vshll.u32 %v5857_v62, 16  ;;  %v4047_v52 = vshll.u32 %v8864_v15, 16  ;;  %v3997_v53 = vrot.slane %v3996_v9, 4  ;;  %v8893_v32 = vpop.f32.mrf.mxu1 }
 0x116   : > { %v4644_v11 = vrot.slane %v4642_v22, 4  ;;  %v4040_v26 = vrot.slane %v4038_v21, 4  ;;  %v4051_v35 = vshrl.u32 %v8864_v15, 16  ;;  %v4007_v12 = vrot.slane %v4006_v29, 4 }
 0x117   : > { %v4033_v34 = vshll.u32 %v8883_v4, 16  ;;  %v4043_v63 = vrot.slane %v4041_v30, 5  ;;  %v8896_v31 = vrot.slane %v4047_v52, 5  ;;  %v4020_v62 = vor.u32 %v4019_v13, %v4016_v51  ;;  %v5927_v52 = vld [vmem:[%s7010_s26 + $0x84] sm:$0xe] }
 0x118   : > { %v8898_v43 = vpop.f32.mrf.mxu0  ;;  %v4030_v9 = vor.u32 %v4029_v42, %v8885_v14  ;;  %v4649_v21 = vrot.slane %v8829_v1, 5  ;;  %v4053_v18 = vrot.slane %v4051_v35, 4  ;;  %v9767_v29 = vcombine.low %v8544_v41, %v8559_v3 }
 0x119   : > { %6701 = vmatmul.mubr.bf16.gmra.mxu0 %v6942_v0  ;;  %v3988_v30 = vsel %vm7041_vm2, %v8860_v28, %v8848_v54  ;;  %v8914_v51 = vsel %vm7352_vm5, %v5941_v6, %v4642_v22  ;;  %v4057_v42 = vshll.u32 %v8890_v5, 16  ;;  %v4002_v41 = vsel %vm7041_vm2, %v3997_v53, %v8837_v55  ;;  %v5860_v54 = vld [vmem:[%s7010_s26 + $0x90] sm:$0xf] }
 0x11a   : > { %6768 = vmatprep.mubr.bf16.mxu0 %v9767_v29  ;;  %v8917_v1 = vpop.f32.mrf.mxu0  ;;  %v4044_v3 = vor.u32 %v4043_v63, %v4040_v26  ;;  %v4054_v13 = vor.u32 %v4053_v18, %v8896_v31  ;;  %v4656_v28 = vrot.slane %v8864_v15, 5  ;;  %v9769_v22 = vcombine.low %v8461_v44, %v8466_v8 }
 0x11b   : > { %v4012_v6 = vsel %vm7041_vm2, %v4007_v12, %v4011_v37  ;;  %v8935_v55 = vsel %vm7352_vm5, %v4644_v11, %v4645_v17  ;;  %v4035_v53 = vrot.slane %v4033_v34, 5  ;;  %v5942_v18 = vrot.slane %v5926_v45, 9  ;;  %v8944_v12 = vld [vmem:[%s7010_s26 + $0x94] sm:$0xf] }
 0x11c   : > { %v8926_v35 = vpop.f32.mrf.mxu1  ;;  %6653 = vmatmul.mubr.bf16.gmra.mxu1 %v9769_v22  ;;  %v8937_v26 = vpop.f32.mrf.mxu0  ;;  %v4021_v15 = vrot.slane %v4020_v62, 4  ;;  %v4031_v63 = vrot.slane %v4030_v9, 4  ;;  %v4651_v29 = vrot.slane %v4649_v21, 4  ;;  %v4652_v0 = vrot.slane %v8883_v4, 5 }
 0x11d   : > { %9768 = vst [vmem:[#allocation21_spill] sm:$0xff] %v8926_v35  ;;  %6720 = vmatprep.mubr.bf16.mxu1 %v8653_v40  ;;  %v4059_v8 = vrot.slane %v4057_v42, 5  ;;  %v5943_v37 = vrot.slane %v5927_v52, 9  ;;  %v4062_v11 = vshrl.u32 %v5860_v54, 16  ;;  %v4065_v17 = vshll.u32 %v5860_v54, 16 }
 0x11e   : > { %v8941_v44 = vpop.f32.mrf.mxu1  ;;  %v8946_v34 = vpop.f32.mrf.mxu0  ;;  %v4045_v45 = vrot.slane %v4044_v3, 4  ;;  %v4055_v22 = vrot.slane %v4054_v13, 4  ;;  %v4658_v40 = vrot.slane %v4656_v28, 4  ;;  %v4659_v62 = vrot.slane %v8890_v5, 5  ;;  %v8967_v54 = vld [vmem:[%s7010_s26 + $0x98] sm:$0x1] }
 0x11f   : > { %9770 = vst [vmem:[#allocation22_spill] sm:$0xff] %v8941_v44  ;;  %v9772_v4 = vsel %vm7041_vm2, %v8826_v47, %v8790_v48  ;;  %v8958_v52 = vcombine.low %v4002_v41, %v4012_v6  ;;  %v8964_v13 = vsel %vm7352_vm5, %v5942_v18, %v4649_v21  ;;  %v4026_v48 = vsel %vm7041_vm2, %v4021_v15, %v8885_v14  ;;  %v5863_v41 = vld [vmem:[%s7010_s26 + $0x9c] sm:$0xf]  ;;  %v8984_v6 = vld [vmem:[%s7010_s26 + $0xa0] sm:$0xf] }
 0x120   : > { %v8949_v9 = vpop.f32.mrf.mxu1  ;;  %v8956_v42 = vcombine.low %v9772_v4, %v3988_v30  ;;  %v6482_v5 = vpop.f32.mrf.mxu0  ;;  %v4036_v47 = vsel %vm7041_vm2, %v4031_v63, %v4035_v53  ;;  %v8979_v30 = vsel %vm7352_vm5, %v4651_v29, %v4652_v0  ;;  %v4071_v21 = vshll.u32 %v8944_v12, 16  ;;  %v9071_v35 = vld [vmem:[%s7010_s26 + $0xb0] sm:$0x1] }
 0x121   : > { %9771 = vst [vmem:[#allocation23_spill] sm:$0xff] %v8949_v9  ;;  %v9773_v9 = vcombine.low %v8616_v20, %v8620_v19  ;;  %v9775_v20 = vcombine.low %v8672_v36, %v8688_v59  ;;  %v8993_v19 = vsel %vm7352_vm5, %v5943_v37, %v4656_v28  ;;  %v4064_v14 = vrot.slane %v4062_v11, 4  ;;  %v9008_v37 = vld [vmem:[%s7010_s26 + $0x90] sm:$0xe] }
 0x122   : > { %v8986_v18 = vpop.f32.mrf.mxu1  ;;  %v4067_v53 = vrot.slane %v4065_v17, 5  ;;  %v4075_v0 = vshrl.u32 %v8944_v12, 16  ;;  %v1588_v15 = vpop.f32.mrf.mxu0  ;;  %v4050_v63 = vsel %vm7041_vm2, %v4045_v45, %v8896_v31  ;;  %v4060_v29 = vsel %vm7041_vm2, %v4055_v22, %v4059_v8 }
 0x123   : > { %6769 = vmatmul.mubr.bf16.vlgmr.msra.gmra.mxu0 %v9773_v9  ;;  %9774 = vst [vmem:[#allocation24_spill] sm:$0xff] %v8986_v18  ;;  %v9003_v36 = vsel %vm7352_vm5, %v4658_v40, %v4659_v62  ;;  %v4081_v59 = vshll.u32 %v8967_v54, 16  ;;  %v4086_v11 = vshrl.u32 %v5863_v41, 16  ;;  %v4089_v17 = vshll.u32 %v5863_v41, 16 }
 0x124   : > { %6772 = vmatprep.mubr.bf16.mxu0 %v9775_v20  ;;  %v6434_v28 = vpop.f32.mrf.mxu1  ;;  %6721 = vmatmul.mubr.bf16.vlgmr.msra.gmra.mxu1 %v8659_v61  ;;  %v4095_v9 = vshll.u32 %v8984_v6, 16  ;;  %v4099_v31 = vshrl.u32 %v8984_v6, 16  ;;  %v6483_v45 = vpop.f32.mrf.mxu0  ;;  %v9014_v22 = vcombine.low %v4026_v48, %v4036_v47  ;;  %v9018_v40 = vrot.slane %v4071_v21, 5  ;;  %v9032_v61 = vld [vmem:[%s7010_s26 + $0xa4] sm:$0x1] }
 0x125   : > { %v1144_v8 = vadd.f32 %v6434_v28, %v8509_v24  ;;  %6724 = vmatprep.mubr.bf16.mxu1 %v8759_v58  ;;  %v9020_v4 = vcombine.low %v4050_v63, %v4060_v29  ;;  %v4068_v20 = vor.u32 %v4067_v53, %v4064_v14  ;;  %v4077_v24 = vrot.slane %v4075_v0, 4  ;;  %v5866_v28 = vld [vmem:[%s7010_s26 + $0xa8] sm:$0xf]  ;;  %v9037_v14 = vld [vmem:[%s7010_s26 + $0xac] sm:$0xf] }
 0x126   : > { %v1135_v62 = vpop.f32.mrf.mxu1  ;;  %v1591_v48 = vpop.f32.mrf.mxu0  ;;  %v9028_v47 = vrot.slane %v4081_v59, 5  ;;  %v5944_v21 = vrot.slane %v9008_v37, 9  ;;  %v4088_v29 = vrot.slane %v4086_v11, 4  ;;  %v4091_v18 = vrot.slane %v4089_v17, 5 }
 0x127   : > { %v9025_v3 = vadd.f32 %v6482_v5, %v1144_v8  ;;  %v1136_v58 = vadd.f32 %v1135_v62, %v8530_v57  ;;  %v9034_v44 = vrot.slane %v4095_v9, 5  ;;  %v4101_v41 = vrot.slane %v4099_v31, 4  ;;  %v9781_v62 = vld [vmem:[#allocation3_spill] sm:$0xff] }
 0x128   : > { %v6435_v63 = vpop.f32.mrf.mxu1  ;;  %v6486_v5 = vpop.f32.mrf.mxu0  ;;  %v9778_v0 = vcombine.low %v8722_v33, %v8730_v23  ;;  %v4110_v59 = vshrl.u32 %v5866_v28, 16  ;;  %v4113_v37 = vshll.u32 %v5866_v28, 16  ;;  %v9779_v11 = vcombine.low %v8774_v7, %v8778_v50 }
 0x129   : > { %9776 = vst [vmem:[#allocation25_spill] sm:$0xff] %v9025_v3  ;;  %v9039_v53 = vadd.f32 %v1588_v15, %v1136_v58  ;;  %v1147_v57 = vadd.f32 %v6435_v63, %v8566_v38  ;;  %v9048_v17 = vrot.slane %v4068_v20, 4  ;;  %v4078_v15 = vor.u32 %v4077_v24, %v9018_v40  ;;  %v5929_v58 = vld [vmem:[%s7010_s26 + $0x9c] sm:$0xe] }
 0x12a   : > { %v1138_v8 = vpop.f32.mrf.mxu1  ;;  %v4663_v9 = vrot.slane %v8944_v12, 5  ;;  %v4105_v38 = vshll.u32 %v9032_v61, 16  ;;  %v1604_v23 = vpop.f32.mrf.mxu0  ;;  %v4666_v28 = vrot.slane %v8967_v54, 5  ;;  %v4119_v63 = vshll.u32 %v9037_v14, 16 }
 0x12b   : > { %9777 = vst [vmem:[#allocation26_spill] sm:$0xff] %v9039_v53  ;;  %6773 = vmatmul.mubr.bf16.gmra.mxu0 %v9778_v0  ;;  %v9053_v31 = vadd.f32 %v6483_v45, %v1147_v57  ;;  %v1139_v33 = vadd.f32 %v1138_v8, %v9781_v62  ;;  %v4092_v50 = vor.u32 %v4091_v18, %v4088_v29  ;;  %v4670_v12 = vrot.slane %v8984_v6, 5  ;;  %v9782_v57 = vld [vmem:[#allocation7_spill] sm:$0xff]  ;;  %v9783_v6 = vld [vmem:[#allocation9_spill] sm:$0xff] }
 0x12c   : > { %6776 = vmatprep.mubr.bf16.mxu0 %v9779_v11  ;;  %v6438_v7 = vpop.f32.mrf.mxu1  ;;  %6725 = vmatmul.mubr.bf16.gmra.mxu1 %v8767_v2  ;;  %v4102_v20 = vor.u32 %v4101_v41, %v9034_v44  ;;  %v4123_v45 = vshrl.u32 %v9037_v14, 16  ;;  %v6487_v8 = vpop.f32.mrf.mxu0  ;;  %v4112_v54 = vrot.slane %v4110_v59, 4  ;;  %v4115_v11 = vrot.slane %v4113_v37, 5 }
 0x12d   : > { %9780 = vst [vmem:[#allocation27_spill] sm:$0xff] %v9053_v31  ;;  %v9063_v24 = vadd.f32 %v1591_v48, %v1139_v33  ;;  %v1160_v0 = vadd.f32 %v6438_v7, %v9782_v57  ;;  %6728 = vmatprep.mubr.bf16.mxu1 %v8809_v25  ;;  %v4079_v31 = vrot.slane %v4078_v15, 4  ;;  %v4665_v2 = vrot.slane %v4663_v9, 4 }
 0x12e   : > { %v1151_v62 = vpop.f32.mrf.mxu1  ;;  %v4107_v18 = vrot.slane %v4105_v38, 5  ;;  %v5945_v29 = vrot.slane %v5929_v58, 9  ;;  %v1607_v3 = vpop.f32.mrf.mxu0  ;;  %v9073_v48 = vrot.slane %v4119_v63, 5  ;;  %v4125_v33 = vrot.slane %v4123_v45, 4 }
 0x12f   : > { %v9067_v41 = vadd.f32 %v6486_v5, %v1160_v0  ;;  %v1152_v53 = vadd.f32 %v1151_v62, %v9783_v6  ;;  %v4093_v57 = vrot.slane %v4092_v50, 4  ;;  %v4103_v25 = vrot.slane %v4102_v20, 4 }
 0x130   : > { %v6439_v7 = vpop.f32.mrf.mxu1  ;;  %v4672_v59 = vrot.slane %v4670_v12, 4  ;;  %v4673_v37 = vrot.slane %v9032_v61, 5  ;;  %v6490_v38 = vpop.f32.mrf.mxu0  ;;  %v9784_v58 = vcombine.low %v8816_v49, %v8820_v16  ;;  %v9084_v63 = vsel %vm7352_vm5, %v5944_v21, %v4663_v9  ;;  %v5930_v21 = vld [vmem:[%s7010_s26 + $0xa8] sm:$0xe] }
 0x131   : > { %v9076_v15 = vadd.f32 %v1604_v23, %v1152_v53  ;;  %v1163_v5 = vadd.f32 %v6439_v7, %v8713_v39  ;;  %v4116_v50 = vor.u32 %v4115_v11, %v4112_v54  ;;  %v9785_v20 = vcombine.low %v8852_v60, %v8874_v10 }
 0x132   : > { %v1154_v45 = vpop.f32.mrf.mxu1  ;;  %v4074_v39 = vsel %vm7041_vm2, %v9048_v17, %v9018_v40  ;;  %v4084_v49 = vsel %vm7041_vm2, %v4079_v31, %v9028_v47  ;;  %v9098_v16 = vsel %vm7352_vm5, %v4665_v2, %v4666_v28  ;;  %v4129_v61 = vshll.u32 %v9071_v35, 16  ;;  %v1620_v60 = vpop.f32.mrf.mxu0  ;;  %v5869_v17 = vld [vmem:[%s7010_s26 + $0xb4] sm:$0xf]  ;;  %v9786_v47 = vld [vmem:[#allocation18_spill] sm:$0xff]  ;;  %v9127_v2 = vld [vmem:[%s7010_s26 + $0xb8] sm:$0xf] }
 0x133   : > { %6777 = vmatmul.mubr.bf16.gmra.mxu0 %v9784_v58  ;;  %v9102_v53 = vadd.f32 %v6487_v8, %v1163_v5  ;;  %v1155_v10 = vadd.f32 %v1154_v45, %v8747_v46  ;;  %v4126_v9 = vor.u32 %v4125_v33, %v9073_v48  ;;  %v4677_v40 = vrot.slane %v9037_v14, 5  ;;  %v9787_v8 = vld [vmem:[#allocation13_spill] sm:$0xff] }
 0x134   : > { %6780 = vmatprep.mubr.bf16.mxu0 %v9785_v20  ;;  %v6442_v23 = vpop.f32.mrf.mxu1  ;;  %6729 = vmatmul.mubr.bf16.gmra.mxu1 %v9786_v47  ;;  %v4098_v31 = vsel %vm7041_vm2, %v4093_v57, %v9034_v44  ;;  %v4108_v28 = vsel %vm7041_vm2, %v4103_v25, %v4107_v18  ;;  %v9116_v46 = vsel %vm7352_vm5, %v5945_v29, %v4670_v12  ;;  %v6491_v11 = vpop.f32.mrf.mxu0  ;;  %v4117_v62 = vrot.slane %v4116_v50, 4  ;;  %v9788_v57 = vld [vmem:[#allocation15_spill] sm:$0xff]  ;;  %v9792_v47 = vld [vmem:[#allocation20_spill] sm:$0xff] }
 0x135   : > { %v9120_v0 = vsel %vm7352_vm5, %v4672_v59, %v4673_v37  ;;  %v9122_v14 = vadd.f32 %v1607_v3, %v1155_v10  ;;  %v1176_v54 = vadd.f32 %v6442_v23, %v9787_v8  ;;  %6732 = vmatprep.mubr.bf16.mxu1 %v8956_v42  ;;  %v5946_v44 = vrot.slane %v5930_v21, 9 }
 0x136   : > { %v1167_v18 = vpop.f32.mrf.mxu1  ;;  %v4131_v6 = vrot.slane %v4129_v61, 5  ;;  %v4680_v12 = vrot.slane %v9071_v35, 5  ;;  %v4134_v29 = vshrl.u32 %v5869_v17, 16  ;;  %v4137_v33 = vshll.u32 %v5869_v17, 16  ;;  %v1623_v25 = vpop.f32.mrf.mxu0 }
 0x137   : > { %v9130_v7 = vadd.f32 %v6490_v38, %v1176_v54  ;;  %v1168_v3 = vadd.f32 %v1167_v18, %v9788_v57  ;;  %v4127_v59 = vrot.slane %v4126_v9, 4  ;;  %v4679_v37 = vrot.slane %v4677_v40, 4  ;;  %v9789_v38 = vld [vmem:[#allocation17_spill] sm:$0xff] }
 0x138   : > { %v6443_v42 = vpop.f32.mrf.mxu1  ;;  %v9133_v5 = vcombine.low %v4074_v39, %v4084_v49  ;;  %v5976_v58 = vcombine.low %v9084_v63, %v9098_v16  ;;  %v9137_v50 = vcombine.low %v4098_v31, %v4108_v28  ;;  %v4143_v35 = vshll.u32 %v9127_v2, 16  ;;  %v6494_v61 = vpop.f32.mrf.mxu0  ;;  %v5872_v49 = vld [vmem:[%s7010_s26 + $0xc0] sm:$0xf]  ;;  %v9151_v16 = vld [vmem:[%s7010_s26 + $0xc4] sm:$0xf] }
 0x139   : > { %v9140_v45 = vadd.f32 %v1620_v60, %v1168_v3  ;;  %v1179_v20 = vadd.f32 %v6443_v42, %v9789_v38  ;;  %v9790_v21 = vcombine.low %v8914_v51, %v8935_v55  ;;  %v5977_v39 = vcombine.low %v9116_v46, %v9120_v0  ;;  %v9797_v46 = vld [vmem:[#allocation6_spill] sm:$0xff] }
 0x13a   : > { %v4147_v63 = vshrl.u32 %v9127_v2, 16  ;;  %v1170_v10 = vpop.f32.mrf.mxu1  ;;  %v9791_v60 = vcombine.low %v8964_v13, %v8979_v30  ;;  %v4122_v51 = vsel %vm7041_vm2, %v4117_v62, %v9073_v48  ;;  %v9161_v55 = vsel %vm7352_vm5, %v5946_v44, %v4677_v40  ;;  %v1636_v28 = vpop.f32.mrf.mxu0  ;;  %v9173_v30 = vld [vmem:[%s7010_s26 + $0xbc] sm:$0x1]  ;;  %v5931_v48 = vld [vmem:[%s7010_s26 + $0xb4] sm:$0xe] }
 0x13b   : > { %6781 = vmatmul.mubr.bf16.gmra.mxu0 %v9790_v21  ;;  %v4136_v9 = vrot.slane %v4134_v29, 4  ;;  %v4139_v17 = vrot.slane %v4137_v33, 5  ;;  %v9163_v23 = vadd.f32 %v6491_v11, %v1179_v20  ;;  %v1171_v31 = vadd.f32 %v1170_v10, %v9792_v47  ;;  %v9195_v20 = vld [vmem:[%s7010_s26 + $0xc8] sm:$0x1] }
 0x13c   : > { %6784 = vmatprep.mubr.bf16.mxu0 %v9791_v60  ;;  %v4132_v8 = vsel %vm7041_vm2, %v4127_v59, %v4131_v6  ;;  %v9170_v13 = vsel %vm7352_vm5, %v4679_v37, %v4680_v12  ;;  %v6446_v54 = vpop.f32.mrf.mxu1  ;;  %6733 = vmatmul.mubr.bf16.gmra.mxu1 %v8958_v52  ;;  %v9177_v40 = vrot.slane %v4143_v35, 5  ;;  %v4158_v11 = vshrl.u32 %v5872_v49, 16  ;;  %v6495_v29 = vpop.f32.mrf.mxu0 }
 0x13d   : > { %v4161_v62 = vshll.u32 %v5872_v49, 16  ;;  %v4167_v44 = vshll.u32 %v9151_v16, 16  ;;  %v9180_v18 = vadd.f32 %v1623_v25, %v1171_v31  ;;  %v1192_v6 = vadd.f32 %v6446_v54, %v8898_v43  ;;  %6736 = vmatprep.mubr.bf16.mxu1 %v9014_v22 }
 0x13e   : > { %v4149_v12 = vrot.slane %v4147_v63, 4  ;;  %v4171_v33 = vshrl.u32 %v9151_v16, 16  ;;  %v1183_v57 = vpop.f32.mrf.mxu1  ;;  %v4140_v3 = vor.u32 %v4139_v17, %v4136_v9  ;;  %v4153_v52 = vshll.u32 %v9173_v30, 16  ;;  %v1639_v43 = vpop.f32.mrf.mxu0  ;;  %v5875_v9 = vld [vmem:[%s7010_s26 + $0xcc] sm:$0xf] }
 0x13f   : > { %v5947_v59 = vrot.slane %v5931_v48, 9  ;;  %v4684_v37 = vrot.slane %v9127_v2, 5  ;;  %v9187_v42 = vadd.f32 %v6494_v61, %v1192_v6  ;;  %v1184_v25 = vadd.f32 %v1183_v57, %v8917_v1  ;;  %v5932_v48 = vld [vmem:[%s7010_s26 + $0xc0] sm:$0xe] }
 0x140   : > { %v9190_v35 = vcombine.low %v4122_v51, %v4132_v8  ;;  %v5978_v22 = vcombine.low %v9161_v55, %v9170_v13  ;;  %v6447_v38 = vpop.f32.mrf.mxu1  ;;  %v4160_v21 = vrot.slane %v4158_v11, 4  ;;  %v4163_v63 = vrot.slane %v4161_v62, 5  ;;  %v6498_v10 = vpop.f32.mrf.mxu0  ;;  %v9217_v8 = vld [vmem:[%s7010_s26 + $0xd0] sm:$0xf] }
 0x141   : > { %v9197_v49 = vrot.slane %v4167_v44, 5  ;;  %v4173_v2 = vrot.slane %v4171_v33, 4  ;;  %v9199_v61 = vadd.f32 %v1636_v28, %v1184_v25  ;;  %v1195_v1 = vadd.f32 %v6447_v38, %v8937_v26 }
 0x142   : > { %v9793_v60 = vcombine.low %v8993_v19, %v9003_v36  ;;  %v4150_v51 = vor.u32 %v4149_v12, %v9177_v40  ;;  %v4687_v55 = vrot.slane %v9173_v30, 5  ;;  %v1186_v17 = vpop.f32.mrf.mxu1  ;;  %v9208_v47 = vrot.slane %v4140_v3, 4  ;;  %v1652_v13 = vpop.f32.mrf.mxu0 }
 0x143   : > { %v9210_v31 = vrot.slane %v4153_v52, 5  ;;  %v9214_v26 = vsel %vm7352_vm5, %v5947_v59, %v4684_v37  ;;  %v4686_v28 = vrot.slane %v4684_v37, 4  ;;  %v9219_v19 = vadd.f32 %v6495_v29, %v1195_v1  ;;  %v9794_v29 = vld [vmem:[#allocation2_spill] sm:$0xff] }
 0x144   : > { %6785 = vmatmul.mubr.bf16.gmra.mxu0 %v9793_v60  ;;  %v1187_v36 = vadd.f32 %v1186_v17, %v8946_v34  ;;  %v4177_v30 = vshll.u32 %v9195_v20, 16  ;;  %v6450_v54 = vpop.f32.mrf.mxu1  ;;  %6737 = vmatmul.mubr.bf16.gmra.mxu1 %v9020_v4  ;;  %v4164_v11 = vor.u32 %v4163_v63, %v4160_v21  ;;  %v4174_v62 = vor.u32 %v4173_v2, %v9197_v49  ;;  %v6499_v57 = vpop.f32.mrf.mxu0 }
 0x145   : > { %6788 = vmatprep.mubr.bf16.mxu0 %v5976_v58  ;;  %v4691_v58 = vrot.slane %v9151_v16, 5  ;;  %v4182_v44 = vshrl.u32 %v5875_v9, 16  ;;  %v4185_v6 = vshll.u32 %v5875_v9, 16  ;;  %v1208_v33 = vadd.f32 %v6450_v54, %v9794_v29  ;;  %6740 = vmatprep.mubr.bf16.mxu1 %v9133_v5 }
 0x146   : > { %v9227_v12 = vadd.f32 %v1639_v43, %v1187_v36  ;;  %v4191_v34 = vshll.u32 %v9217_v8, 16  ;;  %v4195_v3 = vshrl.u32 %v9217_v8, 16  ;;  %v1199_v16 = vpop.f32.mrf.mxu1  ;;  %v4151_v52 = vrot.slane %v4150_v51, 4  ;;  %v9795_v43 = vld [vmem:[#allocation5_spill] sm:$0xff]  ;;  %v1655_v21 = vpop.f32.mrf.mxu0  ;;  %v9796_v36 = vld [vmem:[#allocation4_spill] sm:$0xff] }
 0x147   : > { %v4688_v4 = vsel %vm7352_vm5, %v4686_v28, %v4687_v55  ;;  %v5948_v59 = vrot.slane %v5932_v48, 9  ;;  %v4694_v37 = vrot.slane %v9195_v20, 5  ;;  %v9236_v25 = vadd.f32 %v6498_v10, %v1208_v33  ;;  %v5877_v20 = vld [vmem:[%s7010_s26 + $0xd4] sm:$0x1] }
 0x148   : > { %v1200_v38 = vadd.f32 %v1199_v16, %v9795_v43  ;;  %v4179_v63 = vrot.slane %v4177_v30, 5  ;;  %v4693_v5 = vrot.slane %v4691_v58, 4  ;;  %v6451_v2 = vpop.f32.mrf.mxu1  ;;  %v4165_v1 = vrot.slane %v4164_v11, 4 }
 0x149   : > { %v4175_v60 = vrot.slane %v4174_v62, 4  ;;  %v4184_v9 = vrot.slane %v4182_v44, 4  ;;  %v4187_v17 = vrot.slane %v4185_v6, 5  ;;  %v1211_v55 = vadd.f32 %v6451_v2, %v9796_v36  ;;  %v6502_v28 = vpop.f32.mrf.mxu0  ;;  %v5933_v6 = vld [vmem:[%s7010_s26 + $0xcc] sm:$0xe]  ;;  %s6024_s26 = sshll.u32 %s9871_s16, 7 }
 0x14a   : > { %v9239_v51 = vadd.f32 %v1652_v13, %v1200_v38  ;;  %v9246_v10 = vrot.slane %v4191_v34, 5  ;;  %v4197_v30 = vrot.slane %v4195_v3, 4  ;;  %v1202_v48 = vpop.f32.mrf.mxu1  ;;  %v4146_v13 = vsel %vm7041_vm2, %v9208_v47, %v9177_v40  ;;  %s9553_s29 = scalar_lea.vmem %s9648_s2, %s6024_s26 }
 0x14b   : > { %v4156_v54 = vsel %vm7041_vm2, %v4151_v52, %v9210_v31  ;;  %v4698_v11 = vrot.slane %v9217_v8, 5  ;;  %v9256_v62 = vadd.f32 %v6499_v57, %v1211_v55  ;;  %v1203_v0 = vadd.f32 %v1202_v48, %v9797_v46  ;;  %v9798_v57 = vld [vmem:[#allocation8_spill] sm:$0xff] }
 0x14c   : > { %6789 = vmatmul.mubr.bf16.gmra.mxu0 %v5977_v39  ;;  %v1668_v39 = vpop.f32.mrf.mxu0  ;;  %v4692_v44 = vsel %vm7352_vm5, %v5948_v59, %v4691_v58  ;;  %v6454_v29 = vpop.f32.mrf.mxu1  ;;  %6741 = vmatmul.mubr.bf16.gmra.mxu1 %v9137_v50  ;;  %v5979_v40 = vcombine.low %v9214_v26, %v4688_v4  ;;  %v4170_v47 = vsel %vm7041_vm2, %v4165_v1, %v9197_v49  ;;  %v4201_v8 = vshll.u32 %v5877_v20, 16  ;;  %v9801_v48 = vld [vmem:[#allocation12_spill] sm:$0xff] }
 0x14d   : > { %6792 = vmatprep.mubr.bf16.mxu0 %v5978_v22  ;;  %v4695_v22 = vsel %vm7352_vm5, %v4693_v5, %v4694_v37  ;;  %v4188_v31 = vor.u32 %v4187_v17, %v4184_v9  ;;  %v9269_v33 = vadd.f32 %v1655_v21, %v1203_v0  ;;  %v1224_v34 = vadd.f32 %v6454_v29, %v9798_v57  ;;  %v9799_v37 = vld [vmem:[#allocation10_spill] sm:$0xff]  ;;  %v9800_v9 = vld [vmem:[#allocation11_spill] sm:$0xff] }
 0x14e   : > { %v6503_v58 = vpop.f32.mrf.mxu0  ;;  %6744 = vmatprep.mubr.bf16.mxu1 %v9190_v35  ;;  %v4180_v3 = vsel %vm7041_vm2, %v4175_v60, %v4179_v63  ;;  %v4198_v50 = vor.u32 %v4197_v30, %v9246_v10  ;;  %v1215_v16 = vpop.f32.mrf.mxu1  ;;  %v5980_v26 = vcombine.low %v4692_v44, %v4695_v22  ;;  %v5949_v52 = vrot.slane %v5933_v6, 9  ;;  %v9802_v44 = vld [vmem:[#allocation14_spill] sm:$0xff] }
 0x14f   : > { %v4700_v4 = vrot.slane %v4698_v11, 4  ;;  %v4701_v59 = vrot.slane %v5877_v20, 5  ;;  %v9276_v49 = vadd.f32 %v6502_v28, %v1224_v34  ;;  %v1216_v43 = vadd.f32 %v1215_v16, %v9799_v37  ;;  %v9805_v37 = vld [vmem:[#allocation21_spill] sm:$0xff] }
 0x150   : > { %v1671_v38 = vpop.f32.mrf.mxu0  ;;  %v6455_v21 = vpop.f32.mrf.mxu1  ;;  %v5907_v5 = vcombine.low %v4146_v13, %v4156_v54  ;;  %v5908_v2 = vcombine.low %v4170_v47, %v4180_v3  ;;  %v4189_v1 = vrot.slane %v4188_v31, 4  ;;  %v4199_v17 = vrot.slane %v4198_v50, 4  ;;  %v9803_v47 = vld [vmem:[#allocation16_spill] sm:$0xff] }
 0x151   : > { %v9279_v35 = vadd.f32 %v1668_v39, %v1216_v43  ;;  %v1227_v63 = vadd.f32 %v6455_v21, %v9800_v9  ;;  %v4203_v36 = vrot.slane %v4201_v8, 5  ;;  %v4699_v28 = vsel %vm7352_vm5, %v5949_v52, %v4698_v11 }
 0x152   : > { %v6506_v60 = vpop.f32.mrf.mxu0  ;;  %v1218_v55 = vpop.f32.mrf.mxu1  ;;  %v4702_v20 = vsel %vm7352_vm5, %v4700_v4, %v4701_v59  ;;  %v4194_v0 = vsel %vm7041_vm2, %v4189_v1, %v9246_v10  ;;  %v9804_v10 = vld [vmem:[#allocation19_spill] sm:$0xff] }
 0x153   : > { %v9286_v30 = vadd.f32 %v6503_v58, %v1227_v63  ;;  %v1219_v13 = vadd.f32 %v1218_v55, %v9801_v48  ;;  %v4204_v56 = vsel %vm7041_vm2, %v4199_v17, %v4203_v36  ;;  %v5981_v11 = vcombine.low %v4699_v28, %v4702_v20  ;;  %v9807_v17 = vld [vmem:[#allocation23_spill] sm:$0xff]  ;;  %v9808_v20 = vld [vmem:[#allocation24_spill] sm:$0xff] }
 0x154   : > { %6793 = vmatmul.mubr.bf16.gmra.mxu0 %v5979_v40  ;;  %v1684_v54 = vpop.f32.mrf.mxu0  ;;  %v6458_v46 = vpop.f32.mrf.mxu1  ;;  %6745 = vmatmul.mubr.bf16.gmra.mxu1 %v5907_v5  ;;  %v5909_v34 = vcombine.low %v4194_v0, %v4204_v56  ;;  %v9809_v0 = vld [vmem:[#allocation25_spill] sm:$0xff] }
 0x155   : > { %6796 = vmatprep.mubr.bf16.mxu0 %v5980_v26  ;;  %v9292_v39 = vadd.f32 %v1671_v38, %v1219_v13  ;;  %v1240_v22 = vadd.f32 %v6458_v46, %v9802_v44  ;;  %6748 = vmatprep.mubr.bf16.mxu1 %v5908_v2  ;;  %v9806_v2 = vld [vmem:[#allocation22_spill] sm:$0xff] }
 0x156   : > { %v6507_v6 = vpop.f32.mrf.mxu0  ;;  %v1231_v29 = vpop.f32.mrf.mxu1 }
 0x157   : > { %v9297_v40 = vadd.f32 %v6506_v60, %v1240_v22  ;;  %v1232_v31 = vadd.f32 %v1231_v29, %v9803_v47 }
 0x158   : > { %v1687_v8 = vpop.f32.mrf.mxu0  ;;  %v6459_v57 = vpop.f32.mrf.mxu1 }
 0x159   : > { %v9300_v58 = vadd.f32 %v1684_v54, %v1232_v31  ;;  %v1243_v3 = vadd.f32 %v6459_v57, %v9804_v10  ;;  %v9811_v57 = vld [vmem:[#allocation27_spill] sm:$0xff] }
 0x15a   : > { %v6510_v50 = vpop.f32.mrf.mxu0  ;;  %v1234_v16 = vpop.f32.mrf.mxu1 }
 0x15b   : > { %v9303_v26 = vadd.f32 %v6507_v6, %v1243_v3  ;;  %v1235_v27 = vadd.f32 %v1234_v16, %v8893_v32 }
 0x15c   : > { %6797 = vmatmul.mubr.bf16.gmra.mxu0 %v5981_v11  ;;  %v1700_v52 = vpop.f32.mrf.mxu0  ;;  %v6462_v4 = vpop.f32.mrf.mxu1  ;;  %6749 = vmatmul.mubr.bf16.gmra.mxu1 %v5909_v34  ;;  %v9810_v11 = vld [vmem:[#allocation26_spill] sm:$0xff] }
 0x15d   : > { %v9306_v59 = vadd.f32 %v1687_v8, %v1235_v27  ;;  %v1256_v43 = vadd.f32 %v6462_v4, %v9805_v37 }
 0x15e   : > { %v6511_v38 = vpop.f32.mrf.mxu0  ;;  %v1247_v21 = vpop.f32.mrf.mxu1 }
 0x15f   : > { %v9309_v5 = vadd.f32 %v6510_v50, %v1256_v43  ;;  %v1248_v1 = vadd.f32 %v1247_v21, %v9806_v2 }
 0x160   : > { %v1703_v9 = vpop.f32.mrf.mxu0  ;;  %v6463_v63 = vpop.f32.mrf.mxu1 }
 0x161   : > { %v9312_v60 = vadd.f32 %v1700_v52, %v1248_v1  ;;  %v1259_v36 = vadd.f32 %v6463_v63, %v9807_v17 }
 0x162   : > { %v6578_v32 = vpop.f32.mrf.mxu0  ;;  %v1250_v55 = vpop.f32.mrf.mxu1 }
 0x163   : > { %v9315_v28 = vadd.f32 %v6511_v38, %v1259_v36  ;;  %v1251_v48 = vadd.f32 %v1250_v55, %v9808_v20 }
 0x164   : > { %v2729_v13 = vpop.f32.mrf.mxu0  ;;  %v6530_v54 = vpop.f32.mrf.mxu1 }
 0x165   : > { %v9318_v46 = vadd.f32 %v1703_v9, %v1251_v48  ;;  %v2104_v44 = vadd.f32 %v6530_v54, %v9809_v0 }
 0x166   : > { %v6579_v22 = vpop.f32.mrf.mxu0  ;;  %v1975_v6 = vpop.f32.mrf.mxu1 }
 0x167   : > { %v9321_v56 = vadd.f32 %v6578_v32, %v2104_v44  ;;  %v2102_v29 = vadd.f32 %v1975_v6, %v9810_v11 }
 0x168   : > { %v2732_v47 = vpop.f32.mrf.mxu0  ;;  %v6531_v31 = vpop.f32.mrf.mxu1 }
 0x169   : > { %v9324_v8 = vadd.f32 %v2729_v13, %v2102_v29  ;;  %v2105_v34 = vadd.f32 %v6531_v31, %v9811_v57 }
 0x16a   : > { %v6582_v10 = vpop.f32.mrf.mxu0  ;;  %v1978_v3 = vpop.f32.mrf.mxu1 }
 0x16b   : > { %v9327_v50 = vadd.f32 %v6579_v22, %v2105_v34  ;;  %v2103_v16 = vadd.f32 %v1978_v3, %v9063_v24 }
 0x16c   : > { %v2745_v27 = vpop.f32.mrf.mxu0  ;;  %v6534_v52 = vpop.f32.mrf.mxu1 }
 0x16d   : > { %v9330_v4 = vadd.f32 %v2732_v47, %v2103_v16  ;;  %v2108_v37 = vadd.f32 %v6534_v52, %v9067_v41 }
 0x16e   : > { %v6583_v43 = vpop.f32.mrf.mxu0  ;;  %v1991_v38 = vpop.f32.mrf.mxu1 }
 0x16f   : > { %v9333_v21 = vadd.f32 %v6582_v10, %v2108_v37  ;;  %v2106_v2 = vadd.f32 %v1991_v38, %v9076_v15 }
 0x170   : > { %v2748_v1 = vpop.f32.mrf.mxu0  ;;  %v6535_v9 = vpop.f32.mrf.mxu1 }
 0x171   : > { %v9336_v63 = vadd.f32 %v2745_v27, %v2106_v2  ;;  %v2109_v17 = vadd.f32 %v6535_v9, %v9102_v53 }
 0x172   : > { %v6586_v36 = vpop.f32.mrf.mxu0  ;;  %v1994_v24 = vpop.f32.mrf.mxu1 }
 0x173   : > { %v9339_v32 = vadd.f32 %v6583_v43, %v2109_v17  ;;  %v2107_v55 = vadd.f32 %v1994_v24, %v9122_v14 }
 0x174   : > { %v2761_v20 = vpop.f32.mrf.mxu0  ;;  %v6538_v41 = vpop.f32.mrf.mxu1 }
 0x175   : > { %v9342_v48 = vadd.f32 %v2748_v1, %v2107_v55  ;;  %v2112_v13 = vadd.f32 %v6538_v41, %v9130_v7 }
 0x176   : > { %v6587_v54 = vpop.f32.mrf.mxu0  ;;  %v2007_v15 = vpop.f32.mrf.mxu1 }
 0x177   : > { %v9345_v0 = vadd.f32 %v6586_v36, %v2112_v13  ;;  %v2110_v44 = vadd.f32 %v2007_v15, %v9140_v45 }
 0x178   : > { %v2764_v22 = vpop.f32.mrf.mxu0  ;;  %v6539_v53 = vpop.f32.mrf.mxu1 }
 0x179   : > { %v9348_v6 = vadd.f32 %v2761_v20, %v2110_v44  ;;  %v2113_v11 = vadd.f32 %v6539_v53, %v9163_v23 }
 0x17a   : > { %v6590_v29 = vpop.f32.mrf.mxu0  ;;  %v2010_v14 = vpop.f32.mrf.mxu1 }
 0x17b   : > { %v9351_v47 = vadd.f32 %v6587_v54, %v2113_v11  ;;  %v2111_v31 = vadd.f32 %v2010_v14, %v9180_v18 }
 0x17c   : > { %v2777_v57 = vpop.f32.mrf.mxu0  ;;  %v6542_v7 = vpop.f32.mrf.mxu1 }
 0x17d   : > { %v9354_v34 = vadd.f32 %v2764_v22, %v2111_v31  ;;  %v2116_v10 = vadd.f32 %v6542_v7, %v9187_v42 }
 0x17e   : > { %v6591_v3 = vpop.f32.mrf.mxu0  ;;  %v2023_v45 = vpop.f32.mrf.mxu1 }
 0x17f   : > { %v9357_v16 = vadd.f32 %v6590_v29, %v2116_v10  ;;  %v2114_v27 = vadd.f32 %v2023_v45, %v9199_v61 }
 0x180   : > { %v2780_v52 = vpop.f32.mrf.mxu0  ;;  %v6543_v23 = vpop.f32.mrf.mxu1 }
 0x181   : > { %v9360_v37 = vadd.f32 %v2777_v57, %v2114_v27  ;;  %v2117_v43 = vadd.f32 %v6543_v23, %v9219_v19 }
 0x182   : > { %v6594_v38 = vpop.f32.mrf.mxu0  ;;  %v2026_v18 = vpop.f32.mrf.mxu1 }
 0x183   : > { %v9363_v2 = vadd.f32 %v6591_v3, %v2117_v43  ;;  %v2115_v1 = vadd.f32 %v2026_v18, %v9227_v12 }
 0x184   : > { %v2793_v9 = vpop.f32.mrf.mxu0  ;;  %v6546_v42 = vpop.f32.mrf.mxu1 }
 0x185   : > { %v9366_v17 = vadd.f32 %v2780_v52, %v2115_v1  ;;  %v2120_v36 = vadd.f32 %v6546_v42, %v9236_v25 }
 0x186   : > { %v6595_v24 = vpop.f32.mrf.mxu0  ;;  %v2039_v61 = vpop.f32.mrf.mxu1 }
 0x187   : > { %v9369_v55 = vadd.f32 %v6594_v38, %v2120_v36  ;;  %v2118_v20 = vadd.f32 %v2039_v61, %v9239_v51 }
 0x188   : > { %v2796_v41 = vpop.f32.mrf.mxu0  ;;  %v6547_v19 = vpop.f32.mrf.mxu1 }
 0x189   : > { %v9372_v13 = vadd.f32 %v2793_v9, %v2118_v20  ;;  %v2121_v54 = vadd.f32 %v6547_v19, %v9256_v62 }
 0x18a   : > { %v6598_v15 = vpop.f32.mrf.mxu0  ;;  %v2042_v12 = vpop.f32.mrf.mxu1 }
 0x18b   : > { %v9375_v44 = vadd.f32 %v6595_v24, %v2121_v54  ;;  %v2119_v22 = vadd.f32 %v2042_v12, %v9269_v33 }
 0x18c   : > { %v2809_v53 = vpop.f32.mrf.mxu0  ;;  %v6550_v25 = vpop.f32.mrf.mxu1 }
 0x18d   : > { %v9378_v11 = vadd.f32 %v2796_v41, %v2119_v22  ;;  %v2124_v29 = vadd.f32 %v6550_v25, %v9276_v49 }
 0x18e   : > { %v6599_v14 = vpop.f32.mrf.mxu0  ;;  %v2055_v51 = vpop.f32.mrf.mxu1 }
 0x18f   : > { %v9381_v31 = vadd.f32 %v6598_v15, %v2124_v29  ;;  %v2122_v57 = vadd.f32 %v2055_v51, %v9279_v35 }
 0x190   : > { %v2812_v7 = vpop.f32.mrf.mxu0  ;;  %v6551_v62 = vpop.f32.mrf.mxu1 }
 0x191   : > { %v9384_v10 = vadd.f32 %v2809_v53, %v2122_v57  ;;  %v2125_v3 = vadd.f32 %v6551_v62, %v9286_v30 }
 0x192   : > { %v6602_v45 = vpop.f32.mrf.mxu0  ;;  %v2058_v33 = vpop.f32.mrf.mxu1 }
 0x193   : > { %9812 = vst [vmem:[#allocation3_spill] sm:$0xff] %v9384_v10  ;;  %v9387_v27 = vadd.f32 %v6599_v14, %v2125_v3  ;;  %v2123_v52 = vadd.f32 %v2058_v33, %v9292_v39 }
 0x194   : > { %v2825_v23 = vpop.f32.mrf.mxu0  ;;  %v6554_v49 = vpop.f32.mrf.mxu1 }
 0x195   : > { %9813 = vst [vmem:[#allocation7_spill] sm:$0xff] %v9387_v27  ;;  %v9390_v43 = vadd.f32 %v2812_v7, %v2123_v52  ;;  %v2128_v38 = vadd.f32 %v6554_v49, %v9297_v40 }
 0x196   : > { %v6603_v18 = vpop.f32.mrf.mxu0  ;;  %v2071_v35 = vpop.f32.mrf.mxu1 }
 0x197   : > { %9814 = vst [vmem:[#allocation9_spill] sm:$0xff] %v9390_v43  ;;  %v9393_v1 = vadd.f32 %v6602_v45, %v2128_v38  ;;  %v2126_v9 = vadd.f32 %v2071_v35, %v9300_v58 }
 0x198   : > { %v2828_v42 = vpop.f32.mrf.mxu0  ;;  %v6555_v30 = vpop.f32.mrf.mxu1 }
 0x199   : > { %v9396_v36 = vadd.f32 %v2825_v23, %v2126_v9  ;;  %v2129_v24 = vadd.f32 %v6555_v30, %v9303_v26 }
 0x19a   : > { %v6606_v61 = vpop.f32.mrf.mxu0  ;;  %v2074_v39 = vpop.f32.mrf.mxu1 }
 0x19b   : > { %9815 = vst [vmem:[#allocation18_spill] sm:$0xff] %v9396_v36  ;;  %v9399_v20 = vadd.f32 %v6603_v18, %v2129_v24  ;;  %v2127_v41 = vadd.f32 %v2074_v39, %v9306_v59 }
 0x19c   : > { %v2841_v19 = vpop.f32.mrf.mxu0  ;;  %v6558_v40 = vpop.f32.mrf.mxu1 }
 0x19d   : > { %9816 = vst [vmem:[#allocation13_spill] sm:$0xff] %v9399_v20  ;;  %v9402_v54 = vadd.f32 %v2828_v42, %v2127_v41  ;;  %v2132_v15 = vadd.f32 %v6558_v40, %v9309_v5 }
 0x19e   : > { %v6607_v12 = vpop.f32.mrf.mxu0  ;;  %v2087_v58 = vpop.f32.mrf.mxu1 }
 0x19f   : > { %9817 = vst [vmem:[#allocation15_spill] sm:$0xff] %v9402_v54  ;;  %v9405_v22 = vadd.f32 %v6606_v61, %v2132_v15  ;;  %v2130_v53 = vadd.f32 %v2087_v58, %v9312_v60 }
 0x1a0   : > { %v2844_v25 = vpop.f32.mrf.mxu0  ;;  %v6559_v26 = vpop.f32.mrf.mxu1 }
 0x1a1   : > { %v9408_v29 = vadd.f32 %v2841_v19, %v2130_v53  ;;  %v2133_v14 = vadd.f32 %v6559_v26, %v9315_v28 }
 0x1a2   : > { %v6674_v51 = vpop.f32.mrf.mxu0  ;;  %v2090_v59 = vpop.f32.mrf.mxu1 }
 0x1a3   : > { %9818 = vst [vmem:[#allocation17_spill] sm:$0xff] %v9408_v29  ;;  %v9411_v57 = vadd.f32 %v6607_v12, %v2133_v14  ;;  %v2131_v7 = vadd.f32 %v2090_v59, %v9318_v46 }
 0x1a4   : > { %v3614_v62 = vpop.f32.mrf.mxu0  ;;  %v6626_v5 = vpop.f32.mrf.mxu1 }
 0x1a5   : > { %9819 = vst [vmem:[#allocation20_spill] sm:$0xff] %v9411_v57  ;;  %v9414_v3 = vadd.f32 %v2844_v25, %v2131_v7  ;;  %v3356_v45 = vadd.f32 %v6626_v5, %v9321_v56 }
 0x1a6   : > { %v9417_v33 = vpop.f32.mrf.mxu0  ;;  %v3227_v60 = vpop.f32.mrf.mxu1 }
 0x1a7   : > { %9820 = vst [vmem:[#allocation2_spill] sm:$0xff] %v9414_v3  ;;  %v9419_v52 = vadd.f32 %v6674_v51, %v3356_v45  ;;  %v3354_v23 = vadd.f32 %v3227_v60, %v9324_v8 }
 0x1a8   : > { %v9422_v28 = vpop.f32.mrf.mxu0  ;;  %v9424_v49 = vpop.f32.mrf.mxu1 }
 0x1a9   : > { %v9426_v38 = vadd.f32 %v3614_v62, %v3354_v23 }
 0x1aa   : > { %v6678_v46 = vpop.f32.mrf.mxu0  ;;  %v9428_v18 = vpop.f32.mrf.mxu1 }
 0x1ac   : > { %v9430_v35 = vpop.f32.mrf.mxu0  ;;  %v6630_v9 = vpop.f32.mrf.mxu1 }
 0x1ad   : > { %v3360_v56 = vadd.f32 %v6630_v9, %v9333_v21 }
 0x1ae   : > { %v9433_v42 = vpop.f32.mrf.mxu0  ;;  %v9435_v30 = vpop.f32.mrf.mxu1 }
 0x1af   : > { %v9437_v24 = vadd.f32 %v6678_v46, %v3360_v56 }
 0x1b0   : > { %v9439_v8 = vpop.f32.mrf.mxu0  ;;  %v9441_v61 = vpop.f32.mrf.mxu1 }
 0x1b2   : > { %v6682_v39 = vpop.f32.mrf.mxu0  ;;  %v9443_v41 = vpop.f32.mrf.mxu1 }
 0x1b4   : > { %v9445_v19 = vpop.f32.mrf.mxu0  ;;  %v6634_v40 = vpop.f32.mrf.mxu1 }
 0x1b5   : > { %v3364_v15 = vadd.f32 %v6634_v40, %v9345_v0 }
 0x1b6   : > { %v9448_v12 = vpop.f32.mrf.mxu0  ;;  %v9450_v21 = vpop.f32.mrf.mxu1 }
 0x1b7   : > { %v9452_v58 = vadd.f32 %v6682_v39, %v3364_v15 }
 0x1b8   : > { %v9454_v53 = vpop.f32.mrf.mxu0  ;;  %v9456_v25 = vpop.f32.mrf.mxu1 }
 0x1ba   : > { %v6686_v26 = vpop.f32.mrf.mxu0  ;;  %v9458_v14 = vpop.f32.mrf.mxu1 }
 0x1bc   : > { %v9460_v51 = vpop.f32.mrf.mxu0  ;;  %v6638_v59 = vpop.f32.mrf.mxu1 }
 0x1bd   : > { %v3368_v7 = vadd.f32 %v6638_v59, %v9357_v16 }
 0x1be   : > { %v9463_v62 = vpop.f32.mrf.mxu0  ;;  %v9465_v0 = vpop.f32.mrf.mxu1 }
 0x1bf   : > { %v9467_v5 = vadd.f32 %v6686_v26, %v3368_v7 }
 0x1c0   : > { %v9469_v45 = vpop.f32.mrf.mxu0  ;;  %v9471_v60 = vpop.f32.mrf.mxu1 }
 0x1c2   : > { %v6690_v23 = vpop.f32.mrf.mxu0  ;;  %v9473_v46 = vpop.f32.mrf.mxu1 }
 0x1c4   : > { %v9475_v9 = vpop.f32.mrf.mxu0  ;;  %v6642_v56 = vpop.f32.mrf.mxu1 }
 0x1c5   : > { %v3372_v39 = vadd.f32 %v6642_v56, %v9369_v55 }
 0x1c6   : > { %v9478_v40 = vpop.f32.mrf.mxu0  ;;  %v9480_v16 = vpop.f32.mrf.mxu1 }
 0x1c7   : > { %v9482_v15 = vadd.f32 %v6690_v23, %v3372_v39 }
 0x1c8   : > { %v9484_v26 = vpop.f32.mrf.mxu0  ;;  %v9486_v59 = vpop.f32.mrf.mxu1 }
 0x1c9   : > { %9821 = vst [vmem:[#allocation5_spill] sm:$0xff] %v9484_v26 }
 0x1ca   : > { %v6694_v7 = vpop.f32.mrf.mxu0  ;;  %v9488_v3 = vpop.f32.mrf.mxu1 }
 0x1cc   : > { %v9490_v57 = vpop.f32.mrf.mxu0  ;;  %v6646_v29 = vpop.f32.mrf.mxu1 }
 0x1cd   : > { %9822 = vst [vmem:[#allocation4_spill] sm:$0xff] %v9490_v57  ;;  %v3376_v54 = vadd.f32 %v6646_v29, %v9381_v31 }
 0x1ce   : > { %v9493_v20 = vpop.f32.mrf.mxu0  ;;  %v9495_v55 = vpop.f32.mrf.mxu1 }
 0x1cf   : > { %9823 = vst [vmem:[#allocation6_spill] sm:$0xff] %v9493_v20  ;;  %v9497_v56 = vadd.f32 %v6694_v7, %v3376_v54 }
 0x1d0   : > { %v9499_v23 = vpop.f32.mrf.mxu0  ;;  %v9501_v39 = vpop.f32.mrf.mxu1 }
 0x1d1   : > { %9824 = vst [vmem:[#allocation8_spill] sm:$0xff] %v9497_v56  ;;  %9825 = vst [vmem:[#allocation10_spill] sm:$0xff] %v9499_v23 }
 0x1d2   : > { %9826 = vst [vmem:[#allocation11_spill] sm:$0xff] %v9501_v39  ;;  %v6698_v36 = vpop.f32.mrf.mxu0  ;;  %v9503_v43 = vpop.f32.mrf.mxu1 }
 0x1d3   : > { %9827 = vst [vmem:[#allocation12_spill] sm:$0xff] %v9503_v43 }
 0x1d4   : > { %v9505_v27 = vpop.f32.mrf.mxu0  ;;  %v6650_v10 = vpop.f32.mrf.mxu1 }
 0x1d5   : > { %9828 = vst [vmem:[#allocation14_spill] sm:$0xff] %v9505_v27  ;;  %v3380_v57 = vadd.f32 %v6650_v10, %v9393_v1 }
 0x1d6   : > { %v9508_v26 = vpop.f32.mrf.mxu0  ;;  %v9510_v31 = vpop.f32.mrf.mxu1 }
 0x1d7   : > { %9829 = vst [vmem:[#allocation16_spill] sm:$0xff] %v9508_v26  ;;  %v9512_v29 = vadd.f32 %v6698_v36, %v3380_v57 }
 0x1d8   : > { %v9514_v54 = vpop.f32.mrf.mxu0  ;;  %v9516_v7 = vpop.f32.mrf.mxu1 }
 0x1d9   : > { %9830 = vst [vmem:[#allocation19_spill] sm:$0xff] %v9512_v29  ;;  %9831 = vst [vmem:[#allocation21_spill] sm:$0xff] %v9514_v54 }
 0x1da   : > { %9832 = vst [vmem:[#allocation22_spill] sm:$0xff] %v9516_v7  ;;  %v6702_v23 = vpop.f32.mrf.mxu0  ;;  %v9518_v56 = vpop.f32.mrf.mxu1 }
 0x1db   : > { %9833 = vst [vmem:[#allocation23_spill] sm:$0xff] %v9518_v56 }
 0x1dc   : > { %v9520_v20 = vpop.f32.mrf.mxu0  ;;  %v6654_v43 = vpop.f32.mrf.mxu1 }
 0x1dd   : > { %9834 = vst [vmem:[#allocation24_spill] sm:$0xff] %v9520_v20  ;;  %v3384_v27 = vadd.f32 %v6654_v43, %v9405_v22  ;;  %v3357_v20 = vadd.f32 %v9424_v49, %v9327_v50  ;;  %v3355_v43 = vadd.f32 %v9428_v18, %v9330_v4  ;;  %v3358_v49 = vadd.f32 %v9435_v30, %v9336_v63 }
 0x1de   : > { %v9523_v39 = vpop.f32.mrf.mxu0  ;;  %v9525_v10 = vpop.f32.mrf.mxu1  ;;  %v3361_v4 = vadd.f32 %v9441_v61, %v9339_v32 }
 0x1df   : > { %9835 = vst [vmem:[#allocation25_spill] sm:$0xff] %v9523_v39  ;;  %9836 = vst [vmem:[#allocation26_spill] sm:$0xff] %v9525_v10  ;;  %v9527_v1 = vadd.f32 %v6702_v23, %v3384_v27  ;;  %v3744_v27 = vadd.f32 %v9417_v33, %v3357_v20  ;;  %v3745_v32 = vadd.f32 %v9430_v35, %v3358_v49 }
 0x1e0   : > { %v9529_v36 = vpop.f32.mrf.mxu0  ;;  %v9531_v57 = vpop.f32.mrf.mxu1  ;;  %v3748_v61 = vadd.f32 %v9433_v42, %v3361_v4  ;;  %v3365_v49 = vadd.f32 %v9456_v25, %v9351_v47 }
 0x1e1   : > { %9837 = vst [vmem:[#allocation27_spill] sm:$0xff] %v9527_v1  ;;  %9838 = vst [vmem:[#allocation28_spill] sm:$0xff] %v9529_v36 }
 0x1e2   : > { %9839 = vst [vmem:[#allocation29_spill] sm:$0xff] %v9531_v57  ;;  %v9533_v29 = vpop.f32.mrf.mxu1 }
 0x1e3   : > { %v6770_v54 = vpop.f32.mrf.mxu0  ;;  %9840 = vst [vmem:[#allocation30_spill] sm:$0xff] %v9533_v29  ;;  %v3742_v29 = vadd.f32 %v9422_v28, %v3355_v43 }
 0x1e4   : > { %v6722_v56 = vpop.f32.mrf.mxu1 }
 0x1e5   : > { %v4866_v26 = vpop.f32.mrf.mxu0  ;;  %v4497_v23 = vadd.f32 %v6722_v56, %v9419_v52 }
 0x1e6   : > { %v4368_v39 = vpop.f32.mrf.mxu1 }
 0x1e7   : > { %v6771_v22 = vpop.f32.mrf.mxu0  ;;  %v4495_v36 = vadd.f32 %v4368_v39, %v9426_v38  ;;  %v4995_v7 = vadd.f32 %v6770_v54, %v4497_v23  ;;  %v3359_v38 = vadd.f32 %v9443_v41, %v9342_v48 }
 0x1e8   : > { %v6723_v57 = vpop.f32.mrf.mxu1 }
 0x1e9   : > { %v4869_v1 = vpop.f32.mrf.mxu0  ;;  %v4498_v10 = vadd.f32 %v6723_v57, %v3744_v27  ;;  %v4993_v20 = vadd.f32 %v4866_v26, %v4495_v36  ;;  %v3746_v57 = vadd.f32 %v9439_v8, %v3359_v38  ;;  %v5225_v27 = vmul.f32 %v4995_v7, %v4995_v7 }
 0x1ea   : > { %v4371_v18 = vpop.f32.mrf.mxu1 }
 0x1eb   : > { %v6774_v50 = vpop.f32.mrf.mxu0  ;;  %v4996_v33 = vadd.f32 %v6771_v22, %v4498_v10  ;;  %v4496_v52 = vadd.f32 %v4371_v18, %v3742_v29  ;;  %v5223_v54 = vmul.f32 %v4993_v20, %v4993_v20 }
 0x1ec   : > { %v6726_v28 = vpop.f32.mrf.mxu1 }
 0x1ed   : > { %v4882_v56 = vpop.f32.mrf.mxu0  ;;  %v6065_v63 = vpack.c.bf16 %v4996_v33, %v4995_v7  ;;  %v4994_v30 = vadd.f32 %v4869_v1, %v4496_v52  ;;  %v4501_v26 = vadd.f32 %v6726_v28, %v9437_v24  ;;  %v3362_v1 = vadd.f32 %v9450_v21, %v9348_v6 }
 0x1ee   : > { %v4384_v29 = vpop.f32.mrf.mxu1  ;;  %v5226_v4 = vmul.f32 %v4996_v33, %v4996_v33 }
 0x1ef   : > { %v6775_v39 = vpop.f32.mrf.mxu0  ;;  %6137 = vst [vmem:[%s9553_s29 + $0x8] sm:$0xff] %v6065_v63   ;;  %v6060_v48 = vpack.c.bf16 %v4994_v30, %v4993_v20  ;;  %v5185_v41 = vadd.f32 %v4994_v30, %v4993_v20  ;;  %v5224_v10 = vmul.f32 %v4994_v30, %v4994_v30  ;;  %v4499_v43 = vadd.f32 %v4384_v29, %v3745_v32 }
 0x1f0   : > { %v6727_v22 = vpop.f32.mrf.mxu1  ;;  %v4999_v18 = vadd.f32 %v6774_v50, %v4501_v26  ;;  %v3749_v63 = vadd.f32 %v9445_v19, %v3362_v1  ;;  %v3752_v26 = vadd.f32 %v9448_v12, %v3365_v49 }
 0x1f1   : > { %v4885_v36 = vpop.f32.mrf.mxu0  ;;  %6061 = vst [vmem:[%s9553_s29] sm:$0xff] %v6060_v48   ;;  %v5186_v35 = vadd.f32 %v5185_v41, %v4995_v7  ;;  %v5255_v42 = vadd.f32 %v5224_v10, %v5223_v54  ;;  %v4502_v23 = vadd.f32 %v6727_v22, %v3748_v61  ;;  %v4997_v20 = vadd.f32 %v4882_v56, %v4499_v43 }
 0x1f2   : > { %v4387_v52 = vpop.f32.mrf.mxu1  ;;  %v3363_v7 = vadd.f32 %v9458_v14, %v9354_v34  ;;  %v5229_v43 = vmul.f32 %v4999_v18, %v4999_v18 }
 0x1f3   : > { %v6778_v24 = vpop.f32.mrf.mxu0  ;;  %v5256_v28 = vadd.f32 %v5255_v42, %v5225_v27  ;;  %v5187_v8 = vadd.f32 %v5186_v35, %v4996_v33  ;;  %v5000_v38 = vadd.f32 %v6775_v39, %v4502_v23  ;;  %v4500_v6 = vadd.f32 %v4387_v52, %v3746_v57 }
 0x1f4   : > { %v6730_v30 = vpop.f32.mrf.mxu1  ;;  %v5227_v61 = vmul.f32 %v4997_v20, %v4997_v20  ;;  %v3750_v10 = vadd.f32 %v9454_v53, %v3363_v7  ;;  %v3366_v57 = vadd.f32 %v9465_v0, %v9360_v37 }
 0x1f5   : > { %v4898_v21 = vpop.f32.mrf.mxu0  ;;  %v5188_v32 = vadd.f32 %v5187_v8, %v4997_v20  ;;  %v5257_v29 = vadd.f32 %v5256_v28, %v5226_v4  ;;  %v6075_v47 = vpack.c.bf16 %v5000_v38, %v4999_v18  ;;  %v4998_v50 = vadd.f32 %v4885_v36, %v4500_v6 }
 0x1f6   : > { %v4400_v56 = vpop.f32.mrf.mxu1  ;;  %v4505_v39 = vadd.f32 %v6730_v30, %v9452_v58  ;;  %v3369_v36 = vadd.f32 %v9471_v60, %v9363_v2  ;;  %v5230_v53 = vmul.f32 %v5000_v38, %v5000_v38  ;;  %v3753_v0 = vadd.f32 %v9460_v51, %v3366_v57 }
 0x1f7   : > { %v6779_v25 = vpop.f32.mrf.mxu0  ;;  %v5258_v33 = vadd.f32 %v5257_v29, %v5227_v61  ;;  %6139 = vst [vmem:[%s9553_s29 + $0x18] sm:$0xff] %v6075_v47   ;;  %v4503_v54 = vadd.f32 %v4400_v56, %v3749_v63  ;;  %v6070_v48 = vpack.c.bf16 %v4998_v50, %v4997_v20  ;;  %v5189_v41 = vadd.f32 %v5188_v32, %v4998_v50 }
 0x1f8   : > { %v5228_v34 = vmul.f32 %v4998_v50, %v4998_v50  ;;  %v6731_v14 = vpop.f32.mrf.mxu1  ;;  %v5003_v42 = vadd.f32 %v6778_v24, %v4505_v39  ;;  %v3367_v2 = vadd.f32 %v9473_v46, %v9366_v17  ;;  %v3756_v8 = vadd.f32 %v9463_v62, %v3369_v36 }
 0x1f9   : > { %v4901_v19 = vpop.f32.mrf.mxu0  ;;  %v4506_v12 = vadd.f32 %v6731_v14, %v3752_v26  ;;  %6138 = vst [vmem:[%s9553_s29 + $0x10] sm:$0xff] %v6070_v48   ;;  %v5190_v22 = vadd.f32 %v5189_v41, %v4999_v18  ;;  %v5001_v27 = vadd.f32 %v4898_v21, %v4503_v54  ;;  %v3370_v62 = vadd.f32 %v9480_v16, %v9372_v13 }
 0x1fa   : > { %v5259_v58 = vadd.f32 %v5258_v33, %v5228_v34  ;;  %v4403_v35 = vpop.f32.mrf.mxu1  ;;  %v3754_v46 = vadd.f32 %v9469_v45, %v3367_v2  ;;  %v3373_v47 = vadd.f32 %v9486_v59, %v9375_v44  ;;  %v5233_v56 = vmul.f32 %v5003_v42, %v5003_v42 }
 0x1fb   : > { %v6782_v1 = vpop.f32.mrf.mxu0  ;;  %v5004_v23 = vadd.f32 %v6779_v25, %v4506_v12  ;;  %v4504_v49 = vadd.f32 %v4403_v35, %v3750_v10  ;;  %v5191_v52 = vadd.f32 %v5190_v22, %v5000_v38  ;;  %v5231_v24 = vmul.f32 %v5001_v27, %v5001_v27 }
 0x1fc   : > { %v5260_v20 = vadd.f32 %v5259_v58, %v5229_v43  ;;  %v6734_v37 = vpop.f32.mrf.mxu1  ;;  %v3757_v16 = vadd.f32 %v9475_v9, %v3370_v62  ;;  %v3371_v44 = vadd.f32 %v9488_v3, %v9378_v11  ;;  %v3760_v36 = vadd.f32 %v9478_v40, %v3373_v47  ;;  %v9841_v3 = vld [vmem:[#allocation5_spill] sm:$0xff] }
 0x1fd   : > { %v4914_v4 = vpop.f32.mrf.mxu0  ;;  %v6085_v60 = vpack.c.bf16 %v5004_v23, %v5003_v42  ;;  %v5002_v28 = vadd.f32 %v4901_v19, %v4504_v49  ;;  %v5192_v6 = vadd.f32 %v5191_v52, %v5001_v27  ;;  %v4509_v38 = vadd.f32 %v6734_v37, %v9467_v5  ;;  %v9844_v52 = vld [vmem:[#allocation11_spill] sm:$0xff] }
 0x1fe   : > { %v5261_v21 = vadd.f32 %v5260_v20, %v5230_v53  ;;  %v4416_v63 = vpop.f32.mrf.mxu1  ;;  %v5234_v45 = vmul.f32 %v5004_v23, %v5004_v23  ;;  %v9842_v53 = vld [vmem:[#allocation3_spill] sm:$0xff] }
 0x1ff   : > { %v6783_v18 = vpop.f32.mrf.mxu0  ;;  %6141 = vst [vmem:[%s9553_s29 + $0x28] sm:$0xff] %v6085_v60   ;;  %v6080_v7 = vpack.c.bf16 %v5002_v28, %v5001_v27  ;;  %v5232_v30 = vmul.f32 %v5002_v28, %v5002_v28  ;;  %v4507_v32 = vadd.f32 %v4416_v63, %v3753_v0  ;;  %v5193_v29 = vadd.f32 %v5192_v6, %v5002_v28  ;;  %v9843_v20 = vld [vmem:[#allocation7_spill] sm:$0xff] }
 0x200   : > { %v5262_v61 = vadd.f32 %v5261_v21, %v5231_v24  ;;  %v6735_v17 = vpop.f32.mrf.mxu1  ;;  %v5007_v54 = vadd.f32 %v6782_v1, %v4509_v38  ;;  %v3374_v40 = vadd.f32 %v9495_v55, %v9842_v53  ;;  %v3377_v37 = vadd.f32 %v9844_v52, %v9843_v20  ;;  %v9855_v52 = vld [vmem:[#allocation15_spill] sm:$0xff] }
 0x201   : > { %v4917_v51 = vpop.f32.mrf.mxu0  ;;  %6140 = vst [vmem:[%s9553_s29 + $0x20] sm:$0xff] %v6080_v7   ;;  %v4510_v25 = vadd.f32 %v6735_v17, %v3756_v8  ;;  %v5194_v26 = vadd.f32 %v5193_v29, %v5003_v42  ;;  %v5005_v5 = vadd.f32 %v4914_v4, %v4507_v32  ;;  %v3758_v4 = vadd.f32 %v9841_v3, %v3371_v44  ;;  %v9845_v32 = vld [vmem:[#allocation4_spill] sm:$0xff] }
 0x202   : > { %v5263_v33 = vadd.f32 %v5262_v61, %v5232_v30  ;;  %v4419_v39 = vpop.f32.mrf.mxu1  ;;  %v5237_v60 = vmul.f32 %v5007_v54, %v5007_v54  ;;  %v9846_v61 = vld [vmem:[#allocation9_spill] sm:$0xff]  ;;  %v9847_v29 = vld [vmem:[#allocation12_spill] sm:$0xff] }
 0x203   : > { %v5008_v19 = vadd.f32 %v6783_v18, %v4510_v25  ;;  %v4508_v48 = vadd.f32 %v4419_v39, %v3754_v46  ;;  %v5195_v14 = vadd.f32 %v5194_v26, %v5004_v23  ;;  %v5235_v1 = vmul.f32 %v5005_v5, %v5005_v5  ;;  %v9848_v25 = vld [vmem:[#allocation6_spill] sm:$0xff] }
 0x204   : > { %v6786_v50 = vpop.f32.mrf.mxu0  ;;  %v5264_v34 = vadd.f32 %v5263_v33, %v5233_v56  ;;  %v6738_v13 = vpop.f32.mrf.mxu1  ;;  %v3375_v17 = vadd.f32 %v9847_v29, %v9846_v61  ;;  %v3764_v56 = vadd.f32 %v9848_v25, %v3377_v37  ;;  %v9856_v37 = vld [vmem:[#allocation23_spill] sm:$0xff] }
 0x205   : > { %v6095_v59 = vpack.c.bf16 %v5008_v19, %v5007_v54  ;;  %v5006_v10 = vadd.f32 %v4917_v51, %v4508_v48  ;;  %v5196_v12 = vadd.f32 %v5195_v14, %v5005_v5  ;;  %v4513_v35 = vadd.f32 %v6738_v13, %v9482_v15 }
 0x206   : > { %v4930_v41 = vpop.f32.mrf.mxu0  ;;  %v5265_v43 = vadd.f32 %v5264_v34, %v5234_v45  ;;  %v4432_v22 = vpop.f32.mrf.mxu1  ;;  %v5238_v7 = vmul.f32 %v5008_v19, %v5008_v19  ;;  %v3761_v51 = vadd.f32 %v9845_v32, %v3374_v40  ;;  %v9854_v40 = vld [vmem:[#allocation14_spill] sm:$0xff] }
 0x207   : > { %6143 = vst [vmem:[%s9553_s29 + $0x38] sm:$0xff] %v6095_v59   ;;  %v6090_v58 = vpack.c.bf16 %v5006_v10, %v5005_v5  ;;  %v5236_v27 = vmul.f32 %v5006_v10, %v5006_v10  ;;  %v4511_v42 = vadd.f32 %v4432_v22, %v3757_v16  ;;  %v5197_v49 = vadd.f32 %v5196_v12, %v5006_v10  ;;  %v9850_v16 = vld [vmem:[#allocation10_spill] sm:$0xff] }
 0x208   : > { %v6787_v57 = vpop.f32.mrf.mxu0  ;;  %v5266_v23 = vadd.f32 %v5265_v43, %v5235_v1  ;;  %v6739_v11 = vpop.f32.mrf.mxu1  ;;  %v5011_v6 = vadd.f32 %v6786_v50, %v4513_v35  ;;  %v3762_v44 = vadd.f32 %v9850_v16, %v3375_v17  ;;  %v9851_v59 = vld [vmem:[#allocation18_spill] sm:$0xff]  ;;  %v9859_v17 = vld [vmem:[#allocation21_spill] sm:$0xff] }
 0x209   : > { %6142 = vst [vmem:[%s9553_s29 + $0x30] sm:$0xff] %v6090_v58   ;;  %v4514_v0 = vadd.f32 %v6739_v11, %v3760_v36  ;;  %v5198_v28 = vadd.f32 %v5197_v49, %v5007_v54  ;;  %v5009_v15 = vadd.f32 %v4930_v41, %v4511_v42  ;;  %v3378_v10 = vadd.f32 %v9510_v31, %v9851_v59  ;;  %v9853_v36 = vld [vmem:[#allocation22_spill] sm:$0xff] }
 0x20a   : > { %v4933_v9 = vpop.f32.mrf.mxu0  ;;  %v5267_v18 = vadd.f32 %v5266_v23, %v5236_v27  ;;  %v4435_v8 = vpop.f32.mrf.mxu1  ;;  %v5241_v22 = vmul.f32 %v5011_v6, %v5011_v6 }
 0x20b   : > { %v5012_v24 = vadd.f32 %v6787_v57, %v4514_v0  ;;  %v4512_v21 = vadd.f32 %v4435_v8, %v3758_v4  ;;  %v5199_v38 = vadd.f32 %v5198_v28, %v5008_v19  ;;  %v5239_v50 = vmul.f32 %v5009_v15, %v5009_v15  ;;  %v9849_v19 = vld [vmem:[#allocation8_spill] sm:$0xff]  ;;  %v9852_v57 = vld [vmem:[#allocation13_spill] sm:$0xff] }
 0x20c   : > { %v6790_v2 = vpop.f32.mrf.mxu0  ;;  %v5268_v30 = vadd.f32 %v5267_v18, %v5237_v60  ;;  %v6742_v55 = vpop.f32.mrf.mxu1  ;;  %v3381_v12 = vadd.f32 %v9853_v36, %v9852_v57  ;;  %v3765_v20 = vadd.f32 %v9854_v40, %v3378_v10  ;;  %v3379_v0 = vadd.f32 %v9856_v37, %v9855_v52  ;;  %v9864_v57 = vld [vmem:[#allocation24_spill] sm:$0xff] }
 0x20d   : > { %v6105_v46 = vpack.c.bf16 %v5012_v24, %v5011_v6  ;;  %v5010_v62 = vadd.f32 %v4933_v9, %v4512_v21  ;;  %v5200_v26 = vadd.f32 %v5199_v38, %v5009_v15  ;;  %v4517_v48 = vadd.f32 %v6742_v55, %v9849_v19 }
 0x20e   : > { %v4946_v63 = vpop.f32.mrf.mxu0  ;;  %v5269_v33 = vadd.f32 %v5268_v30, %v5238_v7  ;;  %v4448_v5 = vpop.f32.mrf.mxu1  ;;  %v5242_v3 = vmul.f32 %v5012_v24, %v5012_v24 }
 0x20f   : > { %6145 = vst [vmem:[%s9553_s29 + $0x48] sm:$0xff] %v6105_v46   ;;  %v6100_v39 = vpack.c.bf16 %v5010_v62, %v5009_v15  ;;  %v5240_v54 = vmul.f32 %v5010_v62, %v5010_v62  ;;  %v4515_v41 = vadd.f32 %v4448_v5, %v3761_v51  ;;  %v5201_v14 = vadd.f32 %v5200_v26, %v5010_v62  ;;  %v9857_v15 = vld [vmem:[#allocation16_spill] sm:$0xff]  ;;  %v9860_v62 = vld [vmem:[#allocation17_spill] sm:$0xff] }
 0x210   : > { %v6791_v47 = vpop.f32.mrf.mxu0  ;;  %v5270_v34 = vadd.f32 %v5269_v33, %v5239_v50  ;;  %v6743_v13 = vpop.f32.mrf.mxu1  ;;  %v5015_v9 = vadd.f32 %v6790_v2, %v4517_v48  ;;  %v3768_v8 = vadd.f32 %v9857_v15, %v3381_v12  ;;  %v3766_v46 = vadd.f32 %v9859_v17, %v3379_v0  ;;  %v9863_v26 = vld [vmem:[#allocation29_spill] sm:$0xff]  ;;  %v9865_v12 = vld [vmem:[#allocation2_spill] sm:$0xff]  ;;  %v9869_v0 = vld [vmem:[#allocation28_spill] sm:$0xff] }
 0x211   : > { %6144 = vst [vmem:[%s9553_s29 + $0x40] sm:$0xff] %v6100_v39   ;;  %v4518_v1 = vadd.f32 %v6743_v13, %v3764_v56  ;;  %v5202_v58 = vadd.f32 %v5201_v14, %v5011_v6  ;;  %v5013_v35 = vadd.f32 %v4946_v63, %v4515_v41  ;;  %v9862_v56 = vld [vmem:[#allocation20_spill] sm:$0xff] }
 0x212   : > { %v4949_v45 = vpop.f32.mrf.mxu0  ;;  %v5271_v27 = vadd.f32 %v5270_v34, %v5240_v54  ;;  %v4451_v42 = vpop.f32.mrf.mxu1  ;;  %v3385_v50 = vadd.f32 %v9863_v26, %v9862_v56  ;;  %v5245_v39 = vmul.f32 %v5015_v9, %v5015_v9 }
 0x213   : > { %v5016_v23 = vadd.f32 %v6791_v47, %v4518_v1  ;;  %v4516_v49 = vadd.f32 %v4451_v42, %v3762_v44  ;;  %v5203_v53 = vadd.f32 %v5202_v58, %v5012_v24  ;;  %v5243_v2 = vmul.f32 %v5013_v35, %v5013_v35  ;;  %v9858_v24 = vld [vmem:[#allocation19_spill] sm:$0xff]  ;;  %v9861_v47 = vld [vmem:[#allocation26_spill] sm:$0xff] }
 0x214   : > { %v6794_v43 = vpop.f32.mrf.mxu0  ;;  %v5272_v4 = vadd.f32 %v5271_v27, %v5241_v22  ;;  %v6746_v31 = vpop.f32.mrf.mxu1  ;;  %v3382_v25 = vadd.f32 %v9861_v47, %v9860_v62  ;;  %v9866_v1 = vld [vmem:[#allocation30_spill] sm:$0xff] }
 0x215   : > { %v6115_v60 = vpack.c.bf16 %v5016_v23, %v5015_v9  ;;  %v5014_v28 = vadd.f32 %v4949_v45, %v4516_v49  ;;  %v5204_v6 = vadd.f32 %v5203_v53, %v5013_v35  ;;  %v4521_v38 = vadd.f32 %v6746_v31, %v9858_v24 }
 0x216   : > { %v4962_v11 = vpop.f32.mrf.mxu0  ;;  %v5273_v21 = vadd.f32 %v5272_v4, %v5242_v3  ;;  %v4464_v63 = vpop.f32.mrf.mxu1  ;;  %v5246_v13 = vmul.f32 %v5016_v23, %v5016_v23  ;;  %v3769_v36 = vadd.f32 %v9864_v57, %v3382_v25  ;;  %v3383_v22 = vadd.f32 %v9866_v1, %v9865_v12 }
 0x217   : > { %6147 = vst [vmem:[%s9553_s29 + $0x58] sm:$0xff] %v6115_v60   ;;  %v6110_v7 = vpack.c.bf16 %v5014_v28, %v5013_v35  ;;  %v5244_v30 = vmul.f32 %v5014_v28, %v5014_v28  ;;  %v4519_v55 = vadd.f32 %v4464_v63, %v3765_v20  ;;  %v5205_v61 = vadd.f32 %v5204_v6, %v5014_v28  ;;  %v9867_v35 = vld [vmem:[#allocation25_spill] sm:$0xff] }
 0x218   : > { %v6795_v18 = vpop.f32.mrf.mxu0  ;;  %v5274_v51 = vadd.f32 %v5273_v21, %v5243_v2  ;;  %v6747_v29 = vpop.f32.mrf.mxu1  ;;  %v5019_v45 = vadd.f32 %v6794_v43, %v4521_v38  ;;  %v3772_v42 = vadd.f32 %v9867_v35, %v3385_v50  ;;  %v3770_v60 = vadd.f32 %v9869_v0, %v3383_v22 }
 0x219   : > { %6146 = vst [vmem:[%s9553_s29 + $0x50] sm:$0xff] %v6110_v7   ;;  %v4522_v33 = vadd.f32 %v6747_v29, %v3768_v8  ;;  %v5206_v54 = vadd.f32 %v5205_v61, %v5015_v9  ;;  %v5017_v48 = vadd.f32 %v4962_v11, %v4519_v55 }
 0x21a   : > { %v4965_v32 = vpop.f32.mrf.mxu0  ;;  %v5275_v19 = vadd.f32 %v5274_v51, %v5244_v30  ;;  %v4467_v41 = vpop.f32.mrf.mxu1 }
 0x21b   : > { %v5020_v34 = vadd.f32 %v6795_v18, %v4522_v33  ;;  %v4520_v14 = vadd.f32 %v4467_v41, %v3766_v46  ;;  %v5207_v44 = vadd.f32 %v5206_v54, %v5016_v23  ;;  %v5247_v43 = vmul.f32 %v5017_v48, %v5017_v48  ;;  %v9868_v23 = vld [vmem:[#allocation27_spill] sm:$0xff] }
 0x21c   : > { %v6798_v5 = vpop.f32.mrf.mxu0  ;;  %v5276_v16 = vadd.f32 %v5275_v19, %v5245_v39  ;;  %v6750_v59 = vpop.f32.mrf.mxu1  ;;  %v5249_v18 = vmul.f32 %v5019_v45, %v5019_v45 }
 0x21d   : > { %v6125_v58 = vpack.c.bf16 %v5020_v34, %v5019_v45  ;;  %v5018_v27 = vadd.f32 %v4965_v32, %v4520_v14  ;;  %v5208_v9 = vadd.f32 %v5207_v44, %v5017_v48  ;;  %v4525_v53 = vadd.f32 %v6750_v59, %v9868_v23 }
 0x21e   : > { %v4978_v10 = vpop.f32.mrf.mxu0  ;;  %v5277_v49 = vadd.f32 %v5276_v16, %v5246_v13  ;;  %v4480_v11 = vpop.f32.mrf.mxu1  ;;  %v5250_v30 = vmul.f32 %v5020_v34, %v5020_v34 }
 0x21f   : > { %6149 = vst [vmem:[%s9553_s29 + $0x68] sm:$0xff] %v6125_v58   ;;  %v6120_v3 = vpack.c.bf16 %v5018_v27, %v5017_v48  ;;  %v5248_v4 = vmul.f32 %v5018_v27, %v5018_v27  ;;  %v4523_v31 = vadd.f32 %v4480_v11, %v3769_v36  ;;  %v5209_v20 = vadd.f32 %v5208_v9, %v5018_v27 }
 0x220   : > { %v5278_v40 = vadd.f32 %v5277_v49, %v5247_v43  ;;  %v6751_v52 = vpop.f32.mrf.mxu1  ;;  %v6799_v37 = vpop.f32.mrf.mxu0  ;;  %v5023_v21 = vadd.f32 %v6798_v5, %v4525_v53 }
 0x221   : > { %6148 = vst [vmem:[%s9553_s29 + $0x60] sm:$0xff] %v6120_v3   ;;  %v4526_v28 = vadd.f32 %v6751_v52, %v3772_v42  ;;  %v5210_v15 = vadd.f32 %v5209_v20, %v5019_v45  ;;  %v5021_v6 = vadd.f32 %v4978_v10, %v4523_v31 }
 0x222   : > { %v5279_v8 = vadd.f32 %v5278_v40, %v5248_v4  ;;  %v4483_v2 = vpop.f32.mrf.mxu1  ;;  %v4981_v55 = vpop.f32.mrf.mxu0  ;;  %v5253_v56 = vmul.f32 %v5023_v21, %v5023_v21 }
 0x223   : > { %v5024_v63 = vadd.f32 %v6799_v37, %v4526_v28  ;;  %v4524_v7 = vadd.f32 %v4483_v2, %v3770_v60  ;;  %v5211_v38 = vadd.f32 %v5210_v15, %v5020_v34  ;;  %v5251_v29 = vmul.f32 %v5021_v6, %v5021_v6 }
 0x224   : > { %v5280_v24 = vadd.f32 %v5279_v8, %v5249_v18 }
 0x225   : > { %v6135_v32 = vpack.c.bf16 %v5024_v63, %v5023_v21  ;;  %v5022_v51 = vadd.f32 %v4981_v55, %v4524_v7  ;;  %v5212_v61 = vadd.f32 %v5211_v38, %v5021_v6  ;;  %v5254_v33 = vmul.f32 %v5024_v63, %v5024_v63 }
 0x226   : > { %v5281_v17 = vadd.f32 %v5280_v24, %v5250_v30 }
 0x227   : > { %6151 = vst [vmem:[%s9553_s29 + $0x78] sm:$0xff] %v6135_v32   ;;  %v6130_v46 = vpack.c.bf16 %v5022_v51, %v5021_v6  ;;  %v5252_v62 = vmul.f32 %v5022_v51, %v5022_v51  ;;  %v5213_v25 = vadd.f32 %v5212_v61, %v5022_v51 }
 0x228   : > { %v5282_v47 = vadd.f32 %v5281_v17, %v5251_v29 }
 0x229   : > { %6150 = vst [vmem:[%s9553_s29 + $0x70] sm:$0xff] %v6130_v46   ;;  %v5214_v26 = vadd.f32 %v5213_v25, %v5023_v21 }
 0x22a   : > { %v5283_v50 = vadd.f32 %v5282_v47, %v5252_v62 }
 0x22b   : > { %v5215_v5 = vadd.f32 %v5214_v26, %v5024_v63 }
 0x22c   : > { %v5284_v39 = vadd.f32 %v5283_v50, %v5253_v56 }
 0x22d   : > { %v5216_v54 = vrot.slane %v5215_v5, 4 }
 0x22e   : > { %v5285_v19 = vadd.f32 %v5284_v39, %v5254_v33 }
 0x22f   : > { %v5217_v48 = vadd.f32 %v5216_v54, %v5215_v5 }
 0x230   : > { %v5286_v41 = vrot.slane %v5285_v19, 4 }
 0x231   : > { %v5218_v45 = vrot.slane %v5217_v48, 2 }
 0x232   : > { %v5287_v34 = vadd.f32 %v5286_v41, %v5285_v19 }
 0x233   : > { %v5219_v14 = vadd.f32 %v5218_v45, %v5217_v48 }
 0x234   : > { %v5288_v13 = vrot.slane %v5287_v34, 2 }
 0x235   : > { %v5220_v16 = vrot.slane %v5219_v14, 1 }
 0x236   : > { %v5289_v44 = vadd.f32 %v5288_v13, %v5287_v34 }
 0x237   : > { %v5221_v59 = vadd.f32 %v5220_v16, %v5219_v14 }
 0x238   : > { %v5290_v10 = vrot.slane %v5289_v44, 1 }
 0x239   : > { %5222 = vst [vmem:[%s211_s6] sm:$0x1] %v5221_v59 }
 0x23a   : > { %v5291_v57 = vadd.f32 %v5290_v10, %v5289_v44 }
 0x23c   : > { %5292 = vst [vmem:[%s214_s9] sm:$0x1] %v5291_v57 }
 0x23d PF: > { %s15_s15 = sadd.s32 1, %s6960_s15  }
 0x23e   : > { %p12_p4 = scmp.ge.s32.totalorder %s15_s15, 4  }
 0x240   :  { %14 = sbr.rel (!%p12_p4) target bundleno = 1 (0x1), region = 92 }

// kernel: _lambda_.9
= control target key start
LH: loop header
LB: loop body
LE: loop exit
PB: predicated region body
PF: predicated region fallthrough
CT: control target
= control target key end

     0   :  { %s817_s12 = smov 0   ;;  %s951_s0 = inlined_call_operand.vmem [shape: bf16[2,256,128], index: 0, kind: input, shape index: {}]   ;;  %s952_s1 = inlined_call_operand.vmem [shape: f32[1,128], index: 1, kind: input, shape index: {}]   ;;  %s953_s2 = inlined_call_operand.vmem [shape: f32[1,128], index: 2, kind: input, shape index: {}]   ;;  %s954_s3 = inlined_call_operand.vmem [shape: bf16[2,256,128], index: 3, kind: output, shape index: {}]  }
   0x1 LB: > { %s528_s13 = sadd.s32 4294967295, %s795_s12   ;;  %p532_p0 = scmp.ge.s32.totalorder %s795_s12, 1  ;;  %s795_s12 = sphi %s817_s12, %s13_s12  }
   0x2   : > { %p137_p1 = scmp.lt.s32.totalorder %s795_s12, 3 }
   0x4   : > { %p138_p2 = pnand %p532_p0, %p137_p1 }
   0x5   : > { %p161_p3 = scmp.lt.s32.totalorder (!%p138_p2), %s528_s13, 1 }
   0x6   : > { %141 = sbr.rel (%p138_p2) target bundleno = 48 (0x30), region = 32 }
   0xb   : > { %s956_s13 = smov (!%p161_p3, %s528_s13), 1  ;;  %v838_v0 = vld [vmem:[%s952_s1] ss:$0 sm:$0xff] }
   0xc   : > { %s573_s14 = sshll.u32 %s956_s13, 7  ;;  %v847_v9 = vld [vmem:[%s953_s2] ss:$0 sm:$0xff] }
   0xd   : > { %s833_s17 = scalar_lea.vmem %s951_s0, %s573_s14  ;;  %s868_s24 = scalar_lea.vmem %s954_s3, %s573_s14 }
   0xe   : > { %v608_v1 = vld [vmem:[%s833_s17] sm:$0xff]   ;;  %v751_v2 = vld [vmem:[%s833_s17 + $0x8] sm:$0xff]   ;;  %v752_v3 = vld [vmem:[%s833_s17 + $0x10] sm:$0xff]  }
   0xf   : > { %v609_v4 = vunpack.c.l.bf16 %v608_v1  ;;  %v610_v5 = vunpack.c.h.bf16 %v608_v1  ;;  %v613_v6 = vunpack.c.l.bf16 %v751_v2  ;;  %v614_v7 = vunpack.c.h.bf16 %v751_v2  ;;  %v753_v8 = vld [vmem:[%s833_s17 + $0x18] sm:$0xff]   ;;  %v754_v22 = vld [vmem:[%s833_s17 + $0x20] sm:$0xff]   ;;  %v755_v27 = vld [vmem:[%s833_s17 + $0x28] sm:$0xff]  }
  0x10   : > { %v617_v10 = vunpack.c.l.bf16 %v752_v3  ;;  %v618_v11 = vunpack.c.h.bf16 %v752_v3  ;;  %v621_v12 = vunpack.c.l.bf16 %v753_v8  ;;  %v622_v13 = vunpack.c.h.bf16 %v753_v8  ;;  %v756_v32 = vld [vmem:[%s833_s17 + $0x30] sm:$0xff]   ;;  %v757_v37 = vld [vmem:[%s833_s17 + $0x38] sm:$0xff]   ;;  %v758_v50 = vld [vmem:[%s833_s17 + $0x40] sm:$0xff]  }
  0x11   : > { %v242_v14 = vmul.f32 %v609_v4, %v838_v0  ;;  %v243_v15 = vmul.f32 %v610_v5, %v838_v0  ;;  %v244_v16 = vmul.f32 %v613_v6, %v838_v0  ;;  %v245_v17 = vmul.f32 %v614_v7, %v838_v0  ;;  %v759_v59 = vld [vmem:[%s833_s17 + $0x48] sm:$0xff]   ;;  %v760_v1 = vld [vmem:[%s833_s17 + $0x50] sm:$0xff]   ;;  %v761_v6 = vld [vmem:[%s833_s17 + $0x58] sm:$0xff]  }
  0x12   : > { %v246_v18 = vmul.f32 %v617_v10, %v838_v0  ;;  %v247_v19 = vmul.f32 %v618_v11, %v838_v0  ;;  %v248_v20 = vmul.f32 %v621_v12, %v838_v0  ;;  %v249_v21 = vmul.f32 %v622_v13, %v838_v0 }
  0x13   : > { %v281_v23 = vadd.f32 %v847_v9, %v242_v14  ;;  %v282_v24 = vadd.f32 %v847_v9, %v243_v15  ;;  %v283_v25 = vadd.f32 %v847_v9, %v244_v16  ;;  %v284_v26 = vadd.f32 %v847_v9, %v245_v17  ;;  %v762_v16 = vld [vmem:[%s833_s17 + $0x60] sm:$0xff]  }
  0x14   : > { %v285_v28 = vadd.f32 %v847_v9, %v246_v18  ;;  %v286_v29 = vadd.f32 %v847_v9, %v247_v19  ;;  %v287_v30 = vadd.f32 %v847_v9, %v248_v20  ;;  %v288_v31 = vadd.f32 %v847_v9, %v249_v21 }
  0x15   : > { %v674_v33 = vpack.c.bf16 %v282_v24, %v281_v23  ;;  %v679_v34 = vpack.c.bf16 %v284_v26, %v283_v25  ;;  %v625_v35 = vunpack.c.l.bf16 %v754_v22  ;;  %v626_v36 = vunpack.c.h.bf16 %v754_v22 }
  0x16   : > { %v684_v38 = vpack.c.bf16 %v286_v29, %v285_v28  ;;  %v689_v39 = vpack.c.bf16 %v288_v31, %v287_v30  ;;  %v629_v40 = vunpack.c.l.bf16 %v755_v27  ;;  %v630_v41 = vunpack.c.h.bf16 %v755_v27  ;;  %v763_v29 = vld [vmem:[%s833_s17 + $0x68] sm:$0xff]  }
  0x17   : > { %675 = vst [vmem:[%s868_s24] sm:$0xff] %v674_v33   ;;  %766 = vst [vmem:[%s868_s24 + $0x8] sm:$0xff] %v679_v34   ;;  %v250_v42 = vmul.f32 %v625_v35, %v838_v0  ;;  %v251_v43 = vmul.f32 %v626_v36, %v838_v0  ;;  %v633_v44 = vunpack.c.l.bf16 %v756_v32  ;;  %v634_v45 = vunpack.c.h.bf16 %v756_v32  ;;  %v764_v34 = vld [vmem:[%s833_s17 + $0x70] sm:$0xff]  }
  0x18   : > { %767 = vst [vmem:[%s868_s24 + $0x10] sm:$0xff] %v684_v38   ;;  %768 = vst [vmem:[%s868_s24 + $0x18] sm:$0xff] %v689_v39   ;;  %v252_v46 = vmul.f32 %v629_v40, %v838_v0  ;;  %v253_v47 = vmul.f32 %v630_v41, %v838_v0  ;;  %v637_v48 = vunpack.c.l.bf16 %v757_v37  ;;  %v638_v49 = vunpack.c.h.bf16 %v757_v37  ;;  %v765_v39 = vld [vmem:[%s833_s17 + $0x78] sm:$0xff]  }
  0x19   : > { %v289_v51 = vadd.f32 %v847_v9, %v250_v42  ;;  %v290_v52 = vadd.f32 %v847_v9, %v251_v43  ;;  %v254_v53 = vmul.f32 %v633_v44, %v838_v0  ;;  %v255_v54 = vmul.f32 %v634_v45, %v838_v0 }
  0x1a   : > { %v291_v55 = vadd.f32 %v847_v9, %v252_v46  ;;  %v292_v56 = vadd.f32 %v847_v9, %v253_v47  ;;  %v256_v57 = vmul.f32 %v637_v48, %v838_v0  ;;  %v257_v58 = vmul.f32 %v638_v49, %v838_v0 }
  0x1b   : > { %v694_v60 = vpack.c.bf16 %v290_v52, %v289_v51  ;;  %v293_v61 = vadd.f32 %v847_v9, %v254_v53  ;;  %v294_v62 = vadd.f32 %v847_v9, %v255_v54  ;;  %v641_v63 = vunpack.c.l.bf16 %v758_v50 }
  0x1c   : > { %v699_v2 = vpack.c.bf16 %v292_v56, %v291_v55  ;;  %v295_v3 = vadd.f32 %v847_v9, %v256_v57  ;;  %v296_v4 = vadd.f32 %v847_v9, %v257_v58  ;;  %v642_v5 = vunpack.c.h.bf16 %v758_v50 }
  0x1d   : > { %769 = vst [vmem:[%s868_s24 + $0x20] sm:$0xff] %v694_v60   ;;  %v704_v7 = vpack.c.bf16 %v294_v62, %v293_v61  ;;  %v258_v8 = vmul.f32 %v641_v63, %v838_v0  ;;  %v645_v10 = vunpack.c.l.bf16 %v759_v59  ;;  %v646_v11 = vunpack.c.h.bf16 %v759_v59 }
  0x1e   : > { %770 = vst [vmem:[%s868_s24 + $0x28] sm:$0xff] %v699_v2   ;;  %v709_v12 = vpack.c.bf16 %v296_v4, %v295_v3  ;;  %v259_v13 = vmul.f32 %v642_v5, %v838_v0  ;;  %v649_v14 = vunpack.c.l.bf16 %v760_v1  ;;  %v650_v15 = vunpack.c.h.bf16 %v760_v1 }
  0x1f   : > { %771 = vst [vmem:[%s868_s24 + $0x30] sm:$0xff] %v704_v7   ;;  %v297_v17 = vadd.f32 %v847_v9, %v258_v8  ;;  %v260_v18 = vmul.f32 %v645_v10, %v838_v0  ;;  %v261_v19 = vmul.f32 %v646_v11, %v838_v0  ;;  %v653_v20 = vunpack.c.l.bf16 %v761_v6 }
  0x20   : > { %772 = vst [vmem:[%s868_s24 + $0x38] sm:$0xff] %v709_v12   ;;  %v298_v21 = vadd.f32 %v847_v9, %v259_v13  ;;  %v262_v22 = vmul.f32 %v649_v14, %v838_v0  ;;  %v263_v23 = vmul.f32 %v650_v15, %v838_v0  ;;  %v654_v24 = vunpack.c.h.bf16 %v761_v6 }
  0x21   : > { %v299_v25 = vadd.f32 %v847_v9, %v260_v18  ;;  %v300_v26 = vadd.f32 %v847_v9, %v261_v19  ;;  %v264_v27 = vmul.f32 %v653_v20, %v838_v0  ;;  %v657_v28 = vunpack.c.l.bf16 %v762_v16 }
  0x22   : > { %v714_v30 = vpack.c.bf16 %v298_v21, %v297_v17  ;;  %v301_v31 = vadd.f32 %v847_v9, %v262_v22  ;;  %v302_v32 = vadd.f32 %v847_v9, %v263_v23  ;;  %v265_v33 = vmul.f32 %v654_v24, %v838_v0 }
  0x23   : > { %v719_v35 = vpack.c.bf16 %v300_v26, %v299_v25  ;;  %v303_v36 = vadd.f32 %v847_v9, %v264_v27  ;;  %v658_v37 = vunpack.c.h.bf16 %v762_v16  ;;  %v266_v38 = vmul.f32 %v657_v28, %v838_v0 }
  0x24   : > { %773 = vst [vmem:[%s868_s24 + $0x40] sm:$0xff] %v714_v30   ;;  %v724_v40 = vpack.c.bf16 %v302_v32, %v301_v31  ;;  %v304_v41 = vadd.f32 %v847_v9, %v265_v33  ;;  %v661_v42 = vunpack.c.l.bf16 %v763_v29  ;;  %v662_v43 = vunpack.c.h.bf16 %v763_v29 }
  0x25   : > { %774 = vst [vmem:[%s868_s24 + $0x48] sm:$0xff] %v719_v35   ;;  %v267_v44 = vmul.f32 %v658_v37, %v838_v0  ;;  %v305_v45 = vadd.f32 %v847_v9, %v266_v38  ;;  %v665_v46 = vunpack.c.l.bf16 %v764_v34  ;;  %v666_v47 = vunpack.c.h.bf16 %v764_v34 }
  0x26   : > { %775 = vst [vmem:[%s868_s24 + $0x50] sm:$0xff] %v724_v40   ;;  %v729_v48 = vpack.c.bf16 %v304_v41, %v303_v36  ;;  %v268_v49 = vmul.f32 %v661_v42, %v838_v0  ;;  %v269_v50 = vmul.f32 %v662_v43, %v838_v0  ;;  %v669_v51 = vunpack.c.l.bf16 %v765_v39 }
  0x27   : > { %v306_v52 = vadd.f32 %v847_v9, %v267_v44  ;;  %v270_v53 = vmul.f32 %v665_v46, %v838_v0  ;;  %v271_v54 = vmul.f32 %v666_v47, %v838_v0  ;;  %v670_v55 = vunpack.c.h.bf16 %v765_v39 }
  0x28   : > { %776 = vst [vmem:[%s868_s24 + $0x58] sm:$0xff] %v729_v48   ;;  %v307_v56 = vadd.f32 %v847_v9, %v268_v49  ;;  %v308_v57 = vadd.f32 %v847_v9, %v269_v50  ;;  %v272_v58 = vmul.f32 %v669_v51, %v838_v0 }
  0x29   : > { %v734_v59 = vpack.c.bf16 %v306_v52, %v305_v45  ;;  %v309_v60 = vadd.f32 %v847_v9, %v270_v53  ;;  %v310_v61 = vadd.f32 %v847_v9, %v271_v54  ;;  %v273_v62 = vmul.f32 %v670_v55, %v838_v0 }
  0x2a   : > { %v739_v63 = vpack.c.bf16 %v308_v57, %v307_v56  ;;  %v311_v1 = vadd.f32 %v847_v9, %v272_v58 }
  0x2b   : > { %777 = vst [vmem:[%s868_s24 + $0x60] sm:$0xff] %v734_v59   ;;  %v744_v2 = vpack.c.bf16 %v310_v61, %v309_v60  ;;  %v312_v3 = vadd.f32 %v847_v9, %v273_v62 }
  0x2c   : > { %778 = vst [vmem:[%s868_s24 + $0x68] sm:$0xff] %v739_v63  }
  0x2d   : > { %779 = vst [vmem:[%s868_s24 + $0x70] sm:$0xff] %v744_v2   ;;  %v749_v4 = vpack.c.bf16 %v312_v3, %v311_v1 }
  0x2f   : > { %780 = vst [vmem:[%s868_s24 + $0x78] sm:$0xff] %v749_v4  }
  0x30 PF: > { %s13_s12 = sadd.s32 1, %s795_s12  }
  0x31   : > { %p10_p4 = scmp.ge.s32.totalorder %s13_s12, 4  }
  0x33   :  { %12 = sbr.rel (!%p10_p4) target bundleno = 1 (0x1), region = 62 }

// kernel: _lambda_.11
= control target key start
LH: loop header
LB: loop body
LE: loop exit
PB: predicated region body
PF: predicated region fallthrough
CT: control target
= control target key end

     0   :  { %s1091_s15 = smov 0   ;;  %s1244_s0 = inlined_call_operand.vmem [shape: bf16[2,256,128], index: 0, kind: input, shape index: {}]   ;;  %s1245_s1 = inlined_call_operand.vmem [shape: f32[1,128], index: 1, kind: input, shape index: {}]   ;;  %s1246_s2 = inlined_call_operand.vmem [shape: f32[1,128], index: 2, kind: input, shape index: {}]   ;;  %s1247_s3 = inlined_call_operand.vmem [shape: bf16[2,256,128], index: 3, kind: input, shape index: {}]   ;;  %s1248_s4 = inlined_call_operand.vmem [shape: bf16[2,256,128], index: 4, kind: output, shape index: {}]  }
   0x1 LB: > { %s715_s16 = sadd.s32 4294967295, %s1064_s15   ;;  %p719_p0 = scmp.ge.s32.totalorder %s1064_s15, 1  ;;  %s1064_s15 = sphi %s1091_s15, %s14_s15  }
   0x2   : > { %p172_p1 = scmp.lt.s32.totalorder %s1064_s15, 3 }
   0x4   : > { %p173_p2 = pnand %p719_p0, %p172_p1 }
   0x5   : > { %p203_p3 = scmp.lt.s32.totalorder (!%p173_p2), %s715_s16, 1 }
   0x6   : > { %176 = sbr.rel (%p173_p2) target bundleno = 74 (0x4a), region = 36 }
   0xb   : > { %s1250_s16 = smov (!%p203_p3, %s715_s16), 1  ;;  %v1116_v0 = vld [vmem:[%s1245_s1] ss:$0 sm:$0xff] }
   0xc   : > { %s1099_s17 = sshll.u32 %s1250_s16, 7  ;;  %v1127_v11 = vld [vmem:[%s1246_s2] ss:$0 sm:$0xff] }
   0xd   : > { %s1105_s20 = scalar_lea.vmem %s1244_s0, %s1099_s17  ;;  %s1111_s23 = scalar_lea.vmem %s1247_s3, %s1099_s17 }
   0xe   : > { %v798_v1 = vld [vmem:[%s1105_s20] sm:$0xff]   ;;  %v1005_v3 = vld [vmem:[%s1105_s20 + $0x8] sm:$0xff]   ;;  %v1006_v9 = vld [vmem:[%s1105_s20 + $0x10] sm:$0xff]   ;;  %s1150_s30 = scalar_lea.vmem %s1248_s4, %s1099_s17 }
   0xf   : > { %v862_v2 = vld [vmem:[%s1111_s23] sm:$0xff]   ;;  %v799_v4 = vunpack.c.l.bf16 %v798_v1  ;;  %v800_v5 = vunpack.c.h.bf16 %v798_v1  ;;  %v1020_v8 = vld [vmem:[%s1111_s23 + $0x8] sm:$0xff]   ;;  %v1021_v10 = vld [vmem:[%s1111_s23 + $0x10] sm:$0xff]   ;;  %v803_v12 = vunpack.c.l.bf16 %v1005_v3  ;;  %v804_v13 = vunpack.c.h.bf16 %v1005_v3 }
  0x10   : > { %v863_v6 = vunpack.c.l.bf16 %v862_v2  ;;  %v864_v7 = vunpack.c.h.bf16 %v862_v2  ;;  %v867_v14 = vunpack.c.l.bf16 %v1020_v8  ;;  %v868_v15 = vunpack.c.h.bf16 %v1020_v8  ;;  %v1007_v20 = vld [vmem:[%s1105_s20 + $0x18] sm:$0xff]   ;;  %v1008_v46 = vld [vmem:[%s1105_s20 + $0x20] sm:$0xff]   ;;  %v1009_v56 = vld [vmem:[%s1105_s20 + $0x28] sm:$0xff]  }
  0x11   : > { %v289_v16 = vmul.f32 %v799_v4, %v1116_v0  ;;  %v290_v17 = vmul.f32 %v800_v5, %v1116_v0  ;;  %v807_v18 = vunpack.c.l.bf16 %v1006_v9  ;;  %v808_v19 = vunpack.c.h.bf16 %v1006_v9  ;;  %v1022_v41 = vld [vmem:[%s1111_s23 + $0x18] sm:$0xff]   ;;  %v1023_v51 = vld [vmem:[%s1111_s23 + $0x20] sm:$0xff]   ;;  %v1024_v61 = vld [vmem:[%s1111_s23 + $0x28] sm:$0xff]  }
  0x12   : > { %v291_v21 = vmul.f32 %v803_v12, %v1116_v0  ;;  %v292_v22 = vmul.f32 %v804_v13, %v1116_v0  ;;  %v871_v23 = vunpack.c.l.bf16 %v1021_v10  ;;  %v872_v24 = vunpack.c.h.bf16 %v1021_v10  ;;  %v1025_v8 = vld [vmem:[%s1111_s23 + $0x30] sm:$0xff]  }
  0x13   : > { %v328_v25 = vadd.f32 %v1127_v11, %v289_v16  ;;  %v329_v26 = vadd.f32 %v1127_v11, %v290_v17  ;;  %v293_v27 = vmul.f32 %v807_v18, %v1116_v0  ;;  %v294_v28 = vmul.f32 %v808_v19, %v1116_v0 }
  0x14   : > { %v330_v29 = vadd.f32 %v1127_v11, %v291_v21  ;;  %v331_v30 = vadd.f32 %v1127_v11, %v292_v22  ;;  %v811_v31 = vunpack.c.l.bf16 %v1007_v20  ;;  %v812_v32 = vunpack.c.h.bf16 %v1007_v20  ;;  %v1011_v22 = vld [vmem:[%s1105_s20 + $0x38] sm:$0xff]  }
  0x15   : > { %v424_v33 = vadd.f32 %v863_v6, %v328_v25  ;;  %v425_v34 = vadd.f32 %v864_v7, %v329_v26  ;;  %v332_v35 = vadd.f32 %v1127_v11, %v293_v27  ;;  %v333_v36 = vadd.f32 %v1127_v11, %v294_v28  ;;  %v1010_v7 = vld [vmem:[%s1105_s20 + $0x30] sm:$0xff]  }
  0x16   : > { %v426_v37 = vadd.f32 %v867_v14, %v330_v29  ;;  %v427_v38 = vadd.f32 %v868_v15, %v331_v30  ;;  %v295_v39 = vmul.f32 %v811_v31, %v1116_v0  ;;  %v296_v40 = vmul.f32 %v812_v32, %v1116_v0  ;;  %v1026_v31 = vld [vmem:[%s1111_s23 + $0x38] sm:$0xff]  }
  0x17   : > { %v456_v42 = vmax.f32 %v424_v33, 0.0  ;;  %v457_v43 = vmax.f32 %v425_v34, 0.0  ;;  %v428_v44 = vadd.f32 %v871_v23, %v332_v35  ;;  %v429_v45 = vadd.f32 %v872_v24, %v333_v36 }
  0x18   : > { %v458_v47 = vmax.f32 %v426_v37, 0.0  ;;  %v459_v48 = vmax.f32 %v427_v38, 0.0  ;;  %v334_v49 = vadd.f32 %v1127_v11, %v295_v39  ;;  %v335_v50 = vadd.f32 %v1127_v11, %v296_v40  ;;  %v1012_v40 = vld [vmem:[%s1105_s20 + $0x40] sm:$0xff]  }
  0x19   : > { %v928_v52 = vpack.c.bf16 %v457_v43, %v456_v42  ;;  %v460_v53 = vmax.f32 %v428_v44, 0.0  ;;  %v461_v54 = vmax.f32 %v429_v45, 0.0  ;;  %v875_v55 = vunpack.c.l.bf16 %v1022_v41 }
  0x1a   : > { %v933_v57 = vpack.c.bf16 %v459_v48, %v458_v47  ;;  %v876_v58 = vunpack.c.h.bf16 %v1022_v41  ;;  %v815_v59 = vunpack.c.l.bf16 %v1008_v46  ;;  %v816_v60 = vunpack.c.h.bf16 %v1008_v46 }
  0x1b   : > { %929 = vst [vmem:[%s1150_s30] sm:$0xff] %v928_v52   ;;  %v938_v62 = vpack.c.bf16 %v461_v54, %v460_v53  ;;  %v430_v63 = vadd.f32 %v875_v55, %v334_v49  ;;  %v879_v1 = vunpack.c.l.bf16 %v1023_v51  ;;  %v880_v2 = vunpack.c.h.bf16 %v1023_v51  ;;  %v1027_v49 = vld [vmem:[%s1111_s23 + $0x40] sm:$0xff]   ;;  %v1013_v54 = vld [vmem:[%s1105_s20 + $0x48] sm:$0xff]  }
  0x1c   : > { %1035 = vst [vmem:[%s1150_s30 + $0x8] sm:$0xff] %v933_v57   ;;  %v431_v3 = vadd.f32 %v876_v58, %v335_v50  ;;  %v297_v4 = vmul.f32 %v815_v59, %v1116_v0  ;;  %v298_v5 = vmul.f32 %v816_v60, %v1116_v0  ;;  %v819_v6 = vunpack.c.l.bf16 %v1009_v56 }
  0x1d   : > { %1036 = vst [vmem:[%s1150_s30 + $0x10] sm:$0xff] %v938_v62   ;;  %v462_v9 = vmax.f32 %v430_v63, 0.0  ;;  %v820_v10 = vunpack.c.h.bf16 %v1009_v56  ;;  %v883_v12 = vunpack.c.l.bf16 %v1024_v61  ;;  %v884_v13 = vunpack.c.h.bf16 %v1024_v61  ;;  %v1028_v63 = vld [vmem:[%s1111_s23 + $0x48] sm:$0xff]  }
  0x1e   : > { %v463_v14 = vmax.f32 %v431_v3, 0.0  ;;  %v336_v15 = vadd.f32 %v1127_v11, %v297_v4  ;;  %v337_v16 = vadd.f32 %v1127_v11, %v298_v5  ;;  %v299_v17 = vmul.f32 %v819_v6, %v1116_v0  ;;  %v1014_v5 = vld [vmem:[%s1105_s20 + $0x50] sm:$0xff]  }
  0x1f   : > { %v300_v18 = vmul.f32 %v820_v10, %v1116_v0  ;;  %v823_v19 = vunpack.c.l.bf16 %v1010_v7  ;;  %v824_v20 = vunpack.c.h.bf16 %v1010_v7  ;;  %v887_v21 = vunpack.c.l.bf16 %v1025_v8  ;;  %v1029_v10 = vld [vmem:[%s1111_s23 + $0x50] sm:$0xff]  }
  0x20   : > { %v943_v23 = vpack.c.bf16 %v463_v14, %v462_v9  ;;  %v432_v24 = vadd.f32 %v879_v1, %v336_v15  ;;  %v433_v25 = vadd.f32 %v880_v2, %v337_v16  ;;  %v338_v26 = vadd.f32 %v1127_v11, %v299_v17 }
  0x21   : > { %v339_v27 = vadd.f32 %v1127_v11, %v300_v18  ;;  %v301_v28 = vmul.f32 %v823_v19, %v1116_v0  ;;  %v302_v29 = vmul.f32 %v824_v20, %v1116_v0  ;;  %v888_v30 = vunpack.c.h.bf16 %v1025_v8  ;;  %v1015_v20 = vld [vmem:[%s1105_s20 + $0x58] sm:$0xff]  }
  0x22   : > { %1037 = vst [vmem:[%s1150_s30 + $0x18] sm:$0xff] %v943_v23   ;;  %v464_v32 = vmax.f32 %v432_v24, 0.0  ;;  %v465_v33 = vmax.f32 %v433_v25, 0.0  ;;  %v434_v34 = vadd.f32 %v883_v12, %v338_v26  ;;  %v827_v35 = vunpack.c.l.bf16 %v1011_v22 }
  0x23   : > { %v435_v36 = vadd.f32 %v884_v13, %v339_v27  ;;  %v340_v37 = vadd.f32 %v1127_v11, %v301_v28  ;;  %v341_v38 = vadd.f32 %v1127_v11, %v302_v29  ;;  %v828_v39 = vunpack.c.h.bf16 %v1011_v22  ;;  %v1030_v29 = vld [vmem:[%s1111_s23 + $0x58] sm:$0xff]  }
  0x24   : > { %v948_v41 = vpack.c.bf16 %v465_v33, %v464_v32  ;;  %v466_v42 = vmax.f32 %v434_v34, 0.0  ;;  %v303_v43 = vmul.f32 %v827_v35, %v1116_v0  ;;  %v891_v44 = vunpack.c.l.bf16 %v1026_v31 }
  0x25   : > { %v467_v45 = vmax.f32 %v435_v36, 0.0  ;;  %v436_v46 = vadd.f32 %v887_v21, %v340_v37  ;;  %v437_v47 = vadd.f32 %v888_v30, %v341_v38  ;;  %v304_v48 = vmul.f32 %v828_v39, %v1116_v0  ;;  %v1016_v38 = vld [vmem:[%s1105_s20 + $0x60] sm:$0xff]  }
  0x26   : > { %1038 = vst [vmem:[%s1150_s30 + $0x20] sm:$0xff] %v948_v41   ;;  %v342_v50 = vadd.f32 %v1127_v11, %v303_v43  ;;  %v892_v51 = vunpack.c.h.bf16 %v1026_v31  ;;  %v831_v52 = vunpack.c.l.bf16 %v1012_v40  ;;  %v832_v53 = vunpack.c.h.bf16 %v1012_v40  ;;  %v1031_v43 = vld [vmem:[%s1111_s23 + $0x60] sm:$0xff]  }
  0x27   : > { %v953_v55 = vpack.c.bf16 %v467_v45, %v466_v42  ;;  %v468_v56 = vmax.f32 %v436_v46, 0.0  ;;  %v469_v57 = vmax.f32 %v437_v47, 0.0  ;;  %v343_v58 = vadd.f32 %v1127_v11, %v304_v48 }
  0x28   : > { %v438_v59 = vadd.f32 %v891_v44, %v342_v50  ;;  %v305_v60 = vmul.f32 %v831_v52, %v1116_v0  ;;  %v306_v61 = vmul.f32 %v832_v53, %v1116_v0  ;;  %v895_v62 = vunpack.c.l.bf16 %v1027_v49  ;;  %v1017_v52 = vld [vmem:[%s1105_s20 + $0x68] sm:$0xff]  }
  0x29   : > { %1039 = vst [vmem:[%s1150_s30 + $0x28] sm:$0xff] %v953_v55   ;;  %v958_v1 = vpack.c.bf16 %v469_v57, %v468_v56  ;;  %v439_v2 = vadd.f32 %v892_v51, %v343_v58  ;;  %v896_v3 = vunpack.c.h.bf16 %v1027_v49  ;;  %v835_v4 = vunpack.c.l.bf16 %v1013_v54 }
  0x2a   : > { %v470_v6 = vmax.f32 %v438_v59, 0.0  ;;  %v344_v7 = vadd.f32 %v1127_v11, %v305_v60  ;;  %v345_v8 = vadd.f32 %v1127_v11, %v306_v61  ;;  %v836_v9 = vunpack.c.h.bf16 %v1013_v54  ;;  %v1032_v61 = vld [vmem:[%s1111_s23 + $0x68] sm:$0xff]  }
  0x2b   : > { %1040 = vst [vmem:[%s1150_s30 + $0x30] sm:$0xff] %v958_v1   ;;  %v471_v12 = vmax.f32 %v439_v2, 0.0  ;;  %v307_v13 = vmul.f32 %v835_v4, %v1116_v0  ;;  %v899_v14 = vunpack.c.l.bf16 %v1028_v63  ;;  %v900_v15 = vunpack.c.h.bf16 %v1028_v63 }
  0x2c   : > { %v440_v16 = vadd.f32 %v895_v62, %v344_v7  ;;  %v441_v17 = vadd.f32 %v896_v3, %v345_v8  ;;  %v308_v18 = vmul.f32 %v836_v9, %v1116_v0  ;;  %v839_v19 = vunpack.c.l.bf16 %v1014_v5  ;;  %v1018_v3 = vld [vmem:[%s1105_s20 + $0x70] sm:$0xff]  }
  0x2d   : > { %v963_v21 = vpack.c.bf16 %v471_v12, %v470_v6  ;;  %v346_v22 = vadd.f32 %v1127_v11, %v307_v13  ;;  %v840_v23 = vunpack.c.h.bf16 %v1014_v5  ;;  %v903_v24 = vunpack.c.l.bf16 %v1029_v10  ;;  %v1033_v13 = vld [vmem:[%s1111_s23 + $0x70] sm:$0xff]  }
  0x2e   : > { %v472_v25 = vmax.f32 %v440_v16, 0.0  ;;  %v473_v26 = vmax.f32 %v441_v17, 0.0  ;;  %v347_v27 = vadd.f32 %v1127_v11, %v308_v18  ;;  %v309_v28 = vmul.f32 %v839_v19, %v1116_v0 }
  0x2f   : > { %1041 = vst [vmem:[%s1150_s30 + $0x38] sm:$0xff] %v963_v21   ;;  %v442_v30 = vadd.f32 %v899_v14, %v346_v22  ;;  %v310_v31 = vmul.f32 %v840_v23, %v1116_v0  ;;  %v904_v32 = vunpack.c.h.bf16 %v1029_v10  ;;  %v843_v33 = vunpack.c.l.bf16 %v1015_v20  ;;  %v1019_v22 = vld [vmem:[%s1105_s20 + $0x78] sm:$0xff]  }
  0x30   : > { %v968_v34 = vpack.c.bf16 %v473_v26, %v472_v25  ;;  %v443_v35 = vadd.f32 %v900_v15, %v347_v27  ;;  %v348_v36 = vadd.f32 %v1127_v11, %v309_v28  ;;  %v844_v37 = vunpack.c.h.bf16 %v1015_v20  ;;  %v1034_v27 = vld [vmem:[%s1111_s23 + $0x78] sm:$0xff]  }
  0x31   : > { %v474_v39 = vmax.f32 %v442_v30, 0.0  ;;  %v349_v40 = vadd.f32 %v1127_v11, %v310_v31  ;;  %v311_v41 = vmul.f32 %v843_v33, %v1116_v0  ;;  %v907_v42 = vunpack.c.l.bf16 %v1030_v29 }
  0x32   : > { %1042 = vst [vmem:[%s1150_s30 + $0x40] sm:$0xff] %v968_v34   ;;  %v475_v44 = vmax.f32 %v443_v35, 0.0  ;;  %v444_v45 = vadd.f32 %v903_v24, %v348_v36  ;;  %v312_v46 = vmul.f32 %v844_v37, %v1116_v0  ;;  %v908_v47 = vunpack.c.h.bf16 %v1030_v29 }
  0x33   : > { %v445_v48 = vadd.f32 %v904_v32, %v349_v40  ;;  %v350_v49 = vadd.f32 %v1127_v11, %v311_v41  ;;  %v847_v50 = vunpack.c.l.bf16 %v1016_v38  ;;  %v848_v51 = vunpack.c.h.bf16 %v1016_v38 }
  0x34   : > { %v973_v53 = vpack.c.bf16 %v475_v44, %v474_v39  ;;  %v476_v54 = vmax.f32 %v444_v45, 0.0  ;;  %v351_v55 = vadd.f32 %v1127_v11, %v312_v46  ;;  %v911_v56 = vunpack.c.l.bf16 %v1031_v43 }
  0x35   : > { %v477_v57 = vmax.f32 %v445_v48, 0.0  ;;  %v446_v58 = vadd.f32 %v907_v42, %v350_v49  ;;  %v313_v59 = vmul.f32 %v847_v50, %v1116_v0  ;;  %v314_v60 = vmul.f32 %v848_v51, %v1116_v0 }
  0x36   : > { %1043 = vst [vmem:[%s1150_s30 + $0x48] sm:$0xff] %v973_v53   ;;  %v447_v62 = vadd.f32 %v908_v47, %v351_v55  ;;  %v912_v63 = vunpack.c.h.bf16 %v1031_v43  ;;  %v851_v1 = vunpack.c.l.bf16 %v1017_v52  ;;  %v852_v2 = vunpack.c.h.bf16 %v1017_v52 }
  0x37   : > { %v978_v4 = vpack.c.bf16 %v477_v57, %v476_v54  ;;  %v478_v5 = vmax.f32 %v446_v58, 0.0  ;;  %v352_v6 = vadd.f32 %v1127_v11, %v313_v59  ;;  %v353_v7 = vadd.f32 %v1127_v11, %v314_v60 }
  0x38   : > { %v479_v8 = vmax.f32 %v447_v62, 0.0  ;;  %v315_v9 = vmul.f32 %v851_v1, %v1116_v0  ;;  %v316_v10 = vmul.f32 %v852_v2, %v1116_v0  ;;  %v915_v12 = vunpack.c.l.bf16 %v1032_v61 }
  0x39   : > { %1044 = vst [vmem:[%s1150_s30 + $0x50] sm:$0xff] %v978_v4   ;;  %v448_v14 = vadd.f32 %v911_v56, %v352_v6  ;;  %v449_v15 = vadd.f32 %v912_v63, %v353_v7  ;;  %v916_v16 = vunpack.c.h.bf16 %v1032_v61  ;;  %v855_v17 = vunpack.c.l.bf16 %v1018_v3 }
  0x3a   : > { %v983_v18 = vpack.c.bf16 %v479_v8, %v478_v5  ;;  %v354_v19 = vadd.f32 %v1127_v11, %v315_v9  ;;  %v355_v20 = vadd.f32 %v1127_v11, %v316_v10  ;;  %v856_v21 = vunpack.c.h.bf16 %v1018_v3 }
  0x3b   : > { %v480_v23 = vmax.f32 %v448_v14, 0.0  ;;  %v481_v24 = vmax.f32 %v449_v15, 0.0  ;;  %v317_v25 = vmul.f32 %v855_v17, %v1116_v0  ;;  %v919_v26 = vunpack.c.l.bf16 %v1033_v13 }
  0x3c   : > { %1045 = vst [vmem:[%s1150_s30 + $0x58] sm:$0xff] %v983_v18   ;;  %v450_v28 = vadd.f32 %v915_v12, %v354_v19  ;;  %v451_v29 = vadd.f32 %v916_v16, %v355_v20  ;;  %v318_v30 = vmul.f32 %v856_v21, %v1116_v0  ;;  %v920_v31 = vunpack.c.h.bf16 %v1033_v13 }
  0x3d   : > { %v988_v32 = vpack.c.bf16 %v481_v24, %v480_v23  ;;  %v356_v33 = vadd.f32 %v1127_v11, %v317_v25  ;;  %v859_v34 = vunpack.c.l.bf16 %v1019_v22  ;;  %v860_v35 = vunpack.c.h.bf16 %v1019_v22 }
  0x3e   : > { %v482_v36 = vmax.f32 %v450_v28, 0.0  ;;  %v483_v37 = vmax.f32 %v451_v29, 0.0  ;;  %v357_v38 = vadd.f32 %v1127_v11, %v318_v30  ;;  %v923_v39 = vunpack.c.l.bf16 %v1034_v27 }
  0x3f   : > { %1046 = vst [vmem:[%s1150_s30 + $0x60] sm:$0xff] %v988_v32   ;;  %v452_v40 = vadd.f32 %v919_v26, %v356_v33  ;;  %v319_v41 = vmul.f32 %v859_v34, %v1116_v0  ;;  %v320_v42 = vmul.f32 %v860_v35, %v1116_v0  ;;  %v924_v43 = vunpack.c.h.bf16 %v1034_v27 }
  0x40   : > { %v993_v44 = vpack.c.bf16 %v483_v37, %v482_v36  ;;  %v453_v45 = vadd.f32 %v920_v31, %v357_v38 }
  0x41   : > { %v484_v46 = vmax.f32 %v452_v40, 0.0  ;;  %v358_v47 = vadd.f32 %v1127_v11, %v319_v41  ;;  %v359_v48 = vadd.f32 %v1127_v11, %v320_v42 }
  0x42   : > { %1047 = vst [vmem:[%s1150_s30 + $0x68] sm:$0xff] %v993_v44   ;;  %v485_v49 = vmax.f32 %v453_v45, 0.0 }
  0x43   : > { %v454_v50 = vadd.f32 %v923_v39, %v358_v47  ;;  %v455_v51 = vadd.f32 %v924_v43, %v359_v48 }
  0x44   : > { %v998_v52 = vpack.c.bf16 %v485_v49, %v484_v46 }
  0x45   : > { %v486_v53 = vmax.f32 %v454_v50, 0.0  ;;  %v487_v54 = vmax.f32 %v455_v51, 0.0 }
  0x46   : > { %1048 = vst [vmem:[%s1150_s30 + $0x70] sm:$0xff] %v998_v52  }
  0x47   : > { %v1003_v55 = vpack.c.bf16 %v487_v54, %v486_v53 }
  0x49   : > { %1049 = vst [vmem:[%s1150_s30 + $0x78] sm:$0xff] %v1003_v55  }
  0x4a PF: > { %s14_s15 = sadd.s32 1, %s1064_s15  }
  0x4b   : > { %p11_p4 = scmp.ge.s32.totalorder %s14_s15, 4  }
  0x4d   :  { %13 = sbr.rel (!%p11_p4) target bundleno = 1 (0x1), region = 69 }

</bundles_post_ra>
